<compile_context>
chip_gen: v7x
topology: tpu7x:2x2x1
jax: 0.10.0
libtpu: 0.0.40
codegen_flags: <defaults>
</compile_context>

<pallas_src>
import functools

import numpy as np
import jax
import jax.numpy as jnp
from jax.experimental import pallas as pl
from jax.experimental.pallas import tpu as pltpu


def _round_up(x, m):
    return (x + m - 1) // m * m


# ----------------------------------------------------------------------------
# Pallas kernel 1: tiled matmul + bias (+ReLU) for the large-M outer layers
# ----------------------------------------------------------------------------
def _matmul_bias_kernel(x_ref, w_ref, b_ref, o_ref, *, relu):
    # bf16 inputs, f32 accumulation on the MXU; bias/ReLU epilogue in f32.
    acc = jnp.dot(x_ref[...], w_ref[...], preferred_element_type=jnp.float32)
    acc = acc + b_ref[...]
    if relu:
        acc = jnp.maximum(acc, 0.0)
    o_ref[...] = acc.astype(o_ref.dtype)


def _pick_tm(m):
    if m <= 128:
        return 128
    if m <= 512:
        return 256
    return 512


def pallas_matmul_bias(x, w, b, *, relu, out_dtype=jnp.float32):
    """y = x @ w + b (+optional ReLU).  w: (K, N) bf16, b: (1, N) f32 -- unpadded."""
    M, K = x.shape
    Kw, N = w.shape
    assert Kw == K
    tm = _pick_tm(M)
    Mp = _round_up(M, tm)
    xb = x.astype(jnp.bfloat16)
    if Mp != M:
        xb = jnp.pad(xb, ((0, Mp - M), (0, 0)))
    out = pl.pallas_call(
        functools.partial(_matmul_bias_kernel, relu=relu),
        out_shape=jax.ShapeDtypeStruct((Mp, N), out_dtype),
        grid=(Mp // tm,),
        in_specs=[
            pl.BlockSpec((tm, K), lambda i: (i, 0)),   # K equals full array dim (no pad)
            pl.BlockSpec((K, N), lambda i: (0, 0)),
            pl.BlockSpec((1, N), lambda i: (0, 0)),
        ],
        out_specs=pl.BlockSpec((tm, N), lambda i: (i, 0)),   # lane-exact output (no slice)
        compiler_params=pltpu.CompilerParams(dimension_semantics=("parallel",)),
    )(xb, w, b)
    return out[:M] if Mp != M else out


# ----------------------------------------------------------------------------
# Pallas kernel 2: fused VMEM-resident middle of the network
#   conv3 -> conv4 -> fc_mu/fc_logvar -> reparametrize -> fc_dec -> convT4 -> convT3
# Spatial gathers / flatten / pixel-shuffles are 0/1 selection matmuls on the MXU.
# ----------------------------------------------------------------------------
def _middle_kernel(p3_ref, eps_ref,
                   w3_ref, b3_ref,
                   s4_ref, w4_ref, b4_ref,
                   renc_ref, wml_ref, bml_ref,
                   rdec_ref, wdc_ref, bdc_ref,
                   st4_ref, wt4_ref, bt4_ref,
                   pp4_ref, pe4_ref,
                   st3_ref, wt3_ref, bt3_ref,
                   pp3_ref, pe3_ref,
                   mu_ref, lv_ref, at3_ref):
    f32, bf16 = jnp.float32, jnp.bfloat16

    def dot(a, b):
        return jnp.dot(a, b, preferred_element_type=f32)

    # conv3: patches were im2col'd outside (one matmul) + bias + ReLU.
    a3 = jnp.maximum(dot(p3_ref[...], w3_ref[...]) + b3_ref[...], 0.0)
    a3 = a3.astype(bf16)                                          # (B*36, 64), rows (b,h,w)

    # conv4 (4x4, stride 2): 16 taps; each tap = row-select matmul then per-tap weight.
    acc = jnp.zeros((s4_ref.shape[1], 64), f32)
    for t in range(16):
        g = dot(s4_ref[t], a3).astype(bf16)                       # (B*4, 64)
        acc = acc + dot(g, w4_ref[t])
    a4 = jnp.maximum(acc + b4_ref[...], 0.0).astype(bf16)         # (B*4, 64), rows (b,h,w)

    # fc_mu / fc_logvar with PyTorch's channel-major view(-1, 256) folded into weights.
    acc = jnp.zeros((renc_ref.shape[1], 256), f32)
    for hw in range(4):
        g = dot(renc_ref[hw], a4).astype(bf16)                    # (B, 64)
        acc = acc + dot(g, wml_ref[hw])
    mulv = acc + bml_ref[...]                                     # (B, 256) = [mu | logvar]
    mu = mulv[:, :128]
    lv = mulv[:, 128:]
    z = (mu + eps_ref[...] * jnp.exp(0.5 * lv)).astype(bf16)      # reparametrize, (B, 128)

    # fc_dec (linear), un-flattened straight into decoder spatial layout (b,h,w) x 64.
    acc = jnp.zeros((rdec_ref.shape[1], 64), f32)
    for hw in range(4):
        g = dot(z, wdc_ref[hw]).astype(bf16)                      # (B, 64)
        acc = acc + dot(rdec_ref[hw], g)
    d4 = (acc + bdc_ref[...]).astype(bf16)                        # (B*4, 64)

    # convT4 (k=4, s=2) via sub-pixel decomposition: 4 taps -> (B*9, 4 phases x 64).
    acc = jnp.zeros((st4_ref.shape[1], 256), f32)
    for t in range(4):
        g = dot(st4_ref[t], d4).astype(bf16)
        acc = acc + dot(g, wt4_ref[t])
    yt4 = jnp.maximum(acc + bt4_ref[...], 0.0).astype(bf16)       # (B*9, 256)

    # in-kernel pixel shuffle back to spatial rows (B*36, 64) for convT3.
    acc = jnp.zeros((pp4_ref.shape[1], 64), f32)
    for ph in range(4):
        g = dot(yt4, pe4_ref[ph]).astype(bf16)                    # (B*9, 64)
        acc = acc + dot(pp4_ref[ph], g)
    at4 = acc.astype(bf16)                                        # (B*36, 64)

    # convT3: 4 sub-pixel taps -> (B*49, 4 phases x 32), + bias + ReLU.
    acc = jnp.zeros((st3_ref.shape[1], 128), f32)
    for t in range(4):
        g = dot(st3_ref[t], at4).astype(bf16)
        acc = acc + dot(g, wt3_ref[t])
    yt3 = jnp.maximum(acc + bt3_ref[...], 0.0).astype(bf16)       # (B*49, 128)

    # pixel shuffle to spatial rows (B*196, 32): feeds convT2's im2col directly.
    acc = jnp.zeros((pp3_ref.shape[1], 32), f32)
    for ph in range(4):
        g = dot(yt3, pe3_ref[ph]).astype(bf16)                    # (B*49, 32)
        acc = acc + dot(pp3_ref[ph], g)

    mu_ref[...] = mu
    lv_ref[...] = lv
    at3_ref[...] = acc.astype(at3_ref.dtype)


@functools.lru_cache(maxsize=None)
def _middle_selectors(B):
    """0/1 gather / placement matrices (batch-block-diagonal) for the fused middle."""
    # conv4: 4x4 stride-2 taps on a 6x6 input -> 2x2 output.
    s4 = np.zeros((16, B * 4, B * 36), np.float32)
    for i in range(4):
        for j in range(4):
            for b in range(B):
                for oh in range(2):
                    for ow in range(2):
                        s4[i * 4 + j, (b * 2 + oh) * 2 + ow,
                           (b * 6 + 2 * oh + i) * 6 + 2 * ow + j] = 1.0

    # PyTorch channel-major flatten (encoder) / unflatten (decoder) selectors.
    r_enc = np.zeros((4, B, B * 4), np.float32)
    r_dec = np.zeros((4, B * 4, B), np.float32)
    for hw in range(4):
        for b in range(B):
            r_enc[hw, b, b * 4 + hw] = 1.0
            r_dec[hw, b * 4 + hw, b] = 1.0

    def convt_taps(H):
        # sub-pixel taps for ConvTranspose2d(k=4, s=2, p=0): xpad[m+a, n+c] gather.
        OH = H + 1
        S = np.zeros((4, B * OH * OH, B * H * H), np.float32)
        for a in range(2):
            for c in range(2):
                for b in range(B):
                    for m in range(OH):
                        for n in range(OH):
                            u, v = m + a - 1, n + c - 1
                            if 0 <= u < H and 0 <= v < H:
                                S[a * 2 + c, (b * OH + m) * OH + n,
                                  (b * H + u) * H + v] = 1.0
        return S

    def shuffle_mats(OH, C):
        # phase (p,q) lanes -> interleaved spatial rows (2m+p, 2n+q).
        H2 = 2 * OH
        P = np.zeros((4, B * H2 * H2, B * OH * OH), np.float32)
        E = np.zeros((4, 4 * C, C), np.float32)
        for p in range(2):
            for q in range(2):
                ph = p * 2 + q
                E[ph, ph * C:(ph + 1) * C, :] = np.eye(C, dtype=np.float32)
                for b in range(B):
                    for m in range(OH):
                        for n in range(OH):
                            P[ph, (b * H2 + 2 * m + p) * H2 + 2 * n + q,
                              (b * OH + m) * OH + n] = 1.0
        return P, E

    st4 = convt_taps(2)                 # (4, B*9,  B*4)
    pp4, pe4 = shuffle_mats(3, 64)      # (4, B*36, B*9), (4, 256, 64)
    st3 = convt_taps(6)                 # (4, B*49, B*36)
    pp3, pe3 = shuffle_mats(7, 32)      # (4, B*196, B*49), (4, 128, 32)
    return dict(s4=s4, r_enc=r_enc, r_dec=r_dec, st4=st4, pp4=pp4, pe4=pe4,
                st3=st3, pp3=pp3, pe3=pe3)


def fused_middle(patches3, eps_pad, prep, B):
    sel = {k: jnp.asarray(v, jnp.bfloat16) for k, v in _middle_selectors(B).items()}
    bdec4 = jnp.tile(prep["fc_dec_b_hw"], (B, 1))                 # (B*4, 64) f32
    mu, lv, at3 = pl.pallas_call(
        _middle_kernel,
        out_shape=(jax.ShapeDtypeStruct((B, 128), jnp.float32),
                   jax.ShapeDtypeStruct((B, 128), jnp.float32),
                   jax.ShapeDtypeStruct((B * 196, 32), jnp.bfloat16)),
    )(patches3.astype(jnp.bfloat16), eps_pad,
      prep["conv3_w"], prep["conv3_b"],
      sel["s4"], prep["conv4_w"], prep["conv4_b"],
      sel["r_enc"], prep["fc_mulv_w"], prep["fc_mulv_b"],
      sel["r_dec"], prep["fc_dec_w"], bdec4,
      sel["st4"], prep["convT4_w"], prep["convT4_b"],
      sel["pp4"], sel["pe4"],
      sel["st3"], prep["convT3_w"], prep["convT3_b"],
      sel["pp3"], sel["pe3"])
    return mu, lv, at3


# ----------------------------------------------------------------------------
# im2col-based conv / sub-pixel conv-transpose for the big outer layers
# (patch construction / pixel shuffle for these large tensors stays in XLA)
# ----------------------------------------------------------------------------
def _im2col(x, kh, kw, stride):
    # x: (N, H, W, C) -> (N, OH, OW, kh*kw*C), patch order: (i, j) outer, c inner.
    N, H, W, C = x.shape
    OH = (H - kh) // stride + 1
    OW = (W - kw) // stride + 1
    cols = []
    for i in range(kh):
        for j in range(kw):
            cols.append(x[:, i:i + stride * OH:stride, j:j + stride * OW:stride, :])
    return jnp.concatenate(cols, axis=-1), OH, OW


def conv2d(x_nhwc, w, b, stride, *, relu, out_dtype):
    B = x_nhwc.shape[0]
    n_out = w.shape[1]
    patches, OH, OW = _im2col(x_nhwc.astype(jnp.bfloat16), 4, 4, stride)
    Y = pallas_matmul_bias(patches.reshape(B * OH * OW, -1), w, b,
                           relu=relu, out_dtype=out_dtype)
    return Y.reshape(B, OH, OW, n_out)


def conv_transpose2d(x_nhwc, w, b, b_raw, output_padding, *, relu, out_dtype):
    """ConvTranspose2d(k=4, s=2, p=0) via sub-pixel decomposition.

    out[2m+p, 2n+q, co] = sum_{ci,a,c in {0,1}} xpad[m+a, n+c, ci] * w[ci,co, p+2(1-a), q+2(1-c)]
    -> one stride-1 2x2-tap matmul producing all 4 phases, then a pixel-shuffle.
    """
    B, H, W, _ = x_nhwc.shape
    n_out = w.shape[1] // 4
    xp = jnp.pad(x_nhwc.astype(jnp.bfloat16), ((0, 0), (1, 1), (1, 1), (0, 0)))
    patches, OH, OW = _im2col(xp, 2, 2, 1)            # OH = H+1, OW = W+1
    Y = pallas_matmul_bias(patches.reshape(B * OH * OW, -1), w, b,
                           relu=relu, out_dtype=out_dtype)
    Y = Y.reshape(B, OH, OW, 2, 2, n_out)             # (..., p, q, co)
    Y = jnp.transpose(Y, (0, 1, 3, 2, 4, 5)).reshape(B, 2 * OH, 2 * OW, n_out)
    if output_padding:
        # Extra rows/cols added by output_padding receive no taps -> bias only.
        pad_val = (jnp.maximum(b_raw, 0.0) if relu else b_raw).astype(Y.dtype)
        row = jnp.broadcast_to(pad_val, (B, output_padding, 2 * OW, n_out))
        Y = jnp.concatenate([Y, row], axis=1)
        col = jnp.broadcast_to(pad_val, (B, 2 * OH + output_padding, output_padding, n_out))
        Y = jnp.concatenate([Y, col], axis=2)
    return Y


# ----------------------------------------------------------------------------
# Parameter init (PyTorch layout) and one-time weight packing
# ----------------------------------------------------------------------------
def init_params(key, n_latent=10, img_channels=1):
    def normal(k, shape, fan_in):
        return jax.random.normal(k, shape, jnp.float32) * jnp.sqrt(2.0 / fan_in)

    ks = jax.random.split(key, 11)
    p = {}
    p["conv1_w"] = normal(ks[0], (32, img_channels, 4, 4), img_channels * 16)
    p["conv2_w"] = normal(ks[1], (32, 32, 4, 4), 32 * 16)
    p["conv3_w"] = normal(ks[2], (64, 32, 4, 4), 32 * 16)
    p["conv4_w"] = normal(ks[3], (64, 64, 4, 4), 64 * 16)
    for n in ("conv1", "conv2", "conv3", "conv4"):
        p[n + "_b"] = jnp.zeros((p[n + "_w"].shape[0],), jnp.float32)
    p["fc_mu_w"] = normal(ks[4], (n_latent, 256), 256)
    p["fc_mu_b"] = jnp.zeros((n_latent,), jnp.float32)
    p["fc_lv_w"] = normal(ks[5], (n_latent, 256), 256)
    p["fc_lv_b"] = jnp.zeros((n_latent,), jnp.float32)
    p["fc_dec_w"] = normal(ks[6], (256, n_latent), n_latent)
    p["fc_dec_b"] = jnp.zeros((256,), jnp.float32)
    p["convT4_w"] = normal(ks[7], (64, 64, 4, 4), 64 * 16)
    p["convT3_w"] = normal(ks[8], (64, 32, 4, 4), 64 * 16)
    p["convT2_w"] = normal(ks[9], (32, 32, 4, 4), 32 * 16)
    p["convT1_w"] = normal(ks[10], (32, img_channels, 4, 4), 32 * 16)
    p["convT4_b"] = jnp.zeros((64,), jnp.float32)
    p["convT3_b"] = jnp.zeros((32,), jnp.float32)
    p["convT2_b"] = jnp.zeros((32,), jnp.float32)
    p["convT1_b"] = jnp.zeros((img_channels,), jnp.float32)
    return p


def prepare_params(raw, n_latent, img_channels):
    """One-time packing: transpose to matmul layout, cast to bf16.  No K/N padding."""
    assert n_latent <= 128
    prep = {}
    # outer encoder convs: W_mat[(i*4 + j)*Cin + ci, co] = w[co, ci, i, j]
    for name in ("conv1", "conv2"):
        w = raw[name + "_w"]                                  # (O, I, 4, 4)
        O, I, kh, kw = w.shape
        w_mat = jnp.transpose(w, (2, 3, 1, 0)).reshape(kh * kw * I, O)
        prep[name + "_w"] = w_mat.astype(jnp.bfloat16)
        prep[name + "_b"] = raw[name + "_b"].reshape(1, O).astype(jnp.float32)
    # outer transpose convs, sub-pixel:
    # Wsub[(a*2 + c)*Cin + ci, (p*2 + q)*Cout + co] = w[ci, co, p + 2*(1-a), q + 2*(1-c)]
    for name in ("convT2", "convT1"):
        w = raw[name + "_w"]                                  # (Cin, Cout, 4, 4)
        Cin, Cout = w.shape[:2]
        wr = w.reshape(Cin, Cout, 2, 2, 2, 2)[:, :, ::-1, :, ::-1, :]
        w_mat = jnp.transpose(wr, (2, 4, 0, 3, 5, 1)).reshape(4 * Cin, 4 * Cout)
        prep[name + "_w"] = w_mat.astype(jnp.bfloat16)
        prep[name + "_b"] = jnp.tile(raw[name + "_b"], 4).reshape(1, 4 * Cout).astype(jnp.float32)
        prep[name + "_braw"] = raw[name + "_b"].astype(jnp.float32)
    # fused middle: conv3 (im2col weight) and conv4 (per-tap weights)
    prep["conv3_w"] = jnp.transpose(raw["conv3_w"], (2, 3, 1, 0)).reshape(512, 64).astype(jnp.bfloat16)
    prep["conv3_b"] = raw["conv3_b"].reshape(1, 64).astype(jnp.float32)
    prep["conv4_w"] = jnp.transpose(raw["conv4_w"], (2, 3, 1, 0)).reshape(16, 64, 64).astype(jnp.bfloat16)
    prep["conv4_b"] = raw["conv4_b"].reshape(1, 64).astype(jnp.float32)
    # fc_mu / fc_logvar with PyTorch channel-major flatten folded in: (4, 64, 256),
    # lanes [0:128) = mu head, [128:256) = logvar head.
    wml = jnp.zeros((4, 64, 256), jnp.float32)
    for hw in range(4):
        wml = wml.at[hw, :, :n_latent].set(raw["fc_mu_w"][:, hw::4].T)
        wml = wml.at[hw, :, 128:128 + n_latent].set(raw["fc_lv_w"][:, hw::4].T)
    prep["fc_mulv_w"] = wml.astype(jnp.bfloat16)
    bml = jnp.zeros((1, 256), jnp.float32)
    bml = bml.at[0, :n_latent].set(raw["fc_mu_b"]).at[0, 128:128 + n_latent].set(raw["fc_lv_b"])
    prep["fc_mulv_b"] = bml
    # fc_dec folded with channel-major unflatten: (4, 128, 64) + bias in (hw, c) layout.
    wdc = jnp.zeros((4, 128, 64), jnp.float32)
    for hw in range(4):
        wdc = wdc.at[hw, :n_latent, :].set(raw["fc_dec_w"][hw::4, :].T)
    prep["fc_dec_w"] = wdc.astype(jnp.bfloat16)
    prep["fc_dec_b_hw"] = jnp.stack([raw["fc_dec_b"][hw::4] for hw in range(4)], 0).astype(jnp.float32)
    # fused transpose convs (per-tap sub-pixel weights): (4, Cin, 4*Cout)
    for name, cout in (("convT4", 64), ("convT3", 32)):
        w = raw[name + "_w"]
        Cin = w.shape[0]
        wr = w.reshape(Cin, cout, 2, 2, 2, 2)[:, :, ::-1, :, ::-1, :]
        w_mat = jnp.transpose(wr, (2, 4, 0, 3, 5, 1)).reshape(4, Cin, 4 * cout)
        prep[name + "_w"] = w_mat.astype(jnp.bfloat16)
        prep[name + "_b"] = jnp.tile(raw[name + "_b"], 4).reshape(1, 4 * cout).astype(jnp.float32)
    return prep


# ----------------------------------------------------------------------------
# Forward pass (matches PyTorch staticVAE64.forward)
# ----------------------------------------------------------------------------
def static_vae64_forward(x_nchw, prep, eps, *, n_latent):
    B = x_nchw.shape[0]
    bf16 = jnp.bfloat16

    x = jnp.transpose(x_nchw, (0, 2, 3, 1))                      # NHWC
    # ---- encoder outer layers (large M) ----
    x = conv2d(x, prep["conv1_w"], prep["conv1_b"], 2, relu=True, out_dtype=bf16)  # 64 -> 31
    x = conv2d(x, prep["conv2_w"], prep["conv2_b"], 2, relu=True, out_dtype=bf16)  # 31 -> 14

    # ---- fused VMEM-resident middle: conv3 .. convT3 (+ fc heads + reparametrize) ----
    patches3, _, _ = _im2col(x, 4, 4, 2)                         # (B, 6, 6, 512)
    patches3 = patches3.reshape(B * 36, 512)
    eps_pad = jnp.pad(eps.astype(jnp.float32), ((0, 0), (0, 128 - n_latent)))
    mu, logvar, at3 = fused_middle(patches3, eps_pad, prep, B)
    d = at3.reshape(B, 14, 14, 32)                               # convT3 output, NHWC rows

    # ---- decoder outer layers ----
    d = conv_transpose2d(d, prep["convT2_w"], prep["convT2_b"], prep["convT2_braw"],
                         1, relu=True, out_dtype=bf16)           # 14 -> 31 (output_padding=1)
    d = conv_transpose2d(d, prep["convT1_w"], prep["convT1_b"], prep["convT1_braw"],
                         0, relu=True, out_dtype=jnp.float32)    # 31 -> 64 (torch: relu(convT1))
    recon = jnp.transpose(d, (0, 3, 1, 2))                       # back to NCHW
    return recon, mu[:, :n_latent], logvar[:, :n_latent]


if __name__ == "__main__":
    n_latent = 10
    img_channels = 1
    batch = 2

    key = jax.random.PRNGKey(0)
    k_x, k_eps, k_params = jax.random.split(key, 3)

    # spatial size is fixed at 64x64 by the architecture (fc layers expect 256 features)
    x = jax.random.normal(k_x, (batch, img_channels, 64, 64), jnp.float32)
    # TODO(synk): torch.randn_like (reparametrize noise) is drawn here with jax.random
    # and passed in explicitly so the kernel stays deterministic.
    eps = jax.random.normal(k_eps, (batch, n_latent), jnp.float32)

    raw = init_params(k_params, n_latent=n_latent, img_channels=img_channels)
    prep = prepare_params(raw, n_latent, img_channels)   # one-time weight packing
    prep = jax.tree_util.tree_map(jax.device_put, prep)

    fwd = jax.jit(functools.partial(static_vae64_forward, n_latent=n_latent))
    recon, mu, logvar = fwd(x, prep, eps)
    jax.block_until_ready((recon, mu, logvar))

    assert recon.shape == (batch, img_channels, 64, 64)
    assert mu.shape == (batch, n_latent)
    assert logvar.shape == (batch, n_latent)
    print("KERNEL_OK")
</pallas_src>

<mosaic_0001>
module attributes {stable_mosaic.version = 11 : i64} {
  func.func @_matmul_bias_kernel(%arg0: i32, %arg1: memref<512x16xbf16, #tpu.memory_space<vmem>>, %arg2: memref<16x32xbf16, #tpu.memory_space<vmem>>, %arg3: memref<1x32xf32, #tpu.memory_space<vmem>>, %arg4: memref<512x32xbf16, #tpu.memory_space<vmem>>) attributes {dimension_semantics = [#tpu.dimension_semantics<parallel>], iteration_bounds = array<i64: 4>, scalar_prefetch = 0 : i64, scratch_operands = 0 : i64, tpu.core_type = #tpu.core_type<tc>, window_params = [{transform_indices = @transform_0, window_bounds = array<i64: 512, 16>}, {pipeline_mode = #tpu.pipeline_mode<synchronous>, transform_indices = @transform_1, window_bounds = array<i64: 16, 32>}, {pipeline_mode = #tpu.pipeline_mode<synchronous>, transform_indices = @transform_2, window_bounds = array<i64: 1, 32>}, {transform_indices = @transform_3, window_bounds = array<i64: 512, 32>}]} {
    %c0 = arith.constant 0 : index
    %c0_0 = arith.constant 0 : index
    %0 = vector.load %arg1[%c0, %c0_0] : memref<512x16xbf16, #tpu.memory_space<vmem>>, vector<512x16xbf16>
    %c0_1 = arith.constant 0 : index
    %c0_2 = arith.constant 0 : index
    %1 = vector.load %arg2[%c0_1, %c0_2] : memref<16x32xbf16, #tpu.memory_space<vmem>>, vector<16x32xbf16>
    %cst = arith.constant dense<0.000000e+00> : vector<512x32xf32>
    %2 = tpu.matmul %0, %1, %cst {dimension_numbers = #tpu.dot_dimension_numbers<[1], [0], [0], [1], [0, 0, 1, 1], [], []>} : vector<512x16xbf16>, vector<16x32xbf16>, vector<512x32xf32> -> vector<512x32xf32>
    %c0_3 = arith.constant 0 : index
    %c0_4 = arith.constant 0 : index
    %3 = vector.load %arg3[%c0_3, %c0_4] : memref<1x32xf32, #tpu.memory_space<vmem>>, vector<1x32xf32>
    %4 = vector.broadcast %3 : vector<1x32xf32> to vector<512x32xf32>
    %5 = arith.addf %2, %4 : vector<512x32xf32>
    %cst_5 = arith.constant 0.000000e+00 : f32
    %6 = vector.broadcast %cst_5 : f32 to vector<512x32xf32>
    %7 = arith.maximumf %5, %6 : vector<512x32xf32>
    %8 = arith.truncf %7 : vector<512x32xf32> to vector<512x32xbf16>
    %c0_6 = arith.constant 0 : index
    %c0_7 = arith.constant 0 : index
    %9 = vector.load %arg4[%c0_6, %c0_7] : memref<512x32xbf16, #tpu.memory_space<vmem>>, vector<512x32xbf16>
    tpu.vector_store %arg4[%c0_6, %c0_7], %8 {strides = array<i32>} : memref<512x32xbf16, #tpu.memory_space<vmem>>, vector<512x32xbf16>,
    return
  }
  func.func @transform_0(%arg0: i32) -> (i32, i32) {
    %c0_i32 = arith.constant 0 : i32
    %c0_i32_0 = arith.constant 0 : i32
    return %arg0, %c0_i32 : i32, i32
  }
  func.func @transform_1(%arg0: i32) -> (i32, i32) {
    %c0_i32 = arith.constant 0 : i32
    %c0_i32_0 = arith.constant 0 : i32
    %c0_i32_1 = arith.constant 0 : i32
    return %c0_i32, %c0_i32_0 : i32, i32
  }
  func.func @transform_2(%arg0: i32) -> (i32, i32) {
    %c0_i32 = arith.constant 0 : i32
    %c0_i32_0 = arith.constant 0 : i32
    %c0_i32_1 = arith.constant 0 : i32
    return %c0_i32, %c0_i32_0 : i32, i32
  }
  func.func @transform_3(%arg0: i32) -> (i32, i32) {
    %c0_i32 = arith.constant 0 : i32
    %c0_i32_0 = arith.constant 0 : i32
    return %arg0, %c0_i32 : i32, i32
  }
}

module attributes {stable_mosaic.version = 11 : i64} {
  func.func @_matmul_bias_kernel(%arg0: i32, %arg1: memref<256x512xbf16, #tpu.memory_space<vmem>>, %arg2: memref<512x32xbf16, #tpu.memory_space<vmem>>, %arg3: memref<1x32xf32, #tpu.memory_space<vmem>>, %arg4: memref<256x32xbf16, #tpu.memory_space<vmem>>) attributes {dimension_semantics = [#tpu.dimension_semantics<parallel>], iteration_bounds = array<i64: 2>, scalar_prefetch = 0 : i64, scratch_operands = 0 : i64, tpu.core_type = #tpu.core_type<tc>, window_params = [{transform_indices = @transform_0, window_bounds = array<i64: 256, 512>}, {pipeline_mode = #tpu.pipeline_mode<synchronous>, transform_indices = @transform_1, window_bounds = array<i64: 512, 32>}, {pipeline_mode = #tpu.pipeline_mode<synchronous>, transform_indices = @transform_2, window_bounds = array<i64: 1, 32>}, {transform_indices = @transform_3, window_bounds = array<i64: 256, 32>}]} {
    %c0 = arith.constant 0 : index
    %c0_0 = arith.constant 0 : index
    %0 = vector.load %arg1[%c0, %c0_0] : memref<256x512xbf16, #tpu.memory_space<vmem>>, vector<256x512xbf16>
    %c0_1 = arith.constant 0 : index
    %c0_2 = arith.constant 0 : index
    %1 = vector.load %arg2[%c0_1, %c0_2] : memref<512x32xbf16, #tpu.memory_space<vmem>>, vector<512x32xbf16>
    %cst = arith.constant dense<0.000000e+00> : vector<256x32xf32>
    %2 = tpu.matmul %0, %1, %cst {dimension_numbers = #tpu.dot_dimension_numbers<[1], [0], [0], [1], [0, 0, 1, 1], [], []>} : vector<256x512xbf16>, vector<512x32xbf16>, vector<256x32xf32> -> vector<256x32xf32>
    %c0_3 = arith.constant 0 : index
    %c0_4 = arith.constant 0 : index
    %3 = vector.load %arg3[%c0_3, %c0_4] : memref<1x32xf32, #tpu.memory_space<vmem>>, vector<1x32xf32>
    %4 = vector.broadcast %3 : vector<1x32xf32> to vector<256x32xf32>
    %5 = arith.addf %2, %4 : vector<256x32xf32>
    %cst_5 = arith.constant 0.000000e+00 : f32
    %6 = vector.broadcast %cst_5 : f32 to vector<256x32xf32>
    %7 = arith.maximumf %5, %6 : vector<256x32xf32>
    %8 = arith.truncf %7 : vector<256x32xf32> to vector<256x32xbf16>
    %c0_6 = arith.constant 0 : index
    %c0_7 = arith.constant 0 : index
    %9 = vector.load %arg4[%c0_6, %c0_7] : memref<256x32xbf16, #tpu.memory_space<vmem>>, vector<256x32xbf16>
    tpu.vector_store %arg4[%c0_6, %c0_7], %8 {strides = array<i32>} : memref<256x32xbf16, #tpu.memory_space<vmem>>, vector<256x32xbf16>,
    return
  }
  func.func @transform_0(%arg0: i32) -> (i32, i32) {
    %c0_i32 = arith.constant 0 : i32
    %c0_i32_0 = arith.constant 0 : i32
    return %arg0, %c0_i32 : i32, i32
  }
  func.func @transform_1(%arg0: i32) -> (i32, i32) {
    %c0_i32 = arith.constant 0 : i32
    %c0_i32_0 = arith.constant 0 : i32
    %c0_i32_1 = arith.constant 0 : i32
    return %c0_i32, %c0_i32_0 : i32, i32
  }
  func.func @transform_2(%arg0: i32) -> (i32, i32) {
    %c0_i32 = arith.constant 0 : i32
    %c0_i32_0 = arith.constant 0 : i32
    %c0_i32_1 = arith.constant 0 : i32
    return %c0_i32, %c0_i32_0 : i32, i32
  }
  func.func @transform_3(%arg0: i32) -> (i32, i32) {
    %c0_i32 = arith.constant 0 : i32
    %c0_i32_0 = arith.constant 0 : i32
    return %arg0, %c0_i32 : i32, i32
  }
}

module attributes {stable_mosaic.version = 11 : i64} {
  func.func @_middle_kernel(%arg0: memref<72x512xbf16, #tpu.memory_space<vmem>>, %arg1: memref<2x128xf32, #tpu.memory_space<vmem>>, %arg2: memref<512x64xbf16, #tpu.memory_space<vmem>>, %arg3: memref<1x64xf32, #tpu.memory_space<vmem>>, %arg4: memref<16x8x72xbf16, #tpu.memory_space<vmem>>, %arg5: memref<16x64x64xbf16, #tpu.memory_space<vmem>>, %arg6: memref<1x64xf32, #tpu.memory_space<vmem>>, %arg7: memref<4x2x8xbf16, #tpu.memory_space<vmem>>, %arg8: memref<4x64x256xbf16, #tpu.memory_space<vmem>>, %arg9: memref<1x256xf32, #tpu.memory_space<vmem>>, %arg10: memref<4x8x2xbf16, #tpu.memory_space<vmem>>, %arg11: memref<4x128x64xbf16, #tpu.memory_space<vmem>>, %arg12: memref<8x64xf32, #tpu.memory_space<vmem>>, %arg13: memref<4x18x8xbf16, #tpu.memory_space<vmem>>, %arg14: memref<4x64x256xbf16, #tpu.memory_space<vmem>>, %arg15: memref<1x256xf32, #tpu.memory_space<vmem>>, %arg16: memref<4x72x18xbf16, #tpu.memory_space<vmem>>, %arg17: memref<4x256x64xbf16, #tpu.memory_space<vmem>>, %arg18: memref<4x98x72xbf16, #tpu.memory_space<vmem>>, %arg19: memref<4x64x128xbf16, #tpu.memory_space<vmem>>, %arg20: memref<1x128xf32, #tpu.memory_space<vmem>>, %arg21: memref<4x392x98xbf16, #tpu.memory_space<vmem>>, %arg22: memref<4x128x32xbf16, #tpu.memory_space<vmem>>, %arg23: memref<2x128xf32, #tpu.memory_space<vmem>>, %arg24: memref<2x128xf32, #tpu.memory_space<vmem>>, %arg25: memref<392x32xbf16, #tpu.memory_space<vmem>>) attributes {dimension_semantics = [], scalar_prefetch = 0 : i64, scratch_operands = 0 : i64, tpu.core_type = #tpu.core_type<tc>} {
    %c0 = arith.constant 0 : index
    %c0_0 = arith.constant 0 : index
    %0 = vector.load %arg0[%c0, %c0_0] : memref<72x512xbf16, #tpu.memory_space<vmem>>, vector<72x512xbf16>
    %c0_1 = arith.constant 0 : index
    %c0_2 = arith.constant 0 : index
    %1 = vector.load %arg2[%c0_1, %c0_2] : memref<512x64xbf16, #tpu.memory_space<vmem>>, vector<512x64xbf16>
    %cst = arith.constant dense<0.000000e+00> : vector<72x64xf32>
    %2 = tpu.matmul %0, %1, %cst {dimension_numbers = #tpu.dot_dimension_numbers<[1], [0], [0], [1], [0, 0, 1, 1], [], []>} : vector<72x512xbf16>, vector<512x64xbf16>, vector<72x64xf32> -> vector<72x64xf32>
    %c0_3 = arith.constant 0 : index
    %c0_4 = arith.constant 0 : index
    %3 = vector.load %arg3[%c0_3, %c0_4] : memref<1x64xf32, #tpu.memory_space<vmem>>, vector<1x64xf32>
    %4 = vector.broadcast %3 : vector<1x64xf32> to vector<72x64xf32>
    %5 = arith.addf %2, %4 : vector<72x64xf32>
    %cst_5 = arith.constant 0.000000e+00 : f32
    %6 = vector.broadcast %cst_5 : f32 to vector<72x64xf32>
    %7 = arith.maximumf %5, %6 : vector<72x64xf32>
    %8 = arith.truncf %7 : vector<72x64xf32> to vector<72x64xbf16>
    %cst_6 = arith.constant 0.000000e+00 : f32
    %9 = vector.broadcast %cst_6 : f32 to vector<8x64xf32>
    %c0_7 = arith.constant 0 : index
    %c0_8 = arith.constant 0 : index
    %c0_9 = arith.constant 0 : index
    %10 = vector.load %arg4[%c0_7, %c0_8, %c0_9] : memref<16x8x72xbf16, #tpu.memory_space<vmem>>, vector<1x8x72xbf16>
    %11 = vector.shape_cast %10 : vector<1x8x72xbf16> to vector<8x72xbf16>
    %cst_10 = arith.constant dense<0.000000e+00> : vector<8x64xf32>
    %12 = tpu.matmul %11, %8, %cst_10 {dimension_numbers = #tpu.dot_dimension_numbers<[1], [0], [0], [1], [0, 0, 1, 1], [], []>} : vector<8x72xbf16>, vector<72x64xbf16>, vector<8x64xf32> -> vector<8x64xf32>
    %13 = arith.truncf %12 : vector<8x64xf32> to vector<8x64xbf16>
    %c0_11 = arith.constant 0 : index
    %c0_12 = arith.constant 0 : index
    %c0_13 = arith.constant 0 : index
    %14 = vector.load %arg5[%c0_11, %c0_12, %c0_13] : memref<16x64x64xbf16, #tpu.memory_space<vmem>>, vector<1x64x64xbf16>
    %15 = vector.shape_cast %14 : vector<1x64x64xbf16> to vector<64x64xbf16>
    %cst_14 = arith.constant dense<0.000000e+00> : vector<8x64xf32>
    %16 = tpu.matmul %13, %15, %cst_14 {dimension_numbers = #tpu.dot_dimension_numbers<[1], [0], [0], [1], [0, 0, 1, 1], [], []>} : vector<8x64xbf16>, vector<64x64xbf16>, vector<8x64xf32> -> vector<8x64xf32>
    %17 = arith.addf %9, %16 : vector<8x64xf32>
    %c1 = arith.constant 1 : index
    %c0_15 = arith.constant 0 : index
    %c0_16 = arith.constant 0 : index
    %18 = vector.load %arg4[%c1, %c0_15, %c0_16] : memref<16x8x72xbf16, #tpu.memory_space<vmem>>, vector<1x8x72xbf16>
    %19 = vector.shape_cast %18 : vector<1x8x72xbf16> to vector<8x72xbf16>
    %cst_17 = arith.constant dense<0.000000e+00> : vector<8x64xf32>
    %20 = tpu.matmul %19, %8, %cst_17 {dimension_numbers = #tpu.dot_dimension_numbers<[1], [0], [0], [1], [0, 0, 1, 1], [], []>} : vector<8x72xbf16>, vector<72x64xbf16>, vector<8x64xf32> -> vector<8x64xf32>
    %21 = arith.truncf %20 : vector<8x64xf32> to vector<8x64xbf16>
    %c1_18 = arith.constant 1 : index
    %c0_19 = arith.constant 0 : index
    %c0_20 = arith.constant 0 : index
    %22 = vector.load %arg5[%c1_18, %c0_19, %c0_20] : memref<16x64x64xbf16, #tpu.memory_space<vmem>>, vector<1x64x64xbf16>
    %23 = vector.shape_cast %22 : vector<1x64x64xbf16> to vector<64x64xbf16>
    %cst_21 = arith.constant dense<0.000000e+00> : vector<8x64xf32>
    %24 = tpu.matmul %21, %23, %cst_21 {dimension_numbers = #tpu.dot_dimension_numbers<[1], [0], [0], [1], [0, 0, 1, 1], [], []>} : vector<8x64xbf16>, vector<64x64xbf16>, vector<8x64xf32> -> vector<8x64xf32>
    %25 = arith.addf %17, %24 : vector<8x64xf32>
    %c2 = arith.constant 2 : index
    %c0_22 = arith.constant 0 : index
    %c0_23 = arith.constant 0 : index
    %26 = vector.load %arg4[%c2, %c0_22, %c0_23] : memref<16x8x72xbf16, #tpu.memory_space<vmem>>, vector<1x8x72xbf16>
    %27 = vector.shape_cast %26 : vector<1x8x72xbf16> to vector<8x72xbf16>
    %cst_24 = arith.constant dense<0.000000e+00> : vector<8x64xf32>
    %28 = tpu.matmul %27, %8, %cst_24 {dimension_numbers = #tpu.dot_dimension_numbers<[1], [0], [0], [1], [0, 0, 1, 1], [], []>} : vector<8x72xbf16>, vector<72x64xbf16>, vector<8x64xf32> -> vector<8x64xf32>
    %29 = arith.truncf %28 : vector<8x64xf32> to vector<8x64xbf16>
    %c2_25 = arith.constant 2 : index
    %c0_26 = arith.constant 0 : index
    %c0_27 = arith.constant 0 : index
    %30 = vector.load %arg5[%c2_25, %c0_26, %c0_27] : memref<16x64x64xbf16, #tpu.memory_space<vmem>>, vector<1x64x64xbf16>
    %31 = vector.shape_cast %30 : vector<1x64x64xbf16> to vector<64x64xbf16>
    %cst_28 = arith.constant dense<0.000000e+00> : vector<8x64xf32>
    %32 = tpu.matmul %29, %31, %cst_28 {dimension_numbers = #tpu.dot_dimension_numbers<[1], [0], [0], [1], [0, 0, 1, 1], [], []>} : vector<8x64xbf16>, vector<64x64xbf16>, vector<8x64xf32> -> vector<8x64xf32>
    %33 = arith.addf %25, %32 : vector<8x64xf32>
    %c3 = arith.constant 3 : index
    %c0_29 = arith.constant 0 : index
    %c0_30 = arith.constant 0 : index
    %34 = vector.load %arg4[%c3, %c0_29, %c0_30] : memref<16x8x72xbf16, #tpu.memory_space<vmem>>, vector<1x8x72xbf16>
    %35 = vector.shape_cast %34 : vector<1x8x72xbf16> to vector<8x72xbf16>
    %cst_31 = arith.constant dense<0.000000e+00> : vector<8x64xf32>
    %36 = tpu.matmul %35, %8, %cst_31 {dimension_numbers = #tpu.dot_dimension_numbers<[1], [0], [0], [1], [0, 0, 1, 1], [], []>} : vector<8x72xbf16>, vector<72x64xbf16>, vector<8x64xf32> -> vector<8x64xf32>
    %37 = arith.truncf %36 : vector<8x64xf32> to vector<8x64xbf16>
    %c3_32 = arith.constant 3 : index
    %c0_33 = arith.constant 0 : index
    %c0_34 = arith.constant 0 : index
    %38 = vector.load %arg5[%c3_32, %c0_33, %c0_34] : memref<16x64x64xbf16, #tpu.memory_space<vmem>>, vector<1x64x64xbf16>
    %39 = vector.shape_cast %38 : vector<1x64x64xbf16> to vector<64x64xbf16>
    %cst_35 = arith.constant dense<0.000000e+00> : vector<8x64xf32>
    %40 = tpu.matmul %37, %39, %cst_35 {dimension_numbers = #tpu.dot_dimension_numbers<[1], [0], [0], [1], [0, 0, 1, 1], [], []>} : vector<8x64xbf16>, vector<64x64xbf16>, vector<8x64xf32> -> vector<8x64xf32>
    %41 = arith.addf %33, %40 : vector<8x64xf32>
    %c4 = arith.constant 4 : index
    %c0_36 = arith.constant 0 : index
    %c0_37 = arith.constant 0 : index
    %42 = vector.load %arg4[%c4, %c0_36, %c0_37] : memref<16x8x72xbf16, #tpu.memory_space<vmem>>, vector<1x8x72xbf16>
    %43 = vector.shape_cast %42 : vector<1x8x72xbf16> to vector<8x72xbf16>
    %cst_38 = arith.constant dense<0.000000e+00> : vector<8x64xf32>
    %44 = tpu.matmul %43, %8, %cst_38 {dimension_numbers = #tpu.dot_dimension_numbers<[1], [0], [0], [1], [0, 0, 1, 1], [], []>} : vector<8x72xbf16>, vector<72x64xbf16>, vector<8x64xf32> -> vector<8x64xf32>
    %45 = arith.truncf %44 : vector<8x64xf32> to vector<8x64xbf16>
    %c4_39 = arith.constant 4 : index
    %c0_40 = arith.constant 0 : index
    %c0_41 = arith.constant 0 : index
    %46 = vector.load %arg5[%c4_39, %c0_40, %c0_41] : memref<16x64x64xbf16, #tpu.memory_space<vmem>>, vector<1x64x64xbf16>
    %47 = vector.shape_cast %46 : vector<1x64x64xbf16> to vector<64x64xbf16>
    %cst_42 = arith.constant dense<0.000000e+00> : vector<8x64xf32>
    %48 = tpu.matmul %45, %47, %cst_42 {dimension_numbers = #tpu.dot_dimension_numbers<[1], [0], [0], [1], [0, 0, 1, 1], [], []>} : vector<8x64xbf16>, vector<64x64xbf16>, vector<8x64xf32> -> vector<8x64xf32>
    %49 = arith.addf %41, %48 : vector<8x64xf32>
    %c5 = arith.constant 5 : index
    %c0_43 = arith.constant 0 : index
    %c0_44 = arith.constant 0 : index
    %50 = vector.load %arg4[%c5, %c0_43, %c0_44] : memref<16x8x72xbf16, #tpu.memory_space<vmem>>, vector<1x8x72xbf16>
    %51 = vector.shape_cast %50 : vector<1x8x72xbf16> to vector<8x72xbf16>
    %cst_45 = arith.constant dense<0.000000e+00> : vector<8x64xf32>
    %52 = tpu.matmul %51, %8, %cst_45 {dimension_numbers = #tpu.dot_dimension_numbers<[1], [0], [0], [1], [0, 0, 1, 1], [], []>} : vector<8x72xbf16>, vector<72x64xbf16>, vector<8x64xf32> -> vector<8x64xf32>
    %53 = arith.truncf %52 : vector<8x64xf32> to vector<8x64xbf16>
    %c5_46 = arith.constant 5 : index
    %c0_47 = arith.constant 0 : index
    %c0_48 = arith.constant 0 : index
    %54 = vector.load %arg5[%c5_46, %c0_47, %c0_48] : memref<16x64x64xbf16, #tpu.memory_space<vmem>>, vector<1x64x64xbf16>
    %55 = vector.shape_cast %54 : vector<1x64x64xbf16> to vector<64x64xbf16>
    %cst_49 = arith.constant dense<0.000000e+00> : vector<8x64xf32>
    %56 = tpu.matmul %53, %55, %cst_49 {dimension_numbers = #tpu.dot_dimension_numbers<[1], [0], [0], [1], [0, 0, 1, 1], [], []>} : vector<8x64xbf16>, vector<64x64xbf16>, vector<8x64xf32> -> vector<8x64xf32>
    %57 = arith.addf %49, %56 : vector<8x64xf32>
    %c6 = arith.constant 6 : index
    %c0_50 = arith.constant 0 : index
    %c0_51 = arith.constant 0 : index
    %58 = vector.load %arg4[%c6, %c0_50, %c0_51] : memref<16x8x72xbf16, #tpu.memory_space<vmem>>, vector<1x8x72xbf16>
    %59 = vector.shape_cast %58 : vector<1x8x72xbf16> to vector<8x72xbf16>
    %cst_52 = arith.constant dense<0.000000e+00> : vector<8x64xf32>
    %60 = tpu.matmul %59, %8, %cst_52 {dimension_numbers = #tpu.dot_dimension_numbers<[1], [0], [0], [1], [0, 0, 1, 1], [], []>} : vector<8x72xbf16>, vector<72x64xbf16>, vector<8x64xf32> -> vector<8x64xf32>
    %61 = arith.truncf %60 : vector<8x64xf32> to vector<8x64xbf16>
    %c6_53 = arith.constant 6 : index
    %c0_54 = arith.constant 0 : index
    %c0_55 = arith.constant 0 : index
    %62 = vector.load %arg5[%c6_53, %c0_54, %c0_55] : memref<16x64x64xbf16, #tpu.memory_space<vmem>>, vector<1x64x64xbf16>
    %63 = vector.shape_cast %62 : vector<1x64x64xbf16> to vector<64x64xbf16>
    %cst_56 = arith.constant dense<0.000000e+00> : vector<8x64xf32>
    %64 = tpu.matmul %61, %63, %cst_56 {dimension_numbers = #tpu.dot_dimension_numbers<[1], [0], [0], [1], [0, 0, 1, 1], [], []>} : vector<8x64xbf16>, vector<64x64xbf16>, vector<8x64xf32> -> vector<8x64xf32>
    %65 = arith.addf %57, %64 : vector<8x64xf32>
    %c7 = arith.constant 7 : index
    %c0_57 = arith.constant 0 : index
    %c0_58 = arith.constant 0 : index
    %66 = vector.load %arg4[%c7, %c0_57, %c0_58] : memref<16x8x72xbf16, #tpu.memory_space<vmem>>, vector<1x8x72xbf16>
    %67 = vector.shape_cast %66 : vector<1x8x72xbf16> to vector<8x72xbf16>
    %cst_59 = arith.constant dense<0.000000e+00> : vector<8x64xf32>
    %68 = tpu.matmul %67, %8, %cst_59 {dimension_numbers = #tpu.dot_dimension_numbers<[1], [0], [0], [1], [0, 0, 1, 1], [], []>} : vector<8x72xbf16>, vector<72x64xbf16>, vector<8x64xf32> -> vector<8x64xf32>
    %69 = arith.truncf %68 : vector<8x64xf32> to vector<8x64xbf16>
    %c7_60 = arith.constant 7 : index
    %c0_61 = arith.constant 0 : index
    %c0_62 = arith.constant 0 : index
    %70 = vector.load %arg5[%c7_60, %c0_61, %c0_62] : memref<16x64x64xbf16, #tpu.memory_space<vmem>>, vector<1x64x64xbf16>
    %71 = vector.shape_cast %70 : vector<1x64x64xbf16> to vector<64x64xbf16>
    %cst_63 = arith.constant dense<0.000000e+00> : vector<8x64xf32>
    %72 = tpu.matmul %69, %71, %cst_63 {dimension_numbers = #tpu.dot_dimension_numbers<[1], [0], [0], [1], [0, 0, 1, 1], [], []>} : vector<8x64xbf16>, vector<64x64xbf16>, vector<8x64xf32> -> vector<8x64xf32>
    %73 = arith.addf %65, %72 : vector<8x64xf32>
    %c8 = arith.constant 8 : index
    %c0_64 = arith.constant 0 : index
    %c0_65 = arith.constant 0 : index
    %74 = vector.load %arg4[%c8, %c0_64, %c0_65] : memref<16x8x72xbf16, #tpu.memory_space<vmem>>, vector<1x8x72xbf16>
    %75 = vector.shape_cast %74 : vector<1x8x72xbf16> to vector<8x72xbf16>
    %cst_66 = arith.constant dense<0.000000e+00> : vector<8x64xf32>
    %76 = tpu.matmul %75, %8, %cst_66 {dimension_numbers = #tpu.dot_dimension_numbers<[1], [0], [0], [1], [0, 0, 1, 1], [], []>} : vector<8x72xbf16>, vector<72x64xbf16>, vector<8x64xf32> -> vector<8x64xf32>
    %77 = arith.truncf %76 : vector<8x64xf32> to vector<8x64xbf16>
    %c8_67 = arith.constant 8 : index
    %c0_68 = arith.constant 0 : index
    %c0_69 = arith.constant 0 : index
    %78 = vector.load %arg5[%c8_67, %c0_68, %c0_69] : memref<16x64x64xbf16, #tpu.memory_space<vmem>>, vector<1x64x64xbf16>
    %79 = vector.shape_cast %78 : vector<1x64x64xbf16> to vector<64x64xbf16>
    %cst_70 = arith.constant dense<0.000000e+00> : vector<8x64xf32>
    %80 = tpu.matmul %77, %79, %cst_70 {dimension_numbers = #tpu.dot_dimension_numbers<[1], [0], [0], [1], [0, 0, 1, 1], [], []>} : vector<8x64xbf16>, vector<64x64xbf16>, vector<8x64xf32> -> vector<8x64xf32>
    %81 = arith.addf %73, %80 : vector<8x64xf32>
    %c9 = arith.constant 9 : index
    %c0_71 = arith.constant 0 : index
    %c0_72 = arith.constant 0 : index
    %82 = vector.load %arg4[%c9, %c0_71, %c0_72] : memref<16x8x72xbf16, #tpu.memory_space<vmem>>, vector<1x8x72xbf16>
    %83 = vector.shape_cast %82 : vector<1x8x72xbf16> to vector<8x72xbf16>
    %cst_73 = arith.constant dense<0.000000e+00> : vector<8x64xf32>
    %84 = tpu.matmul %83, %8, %cst_73 {dimension_numbers = #tpu.dot_dimension_numbers<[1], [0], [0], [1], [0, 0, 1, 1], [], []>} : vector<8x72xbf16>, vector<72x64xbf16>, vector<8x64xf32> -> vector<8x64xf32>
    %85 = arith.truncf %84 : vector<8x64xf32> to vector<8x64xbf16>
    %c9_74 = arith.constant 9 : index
    %c0_75 = arith.constant 0 : index
    %c0_76 = arith.constant 0 : index
    %86 = vector.load %arg5[%c9_74, %c0_75, %c0_76] : memref<16x64x64xbf16, #tpu.memory_space<vmem>>, vector<1x64x64xbf16>
    %87 = vector.shape_cast %86 : vector<1x64x64xbf16> to vector<64x64xbf16>
    %cst_77 = arith.constant dense<0.000000e+00> : vector<8x64xf32>
    %88 = tpu.matmul %85, %87, %cst_77 {dimension_numbers = #tpu.dot_dimension_numbers<[1], [0], [0], [1], [0, 0, 1, 1], [], []>} : vector<8x64xbf16>, vector<64x64xbf16>, vector<8x64xf32> -> vector<8x64xf32>
    %89 = arith.addf %81, %88 : vector<8x64xf32>
    %c10 = arith.constant 10 : index
    %c0_78 = arith.constant 0 : index
    %c0_79 = arith.constant 0 : index
    %90 = vector.load %arg4[%c10, %c0_78, %c0_79] : memref<16x8x72xbf16, #tpu.memory_space<vmem>>, vector<1x8x72xbf16>
    %91 = vector.shape_cast %90 : vector<1x8x72xbf16> to vector<8x72xbf16>
    %cst_80 = arith.constant dense<0.000000e+00> : vector<8x64xf32>
    %92 = tpu.matmul %91, %8, %cst_80 {dimension_numbers = #tpu.dot_dimension_numbers<[1], [0], [0], [1], [0, 0, 1, 1], [], []>} : vector<8x72xbf16>, vector<72x64xbf16>, vector<8x64xf32> -> vector<8x64xf32>
    %93 = arith.truncf %92 : vector<8x64xf32> to vector<8x64xbf16>
    %c10_81 = arith.constant 10 : index
    %c0_82 = arith.constant 0 : index
    %c0_83 = arith.constant 0 : index
    %94 = vector.load %arg5[%c10_81, %c0_82, %c0_83] : memref<16x64x64xbf16, #tpu.memory_space<vmem>>, vector<1x64x64xbf16>
    %95 = vector.shape_cast %94 : vector<1x64x64xbf16> to vector<64x64xbf16>
    %cst_84 = arith.constant dense<0.000000e+00> : vector<8x64xf32>
    %96 = tpu.matmul %93, %95, %cst_84 {dimension_numbers = #tpu.dot_dimension_numbers<[1], [0], [0], [1], [0, 0, 1, 1], [], []>} : vector<8x64xbf16>, vector<64x64xbf16>, vector<8x64xf32> -> vector<8x64xf32>
    %97 = arith.addf %89, %96 : vector<8x64xf32>
    %c11 = arith.constant 11 : index
    %c0_85 = arith.constant 0 : index
    %c0_86 = arith.constant 0 : index
    %98 = vector.load %arg4[%c11, %c0_85, %c0_86] : memref<16x8x72xbf16, #tpu.memory_space<vmem>>, vector<1x8x72xbf16>
    %99 = vector.shape_cast %98 : vector<1x8x72xbf16> to vector<8x72xbf16>
    %cst_87 = arith.constant dense<0.000000e+00> : vector<8x64xf32>
    %100 = tpu.matmul %99, %8, %cst_87 {dimension_numbers = #tpu.dot_dimension_numbers<[1], [0], [0], [1], [0, 0, 1, 1], [], []>} : vector<8x72xbf16>, vector<72x64xbf16>, vector<8x64xf32> -> vector<8x64xf32>
    %101 = arith.truncf %100 : vector<8x64xf32> to vector<8x64xbf16>
    %c11_88 = arith.constant 11 : index
    %c0_89 = arith.constant 0 : index
    %c0_90 = arith.constant 0 : index
    %102 = vector.load %arg5[%c11_88, %c0_89, %c0_90] : memref<16x64x64xbf16, #tpu.memory_space<vmem>>, vector<1x64x64xbf16>
    %103 = vector.shape_cast %102 : vector<1x64x64xbf16> to vector<64x64xbf16>
    %cst_91 = arith.constant dense<0.000000e+00> : vector<8x64xf32>
    %104 = tpu.matmul %101, %103, %cst_91 {dimension_numbers = #tpu.dot_dimension_numbers<[1], [0], [0], [1], [0, 0, 1, 1], [], []>} : vector<8x64xbf16>, vector<64x64xbf16>, vector<8x64xf32> -> vector<8x64xf32>
    %105 = arith.addf %97, %104 : vector<8x64xf32>
    %c12 = arith.constant 12 : index
    %c0_92 = arith.constant 0 : index
    %c0_93 = arith.constant 0 : index
    %106 = vector.load %arg4[%c12, %c0_92, %c0_93] : memref<16x8x72xbf16, #tpu.memory_space<vmem>>, vector<1x8x72xbf16>
    %107 = vector.shape_cast %106 : vector<1x8x72xbf16> to vector<8x72xbf16>
    %cst_94 = arith.constant dense<0.000000e+00> : vector<8x64xf32>
    %108 = tpu.matmul %107, %8, %cst_94 {dimension_numbers = #tpu.dot_dimension_numbers<[1], [0], [0], [1], [0, 0, 1, 1], [], []>} : vector<8x72xbf16>, vector<72x64xbf16>, vector<8x64xf32> -> vector<8x64xf32>
    %109 = arith.truncf %108 : vector<8x64xf32> to vector<8x64xbf16>
    %c12_95 = arith.constant 12 : index
    %c0_96 = arith.constant 0 : index
    %c0_97 = arith.constant 0 : index
    %110 = vector.load %arg5[%c12_95, %c0_96, %c0_97] : memref<16x64x64xbf16, #tpu.memory_space<vmem>>, vector<1x64x64xbf16>
    %111 = vector.shape_cast %110 : vector<1x64x64xbf16> to vector<64x64xbf16>
    %cst_98 = arith.constant dense<0.000000e+00> : vector<8x64xf32>
    %112 = tpu.matmul %109, %111, %cst_98 {dimension_numbers = #tpu.dot_dimension_numbers<[1], [0], [0], [1], [0, 0, 1, 1], [], []>} : vector<8x64xbf16>, vector<64x64xbf16>, vector<8x64xf32> -> vector<8x64xf32>
    %113 = arith.addf %105, %112 : vector<8x64xf32>
    %c13 = arith.constant 13 : index
    %c0_99 = arith.constant 0 : index
    %c0_100 = arith.constant 0 : index
    %114 = vector.load %arg4[%c13, %c0_99, %c0_100] : memref<16x8x72xbf16, #tpu.memory_space<vmem>>, vector<1x8x72xbf16>
    %115 = vector.shape_cast %114 : vector<1x8x72xbf16> to vector<8x72xbf16>
    %cst_101 = arith.constant dense<0.000000e+00> : vector<8x64xf32>
    %116 = tpu.matmul %115, %8, %cst_101 {dimension_numbers = #tpu.dot_dimension_numbers<[1], [0], [0], [1], [0, 0, 1, 1], [], []>} : vector<8x72xbf16>, vector<72x64xbf16>, vector<8x64xf32> -> vector<8x64xf32>
    %117 = arith.truncf %116 : vector<8x64xf32> to vector<8x64xbf16>
    %c13_102 = arith.constant 13 : index
    %c0_103 = arith.constant 0 : index
    %c0_104 = arith.constant 0 : index
    %118 = vector.load %arg5[%c13_102, %c0_103, %c0_104] : memref<16x64x64xbf16, #tpu.memory_space<vmem>>, vector<1x64x64xbf16>
    %119 = vector.shape_cast %118 : vector<1x64x64xbf16> to vector<64x64xbf16>
    %cst_105 = arith.constant dense<0.000000e+00> : vector<8x64xf32>
    %120 = tpu.matmul %117, %119, %cst_105 {dimension_numbers = #tpu.dot_dimension_numbers<[1], [0], [0], [1], [0, 0, 1, 1], [], []>} : vector<8x64xbf16>, vector<64x64xbf16>, vector<8x64xf32> -> vector<8x64xf32>
    %121 = arith.addf %113, %120 : vector<8x64xf32>
    %c14 = arith.constant 14 : index
    %c0_106 = arith.constant 0 : index
    %c0_107 = arith.constant 0 : index
    %122 = vector.load %arg4[%c14, %c0_106, %c0_107] : memref<16x8x72xbf16, #tpu.memory_space<vmem>>, vector<1x8x72xbf16>
    %123 = vector.shape_cast %122 : vector<1x8x72xbf16> to vector<8x72xbf16>
    %cst_108 = arith.constant dense<0.000000e+00> : vector<8x64xf32>
    %124 = tpu.matmul %123, %8, %cst_108 {dimension_numbers = #tpu.dot_dimension_numbers<[1], [0], [0], [1], [0, 0, 1, 1], [], []>} : vector<8x72xbf16>, vector<72x64xbf16>, vector<8x64xf32> -> vector<8x64xf32>
    %125 = arith.truncf %124 : vector<8x64xf32> to vector<8x64xbf16>
    %c14_109 = arith.constant 14 : index
    %c0_110 = arith.constant 0 : index
    %c0_111 = arith.constant 0 : index
    %126 = vector.load %arg5[%c14_109, %c0_110, %c0_111] : memref<16x64x64xbf16, #tpu.memory_space<vmem>>, vector<1x64x64xbf16>
    %127 = vector.shape_cast %126 : vector<1x64x64xbf16> to vector<64x64xbf16>
    %cst_112 = arith.constant dense<0.000000e+00> : vector<8x64xf32>
    %128 = tpu.matmul %125, %127, %cst_112 {dimension_numbers = #tpu.dot_dimension_numbers<[1], [0], [0], [1], [0, 0, 1, 1], [], []>} : vector<8x64xbf16>, vector<64x64xbf16>, vector<8x64xf32> -> vector<8x64xf32>
    %129 = arith.addf %121, %128 : vector<8x64xf32>
    %c15 = arith.constant 15 : index
    %c0_113 = arith.constant 0 : index
    %c0_114 = arith.constant 0 : index
    %130 = vector.load %arg4[%c15, %c0_113, %c0_114] : memref<16x8x72xbf16, #tpu.memory_space<vmem>>, vector<1x8x72xbf16>
    %131 = vector.shape_cast %130 : vector<1x8x72xbf16> to vector<8x72xbf16>
    %cst_115 = arith.constant dense<0.000000e+00> : vector<8x64xf32>
    %132 = tpu.matmul %131, %8, %cst_115 {dimension_numbers = #tpu.dot_dimension_numbers<[1], [0], [0], [1], [0, 0, 1, 1], [], []>} : vector<8x72xbf16>, vector<72x64xbf16>, vector<8x64xf32> -> vector<8x64xf32>
    %133 = arith.truncf %132 : vector<8x64xf32> to vector<8x64xbf16>
    %c15_116 = arith.constant 15 : index
    %c0_117 = arith.constant 0 : index
    %c0_118 = arith.constant 0 : index
    %134 = vector.load %arg5[%c15_116, %c0_117, %c0_118] : memref<16x64x64xbf16, #tpu.memory_space<vmem>>, vector<1x64x64xbf16>
    %135 = vector.shape_cast %134 : vector<1x64x64xbf16> to vector<64x64xbf16>
    %cst_119 = arith.constant dense<0.000000e+00> : vector<8x64xf32>
    %136 = tpu.matmul %133, %135, %cst_119 {dimension_numbers = #tpu.dot_dimension_numbers<[1], [0], [0], [1], [0, 0, 1, 1], [], []>} : vector<8x64xbf16>, vector<64x64xbf16>, vector<8x64xf32> -> vector<8x64xf32>
    %137 = arith.addf %129, %136 : vector<8x64xf32>
    %c0_120 = arith.constant 0 : index
    %c0_121 = arith.constant 0 : index
    %138 = vector.load %arg6[%c0_120, %c0_121] : memref<1x64xf32, #tpu.memory_space<vmem>>, vector<1x64xf32>
    %139 = vector.broadcast %138 : vector<1x64xf32> to vector<8x64xf32>
    %140 = arith.addf %137, %139 : vector<8x64xf32>
    %cst_122 = arith.constant 0.000000e+00 : f32
    %141 = vector.broadcast %cst_122 : f32 to vector<8x64xf32>
    %142 = arith.maximumf %140, %141 : vector<8x64xf32>
    %143 = arith.truncf %142 : vector<8x64xf32> to vector<8x64xbf16>
    %cst_123 = arith.constant 0.000000e+00 : f32
    %144 = vector.broadcast %cst_123 : f32 to vector<2x256xf32>
    %c0_124 = arith.constant 0 : index
    %c0_125 = arith.constant 0 : index
    %c0_126 = arith.constant 0 : index
    %145 = vector.load %arg7[%c0_124, %c0_125, %c0_126] : memref<4x2x8xbf16, #tpu.memory_space<vmem>>, vector<1x2x8xbf16>
    %146 = vector.shape_cast %145 : vector<1x2x8xbf16> to vector<2x8xbf16>
    %cst_127 = arith.constant dense<0.000000e+00> : vector<2x64xf32>
    %147 = tpu.matmul %146, %143, %cst_127 {dimension_numbers = #tpu.dot_dimension_numbers<[1], [0], [0], [1], [0, 0, 1, 1], [], []>} : vector<2x8xbf16>, vector<8x64xbf16>, vector<2x64xf32> -> vector<2x64xf32>
    %148 = arith.truncf %147 : vector<2x64xf32> to vector<2x64xbf16>
    %c0_128 = arith.constant 0 : index
    %c0_129 = arith.constant 0 : index
    %c0_130 = arith.constant 0 : index
    %149 = vector.load %arg8[%c0_128, %c0_129, %c0_130] : memref<4x64x256xbf16, #tpu.memory_space<vmem>>, vector<1x64x256xbf16>
    %150 = vector.shape_cast %149 : vector<1x64x256xbf16> to vector<64x256xbf16>
    %cst_131 = arith.constant dense<0.000000e+00> : vector<2x256xf32>
    %151 = tpu.matmul %148, %150, %cst_131 {dimension_numbers = #tpu.dot_dimension_numbers<[1], [0], [0], [1], [0, 0, 1, 1], [], []>} : vector<2x64xbf16>, vector<64x256xbf16>, vector<2x256xf32> -> vector<2x256xf32>
    %152 = arith.addf %144, %151 : vector<2x256xf32>
    %c1_132 = arith.constant 1 : index
    %c0_133 = arith.constant 0 : index
    %c0_134 = arith.constant 0 : index
    %153 = vector.load %arg7[%c1_132, %c0_133, %c0_134] : memref<4x2x8xbf16, #tpu.memory_space<vmem>>, vector<1x2x8xbf16>
    %154 = vector.shape_cast %153 : vector<1x2x8xbf16> to vector<2x8xbf16>
    %cst_135 = arith.constant dense<0.000000e+00> : vector<2x64xf32>
    %155 = tpu.matmul %154, %143, %cst_135 {dimension_numbers = #tpu.dot_dimension_numbers<[1], [0], [0], [1], [0, 0, 1, 1], [], []>} : vector<2x8xbf16>, vector<8x64xbf16>, vector<2x64xf32> -> vector<2x64xf32>
    %156 = arith.truncf %155 : vector<2x64xf32> to vector<2x64xbf16>
    %c1_136 = arith.constant 1 : index
    %c0_137 = arith.constant 0 : index
    %c0_138 = arith.constant 0 : index
    %157 = vector.load %arg8[%c1_136, %c0_137, %c0_138] : memref<4x64x256xbf16, #tpu.memory_space<vmem>>, vector<1x64x256xbf16>
    %158 = vector.shape_cast %157 : vector<1x64x256xbf16> to vector<64x256xbf16>
    %cst_139 = arith.constant dense<0.000000e+00> : vector<2x256xf32>
    %159 = tpu.matmul %156, %158, %cst_139 {dimension_numbers = #tpu.dot_dimension_numbers<[1], [0], [0], [1], [0, 0, 1, 1], [], []>} : vector<2x64xbf16>, vector<64x256xbf16>, vector<2x256xf32> -> vector<2x256xf32>
    %160 = arith.addf %152, %159 : vector<2x256xf32>
    %c2_140 = arith.constant 2 : index
    %c0_141 = arith.constant 0 : index
    %c0_142 = arith.constant 0 : index
    %161 = vector.load %arg7[%c2_140, %c0_141, %c0_142] : memref<4x2x8xbf16, #tpu.memory_space<vmem>>, vector<1x2x8xbf16>
    %162 = vector.shape_cast %161 : vector<1x2x8xbf16> to vector<2x8xbf16>
    %cst_143 = arith.constant dense<0.000000e+00> : vector<2x64xf32>
    %163 = tpu.matmul %162, %143, %cst_143 {dimension_numbers = #tpu.dot_dimension_numbers<[1], [0], [0], [1], [0, 0, 1, 1], [], []>} : vector<2x8xbf16>, vector<8x64xbf16>, vector<2x64xf32> -> vector<2x64xf32>
    %164 = arith.truncf %163 : vector<2x64xf32> to vector<2x64xbf16>
    %c2_144 = arith.constant 2 : index
    %c0_145 = arith.constant 0 : index
    %c0_146 = arith.constant 0 : index
    %165 = vector.load %arg8[%c2_144, %c0_145, %c0_146] : memref<4x64x256xbf16, #tpu.memory_space<vmem>>, vector<1x64x256xbf16>
    %166 = vector.shape_cast %165 : vector<1x64x256xbf16> to vector<64x256xbf16>
    %cst_147 = arith.constant dense<0.000000e+00> : vector<2x256xf32>
    %167 = tpu.matmul %164, %166, %cst_147 {dimension_numbers = #tpu.dot_dimension_numbers<[1], [0], [0], [1], [0, 0, 1, 1], [], []>} : vector<2x64xbf16>, vector<64x256xbf16>, vector<2x256xf32> -> vector<2x256xf32>
    %168 = arith.addf %160, %167 : vector<2x256xf32>
    %c3_148 = arith.constant 3 : index
    %c0_149 = arith.constant 0 : index
    %c0_150 = arith.constant 0 : index
    %169 = vector.load %arg7[%c3_148, %c0_149, %c0_150] : memref<4x2x8xbf16, #tpu.memory_space<vmem>>, vector<1x2x8xbf16>
    %170 = vector.shape_cast %169 : vector<1x2x8xbf16> to vector<2x8xbf16>
    %cst_151 = arith.constant dense<0.000000e+00> : vector<2x64xf32>
    %171 = tpu.matmul %170, %143, %cst_151 {dimension_numbers = #tpu.dot_dimension_numbers<[1], [0], [0], [1], [0, 0, 1, 1], [], []>} : vector<2x8xbf16>, vector<8x64xbf16>, vector<2x64xf32> -> vector<2x64xf32>
    %172 = arith.truncf %171 : vector<2x64xf32> to vector<2x64xbf16>
    %c3_152 = arith.constant 3 : index
    %c0_153 = arith.constant 0 : index
    %c0_154 = arith.constant 0 : index
    %173 = vector.load %arg8[%c3_152, %c0_153, %c0_154] : memref<4x64x256xbf16, #tpu.memory_space<vmem>>, vector<1x64x256xbf16>
    %174 = vector.shape_cast %173 : vector<1x64x256xbf16> to vector<64x256xbf16>
    %cst_155 = arith.constant dense<0.000000e+00> : vector<2x256xf32>
    %175 = tpu.matmul %172, %174, %cst_155 {dimension_numbers = #tpu.dot_dimension_numbers<[1], [0], [0], [1], [0, 0, 1, 1], [], []>} : vector<2x64xbf16>, vector<64x256xbf16>, vector<2x256xf32> -> vector<2x256xf32>
    %176 = arith.addf %168, %175 : vector<2x256xf32>
    %c0_156 = arith.constant 0 : index
    %c0_157 = arith.constant 0 : index
    %177 = vector.load %arg9[%c0_156, %c0_157] : memref<1x256xf32, #tpu.memory_space<vmem>>, vector<1x256xf32>
    %178 = vector.broadcast %177 : vector<1x256xf32> to vector<2x256xf32>
    %179 = arith.addf %176, %178 : vector<2x256xf32>
    %180 = vector.extract_strided_slice %179 {offsets = [0, 0], sizes = [2, 128], strides = [1, 1]} : vector<2x256xf32> to vector<2x128xf32>
    %181 = vector.extract_strided_slice %179 {offsets = [0, 128], sizes = [2, 128], strides = [1, 1]} : vector<2x256xf32> to vector<2x128xf32>
    %c0_158 = arith.constant 0 : index
    %c0_159 = arith.constant 0 : index
    %182 = vector.load %arg1[%c0_158, %c0_159] : memref<2x128xf32, #tpu.memory_space<vmem>>, vector<2x128xf32>
    %cst_160 = arith.constant 5.000000e-01 : f32
    %183 = vector.broadcast %cst_160 : f32 to vector<2x128xf32>
    %184 = arith.mulf %183, %181 : vector<2x128xf32>
    %185 = math.exp %184 : vector<2x128xf32>
    %186 = arith.mulf %182, %185 : vector<2x128xf32>
    %187 = arith.addf %180, %186 : vector<2x128xf32>
    %188 = arith.truncf %187 : vector<2x128xf32> to vector<2x128xbf16>
    %cst_161 = arith.constant 0.000000e+00 : f32
    %189 = vector.broadcast %cst_161 : f32 to vector<8x64xf32>
    %c0_162 = arith.constant 0 : index
    %c0_163 = arith.constant 0 : index
    %c0_164 = arith.constant 0 : index
    %190 = vector.load %arg11[%c0_162, %c0_163, %c0_164] : memref<4x128x64xbf16, #tpu.memory_space<vmem>>, vector<1x128x64xbf16>
    %191 = vector.shape_cast %190 : vector<1x128x64xbf16> to vector<128x64xbf16>
    %cst_165 = arith.constant dense<0.000000e+00> : vector<2x64xf32>
    %192 = tpu.matmul %188, %191, %cst_165 {dimension_numbers = #tpu.dot_dimension_numbers<[1], [0], [0], [1], [0, 0, 1, 1], [], []>} : vector<2x128xbf16>, vector<128x64xbf16>, vector<2x64xf32> -> vector<2x64xf32>
    %193 = arith.truncf %192 : vector<2x64xf32> to vector<2x64xbf16>
    %c0_166 = arith.constant 0 : index
    %c0_167 = arith.constant 0 : index
    %c0_168 = arith.constant 0 : index
    %194 = vector.load %arg10[%c0_166, %c0_167, %c0_168] : memref<4x8x2xbf16, #tpu.memory_space<vmem>>, vector<1x8x2xbf16>
    %195 = vector.shape_cast %194 : vector<1x8x2xbf16> to vector<8x2xbf16>
    %cst_169 = arith.constant dense<0.000000e+00> : vector<8x64xf32>
    %196 = tpu.matmul %195, %193, %cst_169 {dimension_numbers = #tpu.dot_dimension_numbers<[1], [0], [0], [1], [0, 0, 1, 1], [], []>} : vector<8x2xbf16>, vector<2x64xbf16>, vector<8x64xf32> -> vector<8x64xf32>
    %197 = arith.addf %189, %196 : vector<8x64xf32>
    %c1_170 = arith.constant 1 : index
    %c0_171 = arith.constant 0 : index
    %c0_172 = arith.constant 0 : index
    %198 = vector.load %arg11[%c1_170, %c0_171, %c0_172] : memref<4x128x64xbf16, #tpu.memory_space<vmem>>, vector<1x128x64xbf16>
    %199 = vector.shape_cast %198 : vector<1x128x64xbf16> to vector<128x64xbf16>
    %cst_173 = arith.constant dense<0.000000e+00> : vector<2x64xf32>
    %200 = tpu.matmul %188, %199, %cst_173 {dimension_numbers = #tpu.dot_dimension_numbers<[1], [0], [0], [1], [0, 0, 1, 1], [], []>} : vector<2x128xbf16>, vector<128x64xbf16>, vector<2x64xf32> -> vector<2x64xf32>
    %201 = arith.truncf %200 : vector<2x64xf32> to vector<2x64xbf16>
    %c1_174 = arith.constant 1 : index
    %c0_175 = arith.constant 0 : index
    %c0_176 = arith.constant 0 : index
    %202 = vector.load %arg10[%c1_174, %c0_175, %c0_176] : memref<4x8x2xbf16, #tpu.memory_space<vmem>>, vector<1x8x2xbf16>
    %203 = vector.shape_cast %202 : vector<1x8x2xbf16> to vector<8x2xbf16>
    %cst_177 = arith.constant dense<0.000000e+00> : vector<8x64xf32>
    %204 = tpu.matmul %203, %201, %cst_177 {dimension_numbers = #tpu.dot_dimension_numbers<[1], [0], [0], [1], [0, 0, 1, 1], [], []>} : vector<8x2xbf16>, vector<2x64xbf16>, vector<8x64xf32> -> vector<8x64xf32>
    %205 = arith.addf %197, %204 : vector<8x64xf32>
    %c2_178 = arith.constant 2 : index
    %c0_179 = arith.constant 0 : index
    %c0_180 = arith.constant 0 : index
    %206 = vector.load %arg11[%c2_178, %c0_179, %c0_180] : memref<4x128x64xbf16, #tpu.memory_space<vmem>>, vector<1x128x64xbf16>
    %207 = vector.shape_cast %206 : vector<1x128x64xbf16> to vector<128x64xbf16>
    %cst_181 = arith.constant dense<0.000000e+00> : vector<2x64xf32>
    %208 = tpu.matmul %188, %207, %cst_181 {dimension_numbers = #tpu.dot_dimension_numbers<[1], [0], [0], [1], [0, 0, 1, 1], [], []>} : vector<2x128xbf16>, vector<128x64xbf16>, vector<2x64xf32> -> vector<2x64xf32>
    %209 = arith.truncf %208 : vector<2x64xf32> to vector<2x64xbf16>
    %c2_182 = arith.constant 2 : index
    %c0_183 = arith.constant 0 : index
    %c0_184 = arith.constant 0 : index
    %210 = vector.load %arg10[%c2_182, %c0_183, %c0_184] : memref<4x8x2xbf16, #tpu.memory_space<vmem>>, vector<1x8x2xbf16>
    %211 = vector.shape_cast %210 : vector<1x8x2xbf16> to vector<8x2xbf16>
    %cst_185 = arith.constant dense<0.000000e+00> : vector<8x64xf32>
    %212 = tpu.matmul %211, %209, %cst_185 {dimension_numbers = #tpu.dot_dimension_numbers<[1], [0], [0], [1], [0, 0, 1, 1], [], []>} : vector<8x2xbf16>, vector<2x64xbf16>, vector<8x64xf32> -> vector<8x64xf32>
    %213 = arith.addf %205, %212 : vector<8x64xf32>
    %c3_186 = arith.constant 3 : index
    %c0_187 = arith.constant 0 : index
    %c0_188 = arith.constant 0 : index
    %214 = vector.load %arg11[%c3_186, %c0_187, %c0_188] : memref<4x128x64xbf16, #tpu.memory_space<vmem>>, vector<1x128x64xbf16>
    %215 = vector.shape_cast %214 : vector<1x128x64xbf16> to vector<128x64xbf16>
    %cst_189 = arith.constant dense<0.000000e+00> : vector<2x64xf32>
    %216 = tpu.matmul %188, %215, %cst_189 {dimension_numbers = #tpu.dot_dimension_numbers<[1], [0], [0], [1], [0, 0, 1, 1], [], []>} : vector<2x128xbf16>, vector<128x64xbf16>, vector<2x64xf32> -> vector<2x64xf32>
    %217 = arith.truncf %216 : vector<2x64xf32> to vector<2x64xbf16>
    %c3_190 = arith.constant 3 : index
    %c0_191 = arith.constant 0 : index
    %c0_192 = arith.constant 0 : index
    %218 = vector.load %arg10[%c3_190, %c0_191, %c0_192] : memref<4x8x2xbf16, #tpu.memory_space<vmem>>, vector<1x8x2xbf16>
    %219 = vector.shape_cast %218 : vector<1x8x2xbf16> to vector<8x2xbf16>
    %cst_193 = arith.constant dense<0.000000e+00> : vector<8x64xf32>
    %220 = tpu.matmul %219, %217, %cst_193 {dimension_numbers = #tpu.dot_dimension_numbers<[1], [0], [0], [1], [0, 0, 1, 1], [], []>} : vector<8x2xbf16>, vector<2x64xbf16>, vector<8x64xf32> -> vector<8x64xf32>
    %221 = arith.addf %213, %220 : vector<8x64xf32>
    %c0_194 = arith.constant 0 : index
    %c0_195 = arith.constant 0 : index
    %222 = vector.load %arg12[%c0_194, %c0_195] : memref<8x64xf32, #tpu.memory_space<vmem>>, vector<8x64xf32>
    %223 = arith.addf %221, %222 : vector<8x64xf32>
    %224 = arith.truncf %223 : vector<8x64xf32> to vector<8x64xbf16>
    %cst_196 = arith.constant 0.000000e+00 : f32
    %225 = vector.broadcast %cst_196 : f32 to vector<18x256xf32>
    %c0_197 = arith.constant 0 : index
    %c0_198 = arith.constant 0 : index
    %c0_199 = arith.constant 0 : index
    %226 = vector.load %arg13[%c0_197, %c0_198, %c0_199] : memref<4x18x8xbf16, #tpu.memory_space<vmem>>, vector<1x18x8xbf16>
    %227 = vector.shape_cast %226 : vector<1x18x8xbf16> to vector<18x8xbf16>
    %cst_200 = arith.constant dense<0.000000e+00> : vector<18x64xf32>
    %228 = tpu.matmul %227, %224, %cst_200 {dimension_numbers = #tpu.dot_dimension_numbers<[1], [0], [0], [1], [0, 0, 1, 1], [], []>} : vector<18x8xbf16>, vector<8x64xbf16>, vector<18x64xf32> -> vector<18x64xf32>
    %229 = arith.truncf %228 : vector<18x64xf32> to vector<18x64xbf16>
    %c0_201 = arith.constant 0 : index
    %c0_202 = arith.constant 0 : index
    %c0_203 = arith.constant 0 : index
    %230 = vector.load %arg14[%c0_201, %c0_202, %c0_203] : memref<4x64x256xbf16, #tpu.memory_space<vmem>>, vector<1x64x256xbf16>
    %231 = vector.shape_cast %230 : vector<1x64x256xbf16> to vector<64x256xbf16>
    %cst_204 = arith.constant dense<0.000000e+00> : vector<18x256xf32>
    %232 = tpu.matmul %229, %231, %cst_204 {dimension_numbers = #tpu.dot_dimension_numbers<[1], [0], [0], [1], [0, 0, 1, 1], [], []>} : vector<18x64xbf16>, vector<64x256xbf16>, vector<18x256xf32> -> vector<18x256xf32>
    %233 = arith.addf %225, %232 : vector<18x256xf32>
    %c1_205 = arith.constant 1 : index
    %c0_206 = arith.constant 0 : index
    %c0_207 = arith.constant 0 : index
    %234 = vector.load %arg13[%c1_205, %c0_206, %c0_207] : memref<4x18x8xbf16, #tpu.memory_space<vmem>>, vector<1x18x8xbf16>
    %235 = vector.shape_cast %234 : vector<1x18x8xbf16> to vector<18x8xbf16>
    %cst_208 = arith.constant dense<0.000000e+00> : vector<18x64xf32>
    %236 = tpu.matmul %235, %224, %cst_208 {dimension_numbers = #tpu.dot_dimension_numbers<[1], [0], [0], [1], [0, 0, 1, 1], [], []>} : vector<18x8xbf16>, vector<8x64xbf16>, vector<18x64xf32> -> vector<18x64xf32>
    %237 = arith.truncf %236 : vector<18x64xf32> to vector<18x64xbf16>
    %c1_209 = arith.constant 1 : index
    %c0_210 = arith.constant 0 : index
    %c0_211 = arith.constant 0 : index
    %238 = vector.load %arg14[%c1_209, %c0_210, %c0_211] : memref<4x64x256xbf16, #tpu.memory_space<vmem>>, vector<1x64x256xbf16>
    %239 = vector.shape_cast %238 : vector<1x64x256xbf16> to vector<64x256xbf16>
    %cst_212 = arith.constant dense<0.000000e+00> : vector<18x256xf32>
    %240 = tpu.matmul %237, %239, %cst_212 {dimension_numbers = #tpu.dot_dimension_numbers<[1], [0], [0], [1], [0, 0, 1, 1], [], []>} : vector<18x64xbf16>, vector<64x256xbf16>, vector<18x256xf32> -> vector<18x256xf32>
    %241 = arith.addf %233, %240 : vector<18x256xf32>
    %c2_213 = arith.constant 2 : index
    %c0_214 = arith.constant 0 : index
    %c0_215 = arith.constant 0 : index
    %242 = vector.load %arg13[%c2_213, %c0_214, %c0_215] : memref<4x18x8xbf16, #tpu.memory_space<vmem>>, vector<1x18x8xbf16>
    %243 = vector.shape_cast %242 : vector<1x18x8xbf16> to vector<18x8xbf16>
    %cst_216 = arith.constant dense<0.000000e+00> : vector<18x64xf32>
    %244 = tpu.matmul %243, %224, %cst_216 {dimension_numbers = #tpu.dot_dimension_numbers<[1], [0], [0], [1], [0, 0, 1, 1], [], []>} : vector<18x8xbf16>, vector<8x64xbf16>, vector<18x64xf32> -> vector<18x64xf32>
    %245 = arith.truncf %244 : vector<18x64xf32> to vector<18x64xbf16>
    %c2_217 = arith.constant 2 : index
    %c0_218 = arith.constant 0 : index
    %c0_219 = arith.constant 0 : index
    %246 = vector.load %arg14[%c2_217, %c0_218, %c0_219] : memref<4x64x256xbf16, #tpu.memory_space<vmem>>, vector<1x64x256xbf16>
    %247 = vector.shape_cast %246 : vector<1x64x256xbf16> to vector<64x256xbf16>
    %cst_220 = arith.constant dense<0.000000e+00> : vector<18x256xf32>
    %248 = tpu.matmul %245, %247, %cst_220 {dimension_numbers = #tpu.dot_dimension_numbers<[1], [0], [0], [1], [0, 0, 1, 1], [], []>} : vector<18x64xbf16>, vector<64x256xbf16>, vector<18x256xf32> -> vector<18x256xf32>
    %249 = arith.addf %241, %248 : vector<18x256xf32>
    %c3_221 = arith.constant 3 : index
    %c0_222 = arith.constant 0 : index
    %c0_223 = arith.constant 0 : index
    %250 = vector.load %arg13[%c3_221, %c0_222, %c0_223] : memref<4x18x8xbf16, #tpu.memory_space<vmem>>, vector<1x18x8xbf16>
    %251 = vector.shape_cast %250 : vector<1x18x8xbf16> to vector<18x8xbf16>
    %cst_224 = arith.constant dense<0.000000e+00> : vector<18x64xf32>
    %252 = tpu.matmul %251, %224, %cst_224 {dimension_numbers = #tpu.dot_dimension_numbers<[1], [0], [0], [1], [0, 0, 1, 1], [], []>} : vector<18x8xbf16>, vector<8x64xbf16>, vector<18x64xf32> -> vector<18x64xf32>
    %253 = arith.truncf %252 : vector<18x64xf32> to vector<18x64xbf16>
    %c3_225 = arith.constant 3 : index
    %c0_226 = arith.constant 0 : index
    %c0_227 = arith.constant 0 : index
    %254 = vector.load %arg14[%c3_225, %c0_226, %c0_227] : memref<4x64x256xbf16, #tpu.memory_space<vmem>>, vector<1x64x256xbf16>
    %255 = vector.shape_cast %254 : vector<1x64x256xbf16> to vector<64x256xbf16>
    %cst_228 = arith.constant dense<0.000000e+00> : vector<18x256xf32>
    %256 = tpu.matmul %253, %255, %cst_228 {dimension_numbers = #tpu.dot_dimension_numbers<[1], [0], [0], [1], [0, 0, 1, 1], [], []>} : vector<18x64xbf16>, vector<64x256xbf16>, vector<18x256xf32> -> vector<18x256xf32>
    %257 = arith.addf %249, %256 : vector<18x256xf32>
    %c0_229 = arith.constant 0 : index
    %c0_230 = arith.constant 0 : index
    %258 = vector.load %arg15[%c0_229, %c0_230] : memref<1x256xf32, #tpu.memory_space<vmem>>, vector<1x256xf32>
    %259 = vector.broadcast %258 : vector<1x256xf32> to vector<18x256xf32>
    %260 = arith.addf %257, %259 : vector<18x256xf32>
    %cst_231 = arith.constant 0.000000e+00 : f32
    %261 = vector.broadcast %cst_231 : f32 to vector<18x256xf32>
    %262 = arith.maximumf %260, %261 : vector<18x256xf32>
    %263 = arith.truncf %262 : vector<18x256xf32> to vector<18x256xbf16>
    %cst_232 = arith.constant 0.000000e+00 : f32
    %264 = vector.broadcast %cst_232 : f32 to vector<72x64xf32>
    %c0_233 = arith.constant 0 : index
    %c0_234 = arith.constant 0 : index
    %c0_235 = arith.constant 0 : index
    %265 = vector.load %arg17[%c0_233, %c0_234, %c0_235] : memref<4x256x64xbf16, #tpu.memory_space<vmem>>, vector<1x256x64xbf16>
    %266 = vector.shape_cast %265 : vector<1x256x64xbf16> to vector<256x64xbf16>
    %cst_236 = arith.constant dense<0.000000e+00> : vector<18x64xf32>
    %267 = tpu.matmul %263, %266, %cst_236 {dimension_numbers = #tpu.dot_dimension_numbers<[1], [0], [0], [1], [0, 0, 1, 1], [], []>} : vector<18x256xbf16>, vector<256x64xbf16>, vector<18x64xf32> -> vector<18x64xf32>
    %268 = arith.truncf %267 : vector<18x64xf32> to vector<18x64xbf16>
    %c0_237 = arith.constant 0 : index
    %c0_238 = arith.constant 0 : index
    %c0_239 = arith.constant 0 : index
    %269 = vector.load %arg16[%c0_237, %c0_238, %c0_239] : memref<4x72x18xbf16, #tpu.memory_space<vmem>>, vector<1x72x18xbf16>
    %270 = vector.shape_cast %269 : vector<1x72x18xbf16> to vector<72x18xbf16>
    %cst_240 = arith.constant dense<0.000000e+00> : vector<72x64xf32>
    %271 = tpu.matmul %270, %268, %cst_240 {dimension_numbers = #tpu.dot_dimension_numbers<[1], [0], [0], [1], [0, 0, 1, 1], [], []>} : vector<72x18xbf16>, vector<18x64xbf16>, vector<72x64xf32> -> vector<72x64xf32>
    %272 = arith.addf %264, %271 : vector<72x64xf32>
    %c1_241 = arith.constant 1 : index
    %c0_242 = arith.constant 0 : index
    %c0_243 = arith.constant 0 : index
    %273 = vector.load %arg17[%c1_241, %c0_242, %c0_243] : memref<4x256x64xbf16, #tpu.memory_space<vmem>>, vector<1x256x64xbf16>
    %274 = vector.shape_cast %273 : vector<1x256x64xbf16> to vector<256x64xbf16>
    %cst_244 = arith.constant dense<0.000000e+00> : vector<18x64xf32>
    %275 = tpu.matmul %263, %274, %cst_244 {dimension_numbers = #tpu.dot_dimension_numbers<[1], [0], [0], [1], [0, 0, 1, 1], [], []>} : vector<18x256xbf16>, vector<256x64xbf16>, vector<18x64xf32> -> vector<18x64xf32>
    %276 = arith.truncf %275 : vector<18x64xf32> to vector<18x64xbf16>
    %c1_245 = arith.constant 1 : index
    %c0_246 = arith.constant 0 : index
    %c0_247 = arith.constant 0 : index
    %277 = vector.load %arg16[%c1_245, %c0_246, %c0_247] : memref<4x72x18xbf16, #tpu.memory_space<vmem>>, vector<1x72x18xbf16>
    %278 = vector.shape_cast %277 : vector<1x72x18xbf16> to vector<72x18xbf16>
    %cst_248 = arith.constant dense<0.000000e+00> : vector<72x64xf32>
    %279 = tpu.matmul %278, %276, %cst_248 {dimension_numbers = #tpu.dot_dimension_numbers<[1], [0], [0], [1], [0, 0, 1, 1], [], []>} : vector<72x18xbf16>, vector<18x64xbf16>, vector<72x64xf32> -> vector<72x64xf32>
    %280 = arith.addf %272, %279 : vector<72x64xf32>
    %c2_249 = arith.constant 2 : index
    %c0_250 = arith.constant 0 : index
    %c0_251 = arith.constant 0 : index
    %281 = vector.load %arg17[%c2_249, %c0_250, %c0_251] : memref<4x256x64xbf16, #tpu.memory_space<vmem>>, vector<1x256x64xbf16>
    %282 = vector.shape_cast %281 : vector<1x256x64xbf16> to vector<256x64xbf16>
    %cst_252 = arith.constant dense<0.000000e+00> : vector<18x64xf32>
    %283 = tpu.matmul %263, %282, %cst_252 {dimension_numbers = #tpu.dot_dimension_numbers<[1], [0], [0], [1], [0, 0, 1, 1], [], []>} : vector<18x256xbf16>, vector<256x64xbf16>, vector<18x64xf32> -> vector<18x64xf32>
    %284 = arith.truncf %283 : vector<18x64xf32> to vector<18x64xbf16>
    %c2_253 = arith.constant 2 : index
    %c0_254 = arith.constant 0 : index
    %c0_255 = arith.constant 0 : index
    %285 = vector.load %arg16[%c2_253, %c0_254, %c0_255] : memref<4x72x18xbf16, #tpu.memory_space<vmem>>, vector<1x72x18xbf16>
    %286 = vector.shape_cast %285 : vector<1x72x18xbf16> to vector<72x18xbf16>
    %cst_256 = arith.constant dense<0.000000e+00> : vector<72x64xf32>
    %287 = tpu.matmul %286, %284, %cst_256 {dimension_numbers = #tpu.dot_dimension_numbers<[1], [0], [0], [1], [0, 0, 1, 1], [], []>} : vector<72x18xbf16>, vector<18x64xbf16>, vector<72x64xf32> -> vector<72x64xf32>
    %288 = arith.addf %280, %287 : vector<72x64xf32>
    %c3_257 = arith.constant 3 : index
    %c0_258 = arith.constant 0 : index
    %c0_259 = arith.constant 0 : index
    %289 = vector.load %arg17[%c3_257, %c0_258, %c0_259] : memref<4x256x64xbf16, #tpu.memory_space<vmem>>, vector<1x256x64xbf16>
    %290 = vector.shape_cast %289 : vector<1x256x64xbf16> to vector<256x64xbf16>
    %cst_260 = arith.constant dense<0.000000e+00> : vector<18x64xf32>
    %291 = tpu.matmul %263, %290, %cst_260 {dimension_numbers = #tpu.dot_dimension_numbers<[1], [0], [0], [1], [0, 0, 1, 1], [], []>} : vector<18x256xbf16>, vector<256x64xbf16>, vector<18x64xf32> -> vector<18x64xf32>
    %292 = arith.truncf %291 : vector<18x64xf32> to vector<18x64xbf16>
    %c3_261 = arith.constant 3 : index
    %c0_262 = arith.constant 0 : index
    %c0_263 = arith.constant 0 : index
    %293 = vector.load %arg16[%c3_261, %c0_262, %c0_263] : memref<4x72x18xbf16, #tpu.memory_space<vmem>>, vector<1x72x18xbf16>
    %294 = vector.shape_cast %293 : vector<1x72x18xbf16> to vector<72x18xbf16>
    %cst_264 = arith.constant dense<0.000000e+00> : vector<72x64xf32>
    %295 = tpu.matmul %294, %292, %cst_264 {dimension_numbers = #tpu.dot_dimension_numbers<[1], [0], [0], [1], [0, 0, 1, 1], [], []>} : vector<72x18xbf16>, vector<18x64xbf16>, vector<72x64xf32> -> vector<72x64xf32>
    %296 = arith.addf %288, %295 : vector<72x64xf32>
    %297 = arith.truncf %296 : vector<72x64xf32> to vector<72x64xbf16>
    %cst_265 = arith.constant 0.000000e+00 : f32
    %298 = vector.broadcast %cst_265 : f32 to vector<98x128xf32>
    %c0_266 = arith.constant 0 : index
    %c0_267 = arith.constant 0 : index
    %c0_268 = arith.constant 0 : index
    %299 = vector.load %arg18[%c0_266, %c0_267, %c0_268] : memref<4x98x72xbf16, #tpu.memory_space<vmem>>, vector<1x98x72xbf16>
    %300 = vector.shape_cast %299 : vector<1x98x72xbf16> to vector<98x72xbf16>
    %cst_269 = arith.constant dense<0.000000e+00> : vector<98x64xf32>
    %301 = tpu.matmul %300, %297, %cst_269 {dimension_numbers = #tpu.dot_dimension_numbers<[1], [0], [0], [1], [0, 0, 1, 1], [], []>} : vector<98x72xbf16>, vector<72x64xbf16>, vector<98x64xf32> -> vector<98x64xf32>
    %302 = arith.truncf %301 : vector<98x64xf32> to vector<98x64xbf16>
    %c0_270 = arith.constant 0 : index
    %c0_271 = arith.constant 0 : index
    %c0_272 = arith.constant 0 : index
    %303 = vector.load %arg19[%c0_270, %c0_271, %c0_272] : memref<4x64x128xbf16, #tpu.memory_space<vmem>>, vector<1x64x128xbf16>
    %304 = vector.shape_cast %303 : vector<1x64x128xbf16> to vector<64x128xbf16>
    %cst_273 = arith.constant dense<0.000000e+00> : vector<98x128xf32>
    %305 = tpu.matmul %302, %304, %cst_273 {dimension_numbers = #tpu.dot_dimension_numbers<[1], [0], [0], [1], [0, 0, 1, 1], [], []>} : vector<98x64xbf16>, vector<64x128xbf16>, vector<98x128xf32> -> vector<98x128xf32>
    %306 = arith.addf %298, %305 : vector<98x128xf32>
    %c1_274 = arith.constant 1 : index
    %c0_275 = arith.constant 0 : index
    %c0_276 = arith.constant 0 : index
    %307 = vector.load %arg18[%c1_274, %c0_275, %c0_276] : memref<4x98x72xbf16, #tpu.memory_space<vmem>>, vector<1x98x72xbf16>
    %308 = vector.shape_cast %307 : vector<1x98x72xbf16> to vector<98x72xbf16>
    %cst_277 = arith.constant dense<0.000000e+00> : vector<98x64xf32>
    %309 = tpu.matmul %308, %297, %cst_277 {dimension_numbers = #tpu.dot_dimension_numbers<[1], [0], [0], [1], [0, 0, 1, 1], [], []>} : vector<98x72xbf16>, vector<72x64xbf16>, vector<98x64xf32> -> vector<98x64xf32>
    %310 = arith.truncf %309 : vector<98x64xf32> to vector<98x64xbf16>
    %c1_278 = arith.constant 1 : index
    %c0_279 = arith.constant 0 : index
    %c0_280 = arith.constant 0 : index
    %311 = vector.load %arg19[%c1_278, %c0_279, %c0_280] : memref<4x64x128xbf16, #tpu.memory_space<vmem>>, vector<1x64x128xbf16>
    %312 = vector.shape_cast %311 : vector<1x64x128xbf16> to vector<64x128xbf16>
    %cst_281 = arith.constant dense<0.000000e+00> : vector<98x128xf32>
    %313 = tpu.matmul %310, %312, %cst_281 {dimension_numbers = #tpu.dot_dimension_numbers<[1], [0], [0], [1], [0, 0, 1, 1], [], []>} : vector<98x64xbf16>, vector<64x128xbf16>, vector<98x128xf32> -> vector<98x128xf32>
    %314 = arith.addf %306, %313 : vector<98x128xf32>
    %c2_282 = arith.constant 2 : index
    %c0_283 = arith.constant 0 : index
    %c0_284 = arith.constant 0 : index
    %315 = vector.load %arg18[%c2_282, %c0_283, %c0_284] : memref<4x98x72xbf16, #tpu.memory_space<vmem>>, vector<1x98x72xbf16>
    %316 = vector.shape_cast %315 : vector<1x98x72xbf16> to vector<98x72xbf16>
    %cst_285 = arith.constant dense<0.000000e+00> : vector<98x64xf32>
    %317 = tpu.matmul %316, %297, %cst_285 {dimension_numbers = #tpu.dot_dimension_numbers<[1], [0], [0], [1], [0, 0, 1, 1], [], []>} : vector<98x72xbf16>, vector<72x64xbf16>, vector<98x64xf32> -> vector<98x64xf32>
    %318 = arith.truncf %317 : vector<98x64xf32> to vector<98x64xbf16>
    %c2_286 = arith.constant 2 : index
    %c0_287 = arith.constant 0 : index
    %c0_288 = arith.constant 0 : index
    %319 = vector.load %arg19[%c2_286, %c0_287, %c0_288] : memref<4x64x128xbf16, #tpu.memory_space<vmem>>, vector<1x64x128xbf16>
    %320 = vector.shape_cast %319 : vector<1x64x128xbf16> to vector<64x128xbf16>
    %cst_289 = arith.constant dense<0.000000e+00> : vector<98x128xf32>
    %321 = tpu.matmul %318, %320, %cst_289 {dimension_numbers = #tpu.dot_dimension_numbers<[1], [0], [0], [1], [0, 0, 1, 1], [], []>} : vector<98x64xbf16>, vector<64x128xbf16>, vector<98x128xf32> -> vector<98x128xf32>
    %322 = arith.addf %314, %321 : vector<98x128xf32>
    %c3_290 = arith.constant 3 : index
    %c0_291 = arith.constant 0 : index
    %c0_292 = arith.constant 0 : index
    %323 = vector.load %arg18[%c3_290, %c0_291, %c0_292] : memref<4x98x72xbf16, #tpu.memory_space<vmem>>, vector<1x98x72xbf16>
    %324 = vector.shape_cast %323 : vector<1x98x72xbf16> to vector<98x72xbf16>
    %cst_293 = arith.constant dense<0.000000e+00> : vector<98x64xf32>
    %325 = tpu.matmul %324, %297, %cst_293 {dimension_numbers = #tpu.dot_dimension_numbers<[1], [0], [0], [1], [0, 0, 1, 1], [], []>} : vector<98x72xbf16>, vector<72x64xbf16>, vector<98x64xf32> -> vector<98x64xf32>
    %326 = arith.truncf %325 : vector<98x64xf32> to vector<98x64xbf16>
    %c3_294 = arith.constant 3 : index
    %c0_295 = arith.constant 0 : index
    %c0_296 = arith.constant 0 : index
    %327 = vector.load %arg19[%c3_294, %c0_295, %c0_296] : memref<4x64x128xbf16, #tpu.memory_space<vmem>>, vector<1x64x128xbf16>
    %328 = vector.shape_cast %327 : vector<1x64x128xbf16> to vector<64x128xbf16>
    %cst_297 = arith.constant dense<0.000000e+00> : vector<98x128xf32>
    %329 = tpu.matmul %326, %328, %cst_297 {dimension_numbers = #tpu.dot_dimension_numbers<[1], [0], [0], [1], [0, 0, 1, 1], [], []>} : vector<98x64xbf16>, vector<64x128xbf16>, vector<98x128xf32> -> vector<98x128xf32>
    %330 = arith.addf %322, %329 : vector<98x128xf32>
    %c0_298 = arith.constant 0 : index
    %c0_299 = arith.constant 0 : index
    %331 = vector.load %arg20[%c0_298, %c0_299] : memref<1x128xf32, #tpu.memory_space<vmem>>, vector<1x128xf32>
    %332 = vector.broadcast %331 : vector<1x128xf32> to vector<98x128xf32>
    %333 = arith.addf %330, %332 : vector<98x128xf32>
    %cst_300 = arith.constant 0.000000e+00 : f32
    %334 = vector.broadcast %cst_300 : f32 to vector<98x128xf32>
    %335 = arith.maximumf %333, %334 : vector<98x128xf32>
    %336 = arith.truncf %335 : vector<98x128xf32> to vector<98x128xbf16>
    %cst_301 = arith.constant 0.000000e+00 : f32
    %337 = vector.broadcast %cst_301 : f32 to vector<392x32xf32>
    %c0_302 = arith.constant 0 : index
    %c0_303 = arith.constant 0 : index
    %c0_304 = arith.constant 0 : index
    %338 = vector.load %arg22[%c0_302, %c0_303, %c0_304] : memref<4x128x32xbf16, #tpu.memory_space<vmem>>, vector<1x128x32xbf16>
    %339 = vector.shape_cast %338 : vector<1x128x32xbf16> to vector<128x32xbf16>
    %cst_305 = arith.constant dense<0.000000e+00> : vector<98x32xf32>
    %340 = tpu.matmul %336, %339, %cst_305 {dimension_numbers = #tpu.dot_dimension_numbers<[1], [0], [0], [1], [0, 0, 1, 1], [], []>} : vector<98x128xbf16>, vector<128x32xbf16>, vector<98x32xf32> -> vector<98x32xf32>
    %341 = arith.truncf %340 : vector<98x32xf32> to vector<98x32xbf16>
    %c0_306 = arith.constant 0 : index
    %c0_307 = arith.constant 0 : index
    %c0_308 = arith.constant 0 : index
    %342 = vector.load %arg21[%c0_306, %c0_307, %c0_308] : memref<4x392x98xbf16, #tpu.memory_space<vmem>>, vector<1x392x98xbf16>
    %343 = vector.shape_cast %342 : vector<1x392x98xbf16> to vector<392x98xbf16>
    %cst_309 = arith.constant dense<0.000000e+00> : vector<392x32xf32>
    %344 = tpu.matmul %343, %341, %cst_309 {dimension_numbers = #tpu.dot_dimension_numbers<[1], [0], [0], [1], [0, 0, 1, 1], [], []>} : vector<392x98xbf16>, vector<98x32xbf16>, vector<392x32xf32> -> vector<392x32xf32>
    %345 = arith.addf %337, %344 : vector<392x32xf32>
    %c1_310 = arith.constant 1 : index
    %c0_311 = arith.constant 0 : index
    %c0_312 = arith.constant 0 : index
    %346 = vector.load %arg22[%c1_310, %c0_311, %c0_312] : memref<4x128x32xbf16, #tpu.memory_space<vmem>>, vector<1x128x32xbf16>
    %347 = vector.shape_cast %346 : vector<1x128x32xbf16> to vector<128x32xbf16>
    %cst_313 = arith.constant dense<0.000000e+00> : vector<98x32xf32>
    %348 = tpu.matmul %336, %347, %cst_313 {dimension_numbers = #tpu.dot_dimension_numbers<[1], [0], [0], [1], [0, 0, 1, 1], [], []>} : vector<98x128xbf16>, vector<128x32xbf16>, vector<98x32xf32> -> vector<98x32xf32>
    %349 = arith.truncf %348 : vector<98x32xf32> to vector<98x32xbf16>
    %c1_314 = arith.constant 1 : index
    %c0_315 = arith.constant 0 : index
    %c0_316 = arith.constant 0 : index
    %350 = vector.load %arg21[%c1_314, %c0_315, %c0_316] : memref<4x392x98xbf16, #tpu.memory_space<vmem>>, vector<1x392x98xbf16>
    %351 = vector.shape_cast %350 : vector<1x392x98xbf16> to vector<392x98xbf16>
    %cst_317 = arith.constant dense<0.000000e+00> : vector<392x32xf32>
    %352 = tpu.matmul %351, %349, %cst_317 {dimension_numbers = #tpu.dot_dimension_numbers<[1], [0], [0], [1], [0, 0, 1, 1], [], []>} : vector<392x98xbf16>, vector<98x32xbf16>, vector<392x32xf32> -> vector<392x32xf32>
    %353 = arith.addf %345, %352 : vector<392x32xf32>
    %c2_318 = arith.constant 2 : index
    %c0_319 = arith.constant 0 : index
    %c0_320 = arith.constant 0 : index
    %354 = vector.load %arg22[%c2_318, %c0_319, %c0_320] : memref<4x128x32xbf16, #tpu.memory_space<vmem>>, vector<1x128x32xbf16>
    %355 = vector.shape_cast %354 : vector<1x128x32xbf16> to vector<128x32xbf16>
    %cst_321 = arith.constant dense<0.000000e+00> : vector<98x32xf32>
    %356 = tpu.matmul %336, %355, %cst_321 {dimension_numbers = #tpu.dot_dimension_numbers<[1], [0], [0], [1], [0, 0, 1, 1], [], []>} : vector<98x128xbf16>, vector<128x32xbf16>, vector<98x32xf32> -> vector<98x32xf32>
    %357 = arith.truncf %356 : vector<98x32xf32> to vector<98x32xbf16>
    %c2_322 = arith.constant 2 : index
    %c0_323 = arith.constant 0 : index
    %c0_324 = arith.constant 0 : index
    %358 = vector.load %arg21[%c2_322, %c0_323, %c0_324] : memref<4x392x98xbf16, #tpu.memory_space<vmem>>, vector<1x392x98xbf16>
    %359 = vector.shape_cast %358 : vector<1x392x98xbf16> to vector<392x98xbf16>
    %cst_325 = arith.constant dense<0.000000e+00> : vector<392x32xf32>
    %360 = tpu.matmul %359, %357, %cst_325 {dimension_numbers = #tpu.dot_dimension_numbers<[1], [0], [0], [1], [0, 0, 1, 1], [], []>} : vector<392x98xbf16>, vector<98x32xbf16>, vector<392x32xf32> -> vector<392x32xf32>
    %361 = arith.addf %353, %360 : vector<392x32xf32>
    %c3_326 = arith.constant 3 : index
    %c0_327 = arith.constant 0 : index
    %c0_328 = arith.constant 0 : index
    %362 = vector.load %arg22[%c3_326, %c0_327, %c0_328] : memref<4x128x32xbf16, #tpu.memory_space<vmem>>, vector<1x128x32xbf16>
    %363 = vector.shape_cast %362 : vector<1x128x32xbf16> to vector<128x32xbf16>
    %cst_329 = arith.constant dense<0.000000e+00> : vector<98x32xf32>
    %364 = tpu.matmul %336, %363, %cst_329 {dimension_numbers = #tpu.dot_dimension_numbers<[1], [0], [0], [1], [0, 0, 1, 1], [], []>} : vector<98x128xbf16>, vector<128x32xbf16>, vector<98x32xf32> -> vector<98x32xf32>
    %365 = arith.truncf %364 : vector<98x32xf32> to vector<98x32xbf16>
    %c3_330 = arith.constant 3 : index
    %c0_331 = arith.constant 0 : index
    %c0_332 = arith.constant 0 : index
    %366 = vector.load %arg21[%c3_330, %c0_331, %c0_332] : memref<4x392x98xbf16, #tpu.memory_space<vmem>>, vector<1x392x98xbf16>
    %367 = vector.shape_cast %366 : vector<1x392x98xbf16> to vector<392x98xbf16>
    %cst_333 = arith.constant dense<0.000000e+00> : vector<392x32xf32>
    %368 = tpu.matmul %367, %365, %cst_333 {dimension_numbers = #tpu.dot_dimension_numbers<[1], [0], [0], [1], [0, 0, 1, 1], [], []>} : vector<392x98xbf16>, vector<98x32xbf16>, vector<392x32xf32> -> vector<392x32xf32>
    %369 = arith.addf %361, %368 : vector<392x32xf32>
    %c0_334 = arith.constant 0 : index
    %c0_335 = arith.constant 0 : index
    %370 = vector.load %arg23[%c0_334, %c0_335] : memref<2x128xf32, #tpu.memory_space<vmem>>, vector<2x128xf32>
    tpu.vector_store %arg23[%c0_334, %c0_335], %180 {strides = array<i32>} : memref<2x128xf32, #tpu.memory_space<vmem>>, vector<2x128xf32>,
    %c0_336 = arith.constant 0 : index
    %c0_337 = arith.constant 0 : index
    %371 = vector.load %arg24[%c0_336, %c0_337] : memref<2x128xf32, #tpu.memory_space<vmem>>, vector<2x128xf32>
    tpu.vector_store %arg24[%c0_336, %c0_337], %181 {strides = array<i32>} : memref<2x128xf32, #tpu.memory_space<vmem>>, vector<2x128xf32>,
    %372 = arith.truncf %369 : vector<392x32xf32> to vector<392x32xbf16>
    %c0_338 = arith.constant 0 : index
    %c0_339 = arith.constant 0 : index
    %373 = vector.load %arg25[%c0_338, %c0_339] : memref<392x32xbf16, #tpu.memory_space<vmem>>, vector<392x32xbf16>
    tpu.vector_store %arg25[%c0_338, %c0_339], %372 {strides = array<i32>} : memref<392x32xbf16, #tpu.memory_space<vmem>>, vector<392x32xbf16>,
    return
  }
}

module attributes {stable_mosaic.version = 11 : i64} {
  func.func @_matmul_bias_kernel(%arg0: i32, %arg1: memref<256x128xbf16, #tpu.memory_space<vmem>>, %arg2: memref<128x128xbf16, #tpu.memory_space<vmem>>, %arg3: memref<1x128xf32, #tpu.memory_space<vmem>>, %arg4: memref<256x128xbf16, #tpu.memory_space<vmem>>) attributes {dimension_semantics = [#tpu.dimension_semantics<parallel>], iteration_bounds = array<i64: 2>, scalar_prefetch = 0 : i64, scratch_operands = 0 : i64, tpu.core_type = #tpu.core_type<tc>, window_params = [{transform_indices = @transform_0, window_bounds = array<i64: 256, 128>}, {pipeline_mode = #tpu.pipeline_mode<synchronous>, transform_indices = @transform_1, window_bounds = array<i64: 128, 128>}, {pipeline_mode = #tpu.pipeline_mode<synchronous>, transform_indices = @transform_2, window_bounds = array<i64: 1, 128>}, {transform_indices = @transform_3, window_bounds = array<i64: 256, 128>}]} {
    %c0 = arith.constant 0 : index
    %c0_0 = arith.constant 0 : index
    %0 = vector.load %arg1[%c0, %c0_0] : memref<256x128xbf16, #tpu.memory_space<vmem>>, vector<256x128xbf16>
    %c0_1 = arith.constant 0 : index
    %c0_2 = arith.constant 0 : index
    %1 = vector.load %arg2[%c0_1, %c0_2] : memref<128x128xbf16, #tpu.memory_space<vmem>>, vector<128x128xbf16>
    %cst = arith.constant dense<0.000000e+00> : vector<256x128xf32>
    %2 = tpu.matmul %0, %1, %cst {dimension_numbers = #tpu.dot_dimension_numbers<[1], [0], [0], [1], [0, 0, 1, 1], [], []>} : vector<256x128xbf16>, vector<128x128xbf16>, vector<256x128xf32> -> vector<256x128xf32>
    %c0_3 = arith.constant 0 : index
    %c0_4 = arith.constant 0 : index
    %3 = vector.load %arg3[%c0_3, %c0_4] : memref<1x128xf32, #tpu.memory_space<vmem>>, vector<1x128xf32>
    %4 = vector.broadcast %3 : vector<1x128xf32> to vector<256x128xf32>
    %5 = arith.addf %2, %4 : vector<256x128xf32>
    %cst_5 = arith.constant 0.000000e+00 : f32
    %6 = vector.broadcast %cst_5 : f32 to vector<256x128xf32>
    %7 = arith.maximumf %5, %6 : vector<256x128xf32>
    %8 = arith.truncf %7 : vector<256x128xf32> to vector<256x128xbf16>
    %c0_6 = arith.constant 0 : index
    %c0_7 = arith.constant 0 : index
    %9 = vector.load %arg4[%c0_6, %c0_7] : memref<256x128xbf16, #tpu.memory_space<vmem>>, vector<256x128xbf16>
    tpu.vector_store %arg4[%c0_6, %c0_7], %8 {strides = array<i32>} : memref<256x128xbf16, #tpu.memory_space<vmem>>, vector<256x128xbf16>,
    return
  }
  func.func @transform_0(%arg0: i32) -> (i32, i32) {
    %c0_i32 = arith.constant 0 : i32
    %c0_i32_0 = arith.constant 0 : i32
    return %arg0, %c0_i32 : i32, i32
  }
  func.func @transform_1(%arg0: i32) -> (i32, i32) {
    %c0_i32 = arith.constant 0 : i32
    %c0_i32_0 = arith.constant 0 : i32
    %c0_i32_1 = arith.constant 0 : i32
    return %c0_i32, %c0_i32_0 : i32, i32
  }
  func.func @transform_2(%arg0: i32) -> (i32, i32) {
    %c0_i32 = arith.constant 0 : i32
    %c0_i32_0 = arith.constant 0 : i32
    %c0_i32_1 = arith.constant 0 : i32
    return %c0_i32, %c0_i32_0 : i32, i32
  }
  func.func @transform_3(%arg0: i32) -> (i32, i32) {
    %c0_i32 = arith.constant 0 : i32
    %c0_i32_0 = arith.constant 0 : i32
    return %arg0, %c0_i32 : i32, i32
  }
}

module attributes {stable_mosaic.version = 11 : i64} {
  func.func @_matmul_bias_kernel(%arg0: i32, %arg1: memref<512x128xbf16, #tpu.memory_space<vmem>>, %arg2: memref<128x4xbf16, #tpu.memory_space<vmem>>, %arg3: memref<1x4xf32, #tpu.memory_space<vmem>>, %arg4: memref<512x4xf32, #tpu.memory_space<vmem>>) attributes {dimension_semantics = [#tpu.dimension_semantics<parallel>], iteration_bounds = array<i64: 4>, scalar_prefetch = 0 : i64, scratch_operands = 0 : i64, tpu.core_type = #tpu.core_type<tc>, window_params = [{transform_indices = @transform_0, window_bounds = array<i64: 512, 128>}, {pipeline_mode = #tpu.pipeline_mode<synchronous>, transform_indices = @transform_1, window_bounds = array<i64: 128, 4>}, {pipeline_mode = #tpu.pipeline_mode<synchronous>, transform_indices = @transform_2, window_bounds = array<i64: 1, 4>}, {transform_indices = @transform_3, window_bounds = array<i64: 512, 4>}]} {
    %c0 = arith.constant 0 : index
    %c0_0 = arith.constant 0 : index
    %0 = vector.load %arg1[%c0, %c0_0] : memref<512x128xbf16, #tpu.memory_space<vmem>>, vector<512x128xbf16>
    %c0_1 = arith.constant 0 : index
    %c0_2 = arith.constant 0 : index
    %1 = vector.load %arg2[%c0_1, %c0_2] : memref<128x4xbf16, #tpu.memory_space<vmem>>, vector<128x4xbf16>
    %cst = arith.constant dense<0.000000e+00> : vector<512x4xf32>
    %2 = tpu.matmul %0, %1, %cst {dimension_numbers = #tpu.dot_dimension_numbers<[1], [0], [0], [1], [0, 0, 1, 1], [], []>} : vector<512x128xbf16>, vector<128x4xbf16>, vector<512x4xf32> -> vector<512x4xf32>
    %c0_3 = arith.constant 0 : index
    %c0_4 = arith.constant 0 : index
    %3 = vector.load %arg3[%c0_3, %c0_4] : memref<1x4xf32, #tpu.memory_space<vmem>>, vector<1x4xf32>
    %4 = vector.broadcast %3 : vector<1x4xf32> to vector<512x4xf32>
    %5 = arith.addf %2, %4 : vector<512x4xf32>
    %cst_5 = arith.constant 0.000000e+00 : f32
    %6 = vector.broadcast %cst_5 : f32 to vector<512x4xf32>
    %7 = arith.maximumf %5, %6 : vector<512x4xf32>
    %c0_6 = arith.constant 0 : index
    %c0_7 = arith.constant 0 : index
    %8 = vector.load %arg4[%c0_6, %c0_7] : memref<512x4xf32, #tpu.memory_space<vmem>>, vector<512x4xf32>
    tpu.vector_store %arg4[%c0_6, %c0_7], %7 {strides = array<i32>} : memref<512x4xf32, #tpu.memory_space<vmem>>, vector<512x4xf32>,
    return
  }
  func.func @transform_0(%arg0: i32) -> (i32, i32) {
    %c0_i32 = arith.constant 0 : i32
    %c0_i32_0 = arith.constant 0 : i32
    return %arg0, %c0_i32 : i32, i32
  }
  func.func @transform_1(%arg0: i32) -> (i32, i32) {
    %c0_i32 = arith.constant 0 : i32
    %c0_i32_0 = arith.constant 0 : i32
    %c0_i32_1 = arith.constant 0 : i32
    return %c0_i32, %c0_i32_0 : i32, i32
  }
  func.func @transform_2(%arg0: i32) -> (i32, i32) {
    %c0_i32 = arith.constant 0 : i32
    %c0_i32_0 = arith.constant 0 : i32
    %c0_i32_1 = arith.constant 0 : i32
    return %c0_i32, %c0_i32_0 : i32, i32
  }
  func.func @transform_3(%arg0: i32) -> (i32, i32) {
    %c0_i32 = arith.constant 0 : i32
    %c0_i32_0 = arith.constant 0 : i32
    return %arg0, %c0_i32 : i32, i32
  }
}

</mosaic_0001>

<bundles_post_ra>
// kernel: static_vae64_forward.5
= control target key start
LH: loop header
LB: loop body
LE: loop exit
PB: predicated region body
PF: predicated region fallthrough
CT: control target
= control target key end

     0   :  { %8 = vsyncpa [#allocation3], 0  ;;  %s2127_s0 = inlined_call_operand.vmem [shape: bf16[2048,16], index: 0, kind: input, shape index: {}]   ;;  %s2128_s1 = inlined_call_operand.hbm [shape: bf16[16,32], index: 1, kind: input, shape index: {}]   ;;  %s2129_s2 = inlined_call_operand.hbm [shape: f32[1,32], index: 2, kind: input, shape index: {}]   ;;  %s2130_s3 = inlined_call_operand.vmem [shape: bf16[2048,32], index: 3, kind: output, shape index: {}]  }
   0x1   :  { %9 = vsyncpa [#allocation5], 0  ;;  %s1761_s12 = smov 0  }
   0x2 LB: > { %s1291_s13 = sadd.s32 4294967295, %s1735_s12   ;;  %p1293_p0 = scmp.ge.s32.totalorder %s1735_s12, 1  ;;  %s1735_s12 = sphi %s1761_s12, %s15_s12  }
   0x3   : > { %p114_p1 = scmp.lt.s32.totalorder %s1735_s12, 5  ;;  %s1737_s14 = smov [#allocation2]  }
   0x4   : > { %s126_s15 = sshll.u32 %s1737_s14, 4  ;;  %p1775_p3 = scmp.eq.s32.totalorder %s1291_s13, 0  ;;  %s127_s15 = int_to_ptr.vmem [resolvable:$true] %s126_s15 }
   0x5   : > { %p1769_p2 = pnand %p1293_p0, %p114_p1  ;;  %s1738_s18 = smov [#allocation4]  }
   0x6   : > { %s2135_s17 = scalar_select %p1775_p3, 1, 0 }
   0x7   : > { %s2134_s16 = scalar_select %p1769_p2, 1, 0 }
   0x8   : > { %p1609_p4 = pneg %p1769_p2  ;;  %s140_s19 = sshll.u32 %s1738_s18, 4  ;;  %s1787_s19 = int_to_ptr.vmem [resolvable:$true] %s140_s19 }
   0x9   : > { %s1665_s23 = scalar_lea.hbm %s2128_s1, 128 }
   0xa   : > { %p1783_p5 = pnand %p1775_p3, %p1609_p4  ;;  %p1666_p6 = scmp.ne.s32.totalorder %s2128_s1, %s1665_s23 }
   0xb   : > { %p1672_p10 = scmp.lt.u32.totalorder %s1665_s23, %s2128_s1 }
   0xc   : > { %p1667_p7 = pneg %p1783_p5 }
   0xe   : > { %p1668_p8 = pnand %p1667_p7, %p1666_p6 }
  0x10   : > { %p1669_p9 = pneg %p1668_p8 }
  0x12   : > { %p1674_p11 = pnand %p1672_p10, %p1669_p9 }
  0x14   : > { %1677 = shalt.err (!%p1674_p11)
}
  0x15   : > { %s1678_s28 = scalar_lea.vmem %s127_s15, 128  ;;  %p1686_p1 = scmp.lt.s32.totalorder %s127_s15, %s127_s15 }
  0x16   : > { %p1679_p12 = scmp.ne.s32.totalorder %s127_s15, %s1678_s28  ;;  %p1687_p4 = scmp.lt.s32.totalorder %s1678_s28, %s1678_s28 }
  0x18   : > { %p1681_p13 = pnand %p1679_p12, %p1667_p7  ;;  %p1688_p3 = por %p1687_p4, %p1686_p1 }
  0x1a   : > { %p1682_p0 = pneg %p1681_p13 }
  0x1c   : > { %p1689_p2 = pnand %p1688_p3, %p1682_p0 }
  0x1e   : > { %1692 = shalt.err (!%p1689_p2)
}
  0x1f   : > { %s1739_s29 = smov 64   ;;  %s1740_s30 = smov 4  }
  0x20   : > { %1612 = dma.hbm_to_vmem [thread:$0]  (!%p1783_p5), %s2128_s1, 128, %s127_s15, [#allocation3], %s1739_s29, %s1739_s29, %s1740_s30  }
  0x21   : > { %s1693_s8 = scalar_lea.hbm %s2129_s2, 16 }
  0x22   : > { %p1694_p6 = scmp.ne.s32.totalorder %s2129_s2, %s1693_s8  ;;  %p1700_p8 = scmp.lt.u32.totalorder %s1693_s8, %s2129_s2 }
  0x24   : > { %p1696_p2 = pnand %p1694_p6, %p1667_p7 }
  0x26   : > { %p1697_p3 = pneg %p1696_p2 }
  0x28   : > { %p1702_p9 = pnand %p1700_p8, %p1697_p3 }
  0x2a   : > { %1705 = shalt.err (!%p1702_p9)
}
  0x2b   : > { %s1706_s15 = scalar_lea.vmem %s1787_s19, 16  ;;  %s1713_s18 = scalar_lea.vmem %s1787_s19, 32 }
  0x2c   : > { %p1707_p10 = scmp.ne.s32.totalorder %s1787_s19, %s1706_s15  ;;  %p1714_p13 = scmp.lt.s32.totalorder %s1787_s19, %s1787_s19 }
  0x2d   : > { %p1715_p0 = scmp.lt.s32.totalorder %s1713_s18, %s1706_s15 }
  0x2e   : > { %p1709_p11 = pnand %p1707_p10, %p1667_p7 }
  0x2f   : > { %p1716_p1 = por %p1715_p0, %p1714_p13 }
  0x30   : > { %p1710_p12 = pneg %p1709_p11 }
  0x32   : > { %p1717_p4 = pnand %p1716_p1, %p1710_p12 }
  0x34   : > { %1720 = shalt.err (!%p1717_p4)
}
  0x35   : > { %1615 = dma.hbm_to_vmem [thread:$0]  (!%p1783_p5), %s2129_s2, 16, %s1787_s19, [#allocation5]  }
  0x36   : > { %p2137_p6 = scmp.ne.s32.totalorder %s2134_s16, 0 }
  0x37   : > { %p2138_p7 = scmp.ne.s32.totalorder (!%p2137_p6), %s2135_s17, 0 }
  0x38   : > { %162 = sbr.rel (%p2137_p6) target bundleno = 353 (0x161), region = 32 }
  0x3f   : > { %1726 = dma.done.wait (%p2138_p7), [#allocation3], 128  }
  0x40   : > { %1728 = vsyncadd (%p2138_p7), [#allocation3], 4294967168 }
  0x41   : > { %1730 = dma.done.wait (%p2138_p7), [#allocation5], 16  }
  0x42   : > { %1732 = vsyncadd (%p2138_p7), [#allocation5], 4294967280  ;;  %s1300_s20 = sshll.u32 %s1291_s13, 6  ;;  %v1632_v0 = vld [vmem:[#allocation2] sm:$0xff]   ;;  %vm442_vm0 = vcmask 130048   ;;  %vm1148_vm1 = vcmask 257024  }
  0x43   : > { %p191_p2 = scmp.lt.s32.totalorder %s1300_s20, 255  ;;  %1533 = vmatprep.subr.bf16.mxu0 %v1632_v0  ;;  %1599 = vmatprep.subr.bf16.mxu1 %v1632_v0  ;;  %v1923_v33 = vld [vmem:[#allocation4] ss:$0 sm:$0xff] }
  0x44   : > { %1534 = vmatpush3.bf16.msra.mxu0 %v1632_v0  ;;  %1600 = vmatpush3.bf16.msra.mxu1 %v1632_v0 }
  0x45   : > { %s2140_s20 = smov (!%p191_p2, %s1300_s20), 255 }
  0x46   : > { %s1301_s16 = sshll.u32 %s2140_s20, 2 }
  0x47   : > { %s1857_s24 = scalar_lea.vmem %s2127_s0, %s1301_s16  ;;  %s1936_s25 = scalar_lea.vmem %s2130_s3, %s1301_s16 }
  0x48   : > { %v1633_v1 = vld [vmem:[%s1857_s24] sm:$0xff]   ;;  %v1635_v3 = vld [vmem:[%s1857_s24 + $0x8] sm:$0xff]   ;;  %v1637_v5 = vld [vmem:[%s1857_s24 + $0x10] sm:$0xff]  }
  0x49   : > { %v1634_v2 = vld [vmem:[%s1857_s24 + $0x80] sm:$0xff]   ;;  %1535 = vmatprep.mubr.msk.bf16.mxu0 %vm442_vm0, %v1633_v1  ;;  %v1636_v4 = vld [vmem:[%s1857_s24 + $0x88] sm:$0xff]   ;;  %v1638_v6 = vld [vmem:[%s1857_s24 + $0x90] sm:$0xff]  }
  0x4a   : > { %1567 = vmatprep.mubr.msk.bf16.mxu1 %vm442_vm0, %v1634_v2  ;;  %1536 = vmatmul.mubr.msk.bf16.vlgmr.msra.gmra.mrb[0].mxu0 %vm442_vm0, %v1635_v3  ;;  %v1639_v7 = vld [vmem:[%s1857_s24 + $0x18] sm:$0xff]   ;;  %v1641_v9 = vld [vmem:[%s1857_s24 + $0x20] sm:$0xff]   ;;  %v1643_v11 = vld [vmem:[%s1857_s24 + $0x28] sm:$0xff]  }
  0x4b   : > { %1568 = vmatmul.mubr.msk.bf16.vlgmr.msra.gmra.mrb[0].mxu1 %vm442_vm0, %v1636_v4  ;;  %1539 = vmatprep.mubr.msk.bf16.mxu0 %vm442_vm0, %v1637_v5  ;;  %v1640_v8 = vld [vmem:[%s1857_s24 + $0x98] sm:$0xff]   ;;  %v1642_v10 = vld [vmem:[%s1857_s24 + $0xa0] sm:$0xff]   ;;  %v1644_v12 = vld [vmem:[%s1857_s24 + $0xa8] sm:$0xff]  }
  0x4c   : > { %1571 = vmatprep.mubr.msk.bf16.mxu1 %vm442_vm0, %v1638_v6  ;;  %v1645_v13 = vld [vmem:[%s1857_s24 + $0x30] sm:$0xff]   ;;  %v1647_v15 = vld [vmem:[%s1857_s24 + $0x38] sm:$0xff]   ;;  %v1649_v17 = vld [vmem:[%s1857_s24 + $0x40] sm:$0xff]  }
  0x4d   : > { %v1646_v14 = vld [vmem:[%s1857_s24 + $0xb0] sm:$0xff]   ;;  %v1648_v16 = vld [vmem:[%s1857_s24 + $0xb8] sm:$0xff]   ;;  %v1650_v18 = vld [vmem:[%s1857_s24 + $0xc0] sm:$0xff]  }
  0x4e   : > { %v1651_v19 = vld [vmem:[%s1857_s24 + $0x48] sm:$0xff]   ;;  %v1653_v21 = vld [vmem:[%s1857_s24 + $0x50] sm:$0xff]   ;;  %v1655_v23 = vld [vmem:[%s1857_s24 + $0x58] sm:$0xff]  }
  0x4f   : > { %v1652_v20 = vld [vmem:[%s1857_s24 + $0xc8] sm:$0xff]   ;;  %v1654_v22 = vld [vmem:[%s1857_s24 + $0xd0] sm:$0xff]   ;;  %v1656_v24 = vld [vmem:[%s1857_s24 + $0xd8] sm:$0xff]  }
  0x50   : > { %v1657_v25 = vld [vmem:[%s1857_s24 + $0x60] sm:$0xff]   ;;  %v1659_v27 = vld [vmem:[%s1857_s24 + $0x68] sm:$0xff]   ;;  %v1661_v29 = vld [vmem:[%s1857_s24 + $0x70] sm:$0xff]  }
  0x51   : > { %v1658_v26 = vld [vmem:[%s1857_s24 + $0xe0] sm:$0xff]   ;;  %v1660_v28 = vld [vmem:[%s1857_s24 + $0xe8] sm:$0xff]   ;;  %v1662_v30 = vld [vmem:[%s1857_s24 + $0xf0] sm:$0xff]  }
  0x52   : > { %1540 = vmatmul.mubr.msk.bf16.gmra.mrb[4].mxu0 %vm442_vm0, %v1639_v7  ;;  %v1663_v31 = vld [vmem:[%s1857_s24 + $0x78] sm:$0xff]  }
  0x53   : > { %1572 = vmatmul.mubr.msk.bf16.gmra.mrb[4].mxu1 %vm442_vm0, %v1640_v8  ;;  %1543 = vmatprep.mubr.msk.bf16.mxu0 %vm442_vm0, %v1641_v9  ;;  %v1664_v32 = vld [vmem:[%s1857_s24 + $0xf8] sm:$0xff]  }
  0x54   : > { %1575 = vmatprep.mubr.msk.bf16.mxu1 %vm442_vm0, %v1642_v10 }
  0x5a   : > { %1544 = vmatmul.mubr.msk.bf16.gmra.mrb[8].mxu0 %vm442_vm0, %v1643_v11 }
  0x5b   : > { %1576 = vmatmul.mubr.msk.bf16.gmra.mrb[8].mxu1 %vm442_vm0, %v1644_v12  ;;  %1547 = vmatprep.mubr.msk.bf16.mxu0 %vm442_vm0, %v1645_v13 }
  0x5c   : > { %1579 = vmatprep.mubr.msk.bf16.mxu1 %vm442_vm0, %v1646_v14 }
  0x62   : > { %1548 = vmatmul.mubr.msk.bf16.gmra.mrb[12].mxu0 %vm442_vm0, %v1647_v15 }
  0x63   : > { %1580 = vmatmul.mubr.msk.bf16.gmra.mrb[12].mxu1 %vm442_vm0, %v1648_v16  ;;  %1551 = vmatprep.mubr.msk.bf16.mxu0 %vm442_vm0, %v1649_v17 }
  0x64   : > { %1583 = vmatprep.mubr.msk.bf16.mxu1 %vm442_vm0, %v1650_v18 }
  0x6a   : > { %1552 = vmatmul.mubr.msk.bf16.gmra.mrb[16].mxu0 %vm442_vm0, %v1651_v19 }
  0x6b   : > { %1584 = vmatmul.mubr.msk.bf16.gmra.mrb[16].mxu1 %vm442_vm0, %v1652_v20  ;;  %1555 = vmatprep.mubr.msk.bf16.mxu0 %vm442_vm0, %v1653_v21 }
  0x6c   : > { %1587 = vmatprep.mubr.msk.bf16.mxu1 %vm442_vm0, %v1654_v22 }
  0x72   : > { %1556 = vmatmul.mubr.msk.bf16.gmra.mrb[20].mxu0 %vm442_vm0, %v1655_v23 }
  0x73   : > { %1588 = vmatmul.mubr.msk.bf16.gmra.mrb[20].mxu1 %vm442_vm0, %v1656_v24  ;;  %1559 = vmatprep.mubr.msk.bf16.mxu0 %vm442_vm0, %v1657_v25 }
  0x74   : > { %1591 = vmatprep.mubr.msk.bf16.mxu1 %vm442_vm0, %v1658_v26 }
  0x7a   : > { %1560 = vmatmul.mubr.msk.bf16.gmra.mrb[24].mxu0 %vm442_vm0, %v1659_v27 }
  0x7b   : > { %1592 = vmatmul.mubr.msk.bf16.gmra.mrb[24].mxu1 %vm442_vm0, %v1660_v28  ;;  %1563 = vmatprep.mubr.msk.bf16.mxu0 %vm442_vm0, %v1661_v29 }
  0x7c   : > { %1595 = vmatprep.mubr.msk.bf16.mxu1 %vm442_vm0, %v1662_v30 }
  0x82   : > { %1564 = vmatmul.mubr.msk.bf16.gmra.mrb[28].mxu0 %vm442_vm0, %v1663_v31 }
  0x83   : > { %1596 = vmatmul.mubr.msk.bf16.gmra.mrb[28].mxu1 %vm442_vm0, %v1664_v32 }
 0x11d   : > { %v1537_v34 = vpop.f32.mrb[0].mxu0 }
 0x11e   : > { %v1569_v35 = vpop.f32.mrb[0].mxu1  ;;  %v582_v36 = vadd.f32 %v1537_v34, %v1923_v33  ;;  %v573_v38 = vpop.f32.mrb[1].mxu0 }
 0x11f   : > { %v710_v37 = vadd.f32 %v1569_v35, %v1923_v33  ;;  %v701_v39 = vpop.f32.mrb[1].mxu1  ;;  %v574_v40 = vadd.f32 %v1923_v33, %v573_v38  ;;  %v1538_v42 = vpop.f32.mrb[2].mxu0 }
 0x120   : > { %v702_v41 = vadd.f32 %v1923_v33, %v701_v39  ;;  %v1570_v43 = vpop.f32.mrb[2].mxu1  ;;  %v830_v44 = vmax.f32 %v582_v36, 0.0  ;;  %v585_v46 = vadd.f32 %v1538_v42, %v1923_v33  ;;  %v576_v48 = vpop.f32.mrb[3].mxu0 }
 0x121   : > { %v862_v45 = vmax.f32 %v710_v37, 0.0  ;;  %v713_v47 = vadd.f32 %v1570_v43, %v1923_v33  ;;  %v704_v49 = vpop.f32.mrb[3].mxu1  ;;  %v828_v50 = vmax.f32 %v574_v40, 0.0  ;;  %v577_v52 = vadd.f32 %v1923_v33, %v576_v48 }
 0x122   : > { %v860_v51 = vmax.f32 %v702_v41, 0.0  ;;  %v705_v53 = vadd.f32 %v1923_v33, %v704_v49  ;;  %v1438_v54 = vpack.c.bf16 %v830_v44, %v830_v44  ;;  %v831_v56 = vmax.f32 %v585_v46, 0.0 }
 0x123   : > { %v1470_v55 = vpack.c.bf16 %v862_v45, %v862_v45  ;;  %v863_v57 = vmax.f32 %v713_v47, 0.0  ;;  %v1436_v58 = vpack.c.bf16 %v828_v50, %v828_v50  ;;  %v829_v60 = vmax.f32 %v577_v52, 0.0 }
 0x124   : > { %v1468_v59 = vpack.c.bf16 %v860_v51, %v860_v51  ;;  %v861_v61 = vmax.f32 %v705_v53, 0.0  ;;  %1151 = vst.msk [vmem:[%s1936_s25 + $0x8] sm:$0xf] %vm1148_vm1, %v1438_v54  ;;  %v1439_v62 = vpack.c.bf16 %v831_v56, %v831_v56 }
 0x125   : > { %1183 = vst.msk [vmem:[%s1936_s25 + $0x88] sm:$0xf] %vm1148_vm1, %v1470_v55  ;;  %v1471_v63 = vpack.c.bf16 %v863_v57, %v863_v57  ;;  %1149 = vst.msk [vmem:[%s1936_s25] sm:$0xf] %vm1148_vm1, %v1436_v58  ;;  %v1437_v0 = vpack.c.bf16 %v829_v60, %v829_v60  ;;  %v1541_v2 = vpop.f32.mrb[4].mxu0 }
 0x126   : > { %1181 = vst.msk [vmem:[%s1936_s25 + $0x80] sm:$0xf] %vm1148_vm1, %v1468_v59  ;;  %v1469_v1 = vpack.c.bf16 %v861_v61, %v861_v61  ;;  %v1573_v3 = vpop.f32.mrb[4].mxu1  ;;  %1152 = vst.msk [vmem:[%s1936_s25 + $0xc] sm:$0xf] %vm1148_vm1, %v1439_v62  ;;  %v598_v4 = vadd.f32 %v1541_v2, %v1923_v33  ;;  %v589_v6 = vpop.f32.mrb[5].mxu0 }
 0x127   : > { %1184 = vst.msk [vmem:[%s1936_s25 + $0x8c] sm:$0xf] %vm1148_vm1, %v1471_v63  ;;  %v726_v5 = vadd.f32 %v1573_v3, %v1923_v33  ;;  %v717_v7 = vpop.f32.mrb[5].mxu1  ;;  %1150 = vst.msk [vmem:[%s1936_s25 + $0x4] sm:$0xf] %vm1148_vm1, %v1437_v0  ;;  %v590_v8 = vadd.f32 %v1923_v33, %v589_v6  ;;  %v1542_v10 = vpop.f32.mrb[6].mxu0 }
 0x128   : > { %1182 = vst.msk [vmem:[%s1936_s25 + $0x84] sm:$0xf] %vm1148_vm1, %v1469_v1  ;;  %v718_v9 = vadd.f32 %v1923_v33, %v717_v7  ;;  %v1574_v11 = vpop.f32.mrb[6].mxu1  ;;  %v834_v12 = vmax.f32 %v598_v4, 0.0  ;;  %v601_v14 = vadd.f32 %v1542_v10, %v1923_v33  ;;  %v592_v16 = vpop.f32.mrb[7].mxu0 }
 0x129   : > { %v866_v13 = vmax.f32 %v726_v5, 0.0  ;;  %v729_v15 = vadd.f32 %v1574_v11, %v1923_v33  ;;  %v720_v17 = vpop.f32.mrb[7].mxu1  ;;  %v832_v18 = vmax.f32 %v590_v8, 0.0  ;;  %v593_v20 = vadd.f32 %v1923_v33, %v592_v16 }
 0x12a   : > { %v864_v19 = vmax.f32 %v718_v9, 0.0  ;;  %v721_v21 = vadd.f32 %v1923_v33, %v720_v17  ;;  %v1442_v22 = vpack.c.bf16 %v834_v12, %v834_v12  ;;  %v835_v24 = vmax.f32 %v601_v14, 0.0 }
 0x12b   : > { %v1474_v23 = vpack.c.bf16 %v866_v13, %v866_v13  ;;  %v867_v25 = vmax.f32 %v729_v15, 0.0  ;;  %v1440_v26 = vpack.c.bf16 %v832_v18, %v832_v18  ;;  %v833_v28 = vmax.f32 %v593_v20, 0.0 }
 0x12c   : > { %v1472_v27 = vpack.c.bf16 %v864_v19, %v864_v19  ;;  %v865_v29 = vmax.f32 %v721_v21, 0.0  ;;  %1155 = vst.msk [vmem:[%s1936_s25 + $0x18] sm:$0xf] %vm1148_vm1, %v1442_v22  ;;  %v1443_v30 = vpack.c.bf16 %v835_v24, %v835_v24 }
 0x12d   : > { %1187 = vst.msk [vmem:[%s1936_s25 + $0x98] sm:$0xf] %vm1148_vm1, %v1474_v23  ;;  %v1475_v31 = vpack.c.bf16 %v867_v25, %v867_v25  ;;  %1153 = vst.msk [vmem:[%s1936_s25 + $0x10] sm:$0xf] %vm1148_vm1, %v1440_v26  ;;  %v1441_v32 = vpack.c.bf16 %v833_v28, %v833_v28  ;;  %v1545_v35 = vpop.f32.mrb[8].mxu0 }
 0x12e   : > { %1185 = vst.msk [vmem:[%s1936_s25 + $0x90] sm:$0xf] %vm1148_vm1, %v1472_v27  ;;  %v1473_v34 = vpack.c.bf16 %v865_v29, %v865_v29  ;;  %v1577_v36 = vpop.f32.mrb[8].mxu1  ;;  %1156 = vst.msk [vmem:[%s1936_s25 + $0x1c] sm:$0xf] %vm1148_vm1, %v1443_v30  ;;  %v614_v37 = vadd.f32 %v1545_v35, %v1923_v33  ;;  %v605_v39 = vpop.f32.mrb[9].mxu0 }
 0x12f   : > { %1188 = vst.msk [vmem:[%s1936_s25 + $0x9c] sm:$0xf] %vm1148_vm1, %v1475_v31  ;;  %v742_v38 = vadd.f32 %v1577_v36, %v1923_v33  ;;  %v733_v40 = vpop.f32.mrb[9].mxu1  ;;  %1154 = vst.msk [vmem:[%s1936_s25 + $0x14] sm:$0xf] %vm1148_vm1, %v1441_v32  ;;  %v606_v41 = vadd.f32 %v1923_v33, %v605_v39  ;;  %v1546_v43 = vpop.f32.mrb[10].mxu0 }
 0x130   : > { %1186 = vst.msk [vmem:[%s1936_s25 + $0x94] sm:$0xf] %vm1148_vm1, %v1473_v34  ;;  %v734_v42 = vadd.f32 %v1923_v33, %v733_v40  ;;  %v1578_v44 = vpop.f32.mrb[10].mxu1  ;;  %v838_v45 = vmax.f32 %v614_v37, 0.0  ;;  %v617_v47 = vadd.f32 %v1546_v43, %v1923_v33  ;;  %v608_v49 = vpop.f32.mrb[11].mxu0 }
 0x131   : > { %v870_v46 = vmax.f32 %v742_v38, 0.0  ;;  %v745_v48 = vadd.f32 %v1578_v44, %v1923_v33  ;;  %v736_v50 = vpop.f32.mrb[11].mxu1  ;;  %v836_v51 = vmax.f32 %v606_v41, 0.0  ;;  %v609_v53 = vadd.f32 %v1923_v33, %v608_v49 }
 0x132   : > { %v868_v52 = vmax.f32 %v734_v42, 0.0  ;;  %v737_v54 = vadd.f32 %v1923_v33, %v736_v50  ;;  %v1446_v55 = vpack.c.bf16 %v838_v45, %v838_v45  ;;  %v839_v57 = vmax.f32 %v617_v47, 0.0 }
 0x133   : > { %v1478_v56 = vpack.c.bf16 %v870_v46, %v870_v46  ;;  %v871_v58 = vmax.f32 %v745_v48, 0.0  ;;  %v1444_v59 = vpack.c.bf16 %v836_v51, %v836_v51  ;;  %v837_v61 = vmax.f32 %v609_v53, 0.0 }
 0x134   : > { %v1476_v60 = vpack.c.bf16 %v868_v52, %v868_v52  ;;  %v869_v62 = vmax.f32 %v737_v54, 0.0  ;;  %1159 = vst.msk [vmem:[%s1936_s25 + $0x28] sm:$0xf] %vm1148_vm1, %v1446_v55  ;;  %v1447_v63 = vpack.c.bf16 %v839_v57, %v839_v57 }
 0x135   : > { %1191 = vst.msk [vmem:[%s1936_s25 + $0xa8] sm:$0xf] %vm1148_vm1, %v1478_v56  ;;  %v1479_v0 = vpack.c.bf16 %v871_v58, %v871_v58  ;;  %1157 = vst.msk [vmem:[%s1936_s25 + $0x20] sm:$0xf] %vm1148_vm1, %v1444_v59  ;;  %v1445_v1 = vpack.c.bf16 %v837_v61, %v837_v61  ;;  %v1549_v3 = vpop.f32.mrb[12].mxu0 }
 0x136   : > { %1189 = vst.msk [vmem:[%s1936_s25 + $0xa0] sm:$0xf] %vm1148_vm1, %v1476_v60  ;;  %v1477_v2 = vpack.c.bf16 %v869_v62, %v869_v62  ;;  %v1581_v4 = vpop.f32.mrb[12].mxu1  ;;  %1160 = vst.msk [vmem:[%s1936_s25 + $0x2c] sm:$0xf] %vm1148_vm1, %v1447_v63  ;;  %v630_v5 = vadd.f32 %v1549_v3, %v1923_v33  ;;  %v621_v7 = vpop.f32.mrb[13].mxu0 }
 0x137   : > { %1192 = vst.msk [vmem:[%s1936_s25 + $0xac] sm:$0xf] %vm1148_vm1, %v1479_v0  ;;  %v758_v6 = vadd.f32 %v1581_v4, %v1923_v33  ;;  %v749_v8 = vpop.f32.mrb[13].mxu1  ;;  %1158 = vst.msk [vmem:[%s1936_s25 + $0x24] sm:$0xf] %vm1148_vm1, %v1445_v1  ;;  %v622_v9 = vadd.f32 %v1923_v33, %v621_v7  ;;  %v1550_v11 = vpop.f32.mrb[14].mxu0 }
 0x138   : > { %1190 = vst.msk [vmem:[%s1936_s25 + $0xa4] sm:$0xf] %vm1148_vm1, %v1477_v2  ;;  %v750_v10 = vadd.f32 %v1923_v33, %v749_v8  ;;  %v1582_v12 = vpop.f32.mrb[14].mxu1  ;;  %v842_v13 = vmax.f32 %v630_v5, 0.0  ;;  %v633_v15 = vadd.f32 %v1550_v11, %v1923_v33  ;;  %v624_v17 = vpop.f32.mrb[15].mxu0 }
 0x139   : > { %v874_v14 = vmax.f32 %v758_v6, 0.0  ;;  %v761_v16 = vadd.f32 %v1582_v12, %v1923_v33  ;;  %v752_v18 = vpop.f32.mrb[15].mxu1  ;;  %v840_v19 = vmax.f32 %v622_v9, 0.0  ;;  %v625_v21 = vadd.f32 %v1923_v33, %v624_v17 }
 0x13a   : > { %v872_v20 = vmax.f32 %v750_v10, 0.0  ;;  %v753_v22 = vadd.f32 %v1923_v33, %v752_v18  ;;  %v1450_v23 = vpack.c.bf16 %v842_v13, %v842_v13  ;;  %v843_v25 = vmax.f32 %v633_v15, 0.0 }
 0x13b   : > { %v1482_v24 = vpack.c.bf16 %v874_v14, %v874_v14  ;;  %v875_v26 = vmax.f32 %v761_v16, 0.0  ;;  %v1448_v27 = vpack.c.bf16 %v840_v19, %v840_v19  ;;  %v841_v29 = vmax.f32 %v625_v21, 0.0 }
 0x13c   : > { %v1480_v28 = vpack.c.bf16 %v872_v20, %v872_v20  ;;  %v873_v30 = vmax.f32 %v753_v22, 0.0  ;;  %1163 = vst.msk [vmem:[%s1936_s25 + $0x38] sm:$0xf] %vm1148_vm1, %v1450_v23  ;;  %v1451_v31 = vpack.c.bf16 %v843_v25, %v843_v25 }
 0x13d   : > { %1195 = vst.msk [vmem:[%s1936_s25 + $0xb8] sm:$0xf] %vm1148_vm1, %v1482_v24  ;;  %v1483_v32 = vpack.c.bf16 %v875_v26, %v875_v26  ;;  %1161 = vst.msk [vmem:[%s1936_s25 + $0x30] sm:$0xf] %vm1148_vm1, %v1448_v27  ;;  %v1449_v34 = vpack.c.bf16 %v841_v29, %v841_v29  ;;  %v1553_v36 = vpop.f32.mrb[16].mxu0 }
 0x13e   : > { %1193 = vst.msk [vmem:[%s1936_s25 + $0xb0] sm:$0xf] %vm1148_vm1, %v1480_v28  ;;  %v1481_v35 = vpack.c.bf16 %v873_v30, %v873_v30  ;;  %v1585_v37 = vpop.f32.mrb[16].mxu1  ;;  %1164 = vst.msk [vmem:[%s1936_s25 + $0x3c] sm:$0xf] %vm1148_vm1, %v1451_v31  ;;  %v646_v38 = vadd.f32 %v1553_v36, %v1923_v33  ;;  %v637_v40 = vpop.f32.mrb[17].mxu0 }
 0x13f   : > { %1196 = vst.msk [vmem:[%s1936_s25 + $0xbc] sm:$0xf] %vm1148_vm1, %v1483_v32  ;;  %v774_v39 = vadd.f32 %v1585_v37, %v1923_v33  ;;  %v765_v41 = vpop.f32.mrb[17].mxu1  ;;  %1162 = vst.msk [vmem:[%s1936_s25 + $0x34] sm:$0xf] %vm1148_vm1, %v1449_v34  ;;  %v638_v42 = vadd.f32 %v1923_v33, %v637_v40  ;;  %v1554_v44 = vpop.f32.mrb[18].mxu0 }
 0x140   : > { %1194 = vst.msk [vmem:[%s1936_s25 + $0xb4] sm:$0xf] %vm1148_vm1, %v1481_v35  ;;  %v766_v43 = vadd.f32 %v1923_v33, %v765_v41  ;;  %v1586_v45 = vpop.f32.mrb[18].mxu1  ;;  %v846_v46 = vmax.f32 %v646_v38, 0.0  ;;  %v649_v48 = vadd.f32 %v1554_v44, %v1923_v33  ;;  %v640_v50 = vpop.f32.mrb[19].mxu0 }
 0x141   : > { %v878_v47 = vmax.f32 %v774_v39, 0.0  ;;  %v777_v49 = vadd.f32 %v1586_v45, %v1923_v33  ;;  %v768_v51 = vpop.f32.mrb[19].mxu1  ;;  %v844_v52 = vmax.f32 %v638_v42, 0.0  ;;  %v641_v54 = vadd.f32 %v1923_v33, %v640_v50 }
 0x142   : > { %v876_v53 = vmax.f32 %v766_v43, 0.0  ;;  %v769_v55 = vadd.f32 %v1923_v33, %v768_v51  ;;  %v1454_v56 = vpack.c.bf16 %v846_v46, %v846_v46  ;;  %v847_v58 = vmax.f32 %v649_v48, 0.0 }
 0x143   : > { %v1486_v57 = vpack.c.bf16 %v878_v47, %v878_v47  ;;  %v879_v59 = vmax.f32 %v777_v49, 0.0  ;;  %v1452_v60 = vpack.c.bf16 %v844_v52, %v844_v52  ;;  %v845_v62 = vmax.f32 %v641_v54, 0.0 }
 0x144   : > { %v1484_v61 = vpack.c.bf16 %v876_v53, %v876_v53  ;;  %v877_v63 = vmax.f32 %v769_v55, 0.0  ;;  %1167 = vst.msk [vmem:[%s1936_s25 + $0x48] sm:$0xf] %vm1148_vm1, %v1454_v56  ;;  %v1455_v0 = vpack.c.bf16 %v847_v58, %v847_v58 }
 0x145   : > { %1199 = vst.msk [vmem:[%s1936_s25 + $0xc8] sm:$0xf] %vm1148_vm1, %v1486_v57  ;;  %v1487_v1 = vpack.c.bf16 %v879_v59, %v879_v59  ;;  %1165 = vst.msk [vmem:[%s1936_s25 + $0x40] sm:$0xf] %vm1148_vm1, %v1452_v60  ;;  %v1453_v2 = vpack.c.bf16 %v845_v62, %v845_v62  ;;  %v1557_v4 = vpop.f32.mrb[20].mxu0 }
 0x146   : > { %1197 = vst.msk [vmem:[%s1936_s25 + $0xc0] sm:$0xf] %vm1148_vm1, %v1484_v61  ;;  %v1485_v3 = vpack.c.bf16 %v877_v63, %v877_v63  ;;  %v1589_v5 = vpop.f32.mrb[20].mxu1  ;;  %1168 = vst.msk [vmem:[%s1936_s25 + $0x4c] sm:$0xf] %vm1148_vm1, %v1455_v0  ;;  %v662_v6 = vadd.f32 %v1557_v4, %v1923_v33  ;;  %v653_v8 = vpop.f32.mrb[21].mxu0 }
 0x147   : > { %1200 = vst.msk [vmem:[%s1936_s25 + $0xcc] sm:$0xf] %vm1148_vm1, %v1487_v1  ;;  %v790_v7 = vadd.f32 %v1589_v5, %v1923_v33  ;;  %v781_v9 = vpop.f32.mrb[21].mxu1  ;;  %1166 = vst.msk [vmem:[%s1936_s25 + $0x44] sm:$0xf] %vm1148_vm1, %v1453_v2  ;;  %v654_v10 = vadd.f32 %v1923_v33, %v653_v8  ;;  %v1558_v12 = vpop.f32.mrb[22].mxu0 }
 0x148   : > { %1198 = vst.msk [vmem:[%s1936_s25 + $0xc4] sm:$0xf] %vm1148_vm1, %v1485_v3  ;;  %v782_v11 = vadd.f32 %v1923_v33, %v781_v9  ;;  %v1590_v13 = vpop.f32.mrb[22].mxu1  ;;  %v850_v14 = vmax.f32 %v662_v6, 0.0  ;;  %v665_v16 = vadd.f32 %v1558_v12, %v1923_v33  ;;  %v656_v18 = vpop.f32.mrb[23].mxu0 }
 0x149   : > { %v882_v15 = vmax.f32 %v790_v7, 0.0  ;;  %v793_v17 = vadd.f32 %v1590_v13, %v1923_v33  ;;  %v784_v19 = vpop.f32.mrb[23].mxu1  ;;  %v848_v20 = vmax.f32 %v654_v10, 0.0  ;;  %v657_v22 = vadd.f32 %v1923_v33, %v656_v18 }
 0x14a   : > { %v880_v21 = vmax.f32 %v782_v11, 0.0  ;;  %v785_v23 = vadd.f32 %v1923_v33, %v784_v19  ;;  %v1458_v24 = vpack.c.bf16 %v850_v14, %v850_v14  ;;  %v851_v26 = vmax.f32 %v665_v16, 0.0 }
 0x14b   : > { %v1490_v25 = vpack.c.bf16 %v882_v15, %v882_v15  ;;  %v883_v27 = vmax.f32 %v793_v17, 0.0  ;;  %v1456_v28 = vpack.c.bf16 %v848_v20, %v848_v20  ;;  %v849_v30 = vmax.f32 %v657_v22, 0.0 }
 0x14c   : > { %v1488_v29 = vpack.c.bf16 %v880_v21, %v880_v21  ;;  %v881_v31 = vmax.f32 %v785_v23, 0.0  ;;  %1171 = vst.msk [vmem:[%s1936_s25 + $0x58] sm:$0xf] %vm1148_vm1, %v1458_v24  ;;  %v1459_v32 = vpack.c.bf16 %v851_v26, %v851_v26 }
 0x14d   : > { %1203 = vst.msk [vmem:[%s1936_s25 + $0xd8] sm:$0xf] %vm1148_vm1, %v1490_v25  ;;  %v1491_v34 = vpack.c.bf16 %v883_v27, %v883_v27  ;;  %1169 = vst.msk [vmem:[%s1936_s25 + $0x50] sm:$0xf] %vm1148_vm1, %v1456_v28  ;;  %v1457_v35 = vpack.c.bf16 %v849_v30, %v849_v30  ;;  %v1561_v37 = vpop.f32.mrb[24].mxu0 }
 0x14e   : > { %1201 = vst.msk [vmem:[%s1936_s25 + $0xd0] sm:$0xf] %vm1148_vm1, %v1488_v29  ;;  %v1489_v36 = vpack.c.bf16 %v881_v31, %v881_v31  ;;  %v1593_v38 = vpop.f32.mrb[24].mxu1  ;;  %1172 = vst.msk [vmem:[%s1936_s25 + $0x5c] sm:$0xf] %vm1148_vm1, %v1459_v32  ;;  %v678_v39 = vadd.f32 %v1561_v37, %v1923_v33  ;;  %v669_v41 = vpop.f32.mrb[25].mxu0 }
 0x14f   : > { %1204 = vst.msk [vmem:[%s1936_s25 + $0xdc] sm:$0xf] %vm1148_vm1, %v1491_v34  ;;  %v806_v40 = vadd.f32 %v1593_v38, %v1923_v33  ;;  %v797_v42 = vpop.f32.mrb[25].mxu1  ;;  %1170 = vst.msk [vmem:[%s1936_s25 + $0x54] sm:$0xf] %vm1148_vm1, %v1457_v35  ;;  %v670_v43 = vadd.f32 %v1923_v33, %v669_v41  ;;  %v1562_v45 = vpop.f32.mrb[26].mxu0 }
 0x150   : > { %1202 = vst.msk [vmem:[%s1936_s25 + $0xd4] sm:$0xf] %vm1148_vm1, %v1489_v36  ;;  %v798_v44 = vadd.f32 %v1923_v33, %v797_v42  ;;  %v1594_v46 = vpop.f32.mrb[26].mxu1  ;;  %v854_v47 = vmax.f32 %v678_v39, 0.0  ;;  %v681_v49 = vadd.f32 %v1562_v45, %v1923_v33  ;;  %v672_v51 = vpop.f32.mrb[27].mxu0 }
 0x151   : > { %v886_v48 = vmax.f32 %v806_v40, 0.0  ;;  %v809_v50 = vadd.f32 %v1594_v46, %v1923_v33  ;;  %v800_v52 = vpop.f32.mrb[27].mxu1  ;;  %v852_v53 = vmax.f32 %v670_v43, 0.0  ;;  %v673_v55 = vadd.f32 %v1923_v33, %v672_v51 }
 0x152   : > { %v884_v54 = vmax.f32 %v798_v44, 0.0  ;;  %v801_v56 = vadd.f32 %v1923_v33, %v800_v52  ;;  %v1462_v57 = vpack.c.bf16 %v854_v47, %v854_v47  ;;  %v855_v59 = vmax.f32 %v681_v49, 0.0 }
 0x153   : > { %v1494_v58 = vpack.c.bf16 %v886_v48, %v886_v48  ;;  %v887_v60 = vmax.f32 %v809_v50, 0.0  ;;  %v1460_v61 = vpack.c.bf16 %v852_v53, %v852_v53  ;;  %v853_v63 = vmax.f32 %v673_v55, 0.0 }
 0x154   : > { %v1492_v62 = vpack.c.bf16 %v884_v54, %v884_v54  ;;  %v885_v0 = vmax.f32 %v801_v56, 0.0  ;;  %1175 = vst.msk [vmem:[%s1936_s25 + $0x68] sm:$0xf] %vm1148_vm1, %v1462_v57  ;;  %v1463_v1 = vpack.c.bf16 %v855_v59, %v855_v59 }
 0x155   : > { %1207 = vst.msk [vmem:[%s1936_s25 + $0xe8] sm:$0xf] %vm1148_vm1, %v1494_v58  ;;  %v1495_v2 = vpack.c.bf16 %v887_v60, %v887_v60  ;;  %1173 = vst.msk [vmem:[%s1936_s25 + $0x60] sm:$0xf] %vm1148_vm1, %v1460_v61  ;;  %v1461_v3 = vpack.c.bf16 %v853_v63, %v853_v63  ;;  %v1565_v5 = vpop.f32.mrb[28].mxu0 }
 0x156   : > { %1205 = vst.msk [vmem:[%s1936_s25 + $0xe0] sm:$0xf] %vm1148_vm1, %v1492_v62  ;;  %v1493_v4 = vpack.c.bf16 %v885_v0, %v885_v0  ;;  %v1597_v6 = vpop.f32.mrb[28].mxu1  ;;  %1176 = vst.msk [vmem:[%s1936_s25 + $0x6c] sm:$0xf] %vm1148_vm1, %v1463_v1  ;;  %v694_v7 = vadd.f32 %v1565_v5, %v1923_v33  ;;  %v685_v9 = vpop.f32.mrb[29].mxu0 }
 0x157   : > { %1208 = vst.msk [vmem:[%s1936_s25 + $0xec] sm:$0xf] %vm1148_vm1, %v1495_v2  ;;  %v822_v8 = vadd.f32 %v1597_v6, %v1923_v33  ;;  %v813_v10 = vpop.f32.mrb[29].mxu1  ;;  %1174 = vst.msk [vmem:[%s1936_s25 + $0x64] sm:$0xf] %vm1148_vm1, %v1461_v3  ;;  %v686_v11 = vadd.f32 %v1923_v33, %v685_v9  ;;  %v1566_v13 = vpop.f32.mrb[30].mxu0 }
 0x158   : > { %1206 = vst.msk [vmem:[%s1936_s25 + $0xe4] sm:$0xf] %vm1148_vm1, %v1493_v4  ;;  %v814_v12 = vadd.f32 %v1923_v33, %v813_v10  ;;  %v1598_v14 = vpop.f32.mrb[30].mxu1  ;;  %v858_v15 = vmax.f32 %v694_v7, 0.0  ;;  %v697_v17 = vadd.f32 %v1566_v13, %v1923_v33  ;;  %v688_v19 = vpop.f32.mrb[31].mxu0 }
 0x159   : > { %v890_v16 = vmax.f32 %v822_v8, 0.0  ;;  %v825_v18 = vadd.f32 %v1598_v14, %v1923_v33  ;;  %v816_v20 = vpop.f32.mrb[31].mxu1  ;;  %v856_v21 = vmax.f32 %v686_v11, 0.0  ;;  %v689_v23 = vadd.f32 %v1923_v33, %v688_v19 }
 0x15a   : > { %v888_v22 = vmax.f32 %v814_v12, 0.0  ;;  %v817_v24 = vadd.f32 %v1923_v33, %v816_v20  ;;  %v1466_v25 = vpack.c.bf16 %v858_v15, %v858_v15  ;;  %v859_v27 = vmax.f32 %v697_v17, 0.0 }
 0x15b   : > { %v1498_v26 = vpack.c.bf16 %v890_v16, %v890_v16  ;;  %v891_v28 = vmax.f32 %v825_v18, 0.0  ;;  %v1464_v29 = vpack.c.bf16 %v856_v21, %v856_v21  ;;  %v857_v31 = vmax.f32 %v689_v23, 0.0 }
 0x15c   : > { %v1496_v30 = vpack.c.bf16 %v888_v22, %v888_v22  ;;  %v889_v32 = vmax.f32 %v817_v24, 0.0  ;;  %1179 = vst.msk [vmem:[%s1936_s25 + $0x78] sm:$0xf] %vm1148_vm1, %v1466_v25  ;;  %v1467_v34 = vpack.c.bf16 %v859_v27, %v859_v27 }
 0x15d   : > { %1211 = vst.msk [vmem:[%s1936_s25 + $0xf8] sm:$0xf] %vm1148_vm1, %v1498_v26  ;;  %v1499_v35 = vpack.c.bf16 %v891_v28, %v891_v28  ;;  %1177 = vst.msk [vmem:[%s1936_s25 + $0x70] sm:$0xf] %vm1148_vm1, %v1464_v29  ;;  %v1465_v33 = vpack.c.bf16 %v857_v31, %v857_v31 }
 0x15e   : > { %1209 = vst.msk [vmem:[%s1936_s25 + $0xf0] sm:$0xf] %vm1148_vm1, %v1496_v30  ;;  %v1497_v36 = vpack.c.bf16 %v889_v32, %v889_v32  ;;  %1180 = vst.msk [vmem:[%s1936_s25 + $0x7c] sm:$0xf] %vm1148_vm1, %v1467_v34 }
 0x15f   : > { %1212 = vst.msk [vmem:[%s1936_s25 + $0xfc] sm:$0xf] %vm1148_vm1, %v1499_v35  ;;  %1178 = vst.msk [vmem:[%s1936_s25 + $0x74] sm:$0xf] %vm1148_vm1, %v1465_v33 }
 0x160   : > { %1210 = vst.msk [vmem:[%s1936_s25 + $0xf4] sm:$0xf] %vm1148_vm1, %v1497_v36 }
 0x161 PF: > { %s15_s12 = sadd.s32 1, %s1735_s12  }
 0x162   : > { %p12_p5 = scmp.ge.s32.totalorder %s15_s12, 6  }
 0x164   :  { %14 = sbr.rel (!%p12_p5) target bundleno = 2 (0x2), region = 71 }
 0x16b   :  { %1235 = vsyncpa [#allocation3], 1 }
 0x16c   :  { %1237 = vsyncpa [#allocation3 + $0x1], 1 }
 0x16d   :  { %1238 = vsyncpa [#allocation5], 1 }

// kernel: static_vae64_forward.6
= control target key start
LH: loop header
LB: loop body
LE: loop exit
PB: predicated region body
PF: predicated region fallthrough
CT: control target
= control target key end

     0   :  { %s1958_s12 = smov 0   ;;  %s2246_s0 = inlined_call_operand.vmem [shape: bf16[512,512], index: 0, kind: input, shape index: {}]   ;;  %s2247_s1 = inlined_call_operand.vmem [shape: bf16[512,32], index: 1, kind: input, shape index: {}]   ;;  %s2248_s2 = inlined_call_operand.vmem [shape: f32[1,32], index: 2, kind: input, shape index: {}]   ;;  %s2249_s3 = inlined_call_operand.vmem [shape: bf16[512,32], index: 3, kind: output, shape index: {}]  }
   0x1 LB: > { %s1396_s13 = sadd.s32 4294967295, %s1936_s12   ;;  %p1400_p0 = scmp.ge.s32.totalorder %s1936_s12, 1  ;;  %s1936_s12 = sphi %s1958_s12, %s13_s12  }
   0x2   : > { %p139_p1 = scmp.lt.s32.totalorder %s1936_s12, 3 }
   0x4   : > { %p140_p2 = pnand %p1400_p0, %p139_p1 }
   0x5   : > { %v1802_v0 = vld [vmem:[%s2247_s1 + $0x40] sm:$0xff] (!%p140_p2)   ;;  %v1806_v4 = vld [vmem:[%s2247_s1 + $0x48] sm:$0xff] (!%p140_p2)   ;;  %v1810_v8 = vld [vmem:[%s2247_s1 + $0x50] sm:$0xff] (!%p140_p2)   ;;  %s1401_s21 = sshll.u32 (!%p140_p2), %s1396_s13, 5  ;;  %vm1307_vm0 = vcmask (!%p140_p2), 257024  }
   0x6   : > { %143 = sbr.rel (%p140_p2) target bundleno = 385 (0x181), region = 32  ;;  %v1803_v1 = vld [vmem:[%s2247_s1 + $0xc0] sm:$0xff] (!%p140_p2)   ;;  %1570 = vmatprep.subr.bf16.mxu0 (!%p140_p2), %v1802_v0  ;;  %v1807_v5 = vld [vmem:[%s2247_s1 + $0xc8] sm:$0xff] (!%p140_p2)   ;;  %v1811_v9 = vld [vmem:[%s2247_s1 + $0xd0] sm:$0xff] (!%p140_p2)   ;;  %p165_p3 = scmp.lt.s32.totalorder (!%p140_p2), %s1401_s21, 63 }
   0x7   : > { %v1804_v2 = vld [vmem:[%s2247_s1] sm:$0xff] (!%p140_p2)   ;;  %1682 = vmatprep.subr.bf16.mxu1 (!%p140_p2), %v1803_v1  ;;  %v1808_v6 = vld [vmem:[%s2247_s1 + $0x8] sm:$0xff] (!%p140_p2)   ;;  %v1812_v10 = vld [vmem:[%s2247_s1 + $0x10] sm:$0xff] (!%p140_p2)  }
   0x8   : > { %v1805_v3 = vld [vmem:[%s2247_s1 + $0x80] sm:$0xff] (!%p140_p2)   ;;  %1571 = vmatpush3.bf16.msra.mxu0 (!%p140_p2), %v1804_v2  ;;  %v1809_v7 = vld [vmem:[%s2247_s1 + $0x88] sm:$0xff] (!%p140_p2)   ;;  %v1813_v11 = vld [vmem:[%s2247_s1 + $0x90] sm:$0xff] (!%p140_p2)  }
   0x9   : > { %1683 = vmatpush3.bf16.msra.mxu1 (!%p140_p2), %v1805_v3  ;;  %1572 = vmatprep.subr.bf16.mxu0 (!%p140_p2), %v1806_v4  ;;  %v1814_v12 = vld [vmem:[%s2247_s1 + $0x58] sm:$0xff] (!%p140_p2)   ;;  %v1818_v16 = vld [vmem:[%s2247_s1 + $0x60] sm:$0xff] (!%p140_p2)   ;;  %v1822_v20 = vld [vmem:[%s2247_s1 + $0x68] sm:$0xff] (!%p140_p2)  }
   0xa   : > { %1684 = vmatprep.subr.bf16.mxu1 (!%p140_p2), %v1807_v5  ;;  %v1815_v13 = vld [vmem:[%s2247_s1 + $0xd8] sm:$0xff] (!%p140_p2)   ;;  %v1819_v17 = vld [vmem:[%s2247_s1 + $0xe0] sm:$0xff] (!%p140_p2)   ;;  %v1823_v21 = vld [vmem:[%s2247_s1 + $0xe8] sm:$0xff] (!%p140_p2)  }
   0xb   : > { %v1816_v14 = vld [vmem:[%s2247_s1 + $0x18] sm:$0xff] (!%p140_p2)   ;;  %v1820_v18 = vld [vmem:[%s2247_s1 + $0x20] sm:$0xff] (!%p140_p2)   ;;  %v1824_v22 = vld [vmem:[%s2247_s1 + $0x28] sm:$0xff] (!%p140_p2)  }
   0xc   : > { %1573 = vmatpush3.bf16.msra.mxu0 (!%p140_p2), %v1808_v6  ;;  %v1817_v15 = vld [vmem:[%s2247_s1 + $0x98] sm:$0xff] (!%p140_p2)   ;;  %v1821_v19 = vld [vmem:[%s2247_s1 + $0xa0] sm:$0xff] (!%p140_p2)   ;;  %v1825_v23 = vld [vmem:[%s2247_s1 + $0xa8] sm:$0xff] (!%p140_p2)  }
   0xd   : > { %1685 = vmatpush3.bf16.msra.mxu1 %v1809_v7  ;;  %1574 = vmatprep.subr.bf16.mxu0 %v1810_v8  ;;  %s2251_s21 = smov (!%p165_p3, %s1401_s21), 63  ;;  %v1826_v24 = vld [vmem:[%s2247_s1 + $0x70] sm:$0xff]   ;;  %v1830_v28 = vld [vmem:[%s2247_s1 + $0x78] sm:$0xff]  }
   0xe   : > { %1686 = vmatprep.subr.bf16.mxu1 %v1811_v9  ;;  %v1827_v25 = vld [vmem:[%s2247_s1 + $0xf0] sm:$0xff]   ;;  %s1537_s18 = sshll.u32 %s2251_s21, 4  ;;  %v1831_v29 = vld [vmem:[%s2247_s1 + $0xf8] sm:$0xff]   ;;  %s1405_s7 = sshll.u32 %s2251_s21, 2 }
   0xf   : > { %v1828_v26 = vld [vmem:[%s2247_s1 + $0x30] sm:$0xff]   ;;  %s2064_s28 = scalar_lea.vmem %s2246_s0, %s1537_s18  ;;  %v1832_v30 = vld [vmem:[%s2247_s1 + $0x38] sm:$0xff]   ;;  %s2147_s10 = scalar_lea.vmem %s2249_s3, %s1405_s7 }
  0x10   : > { %1575 = vmatpush3.bf16.msra.mxu0 %v1812_v10  ;;  %v1829_v27 = vld [vmem:[%s2247_s1 + $0xb0] sm:$0xff]   ;;  %v1833_v31 = vld [vmem:[%s2247_s1 + $0xb8] sm:$0xff]  }
  0x11   : > { %1687 = vmatpush3.bf16.msra.mxu1 %v1813_v11  ;;  %1576 = vmatprep.subr.bf16.mxu0 %v1814_v12  ;;  %v1834_v32 = vld [vmem:[%s2064_s28] ss:$16 sps:$4 sm:$0xff]   ;;  %v1836_v33 = vld [vmem:[%s2064_s28 + $0x4] ss:$16 sps:$4 sm:$0xff]   ;;  %v1837_v34 = vld [vmem:[%s2064_s28 + $0x8] ss:$16 sps:$4 sm:$0xff]  }
  0x12   : > { %1688 = vmatprep.subr.bf16.mxu1 %v1815_v13  ;;  %v1839_v35 = vld [vmem:[%s2064_s28 + $0xc] ss:$16 sps:$4 sm:$0xff]   ;;  %857 = vmatprep.mubr.bf16.mxu0 %v1836_v33  ;;  %v1840_v36 = vld [vmem:[%s2064_s28 + $0x24] ss:$16 sps:$4 sm:$0xff]   ;;  %v1844_v38 = vld [vmem:[%s2064_s28 + $0x20] ss:$16 sps:$4 sm:$0xff]  }
  0x13   : > { %1018 = vmatprep.mubr.bf16.mxu1 %v1839_v35  ;;  %v1842_v37 = vld [vmem:[%s2064_s28 + $0x2c] ss:$16 sps:$4 sm:$0xff]   ;;  %v1845_v39 = vld [vmem:[%s2064_s28 + $0x28] ss:$16 sps:$4 sm:$0xff]   ;;  %v1846_v40 = vld [vmem:[%s2064_s28 + $0x44] ss:$16 sps:$4 sm:$0xff]  }
  0x14   : > { %1577 = vmatpush3.bf16.msra.mxu0 %v1816_v14  ;;  %v1848_v41 = vld [vmem:[%s2064_s28 + $0x4c] ss:$16 sps:$4 sm:$0xff]   ;;  %v1850_v42 = vld [vmem:[%s2064_s28 + $0x40] ss:$16 sps:$4 sm:$0xff]   ;;  %v1851_v43 = vld [vmem:[%s2064_s28 + $0x48] ss:$16 sps:$4 sm:$0xff]  }
  0x15   : > { %1689 = vmatpush3.bf16.msra.mxu1 %v1817_v15  ;;  %1578 = vmatprep.subr.bf16.mxu0 %v1818_v16  ;;  %v1852_v44 = vld [vmem:[%s2064_s28 + $0x64] ss:$16 sps:$4 sm:$0xff]   ;;  %v1854_v45 = vld [vmem:[%s2064_s28 + $0x6c] ss:$16 sps:$4 sm:$0xff]   ;;  %v1856_v46 = vld [vmem:[%s2064_s28 + $0x60] ss:$16 sps:$4 sm:$0xff]  }
  0x16   : > { %1690 = vmatprep.subr.bf16.mxu1 %v1819_v17  ;;  %v1857_v47 = vld [vmem:[%s2064_s28 + $0x68] ss:$16 sps:$4 sm:$0xff]   ;;  %v1858_v48 = vld [vmem:[%s2064_s28 + $0x84] ss:$16 sps:$4 sm:$0xff]   ;;  %v1860_v49 = vld [vmem:[%s2064_s28 + $0x8c] ss:$16 sps:$4 sm:$0xff]  }
  0x17   : > { %v1862_v50 = vld [vmem:[%s2064_s28 + $0x80] ss:$16 sps:$4 sm:$0xff]   ;;  %v1863_v51 = vld [vmem:[%s2064_s28 + $0x88] ss:$16 sps:$4 sm:$0xff]   ;;  %v1864_v52 = vld [vmem:[%s2064_s28 + $0xa4] ss:$16 sps:$4 sm:$0xff]  }
  0x18   : > { %1579 = vmatpush3.bf16.msra.mxu0 %v1820_v18  ;;  %v1866_v53 = vld [vmem:[%s2064_s28 + $0xac] ss:$16 sps:$4 sm:$0xff]   ;;  %v1868_v54 = vld [vmem:[%s2064_s28 + $0xa0] ss:$16 sps:$4 sm:$0xff]   ;;  %v1869_v55 = vld [vmem:[%s2064_s28 + $0xa8] ss:$16 sps:$4 sm:$0xff]  }
  0x19   : > { %1691 = vmatpush3.bf16.msra.mxu1 %v1821_v19  ;;  %1580 = vmatprep.subr.bf16.mxu0 %v1822_v20  ;;  %v1870_v56 = vld [vmem:[%s2064_s28 + $0xc4] ss:$16 sps:$4 sm:$0xff]   ;;  %v1872_v57 = vld [vmem:[%s2064_s28 + $0xcc] ss:$16 sps:$4 sm:$0xff]   ;;  %v1874_v58 = vld [vmem:[%s2064_s28 + $0xc0] ss:$16 sps:$4 sm:$0xff]  }
  0x1a   : > { %1692 = vmatprep.subr.bf16.mxu1 %v1823_v21  ;;  %v1875_v59 = vld [vmem:[%s2064_s28 + $0xc8] ss:$16 sps:$4 sm:$0xff]   ;;  %v1876_v60 = vld [vmem:[%s2064_s28 + $0xe4] ss:$16 sps:$4 sm:$0xff]   ;;  %v1878_v61 = vld [vmem:[%s2064_s28 + $0xec] ss:$16 sps:$4 sm:$0xff]  }
  0x1b   : > { %v1880_v62 = vld [vmem:[%s2064_s28 + $0xe0] ss:$16 sps:$4 sm:$0xff]   ;;  %v1881_v63 = vld [vmem:[%s2064_s28 + $0xe8] ss:$16 sps:$4 sm:$0xff]   ;;  %v1882_v0 = vld [vmem:[%s2064_s28 + $0x104] ss:$16 sps:$4 sm:$0xff]  }
  0x1c   : > { %1581 = vmatpush3.bf16.msra.mxu0 %v1824_v22  ;;  %v1884_v1 = vld [vmem:[%s2064_s28 + $0x10c] ss:$16 sps:$4 sm:$0xff]   ;;  %v1886_v2 = vld [vmem:[%s2064_s28 + $0x100] ss:$16 sps:$4 sm:$0xff]   ;;  %v1887_v3 = vld [vmem:[%s2064_s28 + $0x108] ss:$16 sps:$4 sm:$0xff]  }
  0x1d   : > { %1693 = vmatpush3.bf16.msra.mxu1 %v1825_v23  ;;  %1582 = vmatprep.subr.bf16.mxu0 %v1826_v24  ;;  %v1888_v4 = vld [vmem:[%s2064_s28 + $0x124] ss:$16 sps:$4 sm:$0xff]   ;;  %v1890_v5 = vld [vmem:[%s2064_s28 + $0x12c] ss:$16 sps:$4 sm:$0xff]   ;;  %v1892_v6 = vld [vmem:[%s2064_s28 + $0x120] ss:$16 sps:$4 sm:$0xff]  }
  0x1e   : > { %1694 = vmatprep.subr.bf16.mxu1 %v1827_v25  ;;  %v1893_v7 = vld [vmem:[%s2064_s28 + $0x128] ss:$16 sps:$4 sm:$0xff]   ;;  %v1894_v8 = vld [vmem:[%s2064_s28 + $0x144] ss:$16 sps:$4 sm:$0xff]   ;;  %v1896_v9 = vld [vmem:[%s2064_s28 + $0x14c] ss:$16 sps:$4 sm:$0xff]  }
  0x1f   : > { %v1898_v10 = vld [vmem:[%s2064_s28 + $0x140] ss:$16 sps:$4 sm:$0xff]   ;;  %v1899_v11 = vld [vmem:[%s2064_s28 + $0x148] ss:$16 sps:$4 sm:$0xff]   ;;  %v1900_v12 = vld [vmem:[%s2064_s28 + $0x164] ss:$16 sps:$4 sm:$0xff]  }
  0x20   : > { %1583 = vmatpush3.bf16.msra.mxu0 %v1828_v26  ;;  %v1902_v13 = vld [vmem:[%s2064_s28 + $0x16c] ss:$16 sps:$4 sm:$0xff]   ;;  %v1904_v14 = vld [vmem:[%s2064_s28 + $0x160] ss:$16 sps:$4 sm:$0xff]   ;;  %v1905_v15 = vld [vmem:[%s2064_s28 + $0x168] ss:$16 sps:$4 sm:$0xff]  }
  0x21   : > { %1695 = vmatpush3.bf16.msra.mxu1 %v1829_v27  ;;  %1584 = vmatprep.subr.bf16.mxu0 %v1830_v28  ;;  %v1906_v16 = vld [vmem:[%s2064_s28 + $0x184] ss:$16 sps:$4 sm:$0xff]   ;;  %v1908_v17 = vld [vmem:[%s2064_s28 + $0x18c] ss:$16 sps:$4 sm:$0xff]   ;;  %v1910_v18 = vld [vmem:[%s2064_s28 + $0x180] ss:$16 sps:$4 sm:$0xff]  }
  0x22   : > { %1696 = vmatprep.subr.bf16.mxu1 %v1831_v29  ;;  %v1911_v19 = vld [vmem:[%s2064_s28 + $0x188] ss:$16 sps:$4 sm:$0xff]   ;;  %v1912_v20 = vld [vmem:[%s2064_s28 + $0x1a4] ss:$16 sps:$4 sm:$0xff]   ;;  %v1914_v21 = vld [vmem:[%s2064_s28 + $0x1ac] ss:$16 sps:$4 sm:$0xff]  }
  0x23   : > { %v1916_v22 = vld [vmem:[%s2064_s28 + $0x1a0] ss:$16 sps:$4 sm:$0xff]   ;;  %v1917_v23 = vld [vmem:[%s2064_s28 + $0x1a8] ss:$16 sps:$4 sm:$0xff]   ;;  %v1918_v24 = vld [vmem:[%s2064_s28 + $0x1c4] ss:$16 sps:$4 sm:$0xff]  }
  0x24   : > { %1585 = vmatpush3.bf16.msra.mxu0 %v1832_v30  ;;  %v1920_v25 = vld [vmem:[%s2064_s28 + $0x1cc] ss:$16 sps:$4 sm:$0xff]   ;;  %v1922_v26 = vld [vmem:[%s2064_s28 + $0x1c0] ss:$16 sps:$4 sm:$0xff]   ;;  %v1923_v27 = vld [vmem:[%s2064_s28 + $0x1c8] ss:$16 sps:$4 sm:$0xff]  }
  0x25   : > { %1697 = vmatpush3.bf16.msra.mxu1 %v1833_v31  ;;  %v1924_v28 = vld [vmem:[%s2064_s28 + $0x1e4] ss:$16 sps:$4 sm:$0xff]   ;;  %v1926_v29 = vld [vmem:[%s2064_s28 + $0x1ec] ss:$16 sps:$4 sm:$0xff]   ;;  %v1928_v30 = vld [vmem:[%s2064_s28 + $0x1e0] ss:$16 sps:$4 sm:$0xff]  }
  0x26   : > { %v1929_v31 = vld [vmem:[%s2064_s28 + $0x1e8] ss:$16 sps:$4 sm:$0xff]  }
  0x27   : > { %858 = vmatmul.mubr.bf16.vlgmr.msra.gmra.mrb[0].mxu0 %v1834_v32 }
  0x28   : > { %1019 = vmatmul.mubr.bf16.vlgmr.msra.gmra.mrb[0].mxu1 %v1837_v34  ;;  %865 = vmatprep.mubr.bf16.mxu0 %v1840_v36  ;;  %v2139_v34 = vld [vmem:[%s2248_s2] ss:$0 sm:$0xff] }
  0x29   : > { %1026 = vmatprep.mubr.bf16.mxu1 %v1842_v37 }
  0x2f   : > { %866 = vmatmul.mubr.bf16.gmra.mrb[4].mxu0 %v1844_v38 }
  0x30   : > { %1027 = vmatmul.mubr.bf16.gmra.mrb[4].mxu1 %v1845_v39  ;;  %873 = vmatprep.mubr.bf16.mxu0 %v1846_v40 }
  0x31   : > { %1034 = vmatprep.mubr.bf16.mxu1 %v1848_v41 }
  0x37   : > { %874 = vmatmul.mubr.bf16.gmra.mrb[8].mxu0 %v1850_v42 }
  0x38   : > { %1035 = vmatmul.mubr.bf16.gmra.mrb[8].mxu1 %v1851_v43  ;;  %881 = vmatprep.mubr.bf16.mxu0 %v1852_v44 }
  0x39   : > { %1042 = vmatprep.mubr.bf16.mxu1 %v1854_v45 }
  0x3f   : > { %882 = vmatmul.mubr.bf16.gmra.mrb[12].mxu0 %v1856_v46 }
  0x40   : > { %1043 = vmatmul.mubr.bf16.gmra.mrb[12].mxu1 %v1857_v47  ;;  %889 = vmatprep.mubr.bf16.mxu0 %v1858_v48 }
  0x41   : > { %1050 = vmatprep.mubr.bf16.mxu1 %v1860_v49 }
  0x47   : > { %890 = vmatmul.mubr.bf16.gmra.mrb[16].mxu0 %v1862_v50 }
  0x48   : > { %1051 = vmatmul.mubr.bf16.gmra.mrb[16].mxu1 %v1863_v51  ;;  %897 = vmatprep.mubr.bf16.mxu0 %v1864_v52 }
  0x49   : > { %1058 = vmatprep.mubr.bf16.mxu1 %v1866_v53 }
  0x4f   : > { %898 = vmatmul.mubr.bf16.gmra.mrb[20].mxu0 %v1868_v54 }
  0x50   : > { %1059 = vmatmul.mubr.bf16.gmra.mrb[20].mxu1 %v1869_v55  ;;  %905 = vmatprep.mubr.bf16.mxu0 %v1870_v56 }
  0x51   : > { %1066 = vmatprep.mubr.bf16.mxu1 %v1872_v57 }
  0x57   : > { %906 = vmatmul.mubr.bf16.gmra.mrb[24].mxu0 %v1874_v58 }
  0x58   : > { %1067 = vmatmul.mubr.bf16.gmra.mrb[24].mxu1 %v1875_v59  ;;  %913 = vmatprep.mubr.bf16.mxu0 %v1876_v60 }
  0x59   : > { %1074 = vmatprep.mubr.bf16.mxu1 %v1878_v61 }
  0x5f   : > { %914 = vmatmul.mubr.bf16.gmra.mrb[28].mxu0 %v1880_v62 }
  0x60   : > { %1075 = vmatmul.mubr.bf16.gmra.mrb[28].mxu1 %v1881_v63  ;;  %921 = vmatprep.mubr.bf16.mxu0 %v1882_v0 }
  0x61   : > { %1082 = vmatprep.mubr.bf16.mxu1 %v1884_v1 }
  0x67   : > { %922 = vmatmul.mubr.bf16.gmra.mrb[32].mxu0 %v1886_v2 }
  0x68   : > { %1083 = vmatmul.mubr.bf16.gmra.mrb[32].mxu1 %v1887_v3  ;;  %929 = vmatprep.mubr.bf16.mxu0 %v1888_v4 }
  0x69   : > { %1090 = vmatprep.mubr.bf16.mxu1 %v1890_v5 }
  0x6f   : > { %930 = vmatmul.mubr.bf16.gmra.mrb[36].mxu0 %v1892_v6 }
  0x70   : > { %1091 = vmatmul.mubr.bf16.gmra.mrb[36].mxu1 %v1893_v7  ;;  %937 = vmatprep.mubr.bf16.mxu0 %v1894_v8 }
  0x71   : > { %1098 = vmatprep.mubr.bf16.mxu1 %v1896_v9 }
  0x77   : > { %938 = vmatmul.mubr.bf16.gmra.mrb[40].mxu0 %v1898_v10 }
  0x78   : > { %1099 = vmatmul.mubr.bf16.gmra.mrb[40].mxu1 %v1899_v11  ;;  %945 = vmatprep.mubr.bf16.mxu0 %v1900_v12 }
  0x79   : > { %1106 = vmatprep.mubr.bf16.mxu1 %v1902_v13 }
  0x7f   : > { %946 = vmatmul.mubr.bf16.gmra.mrb[44].mxu0 %v1904_v14 }
  0x80   : > { %1107 = vmatmul.mubr.bf16.gmra.mrb[44].mxu1 %v1905_v15  ;;  %953 = vmatprep.mubr.bf16.mxu0 %v1906_v16 }
  0x81   : > { %1114 = vmatprep.mubr.bf16.mxu1 %v1908_v17 }
  0x87   : > { %954 = vmatmul.mubr.bf16.gmra.mrb[48].mxu0 %v1910_v18 }
  0x88   : > { %1115 = vmatmul.mubr.bf16.gmra.mrb[48].mxu1 %v1911_v19  ;;  %961 = vmatprep.mubr.bf16.mxu0 %v1912_v20 }
  0x89   : > { %1122 = vmatprep.mubr.bf16.mxu1 %v1914_v21 }
  0x8f   : > { %962 = vmatmul.mubr.bf16.gmra.mrb[52].mxu0 %v1916_v22 }
  0x90   : > { %1123 = vmatmul.mubr.bf16.gmra.mrb[52].mxu1 %v1917_v23  ;;  %969 = vmatprep.mubr.bf16.mxu0 %v1918_v24 }
  0x91   : > { %1130 = vmatprep.mubr.bf16.mxu1 %v1920_v25 }
  0x97   : > { %970 = vmatmul.mubr.bf16.gmra.mrb[56].mxu0 %v1922_v26 }
  0x98   : > { %1131 = vmatmul.mubr.bf16.gmra.mrb[56].mxu1 %v1923_v27  ;;  %977 = vmatprep.mubr.bf16.mxu0 %v1924_v28 }
  0x99   : > { %1138 = vmatprep.mubr.bf16.mxu1 %v1926_v29 }
  0x9f   : > { %978 = vmatmul.mubr.bf16.gmra.mrb[60].mxu0 %v1928_v30 }
  0xa0   : > { %1139 = vmatmul.mubr.bf16.gmra.mrb[60].mxu1 %v1929_v31 }
  0xfa   : > { %v1586_v32 = vpop.f32.mrb[0].mxu0 }
  0xfb   : > { %v1698_v33 = vpop.f32.mrb[0].mxu1  ;;  %v1587_v35 = vpop.f32.mrb[1].mxu0 }
  0xfc   : > { %v1588_v36 = vadd.f32 %v1587_v35, %v1586_v32  ;;  %v1699_v37 = vpop.f32.mrb[1].mxu1  ;;  %v1589_v38 = vpop.f32.mrb[2].mxu0 }
  0xfd   : > { %v1700_v39 = vadd.f32 %v1699_v37, %v1698_v33  ;;  %v1701_v40 = vpop.f32.mrb[2].mxu1  ;;  %v1590_v41 = vpop.f32.mrb[3].mxu0 }
  0xfe   : > { %v860_v42 = vadd.f32 %v1588_v36, %v2139_v34  ;;  %v1591_v43 = vadd.f32 %v1590_v41, %v1589_v38  ;;  %v1702_v44 = vpop.f32.mrb[3].mxu1 }
  0xff   : > { %v1703_v45 = vadd.f32 %v1702_v44, %v1701_v40 }
 0x100   : > { %v1021_v46 = vadd.f32 %v1700_v39, %v860_v42  ;;  %v863_v47 = vadd.f32 %v1591_v43, %v2139_v34 }
 0x102   : > { %v1147_v48 = vmax.f32 %v1021_v46, 0.0  ;;  %v1024_v49 = vadd.f32 %v1703_v45, %v863_v47  ;;  %v1592_v50 = vpop.f32.mrb[4].mxu0 }
 0x103   : > { %v1704_v51 = vpop.f32.mrb[4].mxu1  ;;  %v1593_v52 = vpop.f32.mrb[5].mxu0 }
 0x104   : > { %v1538_v53 = vpack.c.bf16 %v1147_v48, %v1147_v48  ;;  %v1148_v54 = vmax.f32 %v1024_v49, 0.0  ;;  %v1594_v55 = vadd.f32 %v1593_v52, %v1592_v50  ;;  %v1705_v56 = vpop.f32.mrb[5].mxu1  ;;  %v1595_v57 = vpop.f32.mrb[6].mxu0 }
 0x105   : > { %v1706_v58 = vadd.f32 %v1705_v56, %v1704_v51  ;;  %v1707_v59 = vpop.f32.mrb[6].mxu1  ;;  %v1596_v60 = vpop.f32.mrb[7].mxu0 }
 0x106   : > { %1308 = vst.msk [vmem:[%s2147_s10] sm:$0xf] %vm1307_vm0, %v1538_v53  ;;  %v1539_v61 = vpack.c.bf16 %v1148_v54, %v1148_v54  ;;  %v868_v62 = vadd.f32 %v1594_v55, %v2139_v34  ;;  %v1597_v63 = vadd.f32 %v1596_v60, %v1595_v57  ;;  %v1708_v0 = vpop.f32.mrb[7].mxu1 }
 0x107   : > { %v1709_v1 = vadd.f32 %v1708_v0, %v1707_v59 }
 0x108   : > { %1309 = vst.msk [vmem:[%s2147_s10 + $0x4] sm:$0xf] %vm1307_vm0, %v1539_v61  ;;  %v1029_v2 = vadd.f32 %v1706_v58, %v868_v62  ;;  %v871_v3 = vadd.f32 %v1597_v63, %v2139_v34 }
 0x10a   : > { %v1149_v4 = vmax.f32 %v1029_v2, 0.0  ;;  %v1032_v5 = vadd.f32 %v1709_v1, %v871_v3  ;;  %v1598_v6 = vpop.f32.mrb[8].mxu0 }
 0x10b   : > { %v1710_v7 = vpop.f32.mrb[8].mxu1  ;;  %v1599_v8 = vpop.f32.mrb[9].mxu0 }
 0x10c   : > { %v1540_v9 = vpack.c.bf16 %v1149_v4, %v1149_v4  ;;  %v1150_v10 = vmax.f32 %v1032_v5, 0.0  ;;  %v1600_v11 = vadd.f32 %v1599_v8, %v1598_v6  ;;  %v1711_v12 = vpop.f32.mrb[9].mxu1  ;;  %v1601_v13 = vpop.f32.mrb[10].mxu0 }
 0x10d   : > { %v1712_v14 = vadd.f32 %v1711_v12, %v1710_v7  ;;  %v1713_v15 = vpop.f32.mrb[10].mxu1  ;;  %v1602_v16 = vpop.f32.mrb[11].mxu0 }
 0x10e   : > { %1310 = vst.msk [vmem:[%s2147_s10 + $0x8] sm:$0xf] %vm1307_vm0, %v1540_v9  ;;  %v1541_v17 = vpack.c.bf16 %v1150_v10, %v1150_v10  ;;  %v876_v18 = vadd.f32 %v1600_v11, %v2139_v34  ;;  %v1603_v19 = vadd.f32 %v1602_v16, %v1601_v13  ;;  %v1714_v20 = vpop.f32.mrb[11].mxu1 }
 0x10f   : > { %v1715_v21 = vadd.f32 %v1714_v20, %v1713_v15 }
 0x110   : > { %1311 = vst.msk [vmem:[%s2147_s10 + $0xc] sm:$0xf] %vm1307_vm0, %v1541_v17  ;;  %v1037_v22 = vadd.f32 %v1712_v14, %v876_v18  ;;  %v879_v23 = vadd.f32 %v1603_v19, %v2139_v34 }
 0x112   : > { %v1151_v24 = vmax.f32 %v1037_v22, 0.0  ;;  %v1040_v25 = vadd.f32 %v1715_v21, %v879_v23  ;;  %v1604_v26 = vpop.f32.mrb[12].mxu0 }
 0x113   : > { %v1716_v27 = vpop.f32.mrb[12].mxu1  ;;  %v1605_v28 = vpop.f32.mrb[13].mxu0 }
 0x114   : > { %v1542_v29 = vpack.c.bf16 %v1151_v24, %v1151_v24  ;;  %v1152_v30 = vmax.f32 %v1040_v25, 0.0  ;;  %v1606_v31 = vadd.f32 %v1605_v28, %v1604_v26  ;;  %v1717_v32 = vpop.f32.mrb[13].mxu1  ;;  %v1607_v33 = vpop.f32.mrb[14].mxu0 }
 0x115   : > { %v1718_v35 = vadd.f32 %v1717_v32, %v1716_v27  ;;  %v1719_v36 = vpop.f32.mrb[14].mxu1  ;;  %v1608_v37 = vpop.f32.mrb[15].mxu0 }
 0x116   : > { %1312 = vst.msk [vmem:[%s2147_s10 + $0x10] sm:$0xf] %vm1307_vm0, %v1542_v29  ;;  %v1543_v38 = vpack.c.bf16 %v1152_v30, %v1152_v30  ;;  %v884_v39 = vadd.f32 %v1606_v31, %v2139_v34  ;;  %v1609_v40 = vadd.f32 %v1608_v37, %v1607_v33  ;;  %v1720_v41 = vpop.f32.mrb[15].mxu1 }
 0x117   : > { %v1721_v42 = vadd.f32 %v1720_v41, %v1719_v36 }
 0x118   : > { %1313 = vst.msk [vmem:[%s2147_s10 + $0x14] sm:$0xf] %vm1307_vm0, %v1543_v38  ;;  %v1045_v43 = vadd.f32 %v1718_v35, %v884_v39  ;;  %v887_v44 = vadd.f32 %v1609_v40, %v2139_v34 }
 0x11a   : > { %v1153_v45 = vmax.f32 %v1045_v43, 0.0  ;;  %v1048_v46 = vadd.f32 %v1721_v42, %v887_v44  ;;  %v1610_v47 = vpop.f32.mrb[16].mxu0 }
 0x11b   : > { %v1722_v48 = vpop.f32.mrb[16].mxu1  ;;  %v1611_v49 = vpop.f32.mrb[17].mxu0 }
 0x11c   : > { %v1544_v50 = vpack.c.bf16 %v1153_v45, %v1153_v45  ;;  %v1154_v51 = vmax.f32 %v1048_v46, 0.0  ;;  %v1612_v52 = vadd.f32 %v1611_v49, %v1610_v47  ;;  %v1723_v53 = vpop.f32.mrb[17].mxu1  ;;  %v1613_v54 = vpop.f32.mrb[18].mxu0 }
 0x11d   : > { %v1724_v55 = vadd.f32 %v1723_v53, %v1722_v48  ;;  %v1725_v56 = vpop.f32.mrb[18].mxu1  ;;  %v1614_v57 = vpop.f32.mrb[19].mxu0 }
 0x11e   : > { %1314 = vst.msk [vmem:[%s2147_s10 + $0x18] sm:$0xf] %vm1307_vm0, %v1544_v50  ;;  %v1545_v58 = vpack.c.bf16 %v1154_v51, %v1154_v51  ;;  %v892_v59 = vadd.f32 %v1612_v52, %v2139_v34  ;;  %v1615_v60 = vadd.f32 %v1614_v57, %v1613_v54  ;;  %v1726_v61 = vpop.f32.mrb[19].mxu1 }
 0x11f   : > { %v1727_v62 = vadd.f32 %v1726_v61, %v1725_v56 }
 0x120   : > { %1315 = vst.msk [vmem:[%s2147_s10 + $0x1c] sm:$0xf] %vm1307_vm0, %v1545_v58  ;;  %v1053_v63 = vadd.f32 %v1724_v55, %v892_v59  ;;  %v895_v0 = vadd.f32 %v1615_v60, %v2139_v34 }
 0x122   : > { %v1155_v1 = vmax.f32 %v1053_v63, 0.0  ;;  %v1056_v2 = vadd.f32 %v1727_v62, %v895_v0  ;;  %v1616_v3 = vpop.f32.mrb[20].mxu0 }
 0x123   : > { %v1728_v4 = vpop.f32.mrb[20].mxu1  ;;  %v1617_v5 = vpop.f32.mrb[21].mxu0 }
 0x124   : > { %v1546_v6 = vpack.c.bf16 %v1155_v1, %v1155_v1  ;;  %v1156_v7 = vmax.f32 %v1056_v2, 0.0  ;;  %v1618_v8 = vadd.f32 %v1617_v5, %v1616_v3  ;;  %v1729_v9 = vpop.f32.mrb[21].mxu1  ;;  %v1619_v10 = vpop.f32.mrb[22].mxu0 }
 0x125   : > { %v1730_v11 = vadd.f32 %v1729_v9, %v1728_v4  ;;  %v1731_v12 = vpop.f32.mrb[22].mxu1  ;;  %v1620_v13 = vpop.f32.mrb[23].mxu0 }
 0x126   : > { %1316 = vst.msk [vmem:[%s2147_s10 + $0x20] sm:$0xf] %vm1307_vm0, %v1546_v6  ;;  %v1547_v14 = vpack.c.bf16 %v1156_v7, %v1156_v7  ;;  %v900_v15 = vadd.f32 %v1618_v8, %v2139_v34  ;;  %v1621_v16 = vadd.f32 %v1620_v13, %v1619_v10  ;;  %v1732_v17 = vpop.f32.mrb[23].mxu1 }
 0x127   : > { %v1733_v18 = vadd.f32 %v1732_v17, %v1731_v12 }
 0x128   : > { %1317 = vst.msk [vmem:[%s2147_s10 + $0x24] sm:$0xf] %vm1307_vm0, %v1547_v14  ;;  %v1061_v19 = vadd.f32 %v1730_v11, %v900_v15  ;;  %v903_v20 = vadd.f32 %v1621_v16, %v2139_v34 }
 0x12a   : > { %v1157_v21 = vmax.f32 %v1061_v19, 0.0  ;;  %v1064_v22 = vadd.f32 %v1733_v18, %v903_v20  ;;  %v1622_v23 = vpop.f32.mrb[24].mxu0 }
 0x12b   : > { %v1734_v24 = vpop.f32.mrb[24].mxu1  ;;  %v1623_v25 = vpop.f32.mrb[25].mxu0 }
 0x12c   : > { %v1548_v26 = vpack.c.bf16 %v1157_v21, %v1157_v21  ;;  %v1158_v27 = vmax.f32 %v1064_v22, 0.0  ;;  %v1624_v28 = vadd.f32 %v1623_v25, %v1622_v23  ;;  %v1735_v29 = vpop.f32.mrb[25].mxu1  ;;  %v1625_v30 = vpop.f32.mrb[26].mxu0 }
 0x12d   : > { %v1736_v31 = vadd.f32 %v1735_v29, %v1734_v24  ;;  %v1737_v32 = vpop.f32.mrb[26].mxu1  ;;  %v1626_v33 = vpop.f32.mrb[27].mxu0 }
 0x12e   : > { %1318 = vst.msk [vmem:[%s2147_s10 + $0x28] sm:$0xf] %vm1307_vm0, %v1548_v26  ;;  %v1549_v35 = vpack.c.bf16 %v1158_v27, %v1158_v27  ;;  %v908_v36 = vadd.f32 %v1624_v28, %v2139_v34  ;;  %v1627_v37 = vadd.f32 %v1626_v33, %v1625_v30  ;;  %v1738_v38 = vpop.f32.mrb[27].mxu1 }
 0x12f   : > { %v1739_v39 = vadd.f32 %v1738_v38, %v1737_v32 }
 0x130   : > { %1319 = vst.msk [vmem:[%s2147_s10 + $0x2c] sm:$0xf] %vm1307_vm0, %v1549_v35  ;;  %v1069_v40 = vadd.f32 %v1736_v31, %v908_v36  ;;  %v911_v41 = vadd.f32 %v1627_v37, %v2139_v34 }
 0x132   : > { %v1159_v42 = vmax.f32 %v1069_v40, 0.0  ;;  %v1072_v43 = vadd.f32 %v1739_v39, %v911_v41  ;;  %v1628_v44 = vpop.f32.mrb[28].mxu0 }
 0x133   : > { %v1740_v45 = vpop.f32.mrb[28].mxu1  ;;  %v1629_v46 = vpop.f32.mrb[29].mxu0 }
 0x134   : > { %v1550_v47 = vpack.c.bf16 %v1159_v42, %v1159_v42  ;;  %v1160_v48 = vmax.f32 %v1072_v43, 0.0  ;;  %v1630_v49 = vadd.f32 %v1629_v46, %v1628_v44  ;;  %v1741_v50 = vpop.f32.mrb[29].mxu1  ;;  %v1631_v51 = vpop.f32.mrb[30].mxu0 }
 0x135   : > { %v1742_v52 = vadd.f32 %v1741_v50, %v1740_v45  ;;  %v1743_v53 = vpop.f32.mrb[30].mxu1  ;;  %v1632_v54 = vpop.f32.mrb[31].mxu0 }
 0x136   : > { %1320 = vst.msk [vmem:[%s2147_s10 + $0x30] sm:$0xf] %vm1307_vm0, %v1550_v47  ;;  %v1551_v55 = vpack.c.bf16 %v1160_v48, %v1160_v48  ;;  %v916_v56 = vadd.f32 %v1630_v49, %v2139_v34  ;;  %v1633_v57 = vadd.f32 %v1632_v54, %v1631_v51  ;;  %v1744_v58 = vpop.f32.mrb[31].mxu1 }
 0x137   : > { %v1745_v59 = vadd.f32 %v1744_v58, %v1743_v53 }
 0x138   : > { %1321 = vst.msk [vmem:[%s2147_s10 + $0x34] sm:$0xf] %vm1307_vm0, %v1551_v55  ;;  %v1077_v60 = vadd.f32 %v1742_v52, %v916_v56  ;;  %v919_v61 = vadd.f32 %v1633_v57, %v2139_v34 }
 0x13a   : > { %v1161_v62 = vmax.f32 %v1077_v60, 0.0  ;;  %v1080_v63 = vadd.f32 %v1745_v59, %v919_v61  ;;  %v1634_v0 = vpop.f32.mrb[32].mxu0 }
 0x13b   : > { %v1746_v1 = vpop.f32.mrb[32].mxu1  ;;  %v1635_v2 = vpop.f32.mrb[33].mxu0 }
 0x13c   : > { %v1552_v3 = vpack.c.bf16 %v1161_v62, %v1161_v62  ;;  %v1162_v4 = vmax.f32 %v1080_v63, 0.0  ;;  %v1636_v5 = vadd.f32 %v1635_v2, %v1634_v0  ;;  %v1747_v6 = vpop.f32.mrb[33].mxu1  ;;  %v1637_v7 = vpop.f32.mrb[34].mxu0 }
 0x13d   : > { %v1748_v8 = vadd.f32 %v1747_v6, %v1746_v1  ;;  %v1749_v9 = vpop.f32.mrb[34].mxu1  ;;  %v1638_v10 = vpop.f32.mrb[35].mxu0 }
 0x13e   : > { %1322 = vst.msk [vmem:[%s2147_s10 + $0x38] sm:$0xf] %vm1307_vm0, %v1552_v3  ;;  %v1553_v11 = vpack.c.bf16 %v1162_v4, %v1162_v4  ;;  %v924_v12 = vadd.f32 %v1636_v5, %v2139_v34  ;;  %v1639_v13 = vadd.f32 %v1638_v10, %v1637_v7  ;;  %v1750_v14 = vpop.f32.mrb[35].mxu1 }
 0x13f   : > { %v1751_v15 = vadd.f32 %v1750_v14, %v1749_v9 }
 0x140   : > { %1323 = vst.msk [vmem:[%s2147_s10 + $0x3c] sm:$0xf] %vm1307_vm0, %v1553_v11  ;;  %v1085_v16 = vadd.f32 %v1748_v8, %v924_v12  ;;  %v927_v17 = vadd.f32 %v1639_v13, %v2139_v34 }
 0x142   : > { %v1163_v18 = vmax.f32 %v1085_v16, 0.0  ;;  %v1088_v19 = vadd.f32 %v1751_v15, %v927_v17  ;;  %v1640_v20 = vpop.f32.mrb[36].mxu0 }
 0x143   : > { %v1752_v21 = vpop.f32.mrb[36].mxu1  ;;  %v1641_v22 = vpop.f32.mrb[37].mxu0 }
 0x144   : > { %v1554_v23 = vpack.c.bf16 %v1163_v18, %v1163_v18  ;;  %v1164_v24 = vmax.f32 %v1088_v19, 0.0  ;;  %v1642_v25 = vadd.f32 %v1641_v22, %v1640_v20  ;;  %v1753_v26 = vpop.f32.mrb[37].mxu1  ;;  %v1643_v27 = vpop.f32.mrb[38].mxu0 }
 0x145   : > { %v1754_v28 = vadd.f32 %v1753_v26, %v1752_v21  ;;  %v1755_v29 = vpop.f32.mrb[38].mxu1  ;;  %v1644_v30 = vpop.f32.mrb[39].mxu0 }
 0x146   : > { %1324 = vst.msk [vmem:[%s2147_s10 + $0x40] sm:$0xf] %vm1307_vm0, %v1554_v23  ;;  %v1555_v31 = vpack.c.bf16 %v1164_v24, %v1164_v24  ;;  %v932_v32 = vadd.f32 %v1642_v25, %v2139_v34  ;;  %v1645_v33 = vadd.f32 %v1644_v30, %v1643_v27  ;;  %v1756_v35 = vpop.f32.mrb[39].mxu1 }
 0x147   : > { %v1757_v36 = vadd.f32 %v1756_v35, %v1755_v29 }
 0x148   : > { %1325 = vst.msk [vmem:[%s2147_s10 + $0x44] sm:$0xf] %vm1307_vm0, %v1555_v31  ;;  %v1093_v37 = vadd.f32 %v1754_v28, %v932_v32  ;;  %v935_v38 = vadd.f32 %v1645_v33, %v2139_v34 }
 0x14a   : > { %v1165_v39 = vmax.f32 %v1093_v37, 0.0  ;;  %v1096_v40 = vadd.f32 %v1757_v36, %v935_v38  ;;  %v1646_v41 = vpop.f32.mrb[40].mxu0 }
 0x14b   : > { %v1758_v42 = vpop.f32.mrb[40].mxu1  ;;  %v1647_v43 = vpop.f32.mrb[41].mxu0 }
 0x14c   : > { %v1556_v44 = vpack.c.bf16 %v1165_v39, %v1165_v39  ;;  %v1166_v45 = vmax.f32 %v1096_v40, 0.0  ;;  %v1648_v46 = vadd.f32 %v1647_v43, %v1646_v41  ;;  %v1759_v47 = vpop.f32.mrb[41].mxu1  ;;  %v1649_v48 = vpop.f32.mrb[42].mxu0 }
 0x14d   : > { %v1760_v49 = vadd.f32 %v1759_v47, %v1758_v42  ;;  %v1761_v50 = vpop.f32.mrb[42].mxu1  ;;  %v1650_v51 = vpop.f32.mrb[43].mxu0 }
 0x14e   : > { %1326 = vst.msk [vmem:[%s2147_s10 + $0x48] sm:$0xf] %vm1307_vm0, %v1556_v44  ;;  %v1557_v52 = vpack.c.bf16 %v1166_v45, %v1166_v45  ;;  %v940_v53 = vadd.f32 %v1648_v46, %v2139_v34  ;;  %v1651_v54 = vadd.f32 %v1650_v51, %v1649_v48  ;;  %v1762_v55 = vpop.f32.mrb[43].mxu1 }
 0x14f   : > { %v1763_v56 = vadd.f32 %v1762_v55, %v1761_v50 }
 0x150   : > { %1327 = vst.msk [vmem:[%s2147_s10 + $0x4c] sm:$0xf] %vm1307_vm0, %v1557_v52  ;;  %v1101_v57 = vadd.f32 %v1760_v49, %v940_v53  ;;  %v943_v58 = vadd.f32 %v1651_v54, %v2139_v34 }
 0x152   : > { %v1167_v59 = vmax.f32 %v1101_v57, 0.0  ;;  %v1104_v60 = vadd.f32 %v1763_v56, %v943_v58  ;;  %v1652_v61 = vpop.f32.mrb[44].mxu0 }
 0x153   : > { %v1764_v62 = vpop.f32.mrb[44].mxu1  ;;  %v1653_v63 = vpop.f32.mrb[45].mxu0 }
 0x154   : > { %v1558_v0 = vpack.c.bf16 %v1167_v59, %v1167_v59  ;;  %v1168_v1 = vmax.f32 %v1104_v60, 0.0  ;;  %v1654_v2 = vadd.f32 %v1653_v63, %v1652_v61  ;;  %v1765_v3 = vpop.f32.mrb[45].mxu1  ;;  %v1655_v4 = vpop.f32.mrb[46].mxu0 }
 0x155   : > { %v1766_v5 = vadd.f32 %v1765_v3, %v1764_v62  ;;  %v1767_v6 = vpop.f32.mrb[46].mxu1  ;;  %v1656_v7 = vpop.f32.mrb[47].mxu0 }
 0x156   : > { %1328 = vst.msk [vmem:[%s2147_s10 + $0x50] sm:$0xf] %vm1307_vm0, %v1558_v0  ;;  %v1559_v8 = vpack.c.bf16 %v1168_v1, %v1168_v1  ;;  %v948_v9 = vadd.f32 %v1654_v2, %v2139_v34  ;;  %v1657_v10 = vadd.f32 %v1656_v7, %v1655_v4  ;;  %v1768_v11 = vpop.f32.mrb[47].mxu1 }
 0x157   : > { %v1769_v12 = vadd.f32 %v1768_v11, %v1767_v6 }
 0x158   : > { %1329 = vst.msk [vmem:[%s2147_s10 + $0x54] sm:$0xf] %vm1307_vm0, %v1559_v8  ;;  %v1109_v13 = vadd.f32 %v1766_v5, %v948_v9  ;;  %v951_v14 = vadd.f32 %v1657_v10, %v2139_v34 }
 0x15a   : > { %v1169_v15 = vmax.f32 %v1109_v13, 0.0  ;;  %v1112_v16 = vadd.f32 %v1769_v12, %v951_v14  ;;  %v1658_v17 = vpop.f32.mrb[48].mxu0 }
 0x15b   : > { %v1770_v18 = vpop.f32.mrb[48].mxu1  ;;  %v1659_v19 = vpop.f32.mrb[49].mxu0 }
 0x15c   : > { %v1560_v20 = vpack.c.bf16 %v1169_v15, %v1169_v15  ;;  %v1170_v21 = vmax.f32 %v1112_v16, 0.0  ;;  %v1660_v22 = vadd.f32 %v1659_v19, %v1658_v17  ;;  %v1771_v23 = vpop.f32.mrb[49].mxu1  ;;  %v1661_v24 = vpop.f32.mrb[50].mxu0 }
 0x15d   : > { %v1772_v25 = vadd.f32 %v1771_v23, %v1770_v18  ;;  %v1773_v26 = vpop.f32.mrb[50].mxu1  ;;  %v1662_v27 = vpop.f32.mrb[51].mxu0 }
 0x15e   : > { %1330 = vst.msk [vmem:[%s2147_s10 + $0x58] sm:$0xf] %vm1307_vm0, %v1560_v20  ;;  %v1561_v28 = vpack.c.bf16 %v1170_v21, %v1170_v21  ;;  %v956_v29 = vadd.f32 %v1660_v22, %v2139_v34  ;;  %v1663_v30 = vadd.f32 %v1662_v27, %v1661_v24  ;;  %v1774_v31 = vpop.f32.mrb[51].mxu1 }
 0x15f   : > { %v1775_v32 = vadd.f32 %v1774_v31, %v1773_v26 }
 0x160   : > { %1331 = vst.msk [vmem:[%s2147_s10 + $0x5c] sm:$0xf] %vm1307_vm0, %v1561_v28  ;;  %v1117_v33 = vadd.f32 %v1772_v25, %v956_v29  ;;  %v959_v35 = vadd.f32 %v1663_v30, %v2139_v34 }
 0x162   : > { %v1171_v36 = vmax.f32 %v1117_v33, 0.0  ;;  %v1120_v37 = vadd.f32 %v1775_v32, %v959_v35  ;;  %v1664_v38 = vpop.f32.mrb[52].mxu0 }
 0x163   : > { %v1776_v39 = vpop.f32.mrb[52].mxu1  ;;  %v1665_v40 = vpop.f32.mrb[53].mxu0 }
 0x164   : > { %v1562_v41 = vpack.c.bf16 %v1171_v36, %v1171_v36  ;;  %v1172_v42 = vmax.f32 %v1120_v37, 0.0  ;;  %v1666_v43 = vadd.f32 %v1665_v40, %v1664_v38  ;;  %v1777_v44 = vpop.f32.mrb[53].mxu1  ;;  %v1667_v45 = vpop.f32.mrb[54].mxu0 }
 0x165   : > { %v1778_v46 = vadd.f32 %v1777_v44, %v1776_v39  ;;  %v1779_v47 = vpop.f32.mrb[54].mxu1  ;;  %v1668_v48 = vpop.f32.mrb[55].mxu0 }
 0x166   : > { %1332 = vst.msk [vmem:[%s2147_s10 + $0x60] sm:$0xf] %vm1307_vm0, %v1562_v41  ;;  %v1563_v49 = vpack.c.bf16 %v1172_v42, %v1172_v42  ;;  %v964_v50 = vadd.f32 %v1666_v43, %v2139_v34  ;;  %v1669_v51 = vadd.f32 %v1668_v48, %v1667_v45  ;;  %v1780_v52 = vpop.f32.mrb[55].mxu1 }
 0x167   : > { %v1781_v53 = vadd.f32 %v1780_v52, %v1779_v47 }
 0x168   : > { %1333 = vst.msk [vmem:[%s2147_s10 + $0x64] sm:$0xf] %vm1307_vm0, %v1563_v49  ;;  %v1125_v54 = vadd.f32 %v1778_v46, %v964_v50  ;;  %v967_v55 = vadd.f32 %v1669_v51, %v2139_v34 }
 0x16a   : > { %v1173_v56 = vmax.f32 %v1125_v54, 0.0  ;;  %v1128_v57 = vadd.f32 %v1781_v53, %v967_v55  ;;  %v1670_v58 = vpop.f32.mrb[56].mxu0 }
 0x16b   : > { %v1782_v59 = vpop.f32.mrb[56].mxu1  ;;  %v1671_v60 = vpop.f32.mrb[57].mxu0 }
 0x16c   : > { %v1564_v61 = vpack.c.bf16 %v1173_v56, %v1173_v56  ;;  %v1174_v62 = vmax.f32 %v1128_v57, 0.0  ;;  %v1672_v63 = vadd.f32 %v1671_v60, %v1670_v58  ;;  %v1783_v0 = vpop.f32.mrb[57].mxu1  ;;  %v1673_v1 = vpop.f32.mrb[58].mxu0 }
 0x16d   : > { %v1784_v2 = vadd.f32 %v1783_v0, %v1782_v59  ;;  %v1785_v3 = vpop.f32.mrb[58].mxu1  ;;  %v1674_v4 = vpop.f32.mrb[59].mxu0 }
 0x16e   : > { %1334 = vst.msk [vmem:[%s2147_s10 + $0x68] sm:$0xf] %vm1307_vm0, %v1564_v61  ;;  %v1565_v5 = vpack.c.bf16 %v1174_v62, %v1174_v62  ;;  %v972_v6 = vadd.f32 %v1672_v63, %v2139_v34  ;;  %v1675_v7 = vadd.f32 %v1674_v4, %v1673_v1  ;;  %v1786_v8 = vpop.f32.mrb[59].mxu1 }
 0x16f   : > { %v1787_v9 = vadd.f32 %v1786_v8, %v1785_v3 }
 0x170   : > { %1335 = vst.msk [vmem:[%s2147_s10 + $0x6c] sm:$0xf] %vm1307_vm0, %v1565_v5  ;;  %v1133_v10 = vadd.f32 %v1784_v2, %v972_v6  ;;  %v975_v11 = vadd.f32 %v1675_v7, %v2139_v34 }
 0x172   : > { %v1175_v12 = vmax.f32 %v1133_v10, 0.0  ;;  %v1136_v13 = vadd.f32 %v1787_v9, %v975_v11  ;;  %v1676_v14 = vpop.f32.mrb[60].mxu0 }
 0x173   : > { %v1788_v15 = vpop.f32.mrb[60].mxu1  ;;  %v1677_v16 = vpop.f32.mrb[61].mxu0 }
 0x174   : > { %v1566_v17 = vpack.c.bf16 %v1175_v12, %v1175_v12  ;;  %v1176_v18 = vmax.f32 %v1136_v13, 0.0  ;;  %v1678_v19 = vadd.f32 %v1677_v16, %v1676_v14  ;;  %v1789_v20 = vpop.f32.mrb[61].mxu1  ;;  %v1679_v21 = vpop.f32.mrb[62].mxu0 }
 0x175   : > { %v1790_v22 = vadd.f32 %v1789_v20, %v1788_v15  ;;  %v1791_v23 = vpop.f32.mrb[62].mxu1  ;;  %v1680_v24 = vpop.f32.mrb[63].mxu0 }
 0x176   : > { %1336 = vst.msk [vmem:[%s2147_s10 + $0x70] sm:$0xf] %vm1307_vm0, %v1566_v17  ;;  %v1567_v25 = vpack.c.bf16 %v1176_v18, %v1176_v18  ;;  %v980_v26 = vadd.f32 %v1678_v19, %v2139_v34  ;;  %v1681_v27 = vadd.f32 %v1680_v24, %v1679_v21  ;;  %v1792_v28 = vpop.f32.mrb[63].mxu1 }
 0x177   : > { %v1793_v29 = vadd.f32 %v1792_v28, %v1791_v23 }
 0x178   : > { %1337 = vst.msk [vmem:[%s2147_s10 + $0x74] sm:$0xf] %vm1307_vm0, %v1567_v25  ;;  %v1141_v30 = vadd.f32 %v1790_v22, %v980_v26  ;;  %v983_v31 = vadd.f32 %v1681_v27, %v2139_v34 }
 0x17a   : > { %v1177_v32 = vmax.f32 %v1141_v30, 0.0  ;;  %v1144_v33 = vadd.f32 %v1793_v29, %v983_v31 }
 0x17c   : > { %v1568_v35 = vpack.c.bf16 %v1177_v32, %v1177_v32  ;;  %v1178_v36 = vmax.f32 %v1144_v33, 0.0 }
 0x17e   : > { %1338 = vst.msk [vmem:[%s2147_s10 + $0x78] sm:$0xf] %vm1307_vm0, %v1568_v35  ;;  %v1569_v37 = vpack.c.bf16 %v1178_v36, %v1178_v36 }
 0x180   : > { %1339 = vst.msk [vmem:[%s2147_s10 + $0x7c] sm:$0xf] %vm1307_vm0, %v1569_v37 }
 0x181 PF: > { %s13_s12 = sadd.s32 1, %s1936_s12  }
 0x182   : > { %p10_p4 = scmp.ge.s32.totalorder %s13_s12, 4  }
 0x184   :  { %12 = sbr.rel (!%p10_p4) target bundleno = 1 (0x1), region = 62 }

// kernel: static_vae64_forward.8
= control target key start
LH: loop header
LB: loop body
LE: loop exit
PB: predicated region body
PF: predicated region fallthrough
CT: control target
= control target key end

     0   :  { %s1126_s12 = smov 0   ;;  %s1247_s0 = inlined_call_operand.vmem [shape: bf16[512,128], index: 0, kind: input, shape index: {}]   ;;  %s1248_s1 = inlined_call_operand.vmem [shape: bf16[128,128], index: 1, kind: input, shape index: {}]   ;;  %s1249_s2 = inlined_call_operand.vmem [shape: f32[1,128], index: 2, kind: input, shape index: {}]   ;;  %s1250_s3 = inlined_call_operand.vmem [shape: bf16[512,128], index: 3, kind: output, shape index: {}]  }
   0x1 LB: > { %s783_s13 = sadd.s32 4294967295, %s1104_s12   ;;  %p787_p0 = scmp.ge.s32.totalorder %s1104_s12, 1  ;;  %s1104_s12 = sphi %s1126_s12, %s13_s12  }
   0x2   : > { %p138_p1 = scmp.lt.s32.totalorder %s1104_s12, 3 }
   0x4   : > { %p139_p2 = pnand %p787_p0, %p138_p1 }
   0x5   : > { %v1074_v0 = vld [vmem:[%s1248_s1] sm:$0xff] (!%p139_p2)   ;;  %s788_s16 = sshll.u32 (!%p139_p2), %s783_s13, 5  ;;  %v1075_v1 = vld [vmem:[%s1248_s1 + $0x8] sm:$0xff] (!%p139_p2)   ;;  %v1076_v2 = vld [vmem:[%s1248_s1 + $0x10] sm:$0xff] (!%p139_p2)  }
   0x6   : > { %142 = sbr.rel (%p139_p2) target bundleno = 284 (0x11c), region = 32  ;;  %p163_p3 = scmp.lt.s32.totalorder (!%p139_p2), %s788_s16, 63  ;;  %1002 = vmatprep.subr.bf16.mxu0 (!%p139_p2), %v1074_v0  ;;  %1050 = vmatprep.subr.bf16.mxu1 (!%p139_p2), %v1074_v0  ;;  %v1077_v3 = vld [vmem:[%s1248_s1 + $0x18] sm:$0xff] (!%p139_p2)   ;;  %v1078_v6 = vld [vmem:[%s1248_s1 + $0x20] sm:$0xff] (!%p139_p2)   ;;  %v1079_v7 = vld [vmem:[%s1248_s1 + $0x28] sm:$0xff] (!%p139_p2)  }
   0x7   : > { %1003 = vmatpush3.bf16.msra.mxu0 (!%p139_p2), %v1074_v0  ;;  %1058 = vmatpush3.bf16.msra.mxu1 (!%p139_p2), %v1074_v0  ;;  %v1080_v8 = vld [vmem:[%s1248_s1 + $0x30] sm:$0xff] (!%p139_p2)   ;;  %v1081_v9 = vld [vmem:[%s1248_s1 + $0x38] sm:$0xff] (!%p139_p2)   ;;  %v1187_v24 = vld [vmem:[%s1249_s2] ss:$0 sm:$0xff] (!%p139_p2) }
   0x8   : > { %1004 = vmatprep.subr.bf16.mxu0 (!%p139_p2), %v1075_v1  ;;  %1051 = vmatprep.subr.bf16.mxu1 (!%p139_p2), %v1075_v1 }
   0xb   : > { %1005 = vmatpush3.bf16.msra.mxu0 (!%p139_p2), %v1075_v1  ;;  %1059 = vmatpush3.bf16.msra.mxu1 (!%p139_p2), %v1075_v1 }
   0xc   : > { %1006 = vmatprep.subr.bf16.mxu0 (!%p139_p2), %v1076_v2  ;;  %1052 = vmatprep.subr.bf16.mxu1 (!%p139_p2), %v1076_v2 }
   0xd   : > { %s1252_s16 = smov (!%p163_p3, %s788_s16), 63 }
   0xe   : > { %s789_s21 = sshll.u32 %s1252_s16, 2 }
   0xf   : > { %s1151_s24 = scalar_lea.vmem %s1247_s0, %s789_s21  ;;  %1007 = vmatpush3.bf16.msra.mxu0 %v1076_v2  ;;  %1060 = vmatpush3.bf16.msra.mxu1 %v1076_v2  ;;  %s1202_s13 = scalar_lea.vmem %s1250_s3, %s789_s21 }
  0x10   : > { %v1082_v4 = vld [vmem:[%s1151_s24] sm:$0xff]   ;;  %1008 = vmatprep.subr.bf16.mxu0 %v1077_v3  ;;  %1053 = vmatprep.subr.bf16.mxu1 %v1077_v3  ;;  %v1084_v10 = vld [vmem:[%s1151_s24 + $0x8] sm:$0xff]   ;;  %v1086_v12 = vld [vmem:[%s1151_s24 + $0x10] sm:$0xff]  }
  0x11   : > { %v1083_v5 = vld [vmem:[%s1151_s24 + $0x40] sm:$0xff]   ;;  %1018 = vmatprep.mubr.bf16.mxu0 %v1082_v4  ;;  %v1085_v11 = vld [vmem:[%s1151_s24 + $0x48] sm:$0xff]   ;;  %v1087_v13 = vld [vmem:[%s1151_s24 + $0x50] sm:$0xff]  }
  0x12   : > { %1034 = vmatprep.mubr.bf16.mxu1 %v1083_v5  ;;  %v1088_v14 = vld [vmem:[%s1151_s24 + $0x18] sm:$0xff]   ;;  %v1090_v16 = vld [vmem:[%s1151_s24 + $0x20] sm:$0xff]   ;;  %v1092_v18 = vld [vmem:[%s1151_s24 + $0x28] sm:$0xff]  }
  0x13   : > { %1009 = vmatpush3.bf16.msra.mxu0 %v1077_v3  ;;  %1061 = vmatpush3.bf16.msra.mxu1 %v1077_v3  ;;  %v1089_v15 = vld [vmem:[%s1151_s24 + $0x58] sm:$0xff]   ;;  %v1091_v17 = vld [vmem:[%s1151_s24 + $0x60] sm:$0xff]   ;;  %v1093_v19 = vld [vmem:[%s1151_s24 + $0x68] sm:$0xff]  }
  0x14   : > { %1010 = vmatprep.subr.bf16.mxu0 %v1078_v6  ;;  %1054 = vmatprep.subr.bf16.mxu1 %v1078_v6  ;;  %v1094_v20 = vld [vmem:[%s1151_s24 + $0x30] sm:$0xff]   ;;  %v1096_v22 = vld [vmem:[%s1151_s24 + $0x38] sm:$0xff]  }
  0x15   : > { %v1095_v21 = vld [vmem:[%s1151_s24 + $0x70] sm:$0xff]   ;;  %v1097_v23 = vld [vmem:[%s1151_s24 + $0x78] sm:$0xff]  }
  0x17   : > { %1011 = vmatpush3.bf16.msra.mxu0 %v1078_v6  ;;  %1062 = vmatpush3.bf16.msra.mxu1 %v1078_v6 }
  0x18   : > { %1012 = vmatprep.subr.bf16.mxu0 %v1079_v7  ;;  %1055 = vmatprep.subr.bf16.mxu1 %v1079_v7 }
  0x1b   : > { %1013 = vmatpush3.bf16.msra.mxu0 %v1079_v7  ;;  %1063 = vmatpush3.bf16.msra.mxu1 %v1079_v7 }
  0x1c   : > { %1014 = vmatprep.subr.bf16.mxu0 %v1080_v8  ;;  %1056 = vmatprep.subr.bf16.mxu1 %v1080_v8 }
  0x1f   : > { %1015 = vmatpush3.bf16.msra.mxu0 %v1080_v8  ;;  %1064 = vmatpush3.bf16.msra.mxu1 %v1080_v8 }
  0x20   : > { %1016 = vmatprep.subr.bf16.mxu0 %v1081_v9  ;;  %1057 = vmatprep.subr.bf16.mxu1 %v1081_v9 }
  0x23   : > { %1017 = vmatpush3.bf16.msra.mxu0 %v1081_v9  ;;  %1065 = vmatpush3.bf16.msra.mxu1 %v1081_v9 }
  0x26   : > { %1019 = vmatmul.mubr.bf16.vlgmr.msra.gmra.mrb[0].mxu0 %v1084_v10  ;;  %1035 = vmatmul.mubr.bf16.vlgmr.msra.gmra.mrb[0].mxu1 %v1085_v11 }
  0x27   : > { %1022 = vmatprep.mubr.bf16.mxu0 %v1086_v12  ;;  %1038 = vmatprep.mubr.bf16.mxu1 %v1087_v13 }
  0x2e   : > { %1023 = vmatmul.mubr.bf16.gmra.mrb[4].mxu0 %v1088_v14  ;;  %1039 = vmatmul.mubr.bf16.gmra.mrb[4].mxu1 %v1089_v15 }
  0x2f   : > { %1026 = vmatprep.mubr.bf16.mxu0 %v1090_v16  ;;  %1042 = vmatprep.mubr.bf16.mxu1 %v1091_v17 }
  0x36   : > { %1027 = vmatmul.mubr.bf16.gmra.mrb[8].mxu0 %v1092_v18  ;;  %1043 = vmatmul.mubr.bf16.gmra.mrb[8].mxu1 %v1093_v19 }
  0x37   : > { %1030 = vmatprep.mubr.bf16.mxu0 %v1094_v20  ;;  %1046 = vmatprep.mubr.bf16.mxu1 %v1095_v21 }
  0x3e   : > { %1031 = vmatmul.mubr.bf16.gmra.mrb[12].mxu0 %v1096_v22  ;;  %1047 = vmatmul.mubr.bf16.gmra.mrb[12].mxu1 %v1097_v23 }
  0xf9   : > { %v1020_v25 = vpop.f32.mrb[0].mxu0  ;;  %v1036_v26 = vpop.f32.mrb[0].mxu1 }
  0xfa   : > { %v417_v27 = vadd.f32 %v1020_v25, %v1187_v24  ;;  %v481_v28 = vadd.f32 %v1036_v26, %v1187_v24  ;;  %v408_v29 = vpop.f32.mrb[1].mxu0  ;;  %v472_v30 = vpop.f32.mrb[1].mxu1 }
  0xfb   : > { %v409_v31 = vadd.f32 %v1187_v24, %v408_v29  ;;  %v473_v32 = vadd.f32 %v1187_v24, %v472_v30  ;;  %v1021_v33 = vpop.f32.mrb[2].mxu0  ;;  %v1037_v34 = vpop.f32.mrb[2].mxu1 }
  0xfc   : > { %v420_v35 = vadd.f32 %v1021_v33, %v1187_v24  ;;  %v484_v36 = vadd.f32 %v1037_v34, %v1187_v24  ;;  %v411_v37 = vpop.f32.mrb[3].mxu0  ;;  %v475_v38 = vpop.f32.mrb[3].mxu1  ;;  %v537_v41 = vmax.f32 %v417_v27, 0.0  ;;  %v553_v42 = vmax.f32 %v481_v28, 0.0 }
  0xfd   : > { %v412_v39 = vadd.f32 %v1187_v24, %v411_v37  ;;  %v476_v40 = vadd.f32 %v1187_v24, %v475_v38  ;;  %v535_v45 = vmax.f32 %v409_v31, 0.0  ;;  %v551_v46 = vmax.f32 %v473_v32, 0.0 }
  0xfe   : > { %v538_v43 = vmax.f32 %v420_v35, 0.0  ;;  %v554_v44 = vmax.f32 %v484_v36, 0.0 }
  0xff   : > { %v536_v47 = vmax.f32 %v412_v39, 0.0  ;;  %v552_v48 = vmax.f32 %v476_v40, 0.0 }
 0x100   : > { %v891_v49 = vpack.c.bf16 %v538_v43, %v537_v41  ;;  %v931_v50 = vpack.c.bf16 %v554_v44, %v553_v42 }
 0x101   : > { %v886_v51 = vpack.c.bf16 %v536_v47, %v535_v45  ;;  %v926_v52 = vpack.c.bf16 %v552_v48, %v551_v46  ;;  %v1024_v53 = vpop.f32.mrb[4].mxu0  ;;  %v1040_v54 = vpop.f32.mrb[4].mxu1 }
 0x102   : > { %963 = vst [vmem:[%s1202_s13 + $0x8] sm:$0xff] %v891_v49   ;;  %971 = vst [vmem:[%s1202_s13 + $0x48] sm:$0xff] %v931_v50   ;;  %v433_v55 = vadd.f32 %v1024_v53, %v1187_v24  ;;  %v497_v56 = vadd.f32 %v1040_v54, %v1187_v24  ;;  %v424_v57 = vpop.f32.mrb[5].mxu0  ;;  %v488_v58 = vpop.f32.mrb[5].mxu1 }
 0x103   : > { %887 = vst [vmem:[%s1202_s13] sm:$0xff] %v886_v51   ;;  %970 = vst [vmem:[%s1202_s13 + $0x40] sm:$0xff] %v926_v52   ;;  %v425_v59 = vadd.f32 %v1187_v24, %v424_v57  ;;  %v489_v60 = vadd.f32 %v1187_v24, %v488_v58  ;;  %v1025_v61 = vpop.f32.mrb[6].mxu0  ;;  %v1041_v62 = vpop.f32.mrb[6].mxu1 }
 0x104   : > { %v436_v63 = vadd.f32 %v1025_v61, %v1187_v24  ;;  %v500_v0 = vadd.f32 %v1041_v62, %v1187_v24  ;;  %v427_v1 = vpop.f32.mrb[7].mxu0  ;;  %v491_v2 = vpop.f32.mrb[7].mxu1  ;;  %v541_v5 = vmax.f32 %v433_v55, 0.0  ;;  %v557_v6 = vmax.f32 %v497_v56, 0.0 }
 0x105   : > { %v428_v3 = vadd.f32 %v1187_v24, %v427_v1  ;;  %v492_v4 = vadd.f32 %v1187_v24, %v491_v2  ;;  %v539_v9 = vmax.f32 %v425_v59, 0.0  ;;  %v555_v10 = vmax.f32 %v489_v60, 0.0 }
 0x106   : > { %v542_v7 = vmax.f32 %v436_v63, 0.0  ;;  %v558_v8 = vmax.f32 %v500_v0, 0.0 }
 0x107   : > { %v540_v11 = vmax.f32 %v428_v3, 0.0  ;;  %v556_v12 = vmax.f32 %v492_v4, 0.0 }
 0x108   : > { %v901_v13 = vpack.c.bf16 %v542_v7, %v541_v5  ;;  %v941_v14 = vpack.c.bf16 %v558_v8, %v557_v6 }
 0x109   : > { %v896_v15 = vpack.c.bf16 %v540_v11, %v539_v9  ;;  %v936_v16 = vpack.c.bf16 %v556_v12, %v555_v10  ;;  %v1028_v17 = vpop.f32.mrb[8].mxu0  ;;  %v1044_v18 = vpop.f32.mrb[8].mxu1 }
 0x10a   : > { %965 = vst [vmem:[%s1202_s13 + $0x18] sm:$0xff] %v901_v13   ;;  %973 = vst [vmem:[%s1202_s13 + $0x58] sm:$0xff] %v941_v14   ;;  %v449_v19 = vadd.f32 %v1028_v17, %v1187_v24  ;;  %v513_v20 = vadd.f32 %v1044_v18, %v1187_v24  ;;  %v440_v21 = vpop.f32.mrb[9].mxu0  ;;  %v504_v22 = vpop.f32.mrb[9].mxu1 }
 0x10b   : > { %964 = vst [vmem:[%s1202_s13 + $0x10] sm:$0xff] %v896_v15   ;;  %972 = vst [vmem:[%s1202_s13 + $0x50] sm:$0xff] %v936_v16   ;;  %v441_v23 = vadd.f32 %v1187_v24, %v440_v21  ;;  %v505_v25 = vadd.f32 %v1187_v24, %v504_v22  ;;  %v1029_v26 = vpop.f32.mrb[10].mxu0  ;;  %v1045_v27 = vpop.f32.mrb[10].mxu1 }
 0x10c   : > { %v452_v28 = vadd.f32 %v1029_v26, %v1187_v24  ;;  %v516_v29 = vadd.f32 %v1045_v27, %v1187_v24  ;;  %v443_v30 = vpop.f32.mrb[11].mxu0  ;;  %v507_v31 = vpop.f32.mrb[11].mxu1  ;;  %v545_v34 = vmax.f32 %v449_v19, 0.0  ;;  %v561_v35 = vmax.f32 %v513_v20, 0.0 }
 0x10d   : > { %v444_v32 = vadd.f32 %v1187_v24, %v443_v30  ;;  %v508_v33 = vadd.f32 %v1187_v24, %v507_v31  ;;  %v543_v38 = vmax.f32 %v441_v23, 0.0  ;;  %v559_v39 = vmax.f32 %v505_v25, 0.0 }
 0x10e   : > { %v546_v36 = vmax.f32 %v452_v28, 0.0  ;;  %v562_v37 = vmax.f32 %v516_v29, 0.0 }
 0x10f   : > { %v544_v40 = vmax.f32 %v444_v32, 0.0  ;;  %v560_v41 = vmax.f32 %v508_v33, 0.0 }
 0x110   : > { %v911_v42 = vpack.c.bf16 %v546_v36, %v545_v34  ;;  %v951_v43 = vpack.c.bf16 %v562_v37, %v561_v35 }
 0x111   : > { %v906_v44 = vpack.c.bf16 %v544_v40, %v543_v38  ;;  %v946_v45 = vpack.c.bf16 %v560_v41, %v559_v39  ;;  %v1032_v46 = vpop.f32.mrb[12].mxu0  ;;  %v1048_v47 = vpop.f32.mrb[12].mxu1 }
 0x112   : > { %967 = vst [vmem:[%s1202_s13 + $0x28] sm:$0xff] %v911_v42   ;;  %975 = vst [vmem:[%s1202_s13 + $0x68] sm:$0xff] %v951_v43   ;;  %v465_v48 = vadd.f32 %v1032_v46, %v1187_v24  ;;  %v529_v49 = vadd.f32 %v1048_v47, %v1187_v24  ;;  %v456_v50 = vpop.f32.mrb[13].mxu0  ;;  %v520_v51 = vpop.f32.mrb[13].mxu1 }
 0x113   : > { %966 = vst [vmem:[%s1202_s13 + $0x20] sm:$0xff] %v906_v44   ;;  %974 = vst [vmem:[%s1202_s13 + $0x60] sm:$0xff] %v946_v45   ;;  %v457_v52 = vadd.f32 %v1187_v24, %v456_v50  ;;  %v521_v53 = vadd.f32 %v1187_v24, %v520_v51  ;;  %v1033_v54 = vpop.f32.mrb[14].mxu0  ;;  %v1049_v55 = vpop.f32.mrb[14].mxu1 }
 0x114   : > { %v468_v56 = vadd.f32 %v1033_v54, %v1187_v24  ;;  %v532_v57 = vadd.f32 %v1049_v55, %v1187_v24  ;;  %v459_v58 = vpop.f32.mrb[15].mxu0  ;;  %v523_v59 = vpop.f32.mrb[15].mxu1  ;;  %v549_v62 = vmax.f32 %v465_v48, 0.0  ;;  %v565_v63 = vmax.f32 %v529_v49, 0.0 }
 0x115   : > { %v460_v60 = vadd.f32 %v1187_v24, %v459_v58  ;;  %v524_v61 = vadd.f32 %v1187_v24, %v523_v59  ;;  %v547_v2 = vmax.f32 %v457_v52, 0.0  ;;  %v563_v3 = vmax.f32 %v521_v53, 0.0 }
 0x116   : > { %v550_v0 = vmax.f32 %v468_v56, 0.0  ;;  %v566_v1 = vmax.f32 %v532_v57, 0.0 }
 0x117   : > { %v548_v4 = vmax.f32 %v460_v60, 0.0  ;;  %v564_v5 = vmax.f32 %v524_v61, 0.0 }
 0x118   : > { %v921_v6 = vpack.c.bf16 %v550_v0, %v549_v62  ;;  %v961_v7 = vpack.c.bf16 %v566_v1, %v565_v63 }
 0x119   : > { %v916_v8 = vpack.c.bf16 %v548_v4, %v547_v2  ;;  %v956_v9 = vpack.c.bf16 %v564_v5, %v563_v3 }
 0x11a   : > { %969 = vst [vmem:[%s1202_s13 + $0x38] sm:$0xff] %v921_v6   ;;  %977 = vst [vmem:[%s1202_s13 + $0x78] sm:$0xff] %v961_v7  }
 0x11b   : > { %968 = vst [vmem:[%s1202_s13 + $0x30] sm:$0xff] %v916_v8   ;;  %976 = vst [vmem:[%s1202_s13 + $0x70] sm:$0xff] %v956_v9  }
 0x11c PF: > { %s13_s12 = sadd.s32 1, %s1104_s12  }
 0x11d   : > { %p10_p4 = scmp.ge.s32.totalorder %s13_s12, 4  }
 0x11f   :  { %12 = sbr.rel (!%p10_p4) target bundleno = 1 (0x1), region = 62 }

// kernel: static_vae64_forward.7
= control target key start
LH: loop header
LB: loop body
LE: loop exit
PB: predicated region body
PF: predicated region fallthrough
CT: control target
= control target key end

     0   :  { %s18103_s0 = inlined_call_operand.vmem [shape: bf16[72,512], index: 0, kind: input, shape index: {}]   ;;  %s18104_s1 = inlined_call_operand.vmem [shape: f32[2,128], index: 1, kind: input, shape index: {}]   ;;  %s18105_s2 = inlined_call_operand.vmem [shape: bf16[512,64], index: 2, kind: input, shape index: {}]   ;;  %s18106_s3 = inlined_call_operand.vmem [shape: f32[1,64], index: 3, kind: input, shape index: {}]   ;;  %s18107_s4 = inlined_call_operand.vmem [shape: bf16[16,8,72], index: 4, kind: input, shape index: {}]   ;;  %s18108_s5 = inlined_call_operand.vmem [shape: bf16[16,64,64], index: 5, kind: input, shape index: {}]   ;;  %s18109_s6 = inlined_call_operand.vmem [shape: f32[1,64], index: 6, kind: input, shape index: {}]   ;;  %s18110_s7 = inlined_call_operand.vmem [shape: bf16[4,2,8], index: 7, kind: input, shape index: {}]   ;;  %s18111_s8 = inlined_call_operand.vmem [shape: bf16[4,64,256], index: 8, kind: input, shape index: {}]   ;;  %s18112_s9 = inlined_call_operand.vmem [shape: f32[1,256], index: 9, kind: input, shape index: {}]   ;;  %s18113_s10 = inlined_call_operand.vmem [shape: bf16[4,8,2], index: 10, kind: input, shape index: {}]   ;;  %s18114_s11 = inlined_call_operand.vmem [shape: bf16[4,128,64], index: 11, kind: input, shape index: {}]   ;;  %s18115_s12 = inlined_call_operand.vmem [shape: f32[8,64], index: 12, kind: input, shape index: {}]   ;;  %s18116_s13 = inlined_call_operand.vmem [shape: bf16[4,18,8], index: 13, kind: input, shape index: {}]   ;;  %s18117_s14 = inlined_call_operand.vmem [shape: bf16[4,64,256], index: 14, kind: input, shape index: {}]   ;;  %s18118_s15 = inlined_call_operand.vmem [shape: f32[1,256], index: 15, kind: input, shape index: {}]   ;;  %s18119_s16 = inlined_call_operand.vmem [shape: bf16[4,72,18], index: 16, kind: input, shape index: {}]   ;;  %s18120_s17 = inlined_call_operand.vmem [shape: bf16[4,256,64], index: 17, kind: input, shape index: {}]   ;;  %s18121_s18 = inlined_call_operand.vmem [shape: bf16[4,98,72], index: 18, kind: input, shape index: {}]   ;;  %s18122_s19 = inlined_call_operand.vmem [shape: bf16[4,64,128], index: 19, kind: input, shape index: {}]   ;;  %s18123_s20 = inlined_call_operand.vmem [shape: f32[1,128], index: 20, kind: input, shape index: {}]   ;;  %s18124_s21 = inlined_call_operand.vmem [shape: bf16[4,392,98], index: 21, kind: input, shape index: {}]   ;;  %s18125_s22 = inlined_call_operand.vmem [shape: bf16[4,128,32], index: 22, kind: input, shape index: {}]   ;;  %s18126_s23 = inlined_call_operand.hbm [shape: f32[2,128], index: 23, kind: output, shape index: {0}]   ;;  %s18127_s24 = inlined_call_operand.hbm [shape: f32[2,128], index: 24, kind: output, shape index: {1}]   ;;  %s18128_s25 = inlined_call_operand.vmem [shape: bf16[392,32], index: 25, kind: output, shape index: {2}]  }
   0x1   :  { %18135 = sst [smem:[#allocation9_spill]] %s18103_s0 }
   0x2   :  { %18136 = sst [smem:[#allocation10_spill]] %s18104_s1 }
   0x3   :  { %18137 = sst [smem:[#allocation11_spill]] %s18105_s2 }
   0x4   :  { %18138 = sst [smem:[#allocation12_spill]] %s18106_s3 }
   0x5   :  { %18139 = sst [smem:[#allocation13_spill]] %s18107_s4 }
   0x6   :  { %18140 = sst [smem:[#allocation14_spill]] %s18108_s5 }
   0x7   :  { %18141 = sst [smem:[#allocation15_spill]] %s18109_s6 }
   0x8   :  { %18142 = sst [smem:[#allocation16_spill]] %s18110_s7 }
   0x9   :  { %18143 = sst [smem:[#allocation17_spill]] %s18111_s8 }
   0xa   :  { %18144 = sst [smem:[#allocation18_spill]] %s18112_s9 }
   0xb   :  { %31 = vsyncpa [#allocation3], 0  ;;  %s18145_s6 = sld [smem:[#allocation11_spill]]  ;;  %s18146_s28 = sld [smem:[#allocation9_spill]]  ;;  %v14703_v54 = vmov 0.0   ;;  %vm14704_vm0 = vmmov 0  }
   0xc   :  { %s18147_s7 = sld [smem:[#allocation12_spill]]  ;;  %vm618_vm1 = vcmask 1043456   ;;  %vm614_vm2 = vcmask 588800   ;;  %s18148_s1 = sld [smem:[#allocation13_spill]] }
   0xd   :  { %s18149_s5 = sld [smem:[#allocation14_spill]] }
  0x11   :  { %v14133_v0 = vld [vmem:[%s18145_s6 + $0x40] sm:$0xff]   ;;  %v14137_v4 = vld [vmem:[%s18145_s6 + $0x48] sm:$0xff]   ;;  %v14141_v8 = vld [vmem:[%s18145_s6 + $0x50] sm:$0xff]  }
  0x12   :  { %v14134_v1 = vld [vmem:[%s18145_s6 + $0xc0] sm:$0xff]   ;;  %11445 = vmatprep.subr.bf16.mxu0 %v14133_v0  ;;  %v14138_v5 = vld [vmem:[%s18145_s6 + $0xc8] sm:$0xff]   ;;  %v14142_v9 = vld [vmem:[%s18145_s6 + $0xd0] sm:$0xff]  }
  0x13   :  { %v14135_v2 = vld [vmem:[%s18145_s6] sm:$0xff]   ;;  %11491 = vmatprep.subr.bf16.mxu1 %v14134_v1  ;;  %v14139_v6 = vld [vmem:[%s18145_s6 + $0x8] sm:$0xff]   ;;  %v14143_v10 = vld [vmem:[%s18145_s6 + $0x10] sm:$0xff]  }
  0x14   :  { %v14136_v3 = vld [vmem:[%s18145_s6 + $0x80] sm:$0xff]   ;;  %11446 = vmatpush3.bf16.msra.mxu0 %v14135_v2  ;;  %v14140_v7 = vld [vmem:[%s18145_s6 + $0x88] sm:$0xff]   ;;  %v14144_v11 = vld [vmem:[%s18145_s6 + $0x90] sm:$0xff]  }
  0x15   :  { %11492 = vmatpush3.bf16.msra.mxu1 %v14136_v3  ;;  %11447 = vmatprep.subr.bf16.mxu0 %v14137_v4  ;;  %v14145_v12 = vld [vmem:[%s18145_s6 + $0x58] sm:$0xff]   ;;  %v14149_v16 = vld [vmem:[%s18145_s6 + $0x60] sm:$0xff]   ;;  %v14153_v20 = vld [vmem:[%s18145_s6 + $0x68] sm:$0xff]  }
  0x16   :  { %11493 = vmatprep.subr.bf16.mxu1 %v14138_v5  ;;  %v14146_v13 = vld [vmem:[%s18145_s6 + $0xd8] sm:$0xff]   ;;  %v14150_v17 = vld [vmem:[%s18145_s6 + $0xe0] sm:$0xff]   ;;  %v14154_v21 = vld [vmem:[%s18145_s6 + $0xe8] sm:$0xff]  }
  0x17   :  { %v14147_v14 = vld [vmem:[%s18145_s6 + $0x18] sm:$0xff]   ;;  %v14151_v18 = vld [vmem:[%s18145_s6 + $0x20] sm:$0xff]   ;;  %v14155_v22 = vld [vmem:[%s18145_s6 + $0x28] sm:$0xff]  }
  0x18   :  { %11448 = vmatpush3.bf16.msra.mxu0 %v14139_v6  ;;  %v14148_v15 = vld [vmem:[%s18145_s6 + $0x98] sm:$0xff]   ;;  %v14152_v19 = vld [vmem:[%s18145_s6 + $0xa0] sm:$0xff]   ;;  %v14156_v23 = vld [vmem:[%s18145_s6 + $0xa8] sm:$0xff]  }
  0x19   :  { %11494 = vmatpush3.bf16.msra.mxu1 %v14140_v7  ;;  %11449 = vmatprep.subr.bf16.mxu0 %v14141_v8  ;;  %v14157_v24 = vld [vmem:[%s18145_s6 + $0x70] sm:$0xff]   ;;  %v14161_v28 = vld [vmem:[%s18145_s6 + $0x78] sm:$0xff]   ;;  %v96_v46 = vld [vmem:[%s18146_s28 + $0x80] sm:$0xff] }
  0x1a   :  { %11495 = vmatprep.subr.bf16.mxu1 %v14142_v9  ;;  %v14158_v25 = vld [vmem:[%s18145_s6 + $0xf0] sm:$0xff]   ;;  %v14162_v29 = vld [vmem:[%s18145_s6 + $0xf8] sm:$0xff]   ;;  %v97_v47 = vld [vmem:[%s18146_s28 + $0x88] sm:$0xff]  ;;  %v10019_v50 = vcombine.high %v96_v46, %v96_v46  ;;  %v10018_v52 = vcombine.low %v96_v46, %v96_v46 }
  0x1b   :  { %v14159_v26 = vld [vmem:[%s18145_s6 + $0x30] sm:$0xff]   ;;  %v14163_v30 = vld [vmem:[%s18145_s6 + $0x38] sm:$0xff]   ;;  %v10021_v51 = vcombine.high %v97_v47, %v97_v47  ;;  %v10020_v53 = vcombine.low %v97_v47, %v97_v47  ;;  %v14997_v55 = vld [vmem:[%s18147_s7] ss:$0 sm:$0xff] }
  0x1c   :  { %11450 = vmatpush3.bf16.msra.mxu0 %v14143_v10  ;;  %v14160_v27 = vld [vmem:[%s18145_s6 + $0xb0] sm:$0xff]   ;;  %v14164_v31 = vld [vmem:[%s18145_s6 + $0xb8] sm:$0xff]  }
  0x1d   :  { %11496 = vmatpush3.bf16.msra.mxu1 %v14144_v11  ;;  %11451 = vmatprep.subr.bf16.mxu0 %v14145_v12  ;;  %v14165_v32 = vld [vmem:[%s18146_s28] ss:$16 sps:$4 sm:$0xff]   ;;  %v14167_v33 = vld [vmem:[%s18146_s28 + $0x4] ss:$16 sps:$4 sm:$0xff]   ;;  %v14168_v34 = vld [vmem:[%s18146_s28 + $0x8] ss:$16 sps:$4 sm:$0xff]  }
  0x1e   :  { %11497 = vmatprep.subr.bf16.mxu1 %v14146_v13  ;;  %v14170_v35 = vld [vmem:[%s18146_s28 + $0xc] ss:$16 sps:$4 sm:$0xff]   ;;  %487 = vmatprep.mubr.bf16.mxu0 %v14167_v33  ;;  %v14171_v36 = vld [vmem:[%s18146_s28 + $0x24] ss:$16 sps:$4 sm:$0xff]   ;;  %v14175_v38 = vld [vmem:[%s18146_s28 + $0x20] ss:$16 sps:$4 sm:$0xff]  }
  0x1f   :  { %559 = vmatprep.mubr.bf16.mxu1 %v14170_v35  ;;  %v14173_v37 = vld [vmem:[%s18146_s28 + $0x2c] ss:$16 sps:$4 sm:$0xff]   ;;  %v14176_v39 = vld [vmem:[%s18146_s28 + $0x28] ss:$16 sps:$4 sm:$0xff]   ;;  %v14177_v40 = vld [vmem:[%s18146_s28 + $0x44] ss:$16 sps:$4 sm:$0xff]  }
  0x20   :  { %11452 = vmatpush3.bf16.msra.mxu0 %v14147_v14  ;;  %v14179_v41 = vld [vmem:[%s18146_s28 + $0x4c] ss:$16 sps:$4 sm:$0xff]   ;;  %v14181_v42 = vld [vmem:[%s18146_s28 + $0x40] ss:$16 sps:$4 sm:$0xff]   ;;  %v14182_v43 = vld [vmem:[%s18146_s28 + $0x48] ss:$16 sps:$4 sm:$0xff]  }
  0x21   :  { %11498 = vmatpush3.bf16.msra.mxu1 %v14148_v15  ;;  %11453 = vmatprep.subr.bf16.mxu0 %v14149_v16  ;;  %v14183_v44 = vld [vmem:[%s18146_s28 + $0x64] ss:$16 sps:$4 sm:$0xff]   ;;  %v14185_v45 = vld [vmem:[%s18146_s28 + $0x6c] ss:$16 sps:$4 sm:$0xff]   ;;  %v14187_v48 = vld [vmem:[%s18146_s28 + $0x60] ss:$16 sps:$4 sm:$0xff]  }
  0x22   :  { %11499 = vmatprep.subr.bf16.mxu1 %v14150_v17  ;;  %v14188_v49 = vld [vmem:[%s18146_s28 + $0x68] ss:$16 sps:$4 sm:$0xff]  }
  0x24   :  { %11454 = vmatpush3.bf16.msra.mxu0 %v14151_v18 }
  0x25   :  { %11500 = vmatpush3.bf16.msra.mxu1 %v14152_v19  ;;  %11455 = vmatprep.subr.bf16.mxu0 %v14153_v20 }
  0x26   :  { %11501 = vmatprep.subr.bf16.mxu1 %v14154_v21 }
  0x28   :  { %11456 = vmatpush3.bf16.msra.mxu0 %v14155_v22 }
  0x29   :  { %11502 = vmatpush3.bf16.msra.mxu1 %v14156_v23  ;;  %11457 = vmatprep.subr.bf16.mxu0 %v14157_v24 }
  0x2a   :  { %11503 = vmatprep.subr.bf16.mxu1 %v14158_v25 }
  0x2c   :  { %11458 = vmatpush3.bf16.msra.mxu0 %v14159_v26 }
  0x2d   :  { %11504 = vmatpush3.bf16.msra.mxu1 %v14160_v27  ;;  %11459 = vmatprep.subr.bf16.mxu0 %v14161_v28 }
  0x2e   :  { %11505 = vmatprep.subr.bf16.mxu1 %v14162_v29 }
  0x30   :  { %11460 = vmatpush3.bf16.msra.mxu0 %v14163_v30 }
  0x31   :  { %11506 = vmatpush3.bf16.msra.mxu1 %v14164_v31  ;;  %12197 = vmatprep.subr.bf16.mxu0 %v14703_v54 }
  0x32   :  { %12211 = vmatprep.subr.bf16.mxu1 %v14703_v54 }
  0x33   :  { %488 = vmatmul.mubr.bf16.vlgmr.msra.gmra.mrb[0].mxu0 %v14165_v32 }
  0x34   :  { %560 = vmatmul.mubr.bf16.vlgmr.msra.gmra.mrb[0].mxu1 %v14168_v34  ;;  %495 = vmatprep.mubr.bf16.mxu0 %v14171_v36 }
  0x35   :  { %567 = vmatprep.mubr.bf16.mxu1 %v14173_v37 }
  0x3b   :  { %496 = vmatmul.mubr.bf16.gmra.mrb[4].mxu0 %v14175_v38 }
  0x3c   :  { %568 = vmatmul.mubr.bf16.gmra.mrb[4].mxu1 %v14176_v39  ;;  %503 = vmatprep.mubr.bf16.mxu0 %v14177_v40 }
  0x3d   :  { %575 = vmatprep.mubr.bf16.mxu1 %v14179_v41 }
  0x43   :  { %504 = vmatmul.mubr.bf16.gmra.mrb[8].mxu0 %v14181_v42 }
  0x44   :  { %576 = vmatmul.mubr.bf16.gmra.mrb[8].mxu1 %v14182_v43  ;;  %511 = vmatprep.mubr.bf16.mxu0 %v14183_v44 }
  0x45   :  { %583 = vmatprep.mubr.bf16.mxu1 %v14185_v45 }
  0x4b   :  { %512 = vmatmul.mubr.bf16.gmra.mrb[12].mxu0 %v14187_v48 }
  0x4c   :  { %584 = vmatmul.mubr.bf16.gmra.mrb[12].mxu1 %v14188_v49  ;;  %519 = vmatprep.mubr.bf16.mxu0 %v10019_v50 }
  0x4d   :  { %591 = vmatprep.mubr.bf16.mxu1 %v10021_v51 }
  0x53   :  { %520 = vmatmul.mubr.bf16.gmra.mrb[16].mxu0 %v10018_v52 }
  0x54   :  { %592 = vmatmul.mubr.bf16.gmra.mrb[16].mxu1 %v10020_v53  ;;  %12207 = vmatprep.mubr.msk.bf16.mxu0 %vm14704_vm0, %v14703_v54 }
  0x55   :  { %12221 = vmatprep.mubr.msk.bf16.mxu1 %vm14704_vm0, %v14703_v54 }
 0x106   :  { %v11461_v56 = vpop.f32.mrb[0].mxu0 }
 0x107   :  { %v11507_v57 = vpop.f32.mrb[0].mxu1  ;;  %v11462_v58 = vpop.f32.mrb[1].mxu0 }
 0x108   :  { %v11463_v59 = vadd.f32 %v11462_v58, %v11461_v56  ;;  %v11508_v60 = vpop.f32.mrb[1].mxu1  ;;  %v11464_v61 = vpop.f32.mrb[2].mxu0 }
 0x109   :  { %v11509_v62 = vadd.f32 %v11508_v60, %v11507_v57  ;;  %v11510_v63 = vpop.f32.mrb[2].mxu1  ;;  %v11465_v0 = vpop.f32.mrb[3].mxu0 }
 0x10a   :  { %v490_v1 = vadd.f32 %v11463_v59, %v14997_v55  ;;  %v11466_v2 = vadd.f32 %v11465_v0, %v11464_v61  ;;  %v11511_v3 = vpop.f32.mrb[3].mxu1 }
 0x10b   :  { %v11512_v4 = vadd.f32 %v11511_v3, %v11510_v63 }
 0x10c   :  { %v562_v5 = vadd.f32 %v11509_v62, %v490_v1  ;;  %v493_v6 = vadd.f32 %v11466_v2, %v14997_v55 }
 0x10e   :  { %v565_v7 = vadd.f32 %v11512_v4, %v493_v6  ;;  %v11467_v8 = vpop.f32.mrb[4].mxu0  ;;  %v599_v11 = vmax.f32 %v562_v5, 0.0 }
 0x10f   :  { %v11513_v9 = vpop.f32.mrb[4].mxu1  ;;  %v11468_v10 = vpop.f32.mrb[5].mxu0 }
 0x110   :  { %v600_v12 = vmax.f32 %v565_v7, 0.0  ;;  %v11469_v13 = vadd.f32 %v11468_v10, %v11467_v8  ;;  %v11514_v14 = vpop.f32.mrb[5].mxu1  ;;  %v11470_v15 = vpop.f32.mrb[6].mxu0 }
 0x111   :  { %v11515_v16 = vadd.f32 %v11514_v14, %v11513_v9  ;;  %v11516_v17 = vpop.f32.mrb[6].mxu1  ;;  %v11471_v18 = vpop.f32.mrb[7].mxu0 }
 0x112   :  { %v15001_v19 = vpack.c.bf16 %v600_v12, %v599_v11  ;;  %v498_v20 = vadd.f32 %v11469_v13, %v14997_v55  ;;  %v11472_v21 = vadd.f32 %v11471_v18, %v11470_v15  ;;  %v11517_v22 = vpop.f32.mrb[7].mxu1 }
 0x113   :  { %v11518_v23 = vadd.f32 %v11517_v22, %v11516_v17  ;;  %v14193_v22 = vld [vmem:[%s18149_s5 + $0x20] sm:$0xff]  }
 0x114   :  { %v570_v24 = vadd.f32 %v11515_v16, %v498_v20  ;;  %v501_v25 = vadd.f32 %v11472_v21, %v14997_v55  ;;  %12198 = vmatpush3.bf16.msra.mxu0 %v15001_v19  ;;  %12212 = vmatpush3.bf16.msra.mxu1 %v15001_v19  ;;  %v613_v21 = vld [vmem:[%s18148_s1] sm:$0xf] }
 0x115   :  { %12199 = vmatprep.subr.bf16.mxu0 %v14703_v54  ;;  %12213 = vmatprep.subr.bf16.mxu1 %v14703_v54 }
 0x116   :  { %v573_v26 = vadd.f32 %v11518_v23, %v501_v25  ;;  %v11473_v27 = vpop.f32.mrb[8].mxu0  ;;  %v601_v30 = vmax.f32 %v570_v24, 0.0  ;;  %v14194_v24 = vld [vmem:[%s18149_s5] sm:$0xff]   ;;  %v14195_v25 = vld [vmem:[%s18149_s5 + $0x28] sm:$0xff]  }
 0x117   :  { %v11519_v28 = vpop.f32.mrb[8].mxu1  ;;  %v11474_v29 = vpop.f32.mrb[9].mxu0 }
 0x118   :  { %v602_v31 = vmax.f32 %v573_v26, 0.0  ;;  %v11475_v32 = vadd.f32 %v11474_v29, %v11473_v27  ;;  %v11520_v33 = vpop.f32.mrb[9].mxu1  ;;  %v11476_v34 = vpop.f32.mrb[10].mxu0  ;;  %v14196_v26 = vld [vmem:[%s18149_s5 + $0x8] sm:$0xff]   ;;  %v14197_v27 = vld [vmem:[%s18149_s5 + $0x30] sm:$0xff]   ;;  %v14199_v29 = vld [vmem:[%s18149_s5 + $0x38] sm:$0xff]  }
 0x119   :  { %v11521_v35 = vadd.f32 %v11520_v33, %v11519_v28  ;;  %v11522_v36 = vpop.f32.mrb[10].mxu1  ;;  %v11477_v37 = vpop.f32.mrb[11].mxu0  ;;  %v14198_v28 = vld [vmem:[%s18149_s5 + $0x10] sm:$0xff]  }
 0x11a   :  { %v15009_v38 = vpack.c.bf16 %v602_v31, %v601_v30  ;;  %v506_v39 = vadd.f32 %v11475_v32, %v14997_v55  ;;  %v11478_v40 = vadd.f32 %v11477_v37, %v11476_v34  ;;  %v11523_v41 = vpop.f32.mrb[11].mxu1 }
 0x11b   :  { %v11524_v42 = vadd.f32 %v11523_v41, %v11522_v36 }
 0x11c   :  { %v578_v43 = vadd.f32 %v11521_v35, %v506_v39  ;;  %v509_v44 = vadd.f32 %v11478_v40, %v14997_v55  ;;  %12200 = vmatpush3.bf16.msra.mxu0 %v15009_v38  ;;  %12214 = vmatpush3.bf16.msra.mxu1 %v15009_v38 }
 0x11d   :  { %12201 = vmatprep.subr.bf16.mxu0 %v14703_v54  ;;  %12215 = vmatprep.subr.bf16.mxu1 %v14703_v54 }
 0x11e   :  { %v581_v45 = vadd.f32 %v11524_v42, %v509_v44  ;;  %v11479_v46 = vpop.f32.mrb[12].mxu0  ;;  %v603_v49 = vmax.f32 %v578_v43, 0.0 }
 0x11f   :  { %v11525_v47 = vpop.f32.mrb[12].mxu1  ;;  %v11480_v48 = vpop.f32.mrb[13].mxu0 }
 0x120   :  { %v604_v50 = vmax.f32 %v581_v45, 0.0  ;;  %v11481_v51 = vadd.f32 %v11480_v48, %v11479_v46  ;;  %v11526_v52 = vpop.f32.mrb[13].mxu1  ;;  %v11482_v53 = vpop.f32.mrb[14].mxu0 }
 0x121   :  { %v11527_v56 = vadd.f32 %v11526_v52, %v11525_v47  ;;  %v11528_v57 = vpop.f32.mrb[14].mxu1  ;;  %v11483_v58 = vpop.f32.mrb[15].mxu0 }
 0x122   :  { %v15017_v59 = vpack.c.bf16 %v604_v50, %v603_v49  ;;  %v514_v60 = vadd.f32 %v11481_v51, %v14997_v55  ;;  %v11484_v61 = vadd.f32 %v11483_v58, %v11482_v53  ;;  %v11529_v62 = vpop.f32.mrb[15].mxu1 }
 0x123   :  { %v11530_v63 = vadd.f32 %v11529_v62, %v11528_v57 }
 0x124   :  { %v586_v0 = vadd.f32 %v11527_v56, %v514_v60  ;;  %v517_v1 = vadd.f32 %v11484_v61, %v14997_v55  ;;  %12202 = vmatpush3.bf16.msra.mxu0 %v15017_v59  ;;  %12216 = vmatpush3.bf16.msra.mxu1 %v15017_v59 }
 0x125   :  { %12203 = vmatprep.subr.bf16.mxu0 %v14703_v54  ;;  %12217 = vmatprep.subr.bf16.mxu1 %v14703_v54 }
 0x126   :  { %v589_v2 = vadd.f32 %v11530_v63, %v517_v1  ;;  %v11485_v3 = vpop.f32.mrb[16].mxu0  ;;  %v605_v6 = vmax.f32 %v586_v0, 0.0 }
 0x127   :  { %v11531_v4 = vpop.f32.mrb[16].mxu1  ;;  %v11486_v5 = vpop.f32.mrb[17].mxu0 }
 0x128   :  { %v606_v7 = vmax.f32 %v589_v2, 0.0  ;;  %v11487_v8 = vadd.f32 %v11486_v5, %v11485_v3  ;;  %v11532_v9 = vpop.f32.mrb[17].mxu1  ;;  %v11488_v10 = vpop.f32.mrb[18].mxu0 }
 0x129   :  { %v11533_v11 = vadd.f32 %v11532_v9, %v11531_v4  ;;  %v11534_v12 = vpop.f32.mrb[18].mxu1  ;;  %v11489_v13 = vpop.f32.mrb[19].mxu0 }
 0x12a   :  { %v15025_v14 = vpack.c.bf16 %v606_v7, %v605_v6  ;;  %v522_v15 = vadd.f32 %v11487_v8, %v14997_v55  ;;  %v11535_v16 = vpop.f32.mrb[19].mxu1  ;;  %v10055_v55 = vld [vmem:[%s18148_s1 + $0x4] sm:$0xf] }
 0x12c   :  { %v594_v17 = vadd.f32 %v11533_v11, %v522_v15  ;;  %12204 = vmatpush3.bf16.msra.mxu0 %v15025_v14  ;;  %12218 = vmatpush3.bf16.msra.mxu1 %v15025_v14 }
 0x12d   :  { %12205 = vmatprep.subr.bf16.mxu0 %v14703_v54  ;;  %12219 = vmatprep.subr.bf16.mxu1 %v14703_v54 }
 0x12e   :  { %v607_v18 = vmax.f32 %v594_v17, 0.0 }
 0x130   :  { %v612_v20 = vpack.c.bf16 %v607_v18, %v607_v18 }
 0x132   :  { %v15042_v23 = vsel %vm618_vm1, %v612_v20, 0 }
 0x133   :  { %12206 = vmatpush3.bf16.msra.mxu0 %v15042_v23  ;;  %12220 = vmatpush3.bf16.msra.mxu1 %v15042_v23 }
 0x134   :  { %12225 = vmatprep.subr.bf16.mxu0 %v14703_v54  ;;  %12237 = vmatprep.subr.bf16.mxu1 %v14703_v54 }
 0x136   :  { %12208 = vmatmul.mubr.msk.bf16.vlgmr.msra.gmra.mrb[20].mxu0 %vm614_vm2, %v613_v21  ;;  %12222 = vmatmul.mubr.msk.bf16.vlgmr.msra.gmra.mrb[20].mxu1 %vm614_vm2, %v10055_v55 }
 0x137   :  { %12226 = vmatpush3.bf16.msra.mxu0 %v14193_v22  ;;  %12238 = vmatpush3.bf16.msra.mxu1 %v14194_v24 }
 0x138   :  { %12227 = vmatprep.subr.bf16.mxu0 %v14703_v54  ;;  %12239 = vmatprep.subr.bf16.mxu1 %v14703_v54 }
 0x139   :  { %12233 = vmatprep.mubr.msk.bf16.mxu0 %vm14704_vm0, %v14703_v54  ;;  %12245 = vmatprep.mubr.msk.bf16.mxu1 %vm14704_vm0, %v14703_v54 }
 0x13b   :  { %12228 = vmatpush3.bf16.msra.mxu0 %v14195_v25  ;;  %12240 = vmatpush3.bf16.msra.mxu1 %v14196_v26 }
 0x13c   :  { %12229 = vmatprep.subr.bf16.mxu0 %v14703_v54  ;;  %12241 = vmatprep.subr.bf16.mxu1 %v14703_v54 }
 0x13f   :  { %12230 = vmatpush3.bf16.msra.mxu0 %v14197_v27  ;;  %12242 = vmatpush3.bf16.msra.mxu1 %v14198_v28 }
 0x140   :  { %12231 = vmatprep.subr.bf16.mxu0 %v14703_v54  ;;  %12243 = vmatprep.subr.bf16.mxu1 %v14703_v54 }
 0x143   :  { %12232 = vmatpush3.bf16.msra.mxu0 %v14199_v29 }
 0x144   :  { %12249 = vmatprep.subr.bf16.mxu0 %v14703_v54 }
 0x145   :  { %32 = vsyncpa [#allocation5], 0  ;;  %v14200_v30 = vld [vmem:[%s18149_s5 + $0x18] sm:$0xff]   ;;  %vm750_vm3 = vcmask 523264   ;;  %v10075_v42 = vld [vmem:[%s18148_s1 + $0x8] sm:$0xf] }
 0x146   :  { %12244 = vmatpush3.bf16.msra.mxu1 %v14200_v30  ;;  %v14201_v43 = vld [vmem:[%s18149_s5 + $0x40] sm:$0xff]   ;;  %v14202_v44 = vld [vmem:[%s18149_s5 + $0x48] sm:$0xff]   ;;  %v14203_v45 = vld [vmem:[%s18149_s5 + $0x50] sm:$0xff]   ;;  %s18150_s9 = sld [smem:[#allocation17_spill]]  ;;  %s18152_s8 = sld [smem:[#allocation16_spill]]  ;;  %vm2594_vm4 = vcmask 64512  }
 0x147   :  { %12263 = vmatprep.subr.bf16.mxu1 %v14703_v54  ;;  %v14204_v46 = vld [vmem:[%s18149_s5 + $0x58] sm:$0xff]   ;;  %v10090_v0 = vld [vmem:[%s18148_s1 + $0xc] sm:$0xf]  ;;  %v14205_v1 = vld [vmem:[%s18149_s5 + $0x60] sm:$0xff]   ;;  %s18154_s27 = sld [smem:[#allocation10_spill]]  ;;  %vm3394_vm5 = vcmask 1040384  }
 0x148   :  { %v14206_v2 = vld [vmem:[%s18149_s5 + $0x68] sm:$0xff]   ;;  %v14207_v3 = vld [vmem:[%s18149_s5 + $0x70] sm:$0xff]   ;;  %v14208_v4 = vld [vmem:[%s18149_s5 + $0x78] sm:$0xff]   ;;  %vm3390_vm6 = vcmask 15360   ;;  %vm4933_vm7 = vcmask 146432   ;;  %vm7592_vm8 = vcmask 801792  }
 0x149   :  { %v10105_v16 = vld [vmem:[%s18148_s1 + $0x10] sm:$0xf]  ;;  %v14209_v17 = vld [vmem:[%s18149_s5 + $0x80] sm:$0xff]   ;;  %v14210_v18 = vld [vmem:[%s18149_s5 + $0x88] sm:$0xff]   ;;  %vm9919_vm9 = vcmask 257024   ;;  %s14706_s4 = smov [#allocation2]  }
 0x14a   :  { %v14211_v20 = vld [vmem:[%s18149_s5 + $0x90] sm:$0xff]   ;;  %v14212_v21 = vld [vmem:[%s18149_s5 + $0x98] sm:$0xff]   ;;  %s14707_s0 = smov [#allocation4]  }
 0x209   :  { %v656_v31 = vpop.f32.mrb[20].mxu0  ;;  %v710_v32 = vpop.f32.mrb[20].mxu1 }
 0x20a   :  { %v662_v33 = vpack.c.bf16 %v656_v31, %v656_v31  ;;  %v716_v34 = vpack.c.bf16 %v710_v32, %v710_v32  ;;  %v12223_v35 = vpop.f32.mrb[21].mxu1  ;;  %v12209_v36 = vpop.f32.mrb[21].mxu0  ;;  %v10120_v32 = vld [vmem:[%s18148_s1 + $0x14] sm:$0xf] }
 0x20b   :  { %v713_v37 = vpop.f32.mrb[22].mxu1  ;;  %v659_v39 = vpop.f32.mrb[22].mxu0  ;;  %v14215_v35 = vld [vmem:[%s18149_s5 + $0xb0] sm:$0xff]   ;;  %v14216_v36 = vld [vmem:[%s18149_s5 + $0xb8] sm:$0xff]  }
 0x20c   :  { %v12224_v40 = vpop.f32.mrb[23].mxu1  ;;  %12234 = vmatmul.mubr.msk.bf16.vlgmr.msra.gmra.mrb[24].mxu0 %vm750_vm3, %v716_v34  ;;  %12246 = vmatmul.mubr.msk.bf16.vlgmr.msra.gmra.mrb[24].mxu1 %vm750_vm3, %v662_v33  ;;  %v12210_v41 = vpop.f32.mrb[23].mxu0  ;;  %v14213_v33 = vld [vmem:[%s18149_s5 + $0xa0] sm:$0xff]   ;;  %v14214_v34 = vld [vmem:[%s18149_s5 + $0xa8] sm:$0xff]  }
 0x20d   :  { %12250 = vmatpush3.bf16.msra.mxu0 %v15001_v19  ;;  %12259 = vmatprep.mubr.msk.bf16.mxu0 %vm14704_vm0, %v14703_v54 }
 0x20e   :  { %12251 = vmatprep.subr.bf16.mxu0 %v14703_v54  ;;  %12271 = vmatprep.mubr.msk.bf16.mxu1 %vm14704_vm0, %v14703_v54 }
 0x20f   :  { %12264 = vmatpush3.bf16.msra.mxu1 %v14201_v43 }
 0x210   :  { %12265 = vmatprep.subr.bf16.mxu1 %v14703_v54 }
 0x211   :  { %12252 = vmatpush3.bf16.msra.mxu0 %v15009_v38 }
 0x212   :  { %12253 = vmatprep.subr.bf16.mxu0 %v14703_v54 }
 0x213   :  { %12266 = vmatpush3.bf16.msra.mxu1 %v14202_v44 }
 0x214   :  { %12267 = vmatprep.subr.bf16.mxu1 %v14703_v54 }
 0x215   :  { %12254 = vmatpush3.bf16.msra.mxu0 %v15017_v59 }
 0x216   :  { %12255 = vmatprep.subr.bf16.mxu0 %v14703_v54 }
 0x217   :  { %12268 = vmatpush3.bf16.msra.mxu1 %v14203_v45 }
 0x218   :  { %12269 = vmatprep.subr.bf16.mxu1 %v14703_v54 }
 0x219   :  { %12256 = vmatpush3.bf16.msra.mxu0 %v15025_v14 }
 0x21a   :  { %12257 = vmatprep.subr.bf16.mxu0 %v14703_v54 }
 0x21b   :  { %12270 = vmatpush3.bf16.msra.mxu1 %v14204_v46 }
 0x21c   :  { %12275 = vmatprep.subr.bf16.mxu1 %v14703_v54 }
 0x21d   :  { %12258 = vmatpush3.bf16.msra.mxu0 %v15042_v23 }
 0x21e   :  { %12289 = vmatprep.subr.bf16.mxu0 %v14703_v54 }
 0x220   :  { %12260 = vmatmul.mubr.msk.bf16.vlgmr.msra.gmra.mrb[28].mxu0 %vm614_vm2, %v10075_v42 }
 0x221   :  { %12297 = vmatprep.mubr.msk.bf16.mxu0 %vm14704_vm0, %v14703_v54  ;;  %12290 = vmatpush3.bf16.msra.mxu0 %v14205_v1 }
 0x222   :  { %12291 = vmatprep.subr.bf16.mxu0 %v14703_v54 }
 0x225   :  { %12292 = vmatpush3.bf16.msra.mxu0 %v14206_v2  ;;  %v10150_v2 = vld [vmem:[%s18148_s1 + $0x1c] sm:$0xf] }
 0x226   :  { %12293 = vmatprep.subr.bf16.mxu0 %v14703_v54 }
 0x229   :  { %12294 = vmatpush3.bf16.msra.mxu0 %v14207_v3  ;;  %v14221_v3 = vld [vmem:[%s18149_s5 + $0xe0] sm:$0xff]  }
 0x22a   :  { %12295 = vmatprep.subr.bf16.mxu0 %v14703_v54 }
 0x22d   :  { %12296 = vmatpush3.bf16.msra.mxu0 %v14208_v4  ;;  %v14222_v4 = vld [vmem:[%s18149_s5 + $0xe8] sm:$0xff]  }
 0x22e   :  { %12301 = vmatprep.subr.bf16.mxu0 %v14703_v54 }
 0x2df   :  { %v788_v47 = vpop.f32.mrb[24].mxu0  ;;  %v855_v48 = vpop.f32.mrb[24].mxu1 }
 0x2e0   :  { %v856_v49 = vadd.f32 %v855_v48, %v788_v47  ;;  %v12235_v50 = vpop.f32.mrb[25].mxu0  ;;  %v12247_v51 = vpop.f32.mrb[25].mxu1  ;;  %v10135_v48 = vld [vmem:[%s18148_s1 + $0x18] sm:$0xf] }
 0x2e1   :  { %v791_v52 = vpop.f32.mrb[26].mxu0  ;;  %v858_v53 = vpop.f32.mrb[26].mxu1  ;;  %v14218_v50 = vld [vmem:[%s18149_s5 + $0xc8] sm:$0xff]   ;;  %v14219_v51 = vld [vmem:[%s18149_s5 + $0xd0] sm:$0xff]  }
 0x2e2   :  { %v12236_v56 = vpop.f32.mrb[27].mxu0  ;;  %v12248_v57 = vpop.f32.mrb[27].mxu1  ;;  %v14220_v52 = vld [vmem:[%s18149_s5 + $0xd8] sm:$0xff]  }
 0x2f3   :  { %v900_v58 = vpop.f32.mrb[28].mxu0 }
 0x2f4   :  { %v906_v60 = vpack.c.bf16 %v900_v58, %v900_v58  ;;  %v12261_v61 = vpop.f32.mrb[29].mxu0 }
 0x2f5   :  { %v903_v62 = vpop.f32.mrb[30].mxu0 }
 0x2f6   :  { %v12262_v63 = vpop.f32.mrb[31].mxu0  ;;  %12272 = vmatmul.mubr.msk.bf16.vlgmr.msra.gmra.mrb[28].mxu1 %vm750_vm3, %v906_v60 }
 0x2f7   :  { %12276 = vmatpush3.bf16.msra.mxu1 %v15001_v19  ;;  %12285 = vmatprep.mubr.msk.bf16.mxu1 %vm14704_vm0, %v14703_v54 }
 0x2f8   :  { %12277 = vmatprep.subr.bf16.mxu1 %v14703_v54 }
 0x2fb   :  { %12278 = vmatpush3.bf16.msra.mxu1 %v15009_v38 }
 0x2fc   :  { %12279 = vmatprep.subr.bf16.mxu1 %v14703_v54 }
 0x2ff   :  { %12280 = vmatpush3.bf16.msra.mxu1 %v15017_v59 }
 0x300   :  { %12281 = vmatprep.subr.bf16.mxu1 %v14703_v54 }
 0x303   :  { %12282 = vmatpush3.bf16.msra.mxu1 %v15025_v14 }
 0x304   :  { %12283 = vmatprep.subr.bf16.mxu1 %v14703_v54 }
 0x307   :  { %12284 = vmatpush3.bf16.msra.mxu1 %v15042_v23 }
 0x308   :  { %12315 = vmatprep.subr.bf16.mxu1 %v14703_v54 }
 0x30a   :  { %12286 = vmatmul.mubr.msk.bf16.vlgmr.msra.gmra.mrb[32].mxu1 %vm614_vm2, %v10090_v0 }
 0x30b   :  { %12323 = vmatprep.mubr.msk.bf16.mxu1 %vm14704_vm0, %v14703_v54  ;;  %12316 = vmatpush3.bf16.msra.mxu1 %v14209_v17 }
 0x30c   :  { %12317 = vmatprep.subr.bf16.mxu1 %v14703_v54 }
 0x30f   :  { %12318 = vmatpush3.bf16.msra.mxu1 %v14210_v18  ;;  %v10165_v18 = vld [vmem:[%s18148_s1 + $0x20] sm:$0xf] }
 0x310   :  { %12319 = vmatprep.subr.bf16.mxu1 %v14703_v54 }
 0x313   :  { %12320 = vmatpush3.bf16.msra.mxu1 %v14211_v20  ;;  %v14225_v20 = vld [vmem:[%s18149_s5 + $0x100] sm:$0xff]  }
 0x314   :  { %12321 = vmatprep.subr.bf16.mxu1 %v14703_v54 }
 0x317   :  { %12322 = vmatpush3.bf16.msra.mxu1 %v14212_v21  ;;  %v14226_v21 = vld [vmem:[%s18149_s5 + $0x108] sm:$0xff]  }
 0x318   :  { %12327 = vmatprep.subr.bf16.mxu1 %v14703_v54 }
 0x3c9   :  { %v977_v5 = vpop.f32.mrb[28].mxu1 }
 0x3ca   :  { %v983_v6 = vadd.f32 %v977_v5, %v856_v49  ;;  %v12273_v7 = vpop.f32.mrb[29].mxu1  ;;  %v14217_v49 = vld [vmem:[%s18149_s5 + $0xc0] sm:$0xff]   ;;  %v14223_v5 = vld [vmem:[%s18149_s5 + $0xf0] sm:$0xff]  }
 0x3cb   :  { %v980_v8 = vpop.f32.mrb[30].mxu1 }
 0x3cc   :  { %v12274_v9 = vpop.f32.mrb[31].mxu1 }
 0x3dd   :  { %v1023_v10 = vpop.f32.mrb[32].mxu1 }
 0x3de   :  { %v1029_v11 = vpack.c.bf16 %v1023_v10, %v1023_v10  ;;  %v12287_v12 = vpop.f32.mrb[33].mxu1 }
 0x3df   :  { %v1026_v13 = vpop.f32.mrb[34].mxu1 }
 0x3e0   :  { %v12288_v15 = vpop.f32.mrb[35].mxu1  ;;  %12298 = vmatmul.mubr.msk.bf16.vlgmr.msra.gmra.mrb[32].mxu0 %vm750_vm3, %v1029_v11 }
 0x3e1   :  { %12302 = vmatpush3.bf16.msra.mxu0 %v15001_v19  ;;  %12311 = vmatprep.mubr.msk.bf16.mxu0 %vm14704_vm0, %v14703_v54 }
 0x3e2   :  { %12303 = vmatprep.subr.bf16.mxu0 %v14703_v54 }
 0x3e5   :  { %12304 = vmatpush3.bf16.msra.mxu0 %v15009_v38 }
 0x3e6   :  { %12305 = vmatprep.subr.bf16.mxu0 %v14703_v54 }
 0x3e9   :  { %12306 = vmatpush3.bf16.msra.mxu0 %v15017_v59 }
 0x3ea   :  { %12307 = vmatprep.subr.bf16.mxu0 %v14703_v54 }
 0x3ed   :  { %12308 = vmatpush3.bf16.msra.mxu0 %v15025_v14 }
 0x3ee   :  { %12309 = vmatprep.subr.bf16.mxu0 %v14703_v54 }
 0x3f1   :  { %12310 = vmatpush3.bf16.msra.mxu0 %v15042_v23 }
 0x3f2   :  { %12341 = vmatprep.subr.bf16.mxu0 %v14703_v54 }
 0x3f4   :  { %12312 = vmatmul.mubr.msk.bf16.vlgmr.msra.gmra.mrb[36].mxu0 %vm614_vm2, %v10105_v16 }
 0x3f5   :  { %12349 = vmatprep.mubr.msk.bf16.mxu0 %vm14704_vm0, %v14703_v54  ;;  %12342 = vmatpush3.bf16.msra.mxu0 %v14213_v33 }
 0x3f6   :  { %12343 = vmatprep.subr.bf16.mxu0 %v14703_v54 }
 0x3f9   :  { %12344 = vmatpush3.bf16.msra.mxu0 %v14214_v34  ;;  %v10180_v34 = vld [vmem:[%s18148_s1 + $0x24] sm:$0xf] }
 0x3fa   :  { %12345 = vmatprep.subr.bf16.mxu0 %v14703_v54 }
 0x3fd   :  { %12346 = vmatpush3.bf16.msra.mxu0 %v14215_v35  ;;  %v14229_v35 = vld [vmem:[%s18149_s5 + $0x120] sm:$0xff]  }
 0x3fe   :  { %12347 = vmatprep.subr.bf16.mxu0 %v14703_v54 }
 0x401   :  { %12348 = vmatpush3.bf16.msra.mxu0 %v14216_v36  ;;  %v14230_v36 = vld [vmem:[%s18149_s5 + $0x128] sm:$0xff]  }
 0x402   :  { %12353 = vmatprep.subr.bf16.mxu0 %v14703_v54 }
 0x4b3   :  { %v1100_v55 = vpop.f32.mrb[32].mxu0 }
 0x4b4   :  { %v12299_v22 = vpop.f32.mrb[33].mxu0  ;;  %v1106_v24 = vadd.f32 %v1100_v55, %v983_v6  ;;  %v14224_v6 = vld [vmem:[%s18149_s5 + $0xf8] sm:$0xff]   ;;  %v14227_v55 = vld [vmem:[%s18149_s5 + $0x110] sm:$0xff]  }
 0x4b5   :  { %v1103_v25 = vpop.f32.mrb[34].mxu0  ;;  %v14228_v22 = vld [vmem:[%s18149_s5 + $0x118] sm:$0xff]  }
 0x4b6   :  { %v12300_v26 = vpop.f32.mrb[35].mxu0 }
 0x4c7   :  { %v1146_v27 = vpop.f32.mrb[36].mxu0 }
 0x4c8   :  { %v1152_v28 = vpack.c.bf16 %v1146_v27, %v1146_v27  ;;  %v12313_v29 = vpop.f32.mrb[37].mxu0 }
 0x4c9   :  { %v1149_v30 = vpop.f32.mrb[38].mxu0 }
 0x4ca   :  { %v12314_v31 = vpop.f32.mrb[39].mxu0  ;;  %12324 = vmatmul.mubr.msk.bf16.vlgmr.msra.gmra.mrb[36].mxu1 %vm750_vm3, %v1152_v28 }
 0x4cb   :  { %12328 = vmatpush3.bf16.msra.mxu1 %v15001_v19  ;;  %12337 = vmatprep.mubr.msk.bf16.mxu1 %vm14704_vm0, %v14703_v54 }
 0x4cc   :  { %12329 = vmatprep.subr.bf16.mxu1 %v14703_v54 }
 0x4cf   :  { %12330 = vmatpush3.bf16.msra.mxu1 %v15009_v38 }
 0x4d0   :  { %12331 = vmatprep.subr.bf16.mxu1 %v14703_v54 }
 0x4d3   :  { %12332 = vmatpush3.bf16.msra.mxu1 %v15017_v59 }
 0x4d4   :  { %12333 = vmatprep.subr.bf16.mxu1 %v14703_v54 }
 0x4d7   :  { %12334 = vmatpush3.bf16.msra.mxu1 %v15025_v14 }
 0x4d8   :  { %12335 = vmatprep.subr.bf16.mxu1 %v14703_v54 }
 0x4db   :  { %12336 = vmatpush3.bf16.msra.mxu1 %v15042_v23 }
 0x4dc   :  { %12367 = vmatprep.subr.bf16.mxu1 %v14703_v54 }
 0x4de   :  { %12338 = vmatmul.mubr.msk.bf16.vlgmr.msra.gmra.mrb[40].mxu1 %vm614_vm2, %v10120_v32 }
 0x4df   :  { %12375 = vmatprep.mubr.msk.bf16.mxu1 %vm14704_vm0, %v14703_v54  ;;  %12368 = vmatpush3.bf16.msra.mxu1 %v14217_v49 }
 0x4e0   :  { %12369 = vmatprep.subr.bf16.mxu1 %v14703_v54 }
 0x4e3   :  { %12370 = vmatpush3.bf16.msra.mxu1 %v14218_v50  ;;  %v10195_v50 = vld [vmem:[%s18148_s1 + $0x28] sm:$0xf] }
 0x4e4   :  { %12371 = vmatprep.subr.bf16.mxu1 %v14703_v54 }
 0x4e7   :  { %12372 = vmatpush3.bf16.msra.mxu1 %v14219_v51  ;;  %v14233_v51 = vld [vmem:[%s18149_s5 + $0x140] sm:$0xff]  }
 0x4e8   :  { %12373 = vmatprep.subr.bf16.mxu1 %v14703_v54 }
 0x4eb   :  { %12374 = vmatpush3.bf16.msra.mxu1 %v14220_v52  ;;  %v14234_v52 = vld [vmem:[%s18149_s5 + $0x148] sm:$0xff]  }
 0x4ec   :  { %12379 = vmatprep.subr.bf16.mxu1 %v14703_v54 }
 0x59d   :  { %v1223_v37 = vpop.f32.mrb[36].mxu1 }
 0x59e   :  { %v1229_v39 = vadd.f32 %v1223_v37, %v1106_v24  ;;  %v12325_v40 = vpop.f32.mrb[37].mxu1  ;;  %v14231_v37 = vld [vmem:[%s18149_s5 + $0x130] sm:$0xff]  }
 0x59f   :  { %v1226_v41 = vpop.f32.mrb[38].mxu1 }
 0x5a0   :  { %v12326_v42 = vpop.f32.mrb[39].mxu1 }
 0x5b1   :  { %v1269_v43 = vpop.f32.mrb[40].mxu1 }
 0x5b2   :  { %v1275_v44 = vpack.c.bf16 %v1269_v43, %v1269_v43  ;;  %v12339_v45 = vpop.f32.mrb[41].mxu1 }
 0x5b3   :  { %v1272_v46 = vpop.f32.mrb[42].mxu1 }
 0x5b4   :  { %v12340_v47 = vpop.f32.mrb[43].mxu1  ;;  %12350 = vmatmul.mubr.msk.bf16.vlgmr.msra.gmra.mrb[40].mxu0 %vm750_vm3, %v1275_v44 }
 0x5b5   :  { %12354 = vmatpush3.bf16.msra.mxu0 %v15001_v19  ;;  %12363 = vmatprep.mubr.msk.bf16.mxu0 %vm14704_vm0, %v14703_v54 }
 0x5b6   :  { %12355 = vmatprep.subr.bf16.mxu0 %v14703_v54 }
 0x5b9   :  { %12356 = vmatpush3.bf16.msra.mxu0 %v15009_v38 }
 0x5ba   :  { %12357 = vmatprep.subr.bf16.mxu0 %v14703_v54 }
 0x5bd   :  { %12358 = vmatpush3.bf16.msra.mxu0 %v15017_v59 }
 0x5be   :  { %12359 = vmatprep.subr.bf16.mxu0 %v14703_v54 }
 0x5c1   :  { %12360 = vmatpush3.bf16.msra.mxu0 %v15025_v14 }
 0x5c2   :  { %12361 = vmatprep.subr.bf16.mxu0 %v14703_v54 }
 0x5c5   :  { %12362 = vmatpush3.bf16.msra.mxu0 %v15042_v23 }
 0x5c6   :  { %12393 = vmatprep.subr.bf16.mxu0 %v14703_v54 }
 0x5c8   :  { %12364 = vmatmul.mubr.msk.bf16.vlgmr.msra.gmra.mrb[44].mxu0 %vm614_vm2, %v10135_v48 }
 0x5c9   :  { %12401 = vmatprep.mubr.msk.bf16.mxu0 %vm14704_vm0, %v14703_v54  ;;  %12394 = vmatpush3.bf16.msra.mxu0 %v14221_v3 }
 0x5ca   :  { %12395 = vmatprep.subr.bf16.mxu0 %v14703_v54 }
 0x5cd   :  { %12396 = vmatpush3.bf16.msra.mxu0 %v14222_v4  ;;  %v10210_v4 = vld [vmem:[%s18148_s1 + $0x2c] sm:$0xf] }
 0x5ce   :  { %12397 = vmatprep.subr.bf16.mxu0 %v14703_v54 }
 0x5d1   :  { %12398 = vmatpush3.bf16.msra.mxu0 %v14223_v5  ;;  %v14237_v5 = vld [vmem:[%s18149_s5 + $0x160] sm:$0xff]  }
 0x5d2   :  { %12399 = vmatprep.subr.bf16.mxu0 %v14703_v54 }
 0x5d5   :  { %12400 = vmatpush3.bf16.msra.mxu0 %v14224_v6  ;;  %v14238_v6 = vld [vmem:[%s18149_s5 + $0x168] sm:$0xff]  }
 0x5d6   :  { %12405 = vmatprep.subr.bf16.mxu0 %v14703_v54 }
 0x687   :  { %v1346_v53 = vpop.f32.mrb[40].mxu0 }
 0x688   :  { %v12351_v56 = vpop.f32.mrb[41].mxu0  ;;  %v1352_v57 = vadd.f32 %v1346_v53, %v1229_v39  ;;  %v14232_v39 = vld [vmem:[%s18149_s5 + $0x138] sm:$0xff]   ;;  %v14235_v53 = vld [vmem:[%s18149_s5 + $0x150] sm:$0xff]  }
 0x689   :  { %v1349_v58 = vpop.f32.mrb[42].mxu0  ;;  %v14236_v56 = vld [vmem:[%s18149_s5 + $0x158] sm:$0xff]  }
 0x68a   :  { %v12352_v60 = vpop.f32.mrb[43].mxu0 }
 0x69b   :  { %v1392_v61 = vpop.f32.mrb[44].mxu0 }
 0x69c   :  { %v1398_v62 = vpack.c.bf16 %v1392_v61, %v1392_v61  ;;  %v12365_v63 = vpop.f32.mrb[45].mxu0 }
 0x69d   :  { %v1395_v0 = vpop.f32.mrb[46].mxu0 }
 0x69e   :  { %v12366_v1 = vpop.f32.mrb[47].mxu0  ;;  %12376 = vmatmul.mubr.msk.bf16.vlgmr.msra.gmra.mrb[44].mxu1 %vm750_vm3, %v1398_v62 }
 0x69f   :  { %12380 = vmatpush3.bf16.msra.mxu1 %v15001_v19  ;;  %12389 = vmatprep.mubr.msk.bf16.mxu1 %vm14704_vm0, %v14703_v54 }
 0x6a0   :  { %12381 = vmatprep.subr.bf16.mxu1 %v14703_v54 }
 0x6a3   :  { %12382 = vmatpush3.bf16.msra.mxu1 %v15009_v38 }
 0x6a4   :  { %12383 = vmatprep.subr.bf16.mxu1 %v14703_v54 }
 0x6a7   :  { %12384 = vmatpush3.bf16.msra.mxu1 %v15017_v59 }
 0x6a8   :  { %12385 = vmatprep.subr.bf16.mxu1 %v14703_v54 }
 0x6ab   :  { %12386 = vmatpush3.bf16.msra.mxu1 %v15025_v14 }
 0x6ac   :  { %12387 = vmatprep.subr.bf16.mxu1 %v14703_v54 }
 0x6af   :  { %12388 = vmatpush3.bf16.msra.mxu1 %v15042_v23 }
 0x6b0   :  { %12419 = vmatprep.subr.bf16.mxu1 %v14703_v54 }
 0x6b2   :  { %12390 = vmatmul.mubr.msk.bf16.vlgmr.msra.gmra.mrb[48].mxu1 %vm614_vm2, %v10150_v2 }
 0x6b3   :  { %12427 = vmatprep.mubr.msk.bf16.mxu1 %vm14704_vm0, %v14703_v54  ;;  %12420 = vmatpush3.bf16.msra.mxu1 %v14225_v20 }
 0x6b4   :  { %12421 = vmatprep.subr.bf16.mxu1 %v14703_v54 }
 0x6b7   :  { %12422 = vmatpush3.bf16.msra.mxu1 %v14226_v21  ;;  %v10225_v21 = vld [vmem:[%s18148_s1 + $0x30] sm:$0xf] }
 0x6b8   :  { %12423 = vmatprep.subr.bf16.mxu1 %v14703_v54 }
 0x6bb   :  { %12424 = vmatpush3.bf16.msra.mxu1 %v14227_v55  ;;  %v14241_v55 = vld [vmem:[%s18149_s5 + $0x180] sm:$0xff]  }
 0x6bc   :  { %12425 = vmatprep.subr.bf16.mxu1 %v14703_v54 }
 0x6bf   :  { %12426 = vmatpush3.bf16.msra.mxu1 %v14228_v22  ;;  %v14242_v22 = vld [vmem:[%s18149_s5 + $0x188] sm:$0xff]  }
 0x6c0   :  { %12431 = vmatprep.subr.bf16.mxu1 %v14703_v54 }
 0x771   :  { %v1469_v7 = vpop.f32.mrb[44].mxu1 }
 0x772   :  { %v1475_v8 = vadd.f32 %v1469_v7, %v1352_v57  ;;  %v12377_v9 = vpop.f32.mrb[45].mxu1  ;;  %v14239_v7 = vld [vmem:[%s18149_s5 + $0x170] sm:$0xff]  }
 0x773   :  { %v1472_v10 = vpop.f32.mrb[46].mxu1 }
 0x774   :  { %v12378_v11 = vpop.f32.mrb[47].mxu1 }
 0x785   :  { %v1515_v12 = vpop.f32.mrb[48].mxu1 }
 0x786   :  { %v1521_v13 = vpack.c.bf16 %v1515_v12, %v1515_v12  ;;  %v12391_v15 = vpop.f32.mrb[49].mxu1 }
 0x787   :  { %v1518_v16 = vpop.f32.mrb[50].mxu1 }
 0x788   :  { %v12392_v17 = vpop.f32.mrb[51].mxu1  ;;  %12402 = vmatmul.mubr.msk.bf16.vlgmr.msra.gmra.mrb[48].mxu0 %vm750_vm3, %v1521_v13 }
 0x789   :  { %12406 = vmatpush3.bf16.msra.mxu0 %v15001_v19  ;;  %12415 = vmatprep.mubr.msk.bf16.mxu0 %vm14704_vm0, %v14703_v54 }
 0x78a   :  { %12407 = vmatprep.subr.bf16.mxu0 %v14703_v54 }
 0x78d   :  { %12408 = vmatpush3.bf16.msra.mxu0 %v15009_v38 }
 0x78e   :  { %12409 = vmatprep.subr.bf16.mxu0 %v14703_v54 }
 0x791   :  { %12410 = vmatpush3.bf16.msra.mxu0 %v15017_v59 }
 0x792   :  { %12411 = vmatprep.subr.bf16.mxu0 %v14703_v54 }
 0x795   :  { %12412 = vmatpush3.bf16.msra.mxu0 %v15025_v14 }
 0x796   :  { %12413 = vmatprep.subr.bf16.mxu0 %v14703_v54 }
 0x799   :  { %12414 = vmatpush3.bf16.msra.mxu0 %v15042_v23 }
 0x79a   :  { %12445 = vmatprep.subr.bf16.mxu0 %v14703_v54 }
 0x79c   :  { %12416 = vmatmul.mubr.msk.bf16.vlgmr.msra.gmra.mrb[52].mxu0 %vm614_vm2, %v10165_v18 }
 0x79d   :  { %12453 = vmatprep.mubr.msk.bf16.mxu0 %vm14704_vm0, %v14703_v54  ;;  %12446 = vmatpush3.bf16.msra.mxu0 %v14229_v35 }
 0x79e   :  { %12447 = vmatprep.subr.bf16.mxu0 %v14703_v54 }
 0x7a1   :  { %12448 = vmatpush3.bf16.msra.mxu0 %v14230_v36  ;;  %v10240_v36 = vld [vmem:[%s18148_s1 + $0x34] sm:$0xf] }
 0x7a2   :  { %12449 = vmatprep.subr.bf16.mxu0 %v14703_v54 }
 0x7a5   :  { %12450 = vmatpush3.bf16.msra.mxu0 %v14231_v37  ;;  %v14245_v37 = vld [vmem:[%s18149_s5 + $0x1a0] sm:$0xff]  }
 0x7a6   :  { %12451 = vmatprep.subr.bf16.mxu0 %v14703_v54 }
 0x7a9   :  { %12452 = vmatpush3.bf16.msra.mxu0 %v14232_v39  ;;  %v14246_v39 = vld [vmem:[%s18149_s5 + $0x1a8] sm:$0xff]  }
 0x7aa   :  { %12457 = vmatprep.subr.bf16.mxu0 %v14703_v54 }
 0x85b   :  { %v1592_v24 = vpop.f32.mrb[48].mxu0 }
 0x85c   :  { %v12403_v25 = vpop.f32.mrb[49].mxu0  ;;  %v1598_v26 = vadd.f32 %v1592_v24, %v1475_v8  ;;  %v14240_v8 = vld [vmem:[%s18149_s5 + $0x178] sm:$0xff]   ;;  %v14243_v24 = vld [vmem:[%s18149_s5 + $0x190] sm:$0xff]  }
 0x85d   :  { %v1595_v27 = vpop.f32.mrb[50].mxu0  ;;  %v14244_v25 = vld [vmem:[%s18149_s5 + $0x198] sm:$0xff]  }
 0x85e   :  { %v12404_v28 = vpop.f32.mrb[51].mxu0 }
 0x86f   :  { %v1638_v29 = vpop.f32.mrb[52].mxu0 }
 0x870   :  { %v1644_v30 = vpack.c.bf16 %v1638_v29, %v1638_v29  ;;  %v12417_v31 = vpop.f32.mrb[53].mxu0 }
 0x871   :  { %v1641_v32 = vpop.f32.mrb[54].mxu0 }
 0x872   :  { %v12418_v33 = vpop.f32.mrb[55].mxu0  ;;  %12428 = vmatmul.mubr.msk.bf16.vlgmr.msra.gmra.mrb[52].mxu1 %vm750_vm3, %v1644_v30 }
 0x873   :  { %12432 = vmatpush3.bf16.msra.mxu1 %v15001_v19  ;;  %12441 = vmatprep.mubr.msk.bf16.mxu1 %vm14704_vm0, %v14703_v54 }
 0x874   :  { %12433 = vmatprep.subr.bf16.mxu1 %v14703_v54 }
 0x877   :  { %12434 = vmatpush3.bf16.msra.mxu1 %v15009_v38 }
 0x878   :  { %12435 = vmatprep.subr.bf16.mxu1 %v14703_v54 }
 0x87b   :  { %12436 = vmatpush3.bf16.msra.mxu1 %v15017_v59 }
 0x87c   :  { %12437 = vmatprep.subr.bf16.mxu1 %v14703_v54 }
 0x87f   :  { %12438 = vmatpush3.bf16.msra.mxu1 %v15025_v14 }
 0x880   :  { %12439 = vmatprep.subr.bf16.mxu1 %v14703_v54 }
 0x883   :  { %12440 = vmatpush3.bf16.msra.mxu1 %v15042_v23 }
 0x884   :  { %12471 = vmatprep.subr.bf16.mxu1 %v14703_v54 }
 0x886   :  { %12442 = vmatmul.mubr.msk.bf16.vlgmr.msra.gmra.mrb[56].mxu1 %vm614_vm2, %v10180_v34 }
 0x887   :  { %12479 = vmatprep.mubr.msk.bf16.mxu1 %vm14704_vm0, %v14703_v54  ;;  %12472 = vmatpush3.bf16.msra.mxu1 %v14233_v51 }
 0x888   :  { %12473 = vmatprep.subr.bf16.mxu1 %v14703_v54 }
 0x88b   :  { %12474 = vmatpush3.bf16.msra.mxu1 %v14234_v52  ;;  %v10255_v52 = vld [vmem:[%s18148_s1 + $0x38] sm:$0xf] }
 0x88c   :  { %12475 = vmatprep.subr.bf16.mxu1 %v14703_v54 }
 0x88f   :  { %12476 = vmatpush3.bf16.msra.mxu1 %v14235_v53  ;;  %v14249_v53 = vld [vmem:[%s18149_s5 + $0x1c0] sm:$0xff]  }
 0x890   :  { %12477 = vmatprep.subr.bf16.mxu1 %v14703_v54 }
 0x893   :  { %12478 = vmatpush3.bf16.msra.mxu1 %v14236_v56  ;;  %v14250_v56 = vld [vmem:[%s18149_s5 + $0x1c8] sm:$0xff]  }
 0x894   :  { %12483 = vmatprep.subr.bf16.mxu1 %v14703_v54 }
 0x945   :  { %v1715_v40 = vpop.f32.mrb[52].mxu1 }
 0x946   :  { %v1721_v41 = vadd.f32 %v1715_v40, %v1598_v26  ;;  %v12429_v42 = vpop.f32.mrb[53].mxu1  ;;  %v14247_v40 = vld [vmem:[%s18149_s5 + $0x1b0] sm:$0xff]  }
 0x947   :  { %v1718_v43 = vpop.f32.mrb[54].mxu1 }
 0x948   :  { %v12430_v44 = vpop.f32.mrb[55].mxu1 }
 0x959   :  { %v1761_v45 = vpop.f32.mrb[56].mxu1 }
 0x95a   :  { %v1767_v46 = vpack.c.bf16 %v1761_v45, %v1761_v45  ;;  %v12443_v47 = vpop.f32.mrb[57].mxu1 }
 0x95b   :  { %v1764_v48 = vpop.f32.mrb[58].mxu1 }
 0x95c   :  { %v12444_v49 = vpop.f32.mrb[59].mxu1  ;;  %12454 = vmatmul.mubr.msk.bf16.vlgmr.msra.gmra.mrb[56].mxu0 %vm750_vm3, %v1767_v46 }
 0x95d   :  { %12458 = vmatpush3.bf16.msra.mxu0 %v15001_v19  ;;  %12467 = vmatprep.mubr.msk.bf16.mxu0 %vm14704_vm0, %v14703_v54 }
 0x95e   :  { %12459 = vmatprep.subr.bf16.mxu0 %v14703_v54 }
 0x961   :  { %12460 = vmatpush3.bf16.msra.mxu0 %v15009_v38 }
 0x962   :  { %12461 = vmatprep.subr.bf16.mxu0 %v14703_v54 }
 0x965   :  { %12462 = vmatpush3.bf16.msra.mxu0 %v15017_v59 }
 0x966   :  { %12463 = vmatprep.subr.bf16.mxu0 %v14703_v54 }
 0x969   :  { %12464 = vmatpush3.bf16.msra.mxu0 %v15025_v14 }
 0x96a   :  { %12465 = vmatprep.subr.bf16.mxu0 %v14703_v54 }
 0x96d   :  { %12466 = vmatpush3.bf16.msra.mxu0 %v15042_v23 }
 0x96e   :  { %12497 = vmatprep.subr.bf16.mxu0 %v14703_v54 }
 0x970   :  { %12468 = vmatmul.mubr.msk.bf16.vlgmr.msra.gmra.mrb[60].mxu0 %vm614_vm2, %v10195_v50 }
 0x971   :  { %12505 = vmatprep.mubr.msk.bf16.mxu0 %vm14704_vm0, %v14703_v54  ;;  %12498 = vmatpush3.bf16.msra.mxu0 %v14237_v5 }
 0x972   :  { %12499 = vmatprep.subr.bf16.mxu0 %v14703_v54 }
 0x975   :  { %12500 = vmatpush3.bf16.msra.mxu0 %v14238_v6 }
 0x976   :  { %12501 = vmatprep.subr.bf16.mxu0 %v14703_v54 }
 0x979   :  { %12502 = vmatpush3.bf16.msra.mxu0 %v14239_v7 }
 0x97a   :  { %12503 = vmatprep.subr.bf16.mxu0 %v14703_v54 }
 0x97d   :  { %12504 = vmatpush3.bf16.msra.mxu0 %v14240_v8 }
 0x97e   :  { %12509 = vmatprep.subr.bf16.mxu0 %v14703_v54 }
 0xa2f   :  { %v1838_v57 = vpop.f32.mrb[56].mxu0 }
 0xa30   :  { %v12455_v58 = vpop.f32.mrb[57].mxu0  ;;  %v1844_v60 = vadd.f32 %v1838_v57, %v1721_v41  ;;  %v14248_v41 = vld [vmem:[%s18149_s5 + $0x1b8] sm:$0xff]   ;;  %v14251_v57 = vld [vmem:[%s18149_s5 + $0x1d0] sm:$0xff]  }
 0xa31   :  { %v1841_v61 = vpop.f32.mrb[58].mxu0  ;;  %v14252_v58 = vld [vmem:[%s18149_s5 + $0x1d8] sm:$0xff]  }
 0xa32   :  { %v12456_v62 = vpop.f32.mrb[59].mxu0 }
 0xa43   :  { %v1884_v63 = vpop.f32.mrb[60].mxu0 }
 0xa44   :  { %v1890_v0 = vpack.c.bf16 %v1884_v63, %v1884_v63  ;;  %v12469_v1 = vpop.f32.mrb[61].mxu0 }
 0xa45   :  { %v1887_v2 = vpop.f32.mrb[62].mxu0 }
 0xa46   :  { %v12470_v3 = vpop.f32.mrb[63].mxu0  ;;  %12480 = vmatmul.mubr.msk.bf16.vlgmr.msra.gmra.mrb[60].mxu1 %vm750_vm3, %v1890_v0 }
 0xa47   :  { %12484 = vmatpush3.bf16.msra.mxu1 %v15001_v19  ;;  %12493 = vmatprep.mubr.msk.bf16.mxu1 %vm14704_vm0, %v14703_v54 }
 0xa48   :  { %12485 = vmatprep.subr.bf16.mxu1 %v14703_v54 }
 0xa4b   :  { %12486 = vmatpush3.bf16.msra.mxu1 %v15009_v38 }
 0xa4c   :  { %12487 = vmatprep.subr.bf16.mxu1 %v14703_v54 }
 0xa4f   :  { %12488 = vmatpush3.bf16.msra.mxu1 %v15017_v59 }
 0xa50   :  { %12489 = vmatprep.subr.bf16.mxu1 %v14703_v54 }
 0xa53   :  { %12490 = vmatpush3.bf16.msra.mxu1 %v15025_v14 }
 0xa54   :  { %12491 = vmatprep.subr.bf16.mxu1 %v14703_v54 }
 0xa57   :  { %12492 = vmatpush3.bf16.msra.mxu1 %v15042_v23 }
 0xa58   :  { %12523 = vmatprep.subr.bf16.mxu1 %v14703_v54 }
 0xa5a   :  { %12494 = vmatmul.mubr.msk.bf16.vlgmr.msra.gmra.mrb[64].mxu1 %vm614_vm2, %v10210_v4 }
 0xa5b   :  { %12531 = vmatprep.mubr.msk.bf16.mxu1 %vm14704_vm0, %v14703_v54  ;;  %12524 = vmatpush3.bf16.msra.mxu1 %v14241_v55 }
 0xa5c   :  { %12525 = vmatprep.subr.bf16.mxu1 %v14703_v54 }
 0xa5f   :  { %12526 = vmatpush3.bf16.msra.mxu1 %v14242_v22 }
 0xa60   :  { %12527 = vmatprep.subr.bf16.mxu1 %v14703_v54 }
 0xa63   :  { %12528 = vmatpush3.bf16.msra.mxu1 %v14243_v24 }
 0xa64   :  { %12529 = vmatprep.subr.bf16.mxu1 %v14703_v54 }
 0xa67   :  { %12530 = vmatpush3.bf16.msra.mxu1 %v14244_v25 }
 0xa68   :  { %12535 = vmatprep.subr.bf16.mxu1 %v14703_v54 }
 0xb19   :  { %v1961_v9 = vpop.f32.mrb[60].mxu1 }
 0xb1a   :  { %v1967_v10 = vadd.f32 %v1961_v9, %v1844_v60  ;;  %v12481_v11 = vpop.f32.mrb[61].mxu1 }
 0xb1b   :  { %v1964_v12 = vpop.f32.mrb[62].mxu1 }
 0xb1c   :  { %v12482_v13 = vpop.f32.mrb[63].mxu1 }
 0xb2d   :  { %v2007_v15 = vpop.f32.mrb[64].mxu1 }
 0xb2e   :  { %v2013_v16 = vpack.c.bf16 %v2007_v15, %v2007_v15  ;;  %v12495_v17 = vpop.f32.mrb[65].mxu1 }
 0xb2f   :  { %v2010_v18 = vpop.f32.mrb[66].mxu1  ;;  %v14263_v17 = vld [vmem:[%s18150_s9 + $0x40] ss:$8 sps:$4 sm:$0xff]  }
 0xb30   :  { %v12496_v20 = vpop.f32.mrb[67].mxu1  ;;  %12506 = vmatmul.mubr.msk.bf16.vlgmr.msra.gmra.mrb[64].mxu0 %vm750_vm3, %v2013_v16  ;;  %v14265_v18 = vld [vmem:[%s18150_s9 + $0x44] ss:$8 sps:$4 sm:$0xff]  }
 0xb31   :  { %12510 = vmatpush3.bf16.msra.mxu0 %v15001_v19  ;;  %12519 = vmatprep.mubr.msk.bf16.mxu0 %vm14704_vm0, %v14703_v54  ;;  %v14269_v20 = vld [vmem:[%s18150_s9 + $0x50] ss:$8 sps:$4 sm:$0xff]  }
 0xb32   :  { %12511 = vmatprep.subr.bf16.mxu0 %v14703_v54 }
 0xb35   :  { %12512 = vmatpush3.bf16.msra.mxu0 %v15009_v38 }
 0xb36   :  { %12513 = vmatprep.subr.bf16.mxu0 %v14703_v54 }
 0xb39   :  { %12514 = vmatpush3.bf16.msra.mxu0 %v15017_v59 }
 0xb3a   :  { %12515 = vmatprep.subr.bf16.mxu0 %v14703_v54 }
 0xb3d   :  { %12516 = vmatpush3.bf16.msra.mxu0 %v15025_v14 }
 0xb3e   :  { %12517 = vmatprep.subr.bf16.mxu0 %v14703_v54 }
 0xb41   :  { %12518 = vmatpush3.bf16.msra.mxu0 %v15042_v23 }
 0xb42   :  { %12549 = vmatprep.subr.bf16.mxu0 %v14703_v54 }
 0xb44   :  { %12520 = vmatmul.mubr.msk.bf16.vlgmr.msra.gmra.mrb[68].mxu0 %vm614_vm2, %v10225_v21  ;;  %v14271_v21 = vld [vmem:[%s18150_s9 + $0x54] ss:$8 sps:$4 sm:$0xff]  }
 0xb45   :  { %12557 = vmatprep.mubr.msk.bf16.mxu0 %vm14704_vm0, %v14703_v54  ;;  %12550 = vmatpush3.bf16.msra.mxu0 %v14245_v37  ;;  %v14260_v37 = vld [vmem:[%s18150_s9 + $0x10] ss:$8 sps:$4 sm:$0xff]  }
 0xb46   :  { %12551 = vmatprep.subr.bf16.mxu0 %v14703_v54 }
 0xb49   :  { %12552 = vmatpush3.bf16.msra.mxu0 %v14246_v39  ;;  %v14268_v39 = vld [vmem:[%s18150_s9 + $0x24] ss:$8 sps:$4 sm:$0xff]  }
 0xb4a   :  { %12553 = vmatprep.subr.bf16.mxu0 %v14703_v54 }
 0xb4d   :  { %12554 = vmatpush3.bf16.msra.mxu0 %v14247_v40  ;;  %v14266_v40 = vld [vmem:[%s18150_s9 + $0x20] ss:$8 sps:$4 sm:$0xff]  }
 0xb4e   :  { %12555 = vmatprep.subr.bf16.mxu0 %v14703_v54 }
 0xb51   :  { %12556 = vmatpush3.bf16.msra.mxu0 %v14248_v41  ;;  %v14274_v41 = vld [vmem:[%s18150_s9 + $0x34] ss:$8 sps:$4 sm:$0xff]  }
 0xb52   :  { %12561 = vmatprep.subr.bf16.mxu0 %v14703_v54 }
 0xc03   :  { %v2084_v26 = vpop.f32.mrb[64].mxu0 }
 0xc04   :  { %v12507_v27 = vpop.f32.mrb[65].mxu0  ;;  %v2090_v28 = vadd.f32 %v2084_v26, %v1967_v10 }
 0xc05   :  { %v2087_v29 = vpop.f32.mrb[66].mxu0 }
 0xc06   :  { %v12508_v30 = vpop.f32.mrb[67].mxu0 }
 0xc17   :  { %v2130_v31 = vpop.f32.mrb[68].mxu0 }
 0xc18   :  { %v2136_v32 = vpack.c.bf16 %v2130_v31, %v2130_v31  ;;  %v12521_v33 = vpop.f32.mrb[69].mxu0 }
 0xc19   :  { %v2133_v34 = vpop.f32.mrb[70].mxu0  ;;  %v14259_v33 = vld [vmem:[%s18150_s9 + $0x4] ss:$8 sps:$4 sm:$0xff]  }
 0xc1a   :  { %v12522_v35 = vpop.f32.mrb[71].mxu0  ;;  %12532 = vmatmul.mubr.msk.bf16.vlgmr.msra.gmra.mrb[68].mxu1 %vm750_vm3, %v2136_v32  ;;  %v2593_v32 = vld [vmem:[%s18152_s8] sm:$0x1]  ;;  %v10287_v34 = vld [vmem:[%s18152_s8 + $0x1] sm:$0x1] }
 0xc1b   :  { %12536 = vmatpush3.bf16.msra.mxu1 %v15001_v19  ;;  %12545 = vmatprep.mubr.msk.bf16.mxu1 %vm14704_vm0, %v14703_v54  ;;  %v14257_v35 = vld [vmem:[%s18150_s9] ss:$8 sps:$4 sm:$0xff]  }
 0xc1c   :  { %12537 = vmatprep.subr.bf16.mxu1 %v14703_v54 }
 0xc1f   :  { %12538 = vmatpush3.bf16.msra.mxu1 %v15009_v38 }
 0xc20   :  { %12539 = vmatprep.subr.bf16.mxu1 %v14703_v54 }
 0xc23   :  { %12540 = vmatpush3.bf16.msra.mxu1 %v15017_v59 }
 0xc24   :  { %12541 = vmatprep.subr.bf16.mxu1 %v14703_v54 }
 0xc27   :  { %12542 = vmatpush3.bf16.msra.mxu1 %v15025_v14 }
 0xc28   :  { %12543 = vmatprep.subr.bf16.mxu1 %v14703_v54 }
 0xc2b   :  { %12544 = vmatpush3.bf16.msra.mxu1 %v15042_v23 }
 0xc2c   :  { %12575 = vmatprep.subr.bf16.mxu1 %v14703_v54 }
 0xc2e   :  { %12546 = vmatmul.mubr.msk.bf16.vlgmr.msra.gmra.mrb[72].mxu1 %vm614_vm2, %v10240_v36  ;;  %v14262_v36 = vld [vmem:[%s18150_s9 + $0x14] ss:$8 sps:$4 sm:$0xff]  }
 0xc2f   :  { %12583 = vmatprep.mubr.msk.bf16.mxu1 %vm14704_vm0, %v14703_v54  ;;  %12576 = vmatpush3.bf16.msra.mxu1 %v14249_v53 }
 0xc30   :  { %12577 = vmatprep.subr.bf16.mxu1 %v14703_v54 }
 0xc33   :  { %12578 = vmatpush3.bf16.msra.mxu1 %v14250_v56 }
 0xc34   :  { %12579 = vmatprep.subr.bf16.mxu1 %v14703_v54 }
 0xc37   :  { %12580 = vmatpush3.bf16.msra.mxu1 %v14251_v57 }
 0xc38   :  { %12581 = vmatprep.subr.bf16.mxu1 %v14703_v54 }
 0xc3b   :  { %12582 = vmatpush3.bf16.msra.mxu1 %v14252_v58 }
 0xc3c   :  { %12587 = vmatprep.subr.bf16.mxu1 %v14703_v54 }
 0xced   :  { %v2207_v42 = vpop.f32.mrb[68].mxu1 }
 0xcee   :  { %v2213_v43 = vadd.f32 %v2207_v42, %v2090_v28  ;;  %v12533_v44 = vpop.f32.mrb[69].mxu1  ;;  %v14272_v42 = vld [vmem:[%s18150_s9 + $0x30] ss:$8 sps:$4 sm:$0xff]  }
 0xcef   :  { %v2210_v45 = vpop.f32.mrb[70].mxu1  ;;  %v14275_v44 = vld [vmem:[%s18150_s9 + $0x60] ss:$8 sps:$4 sm:$0xff]  }
 0xcf0   :  { %v12534_v46 = vpop.f32.mrb[71].mxu1  ;;  %v14705_v45 = vmov 0  }
 0xcf1   :  { %v14278_v46 = vld [vmem:[%s18150_s9 + $0x70] ss:$8 sps:$4 sm:$0xff]  }
 0xd01   :  { %v2253_v47 = vpop.f32.mrb[72].mxu1 }
 0xd02   :  { %v2259_v48 = vpack.c.bf16 %v2253_v47, %v2253_v47  ;;  %v12547_v49 = vpop.f32.mrb[73].mxu1  ;;  %v14280_v47 = vld [vmem:[%s18150_s9 + $0x74] ss:$8 sps:$4 sm:$0xff]  }
 0xd03   :  { %v2256_v50 = vpop.f32.mrb[74].mxu1 }
 0xd04   :  { %v12548_v51 = vpop.f32.mrb[75].mxu1  ;;  %12558 = vmatmul.mubr.msk.bf16.vlgmr.msra.gmra.mrb[72].mxu0 %vm750_vm3, %v2259_v48 }
 0xd05   :  { %12562 = vmatpush3.bf16.msra.mxu0 %v15001_v19  ;;  %12571 = vmatprep.mubr.msk.bf16.mxu0 %vm14704_vm0, %v14703_v54 }
 0xd06   :  { %12563 = vmatprep.subr.bf16.mxu0 %v14703_v54 }
 0xd09   :  { %12564 = vmatpush3.bf16.msra.mxu0 %v15009_v38 }
 0xd0a   :  { %12565 = vmatprep.subr.bf16.mxu0 %v14703_v54 }
 0xd0d   :  { %12566 = vmatpush3.bf16.msra.mxu0 %v15017_v59 }
 0xd0e   :  { %12567 = vmatprep.subr.bf16.mxu0 %v14703_v54 }
 0xd11   :  { %12568 = vmatpush3.bf16.msra.mxu0 %v15025_v14 }
 0xd12   :  { %12569 = vmatprep.subr.bf16.mxu0 %v14703_v54 }
 0xd15   :  { %12570 = vmatpush3.bf16.msra.mxu0 %v15042_v23 }
 0xd16   :  { %12601 = vmatprep.subr.bf16.mxu0 %v14703_v54 }
 0xd18   :  { %12572 = vmatmul.mubr.msk.bf16.vlgmr.msra.gmra.mrb[76].mxu0 %vm614_vm2, %v10255_v52 }
 0xd19   :  { %12609 = vmatprep.mubr.msk.bf16.mxu0 %vm14704_vm0, %v14703_v54 }
 0xdd7   :  { %v2330_v60 = vpop.f32.mrb[72].mxu0 }
 0xdd8   :  { %v12559_v61 = vpop.f32.mrb[73].mxu0  ;;  %v2336_v62 = vadd.f32 %v2330_v60, %v2213_v43  ;;  %v14277_v43 = vld [vmem:[%s18150_s9 + $0x64] ss:$8 sps:$4 sm:$0xff]  }
 0xdd9   :  { %v2333_v63 = vpop.f32.mrb[74].mxu0  ;;  %v10315_v61 = vld [vmem:[%s18152_s8 + $0x2] sm:$0x1] }
 0xdda   :  { %v12560_v0 = vpop.f32.mrb[75].mxu0  ;;  %v14283_v63 = vld [vmem:[%s18150_s9 + $0x84] ss:$8 sps:$4 sm:$0xff]  }
 0xddb   :  { %v14281_v0 = vld [vmem:[%s18150_s9 + $0x80] ss:$8 sps:$4 sm:$0xff]  }
 0xdeb   :  { %v2376_v1 = vpop.f32.mrb[76].mxu0 }
 0xdec   :  { %v2382_v2 = vpack.c.bf16 %v2376_v1, %v2376_v1  ;;  %v12573_v3 = vpop.f32.mrb[77].mxu0  ;;  %v14286_v1 = vld [vmem:[%s18150_s9 + $0x94] ss:$8 sps:$4 sm:$0xff]  }
 0xded   :  { %v2379_v4 = vpop.f32.mrb[78].mxu0  ;;  %v14289_v3 = vld [vmem:[%s18150_s9 + $0xa4] ss:$8 sps:$4 sm:$0xff]  }
 0xdee   :  { %v12574_v5 = vpop.f32.mrb[79].mxu0  ;;  %12584 = vmatmul.mubr.msk.bf16.vlgmr.msra.gmra.mrb[76].mxu1 %vm750_vm3, %v2382_v2  ;;  %v14284_v2 = vld [vmem:[%s18150_s9 + $0x90] ss:$8 sps:$4 sm:$0xff]   ;;  %v14292_v4 = vld [vmem:[%s18150_s9 + $0xc4] ss:$8 sps:$4 sm:$0xff]  }
 0xdef   :  { %12588 = vmatpush3.bf16.msra.mxu1 %v15001_v19  ;;  %12597 = vmatprep.mubr.msk.bf16.mxu1 %vm14704_vm0, %v14703_v54  ;;  %v10270_v19 = vld [vmem:[%s18148_s1 + $0x3c] sm:$0xf]  ;;  %s18151_s1 = sld [smem:[#allocation15_spill]]  ;;  %v14287_v5 = vld [vmem:[%s18150_s9 + $0xa0] ss:$8 sps:$4 sm:$0xff]  }
 0xdf0   :  { %12589 = vmatprep.subr.bf16.mxu1 %v14703_v54 }
 0xdf3   :  { %12590 = vmatpush3.bf16.msra.mxu1 %v15009_v38  ;;  %v14253_v38 = vld [vmem:[%s18149_s5 + $0x1e0] sm:$0xff]  }
 0xdf4   :  { %12591 = vmatprep.subr.bf16.mxu1 %v14703_v54  ;;  %12602 = vmatpush3.bf16.msra.mxu0 %v14253_v38  ;;  %v14295_v38 = vld [vmem:[%s18150_s9 + $0xb4] ss:$8 sps:$4 sm:$0xff]  }
 0xdf5   :  { %12603 = vmatprep.subr.bf16.mxu0 %v14703_v54  ;;  %v10285_v22 = vld [vmem:[%s18151_s1] ss:$0 sm:$0xff] }
 0xdf7   :  { %12592 = vmatpush3.bf16.msra.mxu1 %v15017_v59  ;;  %v14254_v59 = vld [vmem:[%s18149_s5 + $0x1e8] sm:$0xff]  }
 0xdf8   :  { %12593 = vmatprep.subr.bf16.mxu1 %v14703_v54  ;;  %12604 = vmatpush3.bf16.msra.mxu0 %v14254_v59  ;;  %v14298_v59 = vld [vmem:[%s18150_s9 + $0xd4] ss:$8 sps:$4 sm:$0xff]  }
 0xdf9   :  { %12605 = vmatprep.subr.bf16.mxu0 %v14703_v54 }
 0xdfb   :  { %12594 = vmatpush3.bf16.msra.mxu1 %v15025_v14  ;;  %v14255_v14 = vld [vmem:[%s18149_s5 + $0x1f0] sm:$0xff]  }
 0xdfc   :  { %12595 = vmatprep.subr.bf16.mxu1 %v14703_v54  ;;  %12606 = vmatpush3.bf16.msra.mxu0 %v14255_v14  ;;  %v14293_v14 = vld [vmem:[%s18150_s9 + $0xb0] ss:$8 sps:$4 sm:$0xff]  }
 0xdfd   :  { %12607 = vmatprep.subr.bf16.mxu0 %v14703_v54 }
 0xdff   :  { %12596 = vmatpush3.bf16.msra.mxu1 %v15042_v23  ;;  %v14256_v23 = vld [vmem:[%s18149_s5 + $0x1f8] sm:$0xff]  }
 0xe00   :  { %12613 = vmatprep.subr.bf16.mxu1 %v14703_v54  ;;  %12608 = vmatpush3.bf16.msra.mxu0 %v14256_v23  ;;  %v14296_v23 = vld [vmem:[%s18150_s9 + $0xd0] ss:$8 sps:$4 sm:$0xff]  }
 0xe01   :  { %2748 = vmatprep.subr.bf16.mxu0 %v14265_v18 }
 0xe02   :  { %12598 = vmatmul.mubr.msk.bf16.vlgmr.msra.gmra.mrb[80].mxu1 %vm614_vm2, %v10270_v19  ;;  %v14290_v19 = vld [vmem:[%s18150_s9 + $0xc0] ss:$8 sps:$4 sm:$0xff]  }
 0xe03   :  { %12615 = vmatprep.mubr.msk.bf16.mxu1 %vm14704_vm0, %v14703_v54 }
 0xec1   :  { %v2453_v6 = vpop.f32.mrb[76].mxu1 }
 0xec2   :  { %v2459_v7 = vadd.f32 %v2453_v6, %v2336_v62  ;;  %v12585_v8 = vpop.f32.mrb[77].mxu1  ;;  %v10334_v62 = vld [vmem:[%s18152_s8 + $0x3] sm:$0x1]  ;;  %v14301_v6 = vld [vmem:[%s18150_s9 + $0xe4] ss:$8 sps:$4 sm:$0xff]   ;;  %s18153_s8 = sld [smem:[#allocation18_spill]] }
 0xec3   :  { %v2456_v9 = vpop.f32.mrb[78].mxu1  ;;  %v14304_v8 = vld [vmem:[%s18150_s9 + $0xf4] ss:$8 sps:$4 sm:$0xff]  }
 0xec4   :  { %v12586_v10 = vpop.f32.mrb[79].mxu1  ;;  %v14302_v9 = vld [vmem:[%s18150_s9 + $0xf0] ss:$8 sps:$4 sm:$0xff]  }
 0xed5   :  { %v2499_v11 = vpop.f32.mrb[80].mxu1 }
 0xed6   :  { %v2505_v12 = vpack.c.bf16 %v2499_v11, %v2499_v11  ;;  %v12599_v13 = vpop.f32.mrb[81].mxu1 }
 0xed7   :  { %v2502_v15 = vpop.f32.mrb[82].mxu1 }
 0xed8   :  { %v12600_v16 = vpop.f32.mrb[83].mxu1  ;;  %12610 = vmatmul.mubr.msk.bf16.vlgmr.msra.gmra.mrb[80].mxu0 %vm750_vm3, %v2505_v12 }
 0xed9   :  { %2749 = vmatpush1.bf16.msra.mxu0 %v14263_v17  ;;  %2780 = vmatprep.mubr.bf16.mxu0 %v14705_v45 }
 0xeda   :  { %2750 = vmatprep.subr.bf16.mxu0 %v14271_v21 }
 0xedd   :  { %2751 = vmatpush1.bf16.msra.mxu0 %v14269_v20 }
 0xede   :  { %2752 = vmatprep.subr.bf16.mxu0 %v14277_v43  ;;  %v14315_v43 = vld [vmem:[%s18114_s11 + $0x68] sm:$0xff]  }
 0xee1   :  { %2753 = vmatpush1.bf16.msra.mxu0 %v14275_v44  ;;  %v14316_v44 = vld [vmem:[%s18114_s11 + $0x28] sm:$0xff]  }
 0xee2   :  { %2754 = vmatprep.subr.bf16.mxu0 %v14280_v47  ;;  %v14318_v47 = vld [vmem:[%s18114_s11 + $0x30] sm:$0xff]  }
 0xee5   :  { %2755 = vmatpush1.bf16.msra.mxu0 %v14278_v46  ;;  %v14317_v46 = vld [vmem:[%s18114_s11 + $0x70] sm:$0xff]  }
 0xee6   :  { %12625 = vmatprep.subr.bf16.mxu0 %v14703_v54 }
 0xfab   :  { %v2576_v55 = vpop.f32.mrb[80].mxu0 }
 0xfac   :  { %v2582_v24 = vadd.f32 %v2576_v55, %v2459_v7  ;;  %v12611_v25 = vpop.f32.mrb[81].mxu0  ;;  %v14299_v7 = vld [vmem:[%s18150_s9 + $0xe0] ss:$8 sps:$4 sm:$0xff]  }
 0xfad   :  { %v2579_v26 = vpop.f32.mrb[82].mxu0 }
 0xfae   :  { %v12612_v27 = vpop.f32.mrb[83].mxu0  ;;  %v2590_v28 = vadd.f32 %v10285_v22, %v2582_v24 }
 0xfb0   :  { %v2591_v29 = vmax.f32 %v2590_v28, 0.0 }
 0xfb2   :  { %v2592_v30 = vpack.c.bf16 %v2591_v29, %v2591_v29 }
 0xfb4   :  { %v2599_v31 = vsel %vm618_vm1, %v2592_v30, 0 }
 0xfb5   :  { %12614 = vmatpush3.bf16.msra.mxu1 %v2599_v31 }
 0xfb6   :  { %12619 = vmatprep.subr.bf16.mxu1 %v14703_v54 }
 0xfb8   :  { %12616 = vmatmul.mubr.msk.bf16.vlgmr.msra.gmra.mrb[84].mxu1 %vm2594_vm4, %v2593_v32  ;;  %v14305_v32 = vld [vmem:[%s18114_s11 + $0x40] sm:$0xff]  }
 0xfb9   :  { %12620 = vmatpush3.bf16.msra.mxu1 %v2599_v31  ;;  %12621 = vmatprep.mubr.msk.bf16.mxu1 %vm14704_vm0, %v14703_v54 }
 0xfba   :  { %2832 = vmatprep.subr.bf16.mxu1 %v14259_v33  ;;  %v14306_v33 = vld [vmem:[%s18114_s11] sm:$0xff]  }
 0xfc0   :  { %12622 = vmatmul.mubr.msk.bf16.vlgmr.msra.gmra.mrb[88].mxu1 %vm2594_vm4, %v10287_v34  ;;  %v14307_v34 = vld [vmem:[%s18114_s11 + $0x48] sm:$0xff]  }
 0xfc1   :  { %2833 = vmatpush1.bf16.msra.mxu1 %v14257_v35  ;;  %2864 = vmatprep.mubr.bf16.mxu1 %v14705_v45  ;;  %v14308_v35 = vld [vmem:[%s18114_s11 + $0x8] sm:$0xff]  }
 0xfc2   :  { %2834 = vmatprep.subr.bf16.mxu1 %v14262_v36  ;;  %v14309_v36 = vld [vmem:[%s18114_s11 + $0x50] sm:$0xff]  }
 0xfc5   :  { %2835 = vmatpush1.bf16.msra.mxu1 %v14260_v37  ;;  %v14310_v37 = vld [vmem:[%s18114_s11 + $0x10] sm:$0xff]  }
 0xfc6   :  { %2836 = vmatprep.subr.bf16.mxu1 %v14268_v39  ;;  %v14311_v39 = vld [vmem:[%s18114_s11 + $0x58] sm:$0xff]  }
 0xfc9   :  { %2837 = vmatpush1.bf16.msra.mxu1 %v14266_v40  ;;  %v14312_v40 = vld [vmem:[%s18114_s11 + $0x18] sm:$0xff]  }
 0xfca   :  { %2838 = vmatprep.subr.bf16.mxu1 %v14274_v41  ;;  %v14313_v41 = vld [vmem:[%s18114_s11 + $0x60] sm:$0xff]  }
 0xfcd   :  { %2839 = vmatpush1.bf16.msra.mxu1 %v14272_v42  ;;  %v14314_v42 = vld [vmem:[%s18114_s11 + $0x20] sm:$0xff]  }
 0xfce   :  { %2971 = vmatprep.subr.bf16.mxu1 %v14283_v63 }
0x108b   :  { %v2635_v48 = vpop.f32.mrb[84].mxu1 }
0x108c   :  { %v2641_v49 = vpack.c.bf16 %v2635_v48, %v2635_v48  ;;  %v12617_v50 = vpop.f32.mrb[85].mxu1  ;;  %v14319_v48 = vld [vmem:[%s18114_s11 + $0x78] sm:$0xff]  }
0x108d   :  { %v2638_v51 = vpop.f32.mrb[86].mxu1  ;;  %v3157_v50 = vlaneseq }
0x108e   :  { %v12618_v52 = vpop.f32.mrb[87].mxu1  ;;  %10314 = vmatmul.mubr.msk.bf16.vlgmr.msra.gmra.mrb[92].mxu1 %vm750_vm3, %v2641_v49  ;;  %v14320_v49 = vld [vmem:[%s18114_s11 + $0x38] sm:$0xff]  }
0x108f   :  { %3003 = vmatprep.mubr.bf16.mxu1 %v14705_v45  ;;  %2972 = vmatpush1.bf16.msra.mxu1 %v14281_v0  ;;  %v15783_v51 = vshrl.u32 %v3157_v50, 7  ;;  %v14334_v50 = vld [vmem:[%s18114_s11 + $0xe8] sm:$0xff]  }
0x1090   :  { %2973 = vmatprep.subr.bf16.mxu1 %v14286_v1 }
0x1091   :  { %v3163_v63 = vsub.s32 1, %v15783_v51 }
0x1093   :  { %v2689_v53 = vpop.f32.mrb[88].mxu1  ;;  %2974 = vmatpush1.bf16.msra.mxu1 %v14284_v2 }
0x1094   :  { %v2695_v56 = vpack.c.bf16 %v2689_v53, %v2689_v53  ;;  %v12623_v57 = vpop.f32.mrb[89].mxu1  ;;  %2975 = vmatprep.subr.bf16.mxu1 %v14289_v3 }
0x1095   :  { %v2692_v58 = vpop.f32.mrb[90].mxu1 }
0x1096   :  { %v12624_v60 = vpop.f32.mrb[91].mxu1  ;;  %10305 = vmatmul.mubr.msk.bf16.vlgmr.msra.gmra.mrb[84].mxu0 %vm750_vm3, %v2695_v56 }
0x1097   :  { %12626 = vmatpush3.bf16.msra.mxu0 %v2599_v31  ;;  %12627 = vmatprep.mubr.msk.bf16.mxu0 %vm14704_vm0, %v14703_v54 }
0x1098   :  { %12631 = vmatprep.subr.bf16.mxu0 %v14703_v54  ;;  %2976 = vmatpush1.bf16.msra.mxu1 %v14287_v5 }
0x1099   :  { %2977 = vmatprep.subr.bf16.mxu1 %v14295_v38 }
0x109c   :  { %2978 = vmatpush1.bf16.msra.mxu1 %v14293_v14 }
0x109d   :  { %12637 = vmatprep.subr.bf16.mxu1 %v14703_v54 }
0x109e   :  { %12628 = vmatmul.mubr.msk.bf16.vlgmr.msra.gmra.mrb[88].mxu0 %vm2594_vm4, %v10315_v61  ;;  %v3159_v61 = vsub.s32 0, %v15783_v51  ;;  %v14410_v51 = vld [vmem:[%s18120_s17 + $0x80] sm:$0xff]  }
0x109f   :  { %12632 = vmatpush3.bf16.msra.mxu0 %v2599_v31  ;;  %12633 = vmatprep.mubr.msk.bf16.mxu0 %vm14704_vm0, %v14703_v54 }
0x10a0   :  { %3112 = vmatprep.subr.bf16.mxu0 %v14292_v4 }
0x10a6   :  { %12634 = vmatmul.mubr.msk.bf16.vlgmr.msra.gmra.mrb[92].mxu0 %vm2594_vm4, %v10334_v62  ;;  %v3155_v62 = vld [vmem:[%s18153_s8] sm:$0x3] }
0x10a7   :  { %3144 = vmatprep.mubr.bf16.mxu0 %v14705_v45  ;;  %3113 = vmatpush1.bf16.msra.mxu0 %v14290_v19  ;;  %v3160_v0 = vrot.slane %v3155_v62, %v3159_v61  ;;  %v3164_v2 = vrot.slane %v3155_v62, %v3163_v63 }
0x10a8   :  { %3114 = vmatprep.subr.bf16.mxu0 %v14298_v59 }
0x10ab   :  { %3115 = vmatpush1.bf16.msra.mxu0 %v14296_v23 }
0x10ac   :  { %3116 = vmatprep.subr.bf16.mxu0 %v14301_v6 }
0x10af   :  { %3117 = vmatpush1.bf16.msra.mxu0 %v14299_v7  ;;  %v3169_v7 = vld [vmem:[%s18154_s27] sm:$0x3] }
0x10b0   :  { %3118 = vmatprep.subr.bf16.mxu0 %v14304_v8 }
0x10b3   :  { %3119 = vmatpush1.bf16.msra.mxu0 %v14302_v9 }
0x10b4   :  { %12657 = vmatprep.subr.bf16.mxu0 %v14703_v54 }
0x1161   :  { %v2866_v10 = vpop.f32.mrb[92].mxu1 }
0x1162   :  { %v2868_v11 = vpop.f32.mrb[93].mxu1 }
0x1163   :  { %v2870_v12 = vpop.f32.mrb[94].mxu1 }
0x1164   :  { %v2871_v13 = vpop.f32.mrb[95].mxu1 }
0x1165   :  { %v14322_v13 = vld [vmem:[%s18114_s11 + $0x88] sm:$0xff]  }
0x1169   :  { %v2782_v15 = vpop.f32.mrb[84].mxu0 }
0x116a   :  { %v2784_v16 = vpop.f32.mrb[85].mxu0  ;;  %v15709_v17 = vadd.f32 %v2866_v10, %v2782_v15  ;;  %v14323_v15 = vld [vmem:[%s18114_s11 + $0x90] sm:$0xff]  }
0x116b   :  { %v2786_v18 = vpop.f32.mrb[86].mxu0  ;;  %v15711_v20 = vadd.f32 %v2868_v11, %v2784_v16  ;;  %v14321_v11 = vld [vmem:[%s18114_s11 + $0x80] sm:$0xff]   ;;  %v14324_v16 = vld [vmem:[%s18114_s11 + $0x98] sm:$0xff]  }
0x116c   :  { %v2787_v21 = vpop.f32.mrb[87].mxu0  ;;  %v14326_v18 = vld [vmem:[%s18114_s11 + $0xa8] sm:$0xff]  }
0x116d   :  { %v14328_v21 = vld [vmem:[%s18114_s11 + $0xb8] sm:$0xff]  }
0x1171   :  { %v2912_v55 = vpop.f32.mrb[88].mxu0 }
0x1172   :  { %v2918_v22 = vpack.c.bf16 %v2912_v55, %v2912_v55  ;;  %v12629_v24 = vpop.f32.mrb[89].mxu0 }
0x1173   :  { %v2915_v25 = vpop.f32.mrb[90].mxu0 }
0x1174   :  { %v12630_v26 = vpop.f32.mrb[91].mxu0  ;;  %10333 = vmatmul.mubr.msk.bf16.vlgmr.msra.gmra.mrb[96].mxu1 %vm750_vm3, %v2918_v22 }
0x1175   :  { %12653 = vmatprep.mubr.msk.bf16.mxu1 %vm14704_vm0, %v14703_v54  ;;  %12638 = vmatpush3.bf16.msra.mxu1 %v14306_v33  ;;  %v10385_v33 = vld [vmem:[%s18113_s10 + $0x4] sm:$0xf] }
0x1176   :  { %12639 = vmatprep.subr.bf16.mxu1 %v14703_v54 }
0x1179   :  { %v3053_v27 = vpop.f32.mrb[92].mxu0  ;;  %12640 = vmatpush3.bf16.msra.mxu1 %v14308_v35  ;;  %v3281_v35 = vld [vmem:[%s18113_s10] sm:$0xf] }
0x117a   :  { %v3059_v28 = vpack.c.bf16 %v3053_v27, %v3053_v27  ;;  %v12635_v29 = vpop.f32.mrb[93].mxu0  ;;  %12641 = vmatprep.subr.bf16.mxu1 %v14703_v54 }
0x117b   :  { %v3056_v30 = vpop.f32.mrb[94].mxu0 }
0x117c   :  { %v12636_v31 = vpop.f32.mrb[95].mxu0  ;;  %10352 = vmatmul.mubr.msk.bf16.vlgmr.msra.gmra.mrb[96].mxu0 %vm750_vm3, %v3059_v28 }
0x117d   :  { %12673 = vmatprep.mubr.msk.bf16.mxu0 %vm14704_vm0, %v14703_v54  ;;  %12658 = vmatpush3.bf16.msra.mxu0 %v14305_v32 }
0x117e   :  { %12659 = vmatprep.subr.bf16.mxu0 %v14703_v54  ;;  %12642 = vmatpush3.bf16.msra.mxu1 %v14310_v37 }
0x117f   :  { %12643 = vmatprep.subr.bf16.mxu1 %v14703_v54 }
0x1181   :  { %12660 = vmatpush3.bf16.msra.mxu0 %v14307_v34 }
0x1182   :  { %12661 = vmatprep.subr.bf16.mxu0 %v14703_v54  ;;  %12644 = vmatpush3.bf16.msra.mxu1 %v14312_v40 }
0x1183   :  { %12645 = vmatprep.subr.bf16.mxu1 %v14703_v54 }
0x1185   :  { %12662 = vmatpush3.bf16.msra.mxu0 %v14309_v36 }
0x1186   :  { %12663 = vmatprep.subr.bf16.mxu0 %v14703_v54  ;;  %12646 = vmatpush3.bf16.msra.mxu1 %v14314_v42 }
0x1187   :  { %12647 = vmatprep.subr.bf16.mxu1 %v14703_v54 }
0x1189   :  { %12664 = vmatpush3.bf16.msra.mxu0 %v14311_v39 }
0x118a   :  { %12665 = vmatprep.subr.bf16.mxu0 %v14703_v54  ;;  %12648 = vmatpush3.bf16.msra.mxu1 %v14316_v44  ;;  %v14329_v44 = vld [vmem:[%s18114_s11 + $0xc0] sm:$0xff]  }
0x118b   :  { %12649 = vmatprep.subr.bf16.mxu1 %v14703_v54 }
0x118d   :  { %12666 = vmatpush3.bf16.msra.mxu0 %v14313_v41 }
0x118e   :  { %12667 = vmatprep.subr.bf16.mxu0 %v14703_v54  ;;  %12650 = vmatpush3.bf16.msra.mxu1 %v14318_v47  ;;  %v14331_v47 = vld [vmem:[%s18114_s11 + $0xd0] sm:$0xff]  }
0x118f   :  { %12651 = vmatprep.subr.bf16.mxu1 %v14703_v54 }
0x1191   :  { %12668 = vmatpush3.bf16.msra.mxu0 %v14315_v43  ;;  %v10412_v43 = vld [vmem:[%s18113_s10 + $0x8] sm:$0xf] }
0x1192   :  { %12669 = vmatprep.subr.bf16.mxu0 %v14703_v54  ;;  %12652 = vmatpush3.bf16.msra.mxu1 %v14320_v49  ;;  %v14333_v49 = vld [vmem:[%s18114_s11 + $0xe0] sm:$0xff]  }
0x1193   :  { %12677 = vmatprep.subr.bf16.mxu1 %v14703_v54 }
0x1195   :  { %12670 = vmatpush3.bf16.msra.mxu0 %v14317_v46  ;;  %v14330_v46 = vld [vmem:[%s18114_s11 + $0xc8] sm:$0xff]  }
0x1196   :  { %12671 = vmatprep.subr.bf16.mxu0 %v14703_v54 }
0x1199   :  { %12672 = vmatpush3.bf16.msra.mxu0 %v14319_v48  ;;  %v14332_v48 = vld [vmem:[%s18114_s11 + $0xd8] sm:$0xff]  }
0x119a   :  { %12689 = vmatprep.subr.bf16.mxu0 %v14703_v54 }
0x1247   :  { %v3005_v52 = vpop.f32.mrb[96].mxu1 }
0x1248   :  { %v3012_v53 = vadd.f32 %v3005_v52, %v15709_v17  ;;  %v3007_v56 = vpop.f32.mrb[97].mxu1  ;;  %v14325_v17 = vld [vmem:[%s18114_s11 + $0xa0] sm:$0xff]   ;;  %v14335_v52 = vld [vmem:[%s18114_s11 + $0xf0] sm:$0xff]  }
0x1249   :  { %v3013_v57 = vadd.f32 %v3007_v56, %v15711_v20  ;;  %v3009_v58 = vpop.f32.mrb[98].mxu1  ;;  %v14327_v20 = vld [vmem:[%s18114_s11 + $0xb0] sm:$0xff]  }
0x124a   :  { %v3010_v60 = vpop.f32.mrb[99].mxu1 }
0x124f   :  { %v3146_v1 = vpop.f32.mrb[96].mxu0 }
0x1250   :  { %v3153_v3 = vadd.f32 %v3146_v1, %v3012_v53  ;;  %v3148_v4 = vpop.f32.mrb[97].mxu0  ;;  %v14336_v53 = vld [vmem:[%s18114_s11 + $0xf8] sm:$0xff]  }
0x1251   :  { %v3154_v5 = vadd.f32 %v3148_v4, %v3013_v57  ;;  %v3150_v19 = vpop.f32.mrb[98].mxu0 }
0x1252   :  { %v3167_v38 = vadd.f32 %v3160_v0, %v3153_v3  ;;  %v3151_v59 = vpop.f32.mrb[99].mxu0 }
0x1253   :  { %v3168_v14 = vadd.f32 %v3164_v2, %v3154_v5 }
0x1254   :  { %9720 = vst [vmem:[#allocation2] sm:$0x3] %v3167_v38 }
0x1255   :  { %v3170_v23 = vmul.f32 0.5, %v3168_v14  ;;  %9721 = vst [vmem:[#allocation4] sm:$0x3] %v3168_v14 }
0x1257   :  { %v3171_v6 = vmul.f32 1.442695, %v3170_v23 }
0x1259   :  { %14653 = vpow2.f32 %v3171_v6 }
0x1263   :  { %v14654_v8 = vpop.eup %14653 }
0x1264   :  { %v3173_v9 = vmul.f32 %v14654_v8, %v3169_v7 }
0x1266   :  { %v3174_v10 = vadd.f32 %v3173_v9, %v3167_v38 }
0x1268   :  { %v15802_v12 = vpack.c.bf16 %v3174_v10, %v3174_v10  ;;  %v10438_v10 = vld [vmem:[%s18113_s10 + $0xc] sm:$0xf] }
0x126a   :  { %12654 = vmatmul.mubr.bf16.vlgmr.msra.gmra.mrb[100].mxu1 %v15802_v12  ;;  %12674 = vmatmul.mubr.bf16.vlgmr.msra.gmra.mrb[100].mxu0 %v15802_v12 }
0x126b   :  { %12690 = vmatpush3.bf16.msra.mxu0 %v14321_v11  ;;  %12705 = vmatprep.mubr.msk.bf16.mxu0 %vm14704_vm0, %v14703_v54  ;;  %v14337_v11 = vld [vmem:[%s18116_s13 + $0xc] sm:$0xff]  }
0x126c   :  { %12691 = vmatprep.subr.bf16.mxu0 %v14703_v54  ;;  %12679 = vmatprep.mubr.msk.bf16.mxu1 %vm14704_vm0, %v14703_v54 }
0x126f   :  { %12692 = vmatpush3.bf16.msra.mxu0 %v14322_v13 }
0x1270   :  { %12693 = vmatprep.subr.bf16.mxu0 %v14703_v54 }
0x1273   :  { %12694 = vmatpush3.bf16.msra.mxu0 %v14323_v15  ;;  %v3794_v15 = vld [vmem:[%s18115_s12] sm:$0xff] }
0x1274   :  { %12695 = vmatprep.subr.bf16.mxu0 %v14703_v54 }
0x1277   :  { %12696 = vmatpush3.bf16.msra.mxu0 %v14324_v16 }
0x1278   :  { %12697 = vmatprep.subr.bf16.mxu0 %v14703_v54 }
0x127b   :  { %12698 = vmatpush3.bf16.msra.mxu0 %v14325_v17 }
0x127c   :  { %12699 = vmatprep.subr.bf16.mxu0 %v14703_v54 }
0x127f   :  { %12700 = vmatpush3.bf16.msra.mxu0 %v14326_v18 }
0x1280   :  { %12701 = vmatprep.subr.bf16.mxu0 %v14703_v54 }
0x1283   :  { %12702 = vmatpush3.bf16.msra.mxu0 %v14327_v20 }
0x1284   :  { %12703 = vmatprep.subr.bf16.mxu0 %v14703_v54 }
0x1287   :  { %12704 = vmatpush3.bf16.msra.mxu0 %v14328_v21 }
0x1288   :  { %12735 = vmatprep.subr.bf16.mxu0 %v14703_v54 }
0x128a   :  { %12706 = vmatmul.mubr.bf16.vlgmr.msra.gmra.mrb[104].mxu0 %v15802_v12 }
0x128b   :  { %12737 = vmatprep.mubr.msk.bf16.mxu0 %vm14704_vm0, %v14703_v54 }
0x133d   :  { %v3274_v55 = vpop.f32.mrb[100].mxu1  ;;  %v3381_v22 = vpop.f32.mrb[100].mxu0 }
0x133e   :  { %v12655_v24 = vpop.f32.mrb[101].mxu1  ;;  %v12675_v25 = vpop.f32.mrb[101].mxu0  ;;  %v3387_v26 = vpack.c.bf16 %v3381_v22, %v3381_v22  ;;  %v3280_v29 = vpack.c.bf16 %v3274_v55, %v3274_v55  ;;  %v14347_v22 = vld [vmem:[%s18117_s14 + $0x44] ss:$8 sps:$4 sm:$0xff]  }
0x133f   :  { %v3277_v27 = vpop.f32.mrb[102].mxu1  ;;  %v3384_v28 = vpop.f32.mrb[102].mxu0  ;;  %v14338_v24 = vld [vmem:[%s18116_s13 + $0x14] ss:$0 sps:$4 sm:$0x11]  }
0x1340   :  { %v12656_v30 = vpop.f32.mrb[103].mxu1  ;;  %v12676_v31 = vpop.f32.mrb[103].mxu0  ;;  %v3396_v32 = vsel %vm3394_vm5, %v3387_v26, 0  ;;  %v3442_v34 = vsel %vm3394_vm5, %v3280_v29, 0  ;;  %v14339_v27 = vld [vmem:[%s18116_s13 + $0x18] sm:$0xff]  }
0x1341   :  { %12678 = vmatpush3.bf16.msra.mxu1 %v3396_v32  ;;  %v14342_v26 = vld [vmem:[%s18116_s13 + $0x8] ss:$0 sps:$4 sm:$0x11]   ;;  %v14350_v29 = vld [vmem:[%s18117_s14 + $0x54] ss:$8 sps:$4 sm:$0xff]  }
0x1342   :  { %12683 = vmatprep.subr.bf16.mxu1 %v14703_v54  ;;  %v14345_v28 = vld [vmem:[%s18117_s14 + $0x40] ss:$8 sps:$4 sm:$0xff]   ;;  %v14348_v30 = vld [vmem:[%s18117_s14 + $0x50] ss:$8 sps:$4 sm:$0xff]   ;;  %v14353_v31 = vld [vmem:[%s18117_s14 + $0x64] ss:$8 sps:$4 sm:$0xff]  }
0x1343   :  { %v14340_v32 = vld [vmem:[%s18116_s13 + $0x20] ss:$0 sps:$4 sm:$0x11]  }
0x1344   :  { %12680 = vmatmul.mubr.msk.bf16.vlgmr.msra.gmra.mrb[104].mxu1 %vm3390_vm6, %v10385_v33  ;;  %v14343_v33 = vld [vmem:[%s18116_s13 + $0x24] sm:$0xff]  }
0x1345   :  { %12684 = vmatpush3.bf16.msra.mxu1 %v3442_v34  ;;  %12685 = vmatprep.mubr.msk.bf16.mxu1 %vm14704_vm0, %v14703_v54  ;;  %v14351_v34 = vld [vmem:[%s18117_s14 + $0x60] ss:$8 sps:$4 sm:$0xff]  }
0x1346   :  { %12709 = vmatprep.subr.bf16.mxu1 %v14703_v54 }
0x134c   :  { %12686 = vmatmul.mubr.msk.bf16.vlgmr.msra.gmra.mrb[108].mxu1 %vm3390_vm6, %v3281_v35  ;;  %v14344_v35 = vld [vmem:[%s18116_s13 + $0x2c] ss:$0 sps:$4 sm:$0x11]  }
0x134d   :  { %12711 = vmatprep.mubr.msk.bf16.mxu1 %vm14704_vm0, %v14703_v54 }
0x135d   :  { %v3583_v36 = vpop.f32.mrb[104].mxu0 }
0x135e   :  { %v12707_v37 = vpop.f32.mrb[105].mxu0  ;;  %v3589_v39 = vpack.c.bf16 %v3583_v36, %v3583_v36  ;;  %v14356_v36 = vld [vmem:[%s18117_s14 + $0x74] ss:$8 sps:$4 sm:$0xff]  }
0x135f   :  { %v3586_v40 = vpop.f32.mrb[106].mxu0  ;;  %v14354_v37 = vld [vmem:[%s18117_s14 + $0x70] ss:$8 sps:$4 sm:$0xff]  }
0x1360   :  { %v12708_v41 = vpop.f32.mrb[107].mxu0  ;;  %v3596_v42 = vsel %vm3394_vm5, %v3589_v39, 0  ;;  %v14359_v39 = vld [vmem:[%s18117_s14 + $0x4] ss:$8 sps:$4 sm:$0xff]  }
0x1361   :  { %12710 = vmatpush3.bf16.msra.mxu1 %v3596_v42 }
0x1362   :  { %12715 = vmatprep.subr.bf16.mxu1 %v14703_v54 }
0x1364   :  { %12712 = vmatmul.mubr.msk.bf16.vlgmr.msra.gmra.mrb[112].mxu1 %vm3390_vm6, %v10412_v43 }
0x1365   :  { %12716 = vmatpush3.bf16.msra.mxu1 %v14329_v44  ;;  %12731 = vmatprep.mubr.msk.bf16.mxu1 %vm14704_vm0, %v14703_v54 }
0x1366   :  { %12717 = vmatprep.subr.bf16.mxu1 %v14703_v54 }
0x1369   :  { %12718 = vmatpush3.bf16.msra.mxu1 %v14330_v46 }
0x136a   :  { %12719 = vmatprep.subr.bf16.mxu1 %v14703_v54 }
0x136d   :  { %12720 = vmatpush3.bf16.msra.mxu1 %v14331_v47 }
0x136e   :  { %12721 = vmatprep.subr.bf16.mxu1 %v14703_v54 }
0x1371   :  { %12722 = vmatpush3.bf16.msra.mxu1 %v14332_v48  ;;  %v14357_v48 = vld [vmem:[%s18117_s14] ss:$8 sps:$4 sm:$0xff]  }
0x1372   :  { %12723 = vmatprep.subr.bf16.mxu1 %v14703_v54 }
0x1375   :  { %12724 = vmatpush3.bf16.msra.mxu1 %v14333_v49 }
0x1376   :  { %12725 = vmatprep.subr.bf16.mxu1 %v14703_v54 }
0x1379   :  { %12726 = vmatpush3.bf16.msra.mxu1 %v14334_v50 }
0x137a   :  { %12727 = vmatprep.subr.bf16.mxu1 %v14703_v54 }
0x137d   :  { %12728 = vmatpush3.bf16.msra.mxu1 %v14335_v52  ;;  %v14362_v52 = vld [vmem:[%s18117_s14 + $0x14] ss:$8 sps:$4 sm:$0xff]  }
0x137e   :  { %12729 = vmatprep.subr.bf16.mxu1 %v14703_v54 }
0x1381   :  { %12730 = vmatpush3.bf16.msra.mxu1 %v14336_v53 }
0x1384   :  { %12732 = vmatmul.mubr.bf16.vlgmr.msra.gmra.mrb[116].mxu1 %v15802_v12  ;;  %v14341_v12 = vld [vmem:[%s18116_s13] sm:$0xff]  }
0x1385   :  { %12749 = vmatprep.mubr.msk.bf16.mxu1 %vm2594_vm4, %v14337_v11  ;;  %v14375_v11 = vld [vmem:[%s18117_s14 + $0xa0] ss:$8 sps:$4 sm:$0xff]  }
0x1417   :  { %v3432_v56 = vpop.f32.mrb[104].mxu1 }
0x1418   :  { %v12681_v57 = vpop.f32.mrb[105].mxu1 }
0x1419   :  { %v3435_v58 = vpop.f32.mrb[106].mxu1  ;;  %v14365_v57 = vld [vmem:[%s18117_s14 + $0x24] ss:$8 sps:$4 sm:$0xff]  }
0x141a   :  { %v12682_v60 = vpop.f32.mrb[107].mxu1 }
0x141f   :  { %v3478_v62 = vpop.f32.mrb[108].mxu1 }
0x1420   :  { %v3479_v0 = vadd.f32 %v3478_v62, %v3432_v56  ;;  %v12687_v1 = vpop.f32.mrb[109].mxu1  ;;  %v14360_v56 = vld [vmem:[%s18117_s14 + $0x10] ss:$8 sps:$4 sm:$0xff]  }
0x1421   :  { %v3481_v2 = vpop.f32.mrb[110].mxu1 }
0x1422   :  { %v12688_v3 = vpop.f32.mrb[111].mxu1 }
0x1423   :  { %v14368_v3 = vld [vmem:[%s18117_s14 + $0x34] ss:$8 sps:$4 sm:$0xff]  }
0x1437   :  { %v3632_v4 = vpop.f32.mrb[112].mxu1 }
0x1438   :  { %v3638_v5 = vadd.f32 %v3632_v4, %v3479_v0  ;;  %v12713_v19 = vpop.f32.mrb[113].mxu1  ;;  %v14363_v0 = vld [vmem:[%s18117_s14 + $0x20] ss:$8 sps:$4 sm:$0xff]  }
0x1439   :  { %v3635_v38 = vpop.f32.mrb[114].mxu1  ;;  %v14371_v19 = vld [vmem:[%s18117_s14 + $0x84] ss:$8 sps:$4 sm:$0xff]  }
0x143a   :  { %v12714_v59 = vpop.f32.mrb[115].mxu1 }
0x1457   :  { %v3738_v14 = vpop.f32.mrb[116].mxu1 }
0x1458   :  { %v12733_v23 = vpop.f32.mrb[117].mxu1  ;;  %v3744_v6 = vpack.c.bf16 %v3738_v14, %v3738_v14 }
0x1459   :  { %v3741_v7 = vpop.f32.mrb[118].mxu1  ;;  %v14369_v23 = vld [vmem:[%s18117_s14 + $0x80] ss:$8 sps:$4 sm:$0xff]  }
0x145a   :  { %v12734_v8 = vpop.f32.mrb[119].mxu1  ;;  %v3751_v9 = vsel %vm3394_vm5, %v3744_v6, 0  ;;  %v14374_v7 = vld [vmem:[%s18117_s14 + $0x94] ss:$8 sps:$4 sm:$0xff]  }
0x145b   :  { %12736 = vmatpush3.bf16.msra.mxu0 %v3751_v9  ;;  %v14372_v9 = vld [vmem:[%s18117_s14 + $0x90] ss:$8 sps:$4 sm:$0xff]  }
0x145e   :  { %12738 = vmatmul.mubr.msk.bf16.vlgmr.msra.gmra.mrb[108].mxu0 %vm3390_vm6, %v10438_v10  ;;  %v14377_v10 = vld [vmem:[%s18117_s14 + $0xa4] ss:$8 sps:$4 sm:$0xff]  }
0x145f   :  { %12743 = vmatprep.mubr.msk.bf16.mxu0 %vm2594_vm4, %v14341_v12 }
0x1531   :  { %v3787_v13 = vpop.f32.mrb[108].mxu0 }
0x1532   :  { %v3793_v16 = vadd.f32 %v3787_v13, %v3638_v5  ;;  %v12739_v17 = vpop.f32.mrb[109].mxu0  ;;  %v14366_v5 = vld [vmem:[%s18117_s14 + $0x30] ss:$8 sps:$4 sm:$0xff]   ;;  %v14380_v13 = vld [vmem:[%s18117_s14 + $0xb4] ss:$8 sps:$4 sm:$0xff]  }
0x1533   :  { %v3790_v18 = vpop.f32.mrb[110].mxu0  ;;  %v14381_v17 = vld [vmem:[%s18117_s14 + $0xc0] ss:$8 sps:$4 sm:$0xff]  }
0x1534   :  { %v3795_v20 = vadd.f32 %v3794_v15, %v3793_v16  ;;  %v12740_v21 = vpop.f32.mrb[111].mxu0  ;;  %v14378_v15 = vld [vmem:[%s18117_s14 + $0xb0] ss:$8 sps:$4 sm:$0xff]   ;;  %v14383_v16 = vld [vmem:[%s18117_s14 + $0xc4] ss:$8 sps:$4 sm:$0xff]  }
0x1535   :  { %v14386_v18 = vld [vmem:[%s18117_s14 + $0xd4] ss:$8 sps:$4 sm:$0xff]   ;;  %v14389_v21 = vld [vmem:[%s18117_s14 + $0xe4] ss:$8 sps:$4 sm:$0xff]  }
0x1536   :  { %v3796_v55 = vpack.c.bf16 %v3795_v20, %v3795_v20  ;;  %v14384_v20 = vld [vmem:[%s18117_s14 + $0xd0] ss:$8 sps:$4 sm:$0xff]  }
0x1538   :  { %14124 = vmatprep.subr.msk.bf16.mxu0 %vm618_vm1, %v3796_v55  ;;  %14125 = vmatprep.subr.msk.bf16.mxu1 %vm618_vm1, %v3796_v55  ;;  %v3815_v25 = vsel %vm618_vm1, %v3796_v55, 0 }
0x1539   :  { %12742 = vmatpush3.bf16.msra.mxu0 %v3815_v25  ;;  %12748 = vmatpush3.bf16.msra.mxu1 %v3815_v25 }
0x153a   :  { %14126 = vmatprep.subr.msk.bf16.mxu1 %vm618_vm1, %v3796_v55  ;;  %3998 = vmatprep.subr.bf16.mxu0 %v14347_v22 }
0x153c   :  { %12750 = vmatmul.mubr.msk.bf16.vlgmr.msra.gmra.mrb[120].mxu1 %vm2594_vm4, %v14338_v24  ;;  %12744 = vmatmul.mubr.msk.bf16.vlgmr.msra.gmra.mrb[112].mxu0 %vm2594_vm4, %v14342_v26  ;;  %v14392_v24 = vld [vmem:[%s18117_s14 + $0xf4] ss:$8 sps:$4 sm:$0xff]  }
0x153d   :  { %12754 = vmatpush3.bf16.msra.mxu1 %v3815_v25  ;;  %12755 = vmatprep.mubr.msk.bf16.mxu1 %vm2594_vm4, %v14339_v27  ;;  %v14393_v27 = vld [vmem:[%s18120_s17 + $0x40] sm:$0xff]  }
0x153e   :  { %14127 = vmatprep.subr.msk.bf16.mxu1 %vm618_vm1, %v3796_v55  ;;  %3999 = vmatpush1.bf16.msra.mxu0 %v14345_v28  ;;  %v14387_v55 = vld [vmem:[%s18117_s14 + $0xe0] ss:$8 sps:$4 sm:$0xff]  }
0x153f   :  { %4000 = vmatprep.subr.bf16.mxu0 %v14350_v29  ;;  %4030 = vmatprep.mubr.bf16.mxu0 %v14705_v45  ;;  %v14394_v28 = vld [vmem:[%s18120_s17] sm:$0xff]   ;;  %v14395_v29 = vld [vmem:[%s18120_s17 + $0x48] sm:$0xff]  }
0x1542   :  { %4001 = vmatpush1.bf16.msra.mxu0 %v14348_v30  ;;  %v14397_v30 = vld [vmem:[%s18120_s17 + $0x50] sm:$0xff]  }
0x1543   :  { %4002 = vmatprep.subr.bf16.mxu0 %v14353_v31  ;;  %v14398_v31 = vld [vmem:[%s18120_s17 + $0x10] sm:$0xff]  }
0x1544   :  { %12756 = vmatmul.mubr.msk.bf16.vlgmr.msra.gmra.mrb[124].mxu1 %vm2594_vm4, %v14340_v32  ;;  %v14399_v32 = vld [vmem:[%s18120_s17 + $0x58] sm:$0xff]  }
0x1545   :  { %12760 = vmatpush3.bf16.msra.mxu1 %v3815_v25  ;;  %12761 = vmatprep.mubr.msk.bf16.mxu1 %vm2594_vm4, %v14343_v33  ;;  %v14390_v25 = vld [vmem:[%s18117_s14 + $0xf0] ss:$8 sps:$4 sm:$0xff]   ;;  %s9985_s14 = sshll.u32 %s14707_s0, 4  ;;  %s9986_s14 = int_to_ptr.vmem [resolvable:$true] %s9985_s14 }
0x1546   :  { %4003 = vmatpush1.bf16.msra.mxu0 %v14351_v34  ;;  %11777 = vmatprep.subr.bf16.mxu1 %v14393_v27  ;;  %v14400_v33 = vld [vmem:[%s18120_s17 + $0x18] sm:$0xff]   ;;  %v14401_v34 = vld [vmem:[%s18120_s17 + $0x60] sm:$0xff]  }
0x1547   :  { %4004 = vmatprep.subr.bf16.mxu0 %v14356_v36  ;;  %v14403_v36 = vld [vmem:[%s18120_s17 + $0x68] sm:$0xff]  }
0x154a   :  { %4005 = vmatpush1.bf16.msra.mxu0 %v14354_v37  ;;  %v14404_v37 = vld [vmem:[%s18120_s17 + $0x28] sm:$0xff]  }
0x154b   :  { %4095 = vmatprep.subr.bf16.mxu0 %v14359_v39  ;;  %v14405_v39 = vld [vmem:[%s18120_s17 + $0x70] sm:$0xff]  }
0x154c   :  { %12762 = vmatmul.mubr.msk.bf16.vlgmr.msra.gmra.mrb[128].mxu1 %vm2594_vm4, %v14344_v35  ;;  %v14402_v35 = vld [vmem:[%s18120_s17 + $0x20] sm:$0xff]  }
0x154d   :  { %11778 = vmatpush3.bf16.msra.mxu1 %v14394_v28 }
0x154e   :  { %11779 = vmatprep.subr.bf16.mxu1 %v14395_v29  ;;  %v14414_v29 = vld [vmem:[%s18120_s17 + $0x90] sm:$0xff]  }
0x160f   :  { %v12751_v40 = vpop.f32.mrb[120].mxu1  ;;  %v12745_v41 = vpop.f32.mrb[112].mxu0 }
0x1610   :  { %v3927_v42 = vpop.f32.mrb[121].mxu1  ;;  %v3851_v43 = vpop.f32.mrb[113].mxu0  ;;  %v3942_v2 = vpack.c.bf16 %v12751_v40, %v12751_v40  ;;  %v3866_v12 = vpack.c.bf16 %v12745_v41, %v12745_v41  ;;  %v14406_v40 = vld [vmem:[%s18120_s17 + $0x30] sm:$0xff]   ;;  %v14407_v41 = vld [vmem:[%s18120_s17 + $0x78] sm:$0xff]  }
0x1611   :  { %v12752_v44 = vpop.f32.mrb[122].mxu1  ;;  %v12746_v46 = vpop.f32.mrb[114].mxu0 }
0x1612   :  { %v3930_v47 = vpop.f32.mrb[123].mxu1  ;;  %v3854_v49 = vpop.f32.mrb[115].mxu0 }
0x1613   :  { %v3941_v50 = vpack.c.bf16 %v3930_v47, %v3927_v42  ;;  %v3865_v53 = vpack.c.bf16 %v3854_v49, %v3851_v43  ;;  %v14408_v42 = vld [vmem:[%s18120_s17 + $0x38] sm:$0xff]   ;;  %v14409_v43 = vld [vmem:[%s18120_s17 + $0xc0] sm:$0xff]  }
0x1615   :  { %10467 = vmatmul.mubr.msk.bf16.vlgmr.msra.gmra.mrb[116].mxu0 %vm750_vm3, %v3941_v50 }
0x1616   :  { %4096 = vmatpush1.bf16.msra.mxu0 %v14357_v48  ;;  %4040 = vmatprep.mubr.bf16.mxu0 %v14705_v45 }
0x1617   :  { %4097 = vmatprep.subr.bf16.mxu0 %v14362_v52  ;;  %v12757_v58 = vpop.f32.mrb[124].mxu1 }
0x1618   :  { %v4198_v60 = vpop.f32.mrb[125].mxu1  ;;  %v4213_v22 = vpack.c.bf16 %v12757_v58, %v12757_v58 }
0x1619   :  { %v12758_v62 = vpop.f32.mrb[126].mxu1 }
0x161a   :  { %4098 = vmatpush1.bf16.msra.mxu0 %v14360_v56  ;;  %v4201_v1 = vpop.f32.mrb[127].mxu1 }
0x161b   :  { %4099 = vmatprep.subr.bf16.mxu0 %v14365_v57  ;;  %v4212_v4 = vpack.c.bf16 %v4201_v1, %v4198_v60 }
0x161d   :  { %10468 = vmatmul.mubr.msk.bf16.gmra.mrb[120].mxu0 %vm750_vm3, %v3942_v2  ;;  %v4506_v2 = vld [vmem:[%s18118_s15] sm:$0x3] }
0x161e   :  { %4100 = vmatpush1.bf16.msra.mxu0 %v14363_v0  ;;  %4127 = vmatprep.mubr.bf16.mxu0 %v14705_v45 }
0x161f   :  { %4101 = vmatprep.subr.bf16.mxu0 %v14368_v3  ;;  %v12763_v38 = vpop.f32.mrb[128].mxu1 }
0x1620   :  { %v4378_v59 = vpop.f32.mrb[129].mxu1  ;;  %v4393_v26 = vpack.c.bf16 %v12763_v38, %v12763_v38 }
0x1621   :  { %v12764_v14 = vpop.f32.mrb[130].mxu1 }
0x1622   :  { %4102 = vmatpush1.bf16.msra.mxu0 %v14366_v5  ;;  %v4381_v6 = vpop.f32.mrb[131].mxu1  ;;  %v4515_v5 = vrot.slane %v4506_v2, %v3163_v63 }
0x1623   :  { %4269 = vmatprep.subr.bf16.mxu0 %v14371_v19  ;;  %v4392_v8 = vpack.c.bf16 %v4381_v6, %v4378_v59 }
0x1625   :  { %10477 = vmatmul.mubr.msk.bf16.vlgmr.msra.gmra.mrb[116].mxu0 %vm750_vm3, %v3865_v53 }
0x1626   :  { %4270 = vmatpush1.bf16.msra.mxu0 %v14369_v23  ;;  %4137 = vmatprep.mubr.bf16.mxu0 %v14705_v45 }
0x1627   :  { %4271 = vmatprep.subr.bf16.mxu0 %v14374_v7 }
0x162a   :  { %4272 = vmatpush1.bf16.msra.mxu0 %v14372_v9 }
0x162b   :  { %4273 = vmatprep.subr.bf16.mxu0 %v14377_v10 }
0x162d   :  { %10478 = vmatmul.mubr.msk.bf16.gmra.mrb[124].mxu0 %vm750_vm3, %v3866_v12 }
0x162e   :  { %4274 = vmatpush1.bf16.msra.mxu0 %v14375_v11  ;;  %4301 = vmatprep.mubr.bf16.mxu0 %v14705_v45 }
0x162f   :  { %4275 = vmatprep.subr.bf16.mxu0 %v14380_v13 }
0x1632   :  { %4276 = vmatpush1.bf16.msra.mxu0 %v14378_v15 }
0x1633   :  { %4449 = vmatprep.subr.bf16.mxu0 %v14383_v16 }
0x1635   :  { %10502 = vmatmul.mubr.msk.bf16.vlgmr.msra.gmra.mrb[116].mxu0 %vm750_vm3, %v4212_v4  ;;  %v4511_v4 = vrot.slane %v4506_v2, %v3159_v61  ;;  %v14443_v2 = vld [vmem:[%s18120_s17 + $0x1c8] sm:$0xff]  }
0x1636   :  { %4450 = vmatpush1.bf16.msra.mxu0 %v14381_v17  ;;  %4311 = vmatprep.mubr.bf16.mxu0 %v14705_v45  ;;  %v14411_v17 = vld [vmem:[%s18120_s17 + $0xc8] sm:$0xff]  }
0x1637   :  { %4451 = vmatprep.subr.bf16.mxu0 %v14386_v18 }
0x163a   :  { %4452 = vmatpush1.bf16.msra.mxu0 %v14384_v20 }
0x163b   :  { %4453 = vmatprep.subr.bf16.mxu0 %v14389_v21 }
0x163d   :  { %10503 = vmatmul.mubr.msk.bf16.gmra.mrb[128].mxu0 %vm750_vm3, %v4213_v22 }
0x163e   :  { %4454 = vmatpush1.bf16.msra.mxu0 %v14387_v55  ;;  %4481 = vmatprep.mubr.bf16.mxu0 %v14705_v45 }
0x163f   :  { %4455 = vmatprep.subr.bf16.mxu0 %v14392_v24  ;;  %v14412_v24 = vld [vmem:[%s18120_s17 + $0x88] sm:$0xff]  }
0x1642   :  { %4456 = vmatpush1.bf16.msra.mxu0 %v14390_v25 }
0x1643   :  { %12765 = vmatprep.subr.bf16.mxu0 %v14703_v54 }
0x1645   :  { %10527 = vmatmul.mubr.msk.bf16.vlgmr.msra.gmra.mrb[116].mxu0 %vm750_vm3, %v4392_v8 }
0x1646   :  { %4491 = vmatprep.mubr.bf16.mxu0 %v14705_v45  ;;  %v14396_v45 = vld [vmem:[%s18120_s17 + $0x8] sm:$0xff]  }
0x1647   :  { %11780 = vmatpush3.bf16.msra.mxu1 %v14396_v45 }
0x1648   :  { %11781 = vmatprep.subr.bf16.mxu1 %v14397_v30  ;;  %v14415_v30 = vld [vmem:[%s18120_s17 + $0xd8] sm:$0xff]  }
0x164b   :  { %11782 = vmatpush3.bf16.msra.mxu1 %v14398_v31  ;;  %v14416_v31 = vld [vmem:[%s18120_s17 + $0x98] sm:$0xff]  }
0x164c   :  { %11783 = vmatprep.subr.bf16.mxu1 %v14399_v32  ;;  %v14417_v32 = vld [vmem:[%s18120_s17 + $0xe0] sm:$0xff]  }
0x164d   :  { %10528 = vmatmul.mubr.msk.bf16.gmra.mrb[132].mxu0 %vm750_vm3, %v4393_v26  ;;  %v14413_v26 = vld [vmem:[%s18120_s17 + $0xd0] sm:$0xff]  }
0x164e   :  { %12769 = vmatprep.mubr.msk.bf16.mxu0 %vm14704_vm0, %v14703_v54 }
0x164f   :  { %11784 = vmatpush3.bf16.msra.mxu1 %v14400_v33  ;;  %v14418_v33 = vld [vmem:[%s18120_s17 + $0xa0] sm:$0xff]  }
0x1650   :  { %11785 = vmatprep.subr.bf16.mxu1 %v14401_v34  ;;  %v14419_v34 = vld [vmem:[%s18120_s17 + $0xe8] sm:$0xff]  }
0x1653   :  { %11786 = vmatpush3.bf16.msra.mxu1 %v14402_v35  ;;  %v14420_v35 = vld [vmem:[%s18120_s17 + $0xa8] sm:$0xff]  }
0x1654   :  { %11787 = vmatprep.subr.bf16.mxu1 %v14403_v36  ;;  %v14421_v36 = vld [vmem:[%s18120_s17 + $0xf0] sm:$0xff]  }
0x1657   :  { %11788 = vmatpush3.bf16.msra.mxu1 %v14404_v37  ;;  %v14422_v37 = vld [vmem:[%s18120_s17 + $0xb0] sm:$0xff]  }
0x1658   :  { %11789 = vmatprep.subr.bf16.mxu1 %v14405_v39  ;;  %v14423_v39 = vld [vmem:[%s18120_s17 + $0xf8] sm:$0xff]  }
0x165b   :  { %11790 = vmatpush3.bf16.msra.mxu1 %v14406_v40  ;;  %v14424_v40 = vld [vmem:[%s18120_s17 + $0xb8] sm:$0xff]  }
0x165c   :  { %11791 = vmatprep.subr.bf16.mxu1 %v14407_v41  ;;  %v14425_v41 = vld [vmem:[%s18120_s17 + $0x140] sm:$0xff]  }
0x165f   :  { %11792 = vmatpush3.bf16.msra.mxu1 %v14408_v42  ;;  %v14426_v42 = vld [vmem:[%s18120_s17 + $0x100] sm:$0xff]  }
0x1660   :  { %11805 = vmatprep.subr.bf16.mxu1 %v14409_v43  ;;  %v14427_v43 = vld [vmem:[%s18120_s17 + $0x148] sm:$0xff]  }
0x16f0   :  { %v4042_v44 = vpop.f32.mrb[120].mxu0 }
0x16f1   :  { %v4044_v46 = vpop.f32.mrb[121].mxu0 }
0x16f2   :  { %v4046_v47 = vpop.f32.mrb[122].mxu0 }
0x16f3   :  { %v4047_v48 = vpop.f32.mrb[123].mxu0  ;;  %v14430_v47 = vld [vmem:[%s18120_s17 + $0x110] sm:$0xff]  }
0x16f4   :  { %v14431_v48 = vld [vmem:[%s18120_s17 + $0x158] sm:$0xff]  }
0x1700   :  { %v4139_v49 = vpop.f32.mrb[124].mxu0 }
0x1701   :  { %v4140_v50 = vadd.f32 %v4139_v49, %v4042_v44  ;;  %v4141_v52 = vpop.f32.mrb[125].mxu0  ;;  %v14428_v44 = vld [vmem:[%s18120_s17 + $0x108] sm:$0xff]   ;;  %v14432_v49 = vld [vmem:[%s18120_s17 + $0x118] sm:$0xff]  }
0x1702   :  { %v4142_v53 = vadd.f32 %v4141_v52, %v4044_v46  ;;  %v4143_v56 = vpop.f32.mrb[126].mxu0  ;;  %v14429_v46 = vld [vmem:[%s18120_s17 + $0x150] sm:$0xff]   ;;  %v14434_v52 = vld [vmem:[%s18120_s17 + $0x120] sm:$0xff]  }
0x1703   :  { %v4144_v57 = vpop.f32.mrb[127].mxu0  ;;  %v14436_v56 = vld [vmem:[%s18120_s17 + $0x128] sm:$0xff]  }
0x1704   :  { %v14437_v57 = vld [vmem:[%s18120_s17 + $0x170] sm:$0xff]  }
0x1710   :  { %v4313_v58 = vpop.f32.mrb[128].mxu0 }
0x1711   :  { %v4324_v60 = vadd.f32 %v4313_v58, %v4140_v50  ;;  %v4315_v62 = vpop.f32.mrb[129].mxu0  ;;  %v14433_v50 = vld [vmem:[%s18120_s17 + $0x160] sm:$0xff]   ;;  %v14438_v58 = vld [vmem:[%s18120_s17 + $0x130] sm:$0xff]  }
0x1712   :  { %v4325_v0 = vadd.f32 %v4315_v62, %v4142_v53  ;;  %v4317_v1 = vpop.f32.mrb[130].mxu0  ;;  %v14435_v53 = vld [vmem:[%s18120_s17 + $0x168] sm:$0xff]   ;;  %v14440_v62 = vld [vmem:[%s18120_s17 + $0x138] sm:$0xff]  }
0x1713   :  { %v4318_v3 = vpop.f32.mrb[131].mxu0  ;;  %v14442_v1 = vld [vmem:[%s18120_s17 + $0x180] sm:$0xff]  }
0x1714   :  { %v14444_v3 = vld [vmem:[%s18120_s17 + $0x188] sm:$0xff]  }
0x1718   :  { %v4483_v19 = vpop.f32.mrb[116].mxu0 }
0x1719   :  { %v4518_v38 = vadd.f32 %v4511_v4, %v4483_v19  ;;  %v4485_v59 = vpop.f32.mrb[117].mxu0  ;;  %v14447_v19 = vld [vmem:[%s18120_s17 + $0x1d8] sm:$0xff]  }
0x171a   :  { %v4519_v14 = vadd.f32 %v4515_v5, %v4485_v59  ;;  %v4487_v23 = vpop.f32.mrb[118].mxu0  ;;  %v14449_v59 = vld [vmem:[%s18120_s17 + $0x1e0] sm:$0xff]  }
0x171b   :  { %v4520_v6 = vadd.f32 %v4511_v4, %v4487_v23  ;;  %v4489_v7 = vpop.f32.mrb[119].mxu0  ;;  %v4524_v9 = vmax.f32 %v4518_v38, 0.0  ;;  %v14448_v38 = vld [vmem:[%s18120_s17 + $0x198] sm:$0xff]   ;;  %v14451_v23 = vld [vmem:[%s18120_s17 + $0x1e8] sm:$0xff]  }
0x171c   :  { %v4521_v8 = vadd.f32 %v4515_v5, %v4489_v7  ;;  %v4525_v11 = vmax.f32 %v4519_v14, 0.0  ;;  %v14450_v14 = vld [vmem:[%s18120_s17 + $0x1a0] sm:$0xff]   ;;  %v14453_v7 = vld [vmem:[%s18120_s17 + $0x1f0] sm:$0xff]  }
0x171d   :  { %v4526_v10 = vmax.f32 %v4520_v6, 0.0  ;;  %v14452_v6 = vld [vmem:[%s18120_s17 + $0x1a8] sm:$0xff]  }
0x171e   :  { %v4527_v12 = vmax.f32 %v4521_v8, 0.0  ;;  %v14454_v8 = vld [vmem:[%s18120_s17 + $0x1b0] sm:$0xff]  }
0x171f   :  { %v16116_v13 = vpack.c.bf16 %v4526_v10, %v4524_v9  ;;  %v14455_v9 = vld [vmem:[%s18120_s17 + $0x1f8] sm:$0xff]  }
0x1720   :  { %v16118_v15 = vpack.c.bf16 %v4527_v12, %v4525_v11  ;;  %v4493_v61 = vpop.f32.mrb[132].mxu0  ;;  %v14456_v10 = vld [vmem:[%s18120_s17 + $0x1b8] sm:$0xff]  }
0x1721   :  { %v4504_v63 = vadd.f32 %v4493_v61, %v4324_v60  ;;  %v4495_v16 = vpop.f32.mrb[133].mxu0  ;;  %v14439_v60 = vld [vmem:[%s18120_s17 + $0x178] sm:$0xff]  }
0x1722   :  { %v4505_v18 = vadd.f32 %v4495_v16, %v4325_v0  ;;  %v4497_v20 = vpop.f32.mrb[134].mxu0  ;;  %4694 = vmatprep.mubr.bf16.mxu1 %v16118_v15  ;;  %v14441_v0 = vld [vmem:[%s18120_s17 + $0x1c0] sm:$0xff]  }
0x1723   :  { %v4522_v21 = vadd.f32 %v4511_v4, %v4504_v63  ;;  %v4498_v55 = vpop.f32.mrb[135].mxu0  ;;  %4695 = vmatmul.mubr.bf16.vlgmr.msra.gmra.mrb[132].mxu1 %v16116_v13  ;;  %v14445_v4 = vld [vmem:[%s18120_s17 + $0x1d0] sm:$0xff]  }
0x1724   :  { %v4523_v22 = vadd.f32 %v4515_v5, %v4505_v18  ;;  %11806 = vmatpush3.bf16.msra.mxu1 %v14410_v51  ;;  %v14446_v5 = vld [vmem:[%s18120_s17 + $0x190] sm:$0xff]  }
0x1725   :  { %v4528_v25 = vmax.f32 %v4522_v21, 0.0  ;;  %11807 = vmatprep.subr.bf16.mxu1 %v14411_v17 }
0x1726   :  { %v4529_v27 = vmax.f32 %v4523_v22, 0.0 }
0x1727   :  { %v16139_v45 = vpack.c.bf16 %v4528_v25, %v4528_v25 }
0x1728   :  { %v16134_v28 = vpack.c.bf16 %v4529_v27, %v4529_v27  ;;  %11808 = vmatpush3.bf16.msra.mxu1 %v14412_v24 }
0x1729   :  { %11809 = vmatprep.subr.bf16.mxu1 %v14413_v26 }
0x172a   :  { %4702 = vmatprep.mubr.bf16.mxu1 %v16134_v28 }
0x172b   :  { %4703 = vmatmul.mubr.bf16.gmra.mrb[136].mxu1 %v16139_v45 }
0x172c   :  { %11810 = vmatpush3.bf16.msra.mxu1 %v14414_v29  ;;  %4882 = vmatprep.mubr.bf16.mxu1 %v16118_v15 }
0x172d   :  { %11811 = vmatprep.subr.bf16.mxu1 %v14415_v30 }
0x1730   :  { %11812 = vmatpush3.bf16.msra.mxu1 %v14416_v31 }
0x1731   :  { %11813 = vmatprep.subr.bf16.mxu1 %v14417_v32 }
0x1734   :  { %11814 = vmatpush3.bf16.msra.mxu1 %v14418_v33 }
0x1735   :  { %11815 = vmatprep.subr.bf16.mxu1 %v14419_v34 }
0x1738   :  { %11816 = vmatpush3.bf16.msra.mxu1 %v14420_v35  ;;  %v14457_v35 = vld [vmem:[%s18119_s16 + $0x24] sm:$0xff]  }
0x1739   :  { %11817 = vmatprep.subr.bf16.mxu1 %v14421_v36 }
0x173c   :  { %11818 = vmatpush3.bf16.msra.mxu1 %v14422_v37 }
0x173d   :  { %11819 = vmatprep.subr.bf16.mxu1 %v14423_v39  ;;  %v14458_v39 = vld [vmem:[%s18119_s16 + $0x2c] sm:$0xff]  }
0x1740   :  { %11820 = vmatpush3.bf16.msra.mxu1 %v14424_v40  ;;  %v14459_v40 = vld [vmem:[%s18119_s16 + $0x34] sm:$0xff]  }
0x1741   :  { %11847 = vmatprep.subr.bf16.mxu1 %v14425_v41 }
0x1743   :  { %4883 = vmatmul.mubr.bf16.vlgmr.msra.gmra.mrb[140].mxu1 %v16116_v13 }
0x1744   :  { %4890 = vmatprep.mubr.bf16.mxu1 %v16134_v28  ;;  %11848 = vmatpush3.bf16.msra.mxu1 %v14426_v42 }
0x1745   :  { %11849 = vmatprep.subr.bf16.mxu1 %v14427_v43 }
0x1748   :  { %11850 = vmatpush3.bf16.msra.mxu1 %v14428_v44 }
0x1749   :  { %11851 = vmatprep.subr.bf16.mxu1 %v14429_v46 }
0x174b   :  { %4891 = vmatmul.mubr.bf16.gmra.mrb[144].mxu1 %v16139_v45 }
0x174c   :  { %11852 = vmatpush3.bf16.msra.mxu1 %v14430_v47  ;;  %5298 = vmatprep.mubr.bf16.mxu1 %v16118_v15 }
0x174d   :  { %11853 = vmatprep.subr.bf16.mxu1 %v14431_v48  ;;  %v14460_v48 = vld [vmem:[%s18119_s16 + $0x3c] sm:$0xff]  }
0x1750   :  { %11854 = vmatpush3.bf16.msra.mxu1 %v14432_v49 }
0x1751   :  { %11855 = vmatprep.subr.bf16.mxu1 %v14433_v50 }
0x1754   :  { %11856 = vmatpush3.bf16.msra.mxu1 %v14434_v52 }
0x1755   :  { %11857 = vmatprep.subr.bf16.mxu1 %v14435_v53 }
0x1758   :  { %11858 = vmatpush3.bf16.msra.mxu1 %v14436_v56 }
0x1759   :  { %11859 = vmatprep.subr.bf16.mxu1 %v14437_v57 }
0x175c   :  { %11860 = vmatpush3.bf16.msra.mxu1 %v14438_v58  ;;  %v14461_v58 = vld [vmem:[%s18119_s16 + $0x44] ss:$0 sps:$4 sm:$0xff]  }
0x175d   :  { %11861 = vmatprep.subr.bf16.mxu1 %v14439_v60  ;;  %v14462_v60 = vld [vmem:[%s18119_s16] sm:$0xff]  }
0x1760   :  { %11862 = vmatpush3.bf16.msra.mxu1 %v14440_v62 }
0x1761   :  { %11882 = vmatprep.subr.bf16.mxu1 %v14441_v0 }
0x1763   :  { %5299 = vmatmul.mubr.bf16.vlgmr.msra.gmra.mrb[148].mxu1 %v16116_v13 }
0x1764   :  { %5306 = vmatprep.mubr.bf16.mxu1 %v16134_v28  ;;  %11883 = vmatpush3.bf16.msra.mxu1 %v14442_v1  ;;  %v14463_v1 = vld [vmem:[%s18119_s16 + $0x8] sm:$0xff]  }
0x1765   :  { %11884 = vmatprep.subr.bf16.mxu1 %v14443_v2 }
0x1768   :  { %11885 = vmatpush3.bf16.msra.mxu1 %v14444_v3 }
0x1769   :  { %11886 = vmatprep.subr.bf16.mxu1 %v14445_v4 }
0x176b   :  { %5307 = vmatmul.mubr.bf16.gmra.mrb[152].mxu1 %v16139_v45 }
0x176c   :  { %11887 = vmatpush3.bf16.msra.mxu1 %v14446_v5  ;;  %5609 = vmatprep.mubr.bf16.mxu1 %v16118_v15 }
0x176d   :  { %11888 = vmatprep.subr.bf16.mxu1 %v14447_v19 }
0x1770   :  { %11889 = vmatpush3.bf16.msra.mxu1 %v14448_v38 }
0x1771   :  { %11890 = vmatprep.subr.bf16.mxu1 %v14449_v59  ;;  %v14464_v59 = vld [vmem:[%s18119_s16 + $0x10] sm:$0xff]  }
0x1774   :  { %11891 = vmatpush3.bf16.msra.mxu1 %v14450_v14 }
0x1775   :  { %11892 = vmatprep.subr.bf16.mxu1 %v14451_v23 }
0x1778   :  { %11893 = vmatpush3.bf16.msra.mxu1 %v14452_v6 }
0x1779   :  { %11894 = vmatprep.subr.bf16.mxu1 %v14453_v7 }
0x177c   :  { %11895 = vmatpush3.bf16.msra.mxu1 %v14454_v8 }
0x177d   :  { %11896 = vmatprep.subr.bf16.mxu1 %v14455_v9 }
0x1780   :  { %11897 = vmatpush3.bf16.msra.mxu1 %v14456_v10  ;;  %v14465_v10 = vld [vmem:[%s18119_s16 + $0x18] sm:$0xff]  }
0x1781   :  { %12861 = vmatprep.subr.bf16.mxu1 %v14703_v54 }
0x1783   :  { %5610 = vmatmul.mubr.bf16.vlgmr.msra.gmra.mrb[156].mxu1 %v16116_v13 }
0x1784   :  { %5617 = vmatprep.mubr.bf16.mxu1 %v16134_v28 }
0x178b   :  { %5618 = vmatmul.mubr.bf16.gmra.mrb[160].mxu1 %v16139_v45 }
0x178c   :  { %12871 = vmatprep.mubr.msk.bf16.mxu1 %vm14704_vm0, %v14703_v54 }
0x17f6   :  { %v11793_v11 = vpop.f32.mrb[132].mxu1 }
0x17f7   :  { %v11794_v12 = vpop.f32.mrb[133].mxu1 }
0x17f8   :  { %v11795_v15 = vadd.f32 %v11794_v12, %v11793_v11  ;;  %v11796_v61 = vpop.f32.mrb[134].mxu1  ;;  %v14466_v11 = vld [vmem:[%s18119_s16 + $0x20] ss:$0 sps:$4 sm:$0xff]   ;;  %v14467_v12 = vld [vmem:[%s18119_s16 + $0x48] sm:$0xff]  }
0x17f9   :  { %v11797_v51 = vpop.f32.mrb[135].mxu1 }
0x17fa   :  { %v11798_v63 = vadd.f32 %v11797_v51, %v11796_v61  ;;  %v14468_v51 = vld [vmem:[%s18119_s16 + $0x50] sm:$0xff]  }
0x17fc   :  { %v4710_v16 = vpack.c.bf16 %v11798_v63, %v11795_v15  ;;  %v14469_v63 = vld [vmem:[%s18119_s16 + $0x58] sm:$0xff]  }
0x17fe   :  { %v11799_v17 = vpop.f32.mrb[136].mxu1 }
0x17ff   :  { %v11800_v18 = vpop.f32.mrb[137].mxu1 }
0x1800   :  { %v11801_v20 = vadd.f32 %v11800_v18, %v11799_v17  ;;  %v11802_v21 = vpop.f32.mrb[138].mxu1  ;;  %v14471_v17 = vld [vmem:[%s18119_s16 + $0x68] ss:$0 sps:$4 sm:$0xff]   ;;  %v14472_v18 = vld [vmem:[%s18119_s16 + $0x6c] sm:$0xff]  }
0x1801   :  { %v11803_v55 = vpop.f32.mrb[139].mxu1  ;;  %v14474_v21 = vld [vmem:[%s18119_s16 + $0x7c] sm:$0xff]  }
0x1802   :  { %v4711_v36 = vpack.c.bf16 %v11801_v20, %v11801_v20  ;;  %v14473_v20 = vld [vmem:[%s18119_s16 + $0x74] sm:$0xff]   ;;  %v14475_v55 = vld [vmem:[%s18119_s16 + $0x84] sm:$0xff]  }
0x1804   :  { %v5063_v37 = vsel %vm3394_vm5, %v4711_v36, 0 }
0x1816   :  { %v11821_v13 = vpop.f32.mrb[140].mxu1 }
0x1817   :  { %v11822_v22 = vpop.f32.mrb[141].mxu1 }
0x1818   :  { %v11823_v24 = vadd.f32 %v11822_v22, %v11821_v13  ;;  %v11824_v25 = vpop.f32.mrb[142].mxu1  ;;  %v14476_v13 = vld [vmem:[%s18119_s16 + $0x8c] ss:$0 sps:$4 sm:$0xff]  }
0x1819   :  { %v11825_v26 = vpop.f32.mrb[143].mxu1 }
0x181a   :  { %v11826_v27 = vadd.f32 %v11825_v26, %v11824_v25 }
0x181c   :  { %v4898_v28 = vpack.c.bf16 %v11826_v27, %v11823_v24 }
0x181e   :  { %v11827_v29 = vpop.f32.mrb[144].mxu1  ;;  %12766 = vmatpush3.bf16.msra.mxu0 %v4898_v28 }
0x181f   :  { %v11828_v45 = vpop.f32.mrb[145].mxu1  ;;  %12767 = vmatprep.subr.bf16.mxu0 %v14703_v54 }
0x1820   :  { %v11829_v30 = vadd.f32 %v11828_v45, %v11827_v29  ;;  %v11830_v31 = vpop.f32.mrb[146].mxu1 }
0x1821   :  { %v11831_v32 = vpop.f32.mrb[147].mxu1 }
0x1822   :  { %v4899_v33 = vpack.c.bf16 %v11829_v30, %v11829_v30 }
0x1824   :  { %v4950_v34 = vsel %vm3394_vm5, %v4899_v33, 0 }
0x1825   :  { %12768 = vmatpush3.bf16.msra.mxu0 %v4950_v34 }
0x1826   :  { %12789 = vmatprep.subr.bf16.mxu0 %v14703_v54 }
0x1828   :  { %12770 = vmatmul.mubr.msk.bf16.vlgmr.msra.gmra.mrb[136].mxu0 %vm4933_vm7, %v14457_v35 }
0x1829   :  { %12790 = vmatpush3.bf16.msra.mxu0 %v4710_v16  ;;  %12773 = vmatprep.mubr.msk.bf16.mxu0 %vm14704_vm0, %v14703_v54  ;;  %v14470_v16 = vld [vmem:[%s18119_s16 + $0x60] sm:$0xff]   ;;  %s9975_s16 = sshll.u32 %s14706_s4, 4  ;;  %s9976_s16 = int_to_ptr.vmem [resolvable:$true] %s9975_s16 }
0x182a   :  { %12791 = vmatprep.subr.bf16.mxu0 %v14703_v54  ;;  %s14655_s12 = scalar_lea.vmem %s9976_s16, 32  ;;  %p14660_p1 = scmp.lt.s32.totalorder %s9976_s16, %s9976_s16 }
0x182b   :  { %p14656_p0 = scmp.ne.s32.totalorder %s9976_s16, %s14655_s12  ;;  %p14661_p2 = scmp.lt.s32.totalorder %s14655_s12, %s14655_s12 }
0x182d   :  { %12792 = vmatpush3.bf16.msra.mxu0 %v5063_v37  ;;  %p14662_p3 = por %p14661_p2, %p14660_p1 }
0x182e   :  { %12813 = vmatprep.subr.bf16.mxu0 %v14703_v54 }
0x182f   :  { %p14663_p4 = pnand %p14662_p3, %p14656_p0 }
0x1830   :  { %12774 = vmatmul.mubr.msk.bf16.gmra.mrb[140].mxu0 %vm4933_vm7, %v14458_v39 }
0x1831   :  { %12777 = vmatprep.mubr.msk.bf16.mxu0 %vm14704_vm0, %v14703_v54 }
0x1836   :  { %v11863_v41 = vpop.f32.mrb[148].mxu1 }
0x1837   :  { %v11864_v42 = vpop.f32.mrb[149].mxu1 }
0x1838   :  { %v11865_v43 = vadd.f32 %v11864_v42, %v11863_v41  ;;  %12778 = vmatmul.mubr.msk.bf16.gmra.mrb[144].mxu0 %vm4933_vm7, %v14459_v40  ;;  %v11866_v44 = vpop.f32.mrb[150].mxu1 }
0x1839   :  { %v11867_v46 = vpop.f32.mrb[151].mxu1  ;;  %12781 = vmatprep.mubr.msk.bf16.mxu0 %vm14704_vm0, %v14703_v54 }
0x183a   :  { %v11868_v47 = vadd.f32 %v11867_v46, %v11866_v44 }
0x183c   :  { %v5314_v49 = vpack.c.bf16 %v11868_v47, %v11865_v43 }
0x183e   :  { %v11869_v50 = vpop.f32.mrb[152].mxu1 }
0x183f   :  { %v11870_v52 = vpop.f32.mrb[153].mxu1 }
0x1840   :  { %v11871_v53 = vadd.f32 %v11870_v52, %v11869_v50  ;;  %12782 = vmatmul.mubr.msk.bf16.gmra.mrb[148].mxu0 %vm4933_vm7, %v14460_v48  ;;  %v11872_v56 = vpop.f32.mrb[154].mxu1  ;;  %v14477_v50 = vld [vmem:[%s18121_s18] sm:$0xff]   ;;  %v14478_v52 = vld [vmem:[%s18121_s18 + $0x8] sm:$0xff]  }
0x1841   :  { %v11873_v57 = vpop.f32.mrb[155].mxu1  ;;  %12785 = vmatprep.mubr.msk.bf16.mxu0 %vm14704_vm0, %v14703_v54  ;;  %v14480_v56 = vld [vmem:[%s18121_s18 + $0x18] sm:$0xff]  }
0x1842   :  { %v5315_v62 = vpack.c.bf16 %v11871_v53, %v11871_v53  ;;  %v14479_v53 = vld [vmem:[%s18121_s18 + $0x10] sm:$0xff]   ;;  %v14481_v57 = vld [vmem:[%s18121_s18 + $0x20] sm:$0xff]  }
0x1844   :  { %v5365_v0 = vsel %vm3394_vm5, %v5315_v62, 0  ;;  %v14484_v62 = vld [vmem:[%s18121_s18 + $0x34] sm:$0xff]  }
0x1848   :  { %12786 = vmatmul.mubr.msk.bf16.gmra.mrb[152].mxu0 %vm4933_vm7, %v14461_v58  ;;  %v14482_v58 = vld [vmem:[%s18121_s18 + $0x28] sm:$0xff]  }
0x1849   :  { %12793 = vmatprep.mubr.msk.bf16.mxu0 %vm14704_vm0, %v14703_v54 }
0x1850   :  { %12794 = vmatmul.mubr.msk.bf16.vlgmr.msra.gmra.mrb[136].mxu0 %vm4933_vm7, %v14462_v60  ;;  %v14483_v60 = vld [vmem:[%s18121_s18 + $0x30] ss:$0 sps:$4 sm:$0x11]  }
0x1851   :  { %12814 = vmatpush3.bf16.msra.mxu0 %v5314_v49  ;;  %12797 = vmatprep.mubr.msk.bf16.mxu0 %vm14704_vm0, %v14703_v54 }
0x1852   :  { %12815 = vmatprep.subr.bf16.mxu0 %v14703_v54 }
0x1855   :  { %12816 = vmatpush3.bf16.msra.mxu0 %v5365_v0  ;;  %v14491_v0 = vld [vmem:[%s18122_s19] sm:$0xff]  }
0x1856   :  { %v11898_v2 = vpop.f32.mrb[156].mxu1  ;;  %12837 = vmatprep.subr.bf16.mxu0 %v14703_v54 }
0x1857   :  { %v11899_v3 = vpop.f32.mrb[157].mxu1 }
0x1858   :  { %v11900_v4 = vadd.f32 %v11899_v3, %v11898_v2  ;;  %12798 = vmatmul.mubr.msk.bf16.gmra.mrb[140].mxu0 %vm4933_vm7, %v14463_v1  ;;  %v11901_v5 = vpop.f32.mrb[158].mxu1  ;;  %v14492_v1 = vld [vmem:[%s18122_s19 + $0x8] sm:$0xff]   ;;  %v14485_v2 = vld [vmem:[%s18121_s18 + $0x3c] sm:$0xff]   ;;  %v14493_v3 = vld [vmem:[%s18122_s19 + $0x10] sm:$0xff]  }
0x1859   :  { %v11902_v19 = vpop.f32.mrb[159].mxu1  ;;  %12801 = vmatprep.mubr.msk.bf16.mxu0 %vm14704_vm0, %v14703_v54 }
0x185a   :  { %v11903_v38 = vadd.f32 %v11902_v19, %v11901_v5  ;;  %v14487_v5 = vld [vmem:[%s18121_s18 + $0x4c] sm:$0xff]   ;;  %v14488_v19 = vld [vmem:[%s18121_s18 + $0x54] sm:$0xff]  }
0x185c   :  { %v5625_v14 = vpack.c.bf16 %v11903_v38, %v11900_v4  ;;  %v14486_v4 = vld [vmem:[%s18121_s18 + $0x44] sm:$0xff]   ;;  %v14494_v38 = vld [vmem:[%s18122_s19 + $0x18] sm:$0xff]  }
0x185e   :  { %v11904_v23 = vpop.f32.mrb[160].mxu1 }
0x185f   :  { %v11905_v6 = vpop.f32.mrb[161].mxu1 }
0x1860   :  { %v11906_v7 = vadd.f32 %v11905_v6, %v11904_v23  ;;  %12802 = vmatmul.mubr.msk.bf16.gmra.mrb[144].mxu0 %vm4933_vm7, %v14464_v59  ;;  %v11907_v8 = vpop.f32.mrb[162].mxu1  ;;  %v14489_v59 = vld [vmem:[%s18121_s18 + $0x5c] sm:$0xff]   ;;  %v14496_v6 = vld [vmem:[%s18122_s19 + $0x28] sm:$0xff]  }
0x1861   :  { %v11908_v9 = vpop.f32.mrb[163].mxu1  ;;  %12805 = vmatprep.mubr.msk.bf16.mxu0 %vm14704_vm0, %v14703_v54  ;;  %v14495_v23 = vld [vmem:[%s18122_s19 + $0x20] sm:$0xff]   ;;  %v14498_v8 = vld [vmem:[%s18122_s19 + $0x38] sm:$0xff]  }
0x1862   :  { %v5626_v15 = vpack.c.bf16 %v11906_v7, %v11906_v7  ;;  %v14497_v7 = vld [vmem:[%s18122_s19 + $0x30] sm:$0xff]  }
0x1864   :  { %v5676_v61 = vsel %vm3394_vm5, %v5626_v15, 0 }
0x1868   :  { %12806 = vmatmul.mubr.msk.bf16.gmra.mrb[148].mxu0 %vm4933_vm7, %v14465_v10 }
0x1869   :  { %12809 = vmatprep.mubr.msk.bf16.mxu0 %vm14704_vm0, %v14703_v54 }
0x1870   :  { %12810 = vmatmul.mubr.msk.bf16.gmra.mrb[152].mxu0 %vm4933_vm7, %v14466_v11 }
0x1871   :  { %12817 = vmatprep.mubr.msk.bf16.mxu0 %vm14704_vm0, %v14703_v54 }
0x1878   :  { %12818 = vmatmul.mubr.msk.bf16.vlgmr.msra.gmra.mrb[136].mxu0 %vm4933_vm7, %v14467_v12 }
0x1879   :  { %12838 = vmatpush3.bf16.msra.mxu0 %v5625_v14  ;;  %12821 = vmatprep.mubr.msk.bf16.mxu0 %vm14704_vm0, %v14703_v54  ;;  %v14490_v14 = vld [vmem:[%s18121_s18 + $0x64] ss:$0 sps:$4 sm:$0x11]  }
0x187a   :  { %12839 = vmatprep.subr.bf16.mxu0 %v14703_v54 }
0x187d   :  { %12840 = vmatpush3.bf16.msra.mxu0 %v5676_v61 }
0x187e   :  { %12937 = vmatprep.subr.bf16.mxu0 %v14703_v54 }
0x1880   :  { %12822 = vmatmul.mubr.msk.bf16.gmra.mrb[140].mxu0 %vm4933_vm7, %v14468_v51 }
0x1881   :  { %12825 = vmatprep.mubr.msk.bf16.mxu0 %vm14704_vm0, %v14703_v54 }
0x1888   :  { %12826 = vmatmul.mubr.msk.bf16.gmra.mrb[144].mxu0 %vm4933_vm7, %v14469_v63 }
0x1889   :  { %12829 = vmatprep.mubr.msk.bf16.mxu0 %vm14704_vm0, %v14703_v54 }
0x1890   :  { %12830 = vmatmul.mubr.msk.bf16.gmra.mrb[148].mxu0 %vm4933_vm7, %v14470_v16 }
0x1891   :  { %12833 = vmatprep.mubr.msk.bf16.mxu0 %vm14704_vm0, %v14703_v54 }
0x1898   :  { %12834 = vmatmul.mubr.msk.bf16.gmra.mrb[152].mxu0 %vm4933_vm7, %v14471_v17 }
0x1899   :  { %12841 = vmatprep.mubr.msk.bf16.mxu0 %vm14704_vm0, %v14703_v54 }
0x18a0   :  { %12842 = vmatmul.mubr.msk.bf16.vlgmr.msra.gmra.mrb[136].mxu0 %vm4933_vm7, %v14472_v18 }
0x18a1   :  { %12845 = vmatprep.mubr.msk.bf16.mxu0 %vm14704_vm0, %v14703_v54  ;;  %12938 = vmatpush3.bf16.msra.mxu0 %v14495_v23 }
0x18a2   :  { %12939 = vmatprep.subr.bf16.mxu0 %v14703_v54 }
0x18a5   :  { %12940 = vmatpush3.bf16.msra.mxu0 %v14496_v6 }
0x18a6   :  { %12941 = vmatprep.subr.bf16.mxu0 %v14703_v54 }
0x18a8   :  { %12846 = vmatmul.mubr.msk.bf16.gmra.mrb[140].mxu0 %vm4933_vm7, %v14473_v20 }
0x18a9   :  { %12849 = vmatprep.mubr.msk.bf16.mxu0 %vm14704_vm0, %v14703_v54  ;;  %12942 = vmatpush3.bf16.msra.mxu0 %v14497_v7 }
0x18aa   :  { %12943 = vmatprep.subr.bf16.mxu0 %v14703_v54 }
0x18ad   :  { %12944 = vmatpush3.bf16.msra.mxu0 %v14498_v8 }
0x18ae   :  { %13009 = vmatprep.subr.bf16.mxu0 %v14703_v54 }
0x18b0   :  { %12850 = vmatmul.mubr.msk.bf16.gmra.mrb[144].mxu0 %vm4933_vm7, %v14474_v21 }
0x18b1   :  { %12853 = vmatprep.mubr.msk.bf16.mxu0 %vm14704_vm0, %v14703_v54 }
0x18b8   :  { %12854 = vmatmul.mubr.msk.bf16.gmra.mrb[148].mxu0 %vm4933_vm7, %v14475_v55 }
0x18b9   :  { %12857 = vmatprep.mubr.msk.bf16.mxu0 %vm14704_vm0, %v14703_v54 }
0x18c0   :  { %12858 = vmatmul.mubr.msk.bf16.gmra.mrb[152].mxu0 %vm4933_vm7, %v14476_v13 }
0x18c1   :  { %12945 = vmatprep.mubr.msk.bf16.mxu0 %vm14704_vm0, %v14703_v54 }
0x1973   :  { %v5712_v22 = vpop.f32.mrb[136].mxu0 }
0x1974   :  { %v12843_v24 = vpop.f32.mrb[137].mxu0 }
0x1975   :  { %v5715_v25 = vpop.f32.mrb[138].mxu0 }
0x1976   :  { %v16416_v26 = vpack.c.bf16 %v5715_v25, %v5712_v22  ;;  %v12844_v27 = vpop.f32.mrb[139].mxu0 }
0x1978   :  { %12862 = vmatpush3.bf16.msra.mxu1 %v16416_v26 }
0x1979   :  { %12863 = vmatprep.subr.bf16.mxu1 %v14703_v54 }
0x197b   :  { %v5720_v28 = vpop.f32.mrb[140].mxu0 }
0x197c   :  { %v12847_v29 = vpop.f32.mrb[141].mxu0 }
0x197d   :  { %v5723_v45 = vpop.f32.mrb[142].mxu0 }
0x197e   :  { %v16420_v30 = vpack.c.bf16 %v5723_v45, %v5720_v28  ;;  %v12848_v31 = vpop.f32.mrb[143].mxu0 }
0x1980   :  { %12864 = vmatpush3.bf16.msra.mxu1 %v16420_v30 }
0x1981   :  { %12865 = vmatprep.subr.bf16.mxu1 %v14703_v54 }
0x1983   :  { %v5728_v32 = vpop.f32.mrb[144].mxu0 }
0x1984   :  { %v12851_v33 = vpop.f32.mrb[145].mxu0 }
0x1985   :  { %v5731_v34 = vpop.f32.mrb[146].mxu0 }
0x1986   :  { %v16424_v35 = vpack.c.bf16 %v5731_v34, %v5728_v32  ;;  %v12852_v36 = vpop.f32.mrb[147].mxu0 }
0x1988   :  { %12866 = vmatpush3.bf16.msra.mxu1 %v16424_v35 }
0x1989   :  { %12867 = vmatprep.subr.bf16.mxu1 %v14703_v54 }
0x198b   :  { %v5736_v37 = vpop.f32.mrb[148].mxu0 }
0x198c   :  { %v12855_v39 = vpop.f32.mrb[149].mxu0 }
0x198d   :  { %v5739_v40 = vpop.f32.mrb[150].mxu0 }
0x198e   :  { %v16428_v41 = vpack.c.bf16 %v5739_v40, %v5736_v37  ;;  %v12856_v42 = vpop.f32.mrb[151].mxu0 }
0x1990   :  { %12868 = vmatpush3.bf16.msra.mxu1 %v16428_v41 }
0x1991   :  { %12869 = vmatprep.subr.bf16.mxu1 %v14703_v54 }
0x1993   :  { %v5744_v43 = vpop.f32.mrb[152].mxu0 }
0x1994   :  { %v5763_v44 = vpack.c.bf16 %v5744_v43, %v5744_v43  ;;  %v12859_v46 = vpop.f32.mrb[153].mxu0 }
0x1995   :  { %v5747_v47 = vpop.f32.mrb[154].mxu0 }
0x1996   :  { %v16433_v48 = vsel %vm618_vm1, %v5763_v44, 0  ;;  %v12860_v49 = vpop.f32.mrb[155].mxu0 }
0x1997   :  { %12870 = vmatpush3.bf16.msra.mxu1 %v16433_v48 }
0x1998   :  { %12899 = vmatprep.subr.bf16.mxu1 %v14703_v54 }
0x199a   :  { %12872 = vmatmul.mubr.msk.bf16.vlgmr.msra.gmra.mrb[164].mxu1 %vm614_vm2, %v14477_v50 }
0x199b   :  { %12900 = vmatpush3.bf16.msra.mxu1 %v16416_v26  ;;  %12875 = vmatprep.mubr.msk.bf16.mxu1 %vm14704_vm0, %v14703_v54 }
0x199c   :  { %12901 = vmatprep.subr.bf16.mxu1 %v14703_v54 }
0x199f   :  { %12902 = vmatpush3.bf16.msra.mxu1 %v16420_v30 }
0x19a0   :  { %12903 = vmatprep.subr.bf16.mxu1 %v14703_v54 }
0x19a2   :  { %12876 = vmatmul.mubr.msk.bf16.gmra.mrb[168].mxu1 %vm614_vm2, %v14478_v52 }
0x19a3   :  { %12904 = vmatpush3.bf16.msra.mxu1 %v16424_v35  ;;  %12879 = vmatprep.mubr.msk.bf16.mxu1 %vm14704_vm0, %v14703_v54 }
0x19a4   :  { %12905 = vmatprep.subr.bf16.mxu1 %v14703_v54 }
0x19a7   :  { %12906 = vmatpush3.bf16.msra.mxu1 %v16428_v41 }
0x19a8   :  { %12907 = vmatprep.subr.bf16.mxu1 %v14703_v54 }
0x19aa   :  { %12880 = vmatmul.mubr.msk.bf16.gmra.mrb[172].mxu1 %vm614_vm2, %v14479_v53 }
0x19ab   :  { %12908 = vmatpush3.bf16.msra.mxu1 %v16433_v48  ;;  %12883 = vmatprep.mubr.msk.bf16.mxu1 %vm14704_vm0, %v14703_v54 }
0x19ac   :  { %12973 = vmatprep.subr.bf16.mxu1 %v14703_v54 }
0x19b2   :  { %12884 = vmatmul.mubr.msk.bf16.gmra.mrb[176].mxu1 %vm614_vm2, %v14480_v56 }
0x19b3   :  { %12887 = vmatprep.mubr.msk.bf16.mxu1 %vm14704_vm0, %v14703_v54 }
0x19ba   :  { %12888 = vmatmul.mubr.msk.bf16.gmra.mrb[180].mxu1 %vm614_vm2, %v14481_v57 }
0x19bb   :  { %12891 = vmatprep.mubr.msk.bf16.mxu1 %vm14704_vm0, %v14703_v54 }
0x19c2   :  { %12892 = vmatmul.mubr.msk.bf16.gmra.mrb[184].mxu1 %vm614_vm2, %v14482_v58 }
0x19c3   :  { %12895 = vmatprep.mubr.msk.bf16.mxu1 %vm14704_vm0, %v14703_v54 }
0x19ca   :  { %12896 = vmatmul.mubr.msk.bf16.gmra.mrb[188].mxu1 %vm614_vm2, %v14483_v60 }
0x19cb   :  { %12909 = vmatprep.mubr.msk.bf16.mxu1 %vm14704_vm0, %v14703_v54 }
0x19d2   :  { %12910 = vmatmul.mubr.msk.bf16.vlgmr.msra.gmra.mrb[192].mxu1 %vm614_vm2, %v14484_v62 }
0x19d3   :  { %12913 = vmatprep.mubr.msk.bf16.mxu1 %vm14704_vm0, %v14703_v54  ;;  %12974 = vmatpush3.bf16.msra.mxu1 %v14491_v0 }
0x19d4   :  { %12975 = vmatprep.subr.bf16.mxu1 %v14703_v54 }
0x19d7   :  { %12976 = vmatpush3.bf16.msra.mxu1 %v14492_v1 }
0x19d8   :  { %12977 = vmatprep.subr.bf16.mxu1 %v14703_v54 }
0x19da   :  { %12914 = vmatmul.mubr.msk.bf16.gmra.mrb[196].mxu1 %vm614_vm2, %v14485_v2 }
0x19db   :  { %12917 = vmatprep.mubr.msk.bf16.mxu1 %vm14704_vm0, %v14703_v54  ;;  %12978 = vmatpush3.bf16.msra.mxu1 %v14493_v3 }
0x19dc   :  { %12979 = vmatprep.subr.bf16.mxu1 %v14703_v54 }
0x19df   :  { %12980 = vmatpush3.bf16.msra.mxu1 %v14494_v38 }
0x19e0   :  { %13047 = vmatprep.subr.bf16.mxu1 %v14703_v54 }
0x19e2   :  { %12918 = vmatmul.mubr.msk.bf16.gmra.mrb[200].mxu1 %vm614_vm2, %v14486_v4 }
0x19e3   :  { %12921 = vmatprep.mubr.msk.bf16.mxu1 %vm14704_vm0, %v14703_v54 }
0x19ea   :  { %12922 = vmatmul.mubr.msk.bf16.gmra.mrb[204].mxu1 %vm614_vm2, %v14487_v5 }
0x19eb   :  { %12925 = vmatprep.mubr.msk.bf16.mxu1 %vm14704_vm0, %v14703_v54 }
0x19f2   :  { %12926 = vmatmul.mubr.msk.bf16.gmra.mrb[208].mxu1 %vm614_vm2, %v14488_v19 }
0x19f3   :  { %12929 = vmatprep.mubr.msk.bf16.mxu1 %vm14704_vm0, %v14703_v54 }
0x19fa   :  { %12930 = vmatmul.mubr.msk.bf16.gmra.mrb[212].mxu1 %vm614_vm2, %v14489_v59 }
0x19fb   :  { %12933 = vmatprep.mubr.msk.bf16.mxu1 %vm14704_vm0, %v14703_v54 }
0x1a02   :  { %12934 = vmatmul.mubr.msk.bf16.gmra.mrb[216].mxu1 %vm614_vm2, %v14490_v14 }
0x1a03   :  { %12981 = vmatprep.mubr.msk.bf16.mxu1 %vm14704_vm0, %v14703_v54 }
0x1a6d   :  { %v5868_v9 = vpop.f32.mrb[164].mxu1 }
0x1a6e   :  { %v12873_v10 = vpop.f32.mrb[165].mxu1 }
0x1a6f   :  { %v5871_v11 = vpop.f32.mrb[166].mxu1 }
0x1a70   :  { %v5922_v12 = vpack.c.bf16 %v5871_v11, %v5868_v9  ;;  %v12874_v15 = vpop.f32.mrb[167].mxu1 }
0x1a72   :  { %12982 = vmatmul.mubr.msk.bf16.vlgmr.msra.gmra.mrb[220].mxu1 %vm750_vm3, %v5922_v12 }
0x1a73   :  { %12985 = vmatprep.mubr.msk.bf16.mxu1 %vm14704_vm0, %v14703_v54 }
0x1a75   :  { %v5876_v61 = vpop.f32.mrb[168].mxu1 }
0x1a76   :  { %v12877_v51 = vpop.f32.mrb[169].mxu1 }
0x1a77   :  { %v5879_v63 = vpop.f32.mrb[170].mxu1 }
0x1a78   :  { %v5923_v16 = vpack.c.bf16 %v5879_v63, %v5876_v61  ;;  %v12878_v17 = vpop.f32.mrb[171].mxu1 }
0x1a7a   :  { %12986 = vmatmul.mubr.msk.bf16.gmra.mrb[224].mxu1 %vm750_vm3, %v5923_v16 }
0x1a7b   :  { %12989 = vmatprep.mubr.msk.bf16.mxu1 %vm14704_vm0, %v14703_v54 }
0x1a7d   :  { %v5884_v18 = vpop.f32.mrb[172].mxu1 }
0x1a7e   :  { %v12881_v20 = vpop.f32.mrb[173].mxu1 }
0x1a7f   :  { %v5887_v21 = vpop.f32.mrb[174].mxu1 }
0x1a80   :  { %v5924_v55 = vpack.c.bf16 %v5887_v21, %v5884_v18  ;;  %v12882_v13 = vpop.f32.mrb[175].mxu1  ;;  %v14499_v21 = vld [vmem:[%s18121_s18 + $0x68] sm:$0xff]  }
0x1a81   :  { %v14506_v13 = vld [vmem:[%s18121_s18 + $0x9c] sm:$0xff]  }
0x1a82   :  { %12990 = vmatmul.mubr.msk.bf16.gmra.mrb[228].mxu1 %vm750_vm3, %v5924_v55  ;;  %v14500_v55 = vld [vmem:[%s18121_s18 + $0x70] sm:$0xff]  }
0x1a83   :  { %12993 = vmatprep.mubr.msk.bf16.mxu1 %vm14704_vm0, %v14703_v54 }
0x1a85   :  { %v5892_v22 = vpop.f32.mrb[176].mxu1 }
0x1a86   :  { %v12885_v24 = vpop.f32.mrb[177].mxu1 }
0x1a87   :  { %v5895_v25 = vpop.f32.mrb[178].mxu1  ;;  %v14513_v24 = vld [vmem:[%s18122_s19 + $0x40] sm:$0xff]  }
0x1a88   :  { %v5925_v27 = vpack.c.bf16 %v5895_v25, %v5892_v22  ;;  %v12886_v28 = vpop.f32.mrb[179].mxu1  ;;  %v14507_v22 = vld [vmem:[%s18121_s18 + $0xa4] sm:$0xff]   ;;  %13048 = vmatpush3.bf16.msra.mxu1 %v14513_v24  ;;  %v14508_v25 = vld [vmem:[%s18121_s18 + $0xac] sm:$0xff]  }
0x1a89   :  { %13049 = vmatprep.subr.bf16.mxu1 %v14703_v54  ;;  %v14514_v28 = vld [vmem:[%s18122_s19 + $0x48] sm:$0xff]  }
0x1a8a   :  { %12994 = vmatmul.mubr.msk.bf16.gmra.mrb[232].mxu1 %vm750_vm3, %v5925_v27  ;;  %v14509_v27 = vld [vmem:[%s18121_s18 + $0xb4] sm:$0xff]  }
0x1a8b   :  { %12997 = vmatprep.mubr.msk.bf16.mxu1 %vm14704_vm0, %v14703_v54 }
0x1a8c   :  { %13050 = vmatpush3.bf16.msra.mxu1 %v14514_v28 }
0x1a8d   :  { %v5900_v29 = vpop.f32.mrb[180].mxu1  ;;  %13051 = vmatprep.subr.bf16.mxu1 %v14703_v54 }
0x1a8e   :  { %v12889_v45 = vpop.f32.mrb[181].mxu1 }
0x1a8f   :  { %v5903_v31 = vpop.f32.mrb[182].mxu1  ;;  %v14510_v45 = vld [vmem:[%s18121_s18 + $0xbc] sm:$0xff]  }
0x1a90   :  { %v5926_v32 = vpack.c.bf16 %v5903_v31, %v5900_v29  ;;  %v12890_v33 = vpop.f32.mrb[183].mxu1  ;;  %v14515_v29 = vld [vmem:[%s18122_s19 + $0x50] sm:$0xff]   ;;  %v14516_v31 = vld [vmem:[%s18122_s19 + $0x58] sm:$0xff]  }
0x1a91   :  { %13052 = vmatpush3.bf16.msra.mxu1 %v14515_v29 }
0x1a92   :  { %12998 = vmatmul.mubr.msk.bf16.gmra.mrb[236].mxu1 %vm750_vm3, %v5926_v32  ;;  %13053 = vmatprep.subr.bf16.mxu1 %v14703_v54  ;;  %v14511_v32 = vld [vmem:[%s18121_s18 + $0xc4] sm:$0xff]  }
0x1a93   :  { %13001 = vmatprep.mubr.msk.bf16.mxu1 %vm14704_vm0, %v14703_v54 }
0x1a95   :  { %v5908_v34 = vpop.f32.mrb[184].mxu1  ;;  %13054 = vmatpush3.bf16.msra.mxu1 %v14516_v31 }
0x1a96   :  { %v12893_v36 = vpop.f32.mrb[185].mxu1  ;;  %13121 = vmatprep.subr.bf16.mxu1 %v14703_v54 }
0x1a97   :  { %v5911_v37 = vpop.f32.mrb[186].mxu1  ;;  %v14512_v36 = vld [vmem:[%s18121_s18 + $0xcc] ss:$0 sps:$4 sm:$0x11]  }
0x1a98   :  { %v5927_v39 = vpack.c.bf16 %v5911_v37, %v5908_v34  ;;  %v12894_v40 = vpop.f32.mrb[187].mxu1 }
0x1a9a   :  { %13002 = vmatmul.mubr.msk.bf16.gmra.mrb[240].mxu1 %vm750_vm3, %v5927_v39 }
0x1a9b   :  { %13005 = vmatprep.mubr.msk.bf16.mxu1 %vm14704_vm0, %v14703_v54 }
0x1a9d   :  { %v5916_v42 = vpop.f32.mrb[188].mxu1 }
0x1a9e   :  { %v12897_v43 = vpop.f32.mrb[189].mxu1  ;;  %v5928_v46 = vpack.c.bf16 %v5916_v42, %v5916_v42 }
0x1a9f   :  { %v5919_v44 = vpop.f32.mrb[190].mxu1 }
0x1aa0   :  { %v12898_v47 = vpop.f32.mrb[191].mxu1 }
0x1aa2   :  { %13006 = vmatmul.mubr.msk.bf16.gmra.mrb[244].mxu1 %vm750_vm3, %v5928_v46 }
0x1aa3   :  { %13055 = vmatprep.mubr.msk.bf16.mxu1 %vm14704_vm0, %v14703_v54 }
0x1aa5   :  { %v6039_v49 = vpop.f32.mrb[192].mxu1 }
0x1aa6   :  { %v12911_v50 = vpop.f32.mrb[193].mxu1 }
0x1aa7   :  { %v6042_v52 = vpop.f32.mrb[194].mxu1 }
0x1aa8   :  { %v6093_v53 = vpack.c.bf16 %v6042_v52, %v6039_v49  ;;  %v12912_v56 = vpop.f32.mrb[195].mxu1 }
0x1aaa   :  { %12946 = vmatmul.mubr.msk.bf16.vlgmr.msra.gmra.mrb[156].mxu0 %vm750_vm3, %v6093_v53 }
0x1aab   :  { %13010 = vmatpush3.bf16.msra.mxu0 %v16416_v26  ;;  %12949 = vmatprep.mubr.msk.bf16.mxu0 %vm14704_vm0, %v14703_v54 }
0x1aac   :  { %13011 = vmatprep.subr.bf16.mxu0 %v14703_v54 }
0x1aad   :  { %v6047_v57 = vpop.f32.mrb[196].mxu1 }
0x1aae   :  { %v12915_v58 = vpop.f32.mrb[197].mxu1 }
0x1aaf   :  { %13012 = vmatpush3.bf16.msra.mxu0 %v16420_v30  ;;  %v6050_v60 = vpop.f32.mrb[198].mxu1 }
0x1ab0   :  { %v6094_v62 = vpack.c.bf16 %v6050_v60, %v6047_v57  ;;  %v12916_v0 = vpop.f32.mrb[199].mxu1  ;;  %13013 = vmatprep.subr.bf16.mxu0 %v14703_v54 }
0x1ab2   :  { %12950 = vmatmul.mubr.msk.bf16.gmra.mrb[160].mxu0 %vm750_vm3, %v6094_v62 }
0x1ab3   :  { %13014 = vmatpush3.bf16.msra.mxu0 %v16424_v35  ;;  %12953 = vmatprep.mubr.msk.bf16.mxu0 %vm14704_vm0, %v14703_v54 }
0x1ab4   :  { %13015 = vmatprep.subr.bf16.mxu0 %v14703_v54 }
0x1ab5   :  { %v6055_v1 = vpop.f32.mrb[200].mxu1 }
0x1ab6   :  { %v12919_v2 = vpop.f32.mrb[201].mxu1 }
0x1ab7   :  { %13016 = vmatpush3.bf16.msra.mxu0 %v16428_v41  ;;  %v6058_v3 = vpop.f32.mrb[202].mxu1 }
0x1ab8   :  { %v6095_v4 = vpack.c.bf16 %v6058_v3, %v6055_v1  ;;  %v12920_v5 = vpop.f32.mrb[203].mxu1  ;;  %13017 = vmatprep.subr.bf16.mxu0 %v14703_v54 }
0x1aba   :  { %12954 = vmatmul.mubr.msk.bf16.gmra.mrb[164].mxu0 %vm750_vm3, %v6095_v4 }
0x1abb   :  { %13018 = vmatpush3.bf16.msra.mxu0 %v16433_v48  ;;  %12957 = vmatprep.mubr.msk.bf16.mxu0 %vm14704_vm0, %v14703_v54 }
0x1abc   :  { %13083 = vmatprep.subr.bf16.mxu0 %v14703_v54 }
0x1abd   :  { %v6063_v19 = vpop.f32.mrb[204].mxu1 }
0x1abe   :  { %v12923_v38 = vpop.f32.mrb[205].mxu1 }
0x1abf   :  { %v6066_v59 = vpop.f32.mrb[206].mxu1 }
0x1ac0   :  { %v6096_v14 = vpack.c.bf16 %v6066_v59, %v6063_v19  ;;  %v12924_v23 = vpop.f32.mrb[207].mxu1 }
0x1ac2   :  { %12958 = vmatmul.mubr.msk.bf16.gmra.mrb[168].mxu0 %vm750_vm3, %v6096_v14 }
0x1ac3   :  { %12961 = vmatprep.mubr.msk.bf16.mxu0 %vm14704_vm0, %v14703_v54 }
0x1ac5   :  { %v6071_v6 = vpop.f32.mrb[208].mxu1 }
0x1ac6   :  { %v12927_v7 = vpop.f32.mrb[209].mxu1 }
0x1ac7   :  { %v6074_v8 = vpop.f32.mrb[210].mxu1 }
0x1ac8   :  { %v6097_v9 = vpack.c.bf16 %v6074_v8, %v6071_v6  ;;  %v12928_v10 = vpop.f32.mrb[211].mxu1 }
0x1aca   :  { %12962 = vmatmul.mubr.msk.bf16.gmra.mrb[172].mxu0 %vm750_vm3, %v6097_v9 }
0x1acb   :  { %12965 = vmatprep.mubr.msk.bf16.mxu0 %vm14704_vm0, %v14703_v54 }
0x1acd   :  { %v6079_v11 = vpop.f32.mrb[212].mxu1 }
0x1ace   :  { %v12931_v12 = vpop.f32.mrb[213].mxu1 }
0x1acf   :  { %v6082_v15 = vpop.f32.mrb[214].mxu1 }
0x1ad0   :  { %v6098_v61 = vpack.c.bf16 %v6082_v15, %v6079_v11  ;;  %v12932_v51 = vpop.f32.mrb[215].mxu1 }
0x1ad2   :  { %12966 = vmatmul.mubr.msk.bf16.gmra.mrb[176].mxu0 %vm750_vm3, %v6098_v61 }
0x1ad3   :  { %12969 = vmatprep.mubr.msk.bf16.mxu0 %vm14704_vm0, %v14703_v54 }
0x1ad5   :  { %v6087_v63 = vpop.f32.mrb[216].mxu1 }
0x1ad6   :  { %v6099_v16 = vpack.c.bf16 %v6087_v63, %v6087_v63  ;;  %v12935_v17 = vpop.f32.mrb[217].mxu1 }
0x1ad7   :  { %v6090_v18 = vpop.f32.mrb[218].mxu1 }
0x1ad8   :  { %v12936_v20 = vpop.f32.mrb[219].mxu1 }
0x1ada   :  { %12970 = vmatmul.mubr.msk.bf16.gmra.mrb[180].mxu0 %vm750_vm3, %v6099_v16 }
0x1adb   :  { %13019 = vmatprep.mubr.msk.bf16.mxu0 %vm14704_vm0, %v14703_v54 }
0x1ae2   :  { %13020 = vmatmul.mubr.msk.bf16.vlgmr.msra.gmra.mrb[184].mxu0 %vm614_vm2, %v14499_v21 }
0x1ae3   :  { %13084 = vmatpush3.bf16.msra.mxu0 %v16416_v26  ;;  %13023 = vmatprep.mubr.msk.bf16.mxu0 %vm14704_vm0, %v14703_v54  ;;  %v14501_v26 = vld [vmem:[%s18121_s18 + $0x78] sm:$0xff]  }
0x1ae4   :  { %13085 = vmatprep.subr.bf16.mxu0 %v14703_v54 }
0x1ae7   :  { %13086 = vmatpush3.bf16.msra.mxu0 %v16420_v30  ;;  %v14502_v30 = vld [vmem:[%s18121_s18 + $0x80] sm:$0xff]  }
0x1ae8   :  { %13087 = vmatprep.subr.bf16.mxu0 %v14703_v54 }
0x1aea   :  { %13024 = vmatmul.mubr.msk.bf16.gmra.mrb[188].mxu0 %vm614_vm2, %v14500_v55 }
0x1aeb   :  { %13088 = vmatpush3.bf16.msra.mxu0 %v16424_v35  ;;  %13027 = vmatprep.mubr.msk.bf16.mxu0 %vm14704_vm0, %v14703_v54  ;;  %v14503_v35 = vld [vmem:[%s18121_s18 + $0x88] sm:$0xff]  }
0x1aec   :  { %13089 = vmatprep.subr.bf16.mxu0 %v14703_v54 }
0x1aef   :  { %13090 = vmatpush3.bf16.msra.mxu0 %v16428_v41  ;;  %v14504_v41 = vld [vmem:[%s18121_s18 + $0x90] sm:$0xff]  }
0x1af0   :  { %13091 = vmatprep.subr.bf16.mxu0 %v14703_v54 }
0x1af2   :  { %13028 = vmatmul.mubr.msk.bf16.gmra.mrb[192].mxu0 %vm614_vm2, %v14501_v26 }
0x1af3   :  { %13092 = vmatpush3.bf16.msra.mxu0 %v16433_v48  ;;  %13031 = vmatprep.mubr.msk.bf16.mxu0 %vm14704_vm0, %v14703_v54  ;;  %v14505_v48 = vld [vmem:[%s18121_s18 + $0x98] ss:$0 sps:$4 sm:$0x11]  }
0x1af4   :  { %13157 = vmatprep.subr.bf16.mxu0 %v14703_v54 }
0x1afa   :  { %13032 = vmatmul.mubr.msk.bf16.gmra.mrb[196].mxu0 %vm614_vm2, %v14502_v30 }
0x1afb   :  { %13035 = vmatprep.mubr.msk.bf16.mxu0 %vm14704_vm0, %v14703_v54 }
0x1b02   :  { %13036 = vmatmul.mubr.msk.bf16.gmra.mrb[200].mxu0 %vm614_vm2, %v14503_v35 }
0x1b03   :  { %13039 = vmatprep.mubr.msk.bf16.mxu0 %vm14704_vm0, %v14703_v54 }
0x1b0a   :  { %13040 = vmatmul.mubr.msk.bf16.gmra.mrb[204].mxu0 %vm614_vm2, %v14504_v41 }
0x1b0b   :  { %13043 = vmatprep.mubr.msk.bf16.mxu0 %vm14704_vm0, %v14703_v54 }
0x1b12   :  { %13044 = vmatmul.mubr.msk.bf16.gmra.mrb[208].mxu0 %vm614_vm2, %v14505_v48 }
0x1b13   :  { %13093 = vmatprep.mubr.msk.bf16.mxu0 %vm14704_vm0, %v14703_v54 }
0x1b1a   :  { %13094 = vmatmul.mubr.msk.bf16.vlgmr.msra.gmra.mrb[212].mxu0 %vm614_vm2, %v14506_v13 }
0x1b1b   :  { %13097 = vmatprep.mubr.msk.bf16.mxu0 %vm14704_vm0, %v14703_v54 }
0x1b22   :  { %13098 = vmatmul.mubr.msk.bf16.gmra.mrb[216].mxu0 %vm614_vm2, %v14507_v22 }
0x1b23   :  { %13101 = vmatprep.mubr.msk.bf16.mxu0 %vm14704_vm0, %v14703_v54 }
0x1b2a   :  { %13102 = vmatmul.mubr.msk.bf16.gmra.mrb[220].mxu0 %vm614_vm2, %v14508_v25 }
0x1b2b   :  { %13105 = vmatprep.mubr.msk.bf16.mxu0 %vm14704_vm0, %v14703_v54 }
0x1b32   :  { %13106 = vmatmul.mubr.msk.bf16.gmra.mrb[224].mxu0 %vm614_vm2, %v14509_v27 }
0x1b33   :  { %13109 = vmatprep.mubr.msk.bf16.mxu0 %vm14704_vm0, %v14703_v54 }
0x1b3a   :  { %13110 = vmatmul.mubr.msk.bf16.gmra.mrb[228].mxu0 %vm614_vm2, %v14510_v45 }
0x1b3b   :  { %13113 = vmatprep.mubr.msk.bf16.mxu0 %vm14704_vm0, %v14703_v54 }
0x1b42   :  { %13114 = vmatmul.mubr.msk.bf16.gmra.mrb[232].mxu0 %vm614_vm2, %v14511_v32 }
0x1b43   :  { %13117 = vmatprep.mubr.msk.bf16.mxu0 %vm14704_vm0, %v14703_v54 }
0x1b45   :  { %v6321_v33 = vpop.f32.mrb[220].mxu1 }
0x1b46   :  { %v12983_v34 = vpop.f32.mrb[221].mxu1 }
0x1b47   :  { %v6324_v37 = vpop.f32.mrb[222].mxu1 }
0x1b48   :  { %v12984_v39 = vpop.f32.mrb[223].mxu1 }
0x1b4a   :  { %13118 = vmatmul.mubr.msk.bf16.gmra.mrb[236].mxu0 %vm614_vm2, %v14512_v36 }
0x1b4b   :  { %13173 = vmatprep.mubr.msk.bf16.mxu0 %vm14704_vm0, %v14703_v54 }
0x1b4d   :  { %v6329_v40 = vpop.f32.mrb[224].mxu1 }
0x1b4e   :  { %v12987_v42 = vpop.f32.mrb[225].mxu1 }
0x1b4f   :  { %v6332_v43 = vpop.f32.mrb[226].mxu1 }
0x1b50   :  { %v12988_v44 = vpop.f32.mrb[227].mxu1 }
0x1b55   :  { %v6337_v46 = vpop.f32.mrb[228].mxu1 }
0x1b56   :  { %v12991_v47 = vpop.f32.mrb[229].mxu1 }
0x1b57   :  { %v6340_v49 = vpop.f32.mrb[230].mxu1  ;;  %v14517_v47 = vld [vmem:[%s18122_s19 + $0x60] sm:$0xff]  }
0x1b58   :  { %v12992_v50 = vpop.f32.mrb[231].mxu1 }
0x1b5d   :  { %v6345_v52 = vpop.f32.mrb[232].mxu1 }
0x1b5e   :  { %v12995_v53 = vpop.f32.mrb[233].mxu1 }
0x1b5f   :  { %v6348_v56 = vpop.f32.mrb[234].mxu1 }
0x1b60   :  { %v12996_v57 = vpop.f32.mrb[235].mxu1 }
0x1b65   :  { %v6353_v58 = vpop.f32.mrb[236].mxu1 }
0x1b66   :  { %v12999_v60 = vpop.f32.mrb[237].mxu1 }
0x1b67   :  { %v6356_v62 = vpop.f32.mrb[238].mxu1 }
0x1b68   :  { %v13000_v0 = vpop.f32.mrb[239].mxu1 }
0x1b69   :  { %v14520_v0 = vld [vmem:[%s18122_s19 + $0x78] sm:$0xff]  }
0x1b6d   :  { %v6361_v1 = vpop.f32.mrb[240].mxu1 }
0x1b6e   :  { %v13003_v2 = vpop.f32.mrb[241].mxu1 }
0x1b6f   :  { %v6364_v3 = vpop.f32.mrb[242].mxu1 }
0x1b70   :  { %v13004_v4 = vpop.f32.mrb[243].mxu1 }
0x1b75   :  { %v6369_v5 = vpop.f32.mrb[244].mxu1 }
0x1b76   :  { %v13007_v19 = vpop.f32.mrb[245].mxu1 }
0x1b77   :  { %v6372_v38 = vpop.f32.mrb[246].mxu1 }
0x1b78   :  { %v13008_v59 = vpop.f32.mrb[247].mxu1 }
0x1b7d   :  { %v6188_v14 = vpop.f32.mrb[156].mxu0 }
0x1b7e   :  { %v16725_v23 = vadd.f32 %v6321_v33, %v6188_v14  ;;  %v12947_v6 = vpop.f32.mrb[157].mxu0 }
0x1b7f   :  { %v6191_v7 = vpop.f32.mrb[158].mxu0 }
0x1b80   :  { %v16727_v8 = vadd.f32 %v6324_v37, %v6191_v7  ;;  %v12948_v9 = vpop.f32.mrb[159].mxu0 }
0x1b85   :  { %v6196_v10 = vpop.f32.mrb[160].mxu0 }
0x1b86   :  { %v16729_v11 = vadd.f32 %v6329_v40, %v6196_v10  ;;  %v12951_v12 = vpop.f32.mrb[161].mxu0 }
0x1b87   :  { %v6199_v15 = vpop.f32.mrb[162].mxu0 }
0x1b88   :  { %v16731_v61 = vadd.f32 %v6332_v43, %v6199_v15  ;;  %v12952_v51 = vpop.f32.mrb[163].mxu0 }
0x1b8d   :  { %v6204_v63 = vpop.f32.mrb[164].mxu0 }
0x1b8e   :  { %v16733_v16 = vadd.f32 %v6337_v46, %v6204_v63  ;;  %v12955_v17 = vpop.f32.mrb[165].mxu0 }
0x1b8f   :  { %v6207_v18 = vpop.f32.mrb[166].mxu0 }
0x1b90   :  { %v16735_v20 = vadd.f32 %v6340_v49, %v6207_v18  ;;  %v12956_v21 = vpop.f32.mrb[167].mxu0 }
0x1b95   :  { %v6212_v55 = vpop.f32.mrb[168].mxu0 }
0x1b96   :  { %v16737_v26 = vadd.f32 %v6345_v52, %v6212_v55  ;;  %v12959_v30 = vpop.f32.mrb[169].mxu0  ;;  %v14518_v52 = vld [vmem:[%s18122_s19 + $0x68] sm:$0xff]  }
0x1b97   :  { %v6215_v35 = vpop.f32.mrb[170].mxu0 }
0x1b98   :  { %v16739_v41 = vadd.f32 %v6348_v56, %v6215_v35  ;;  %v12960_v48 = vpop.f32.mrb[171].mxu0 }
0x1b9d   :  { %v6220_v13 = vpop.f32.mrb[172].mxu0 }
0x1b9e   :  { %v16741_v22 = vadd.f32 %v6353_v58, %v6220_v13  ;;  %v12963_v24 = vpop.f32.mrb[173].mxu0  ;;  %v14519_v58 = vld [vmem:[%s18122_s19 + $0x70] sm:$0xff]  }
0x1b9f   :  { %v6223_v25 = vpop.f32.mrb[174].mxu0 }
0x1ba0   :  { %v16743_v27 = vadd.f32 %v6356_v62, %v6223_v25  ;;  %v12964_v28 = vpop.f32.mrb[175].mxu0 }
0x1ba5   :  { %v6228_v29 = vpop.f32.mrb[176].mxu0 }
0x1ba6   :  { %v16745_v45 = vadd.f32 %v6361_v1, %v6228_v29  ;;  %v12967_v31 = vpop.f32.mrb[177].mxu0 }
0x1ba7   :  { %v6231_v32 = vpop.f32.mrb[178].mxu0 }
0x1ba8   :  { %v16747_v33 = vadd.f32 %v6364_v3, %v6231_v32  ;;  %v12968_v34 = vpop.f32.mrb[179].mxu0 }
0x1bad   :  { %v6236_v36 = vpop.f32.mrb[180].mxu0 }
0x1bae   :  { %v16749_v37 = vadd.f32 %v6369_v5, %v6236_v36  ;;  %v12971_v39 = vpop.f32.mrb[181].mxu0 }
0x1baf   :  { %v6239_v40 = vpop.f32.mrb[182].mxu0 }
0x1bb0   :  { %v12972_v42 = vpop.f32.mrb[183].mxu0 }
0x1bb5   :  { %v6477_v43 = vpop.f32.mrb[184].mxu0 }
0x1bb6   :  { %v13021_v44 = vpop.f32.mrb[185].mxu0 }
0x1bb7   :  { %v6480_v46 = vpop.f32.mrb[186].mxu0 }
0x1bb8   :  { %v6531_v49 = vpack.c.bf16 %v6480_v46, %v6477_v43  ;;  %v13022_v50 = vpop.f32.mrb[187].mxu0 }
0x1bba   :  { %13056 = vmatmul.mubr.msk.bf16.vlgmr.msra.gmra.mrb[248].mxu1 %vm750_vm3, %v6531_v49 }
0x1bbb   :  { %13059 = vmatprep.mubr.msk.bf16.mxu1 %vm14704_vm0, %v14703_v54  ;;  %13122 = vmatpush3.bf16.msra.mxu1 %v14517_v47 }
0x1bbc   :  { %13123 = vmatprep.subr.bf16.mxu1 %v14703_v54 }
0x1bbd   :  { %v6485_v53 = vpop.f32.mrb[188].mxu0 }
0x1bbe   :  { %v13025_v56 = vpop.f32.mrb[189].mxu0 }
0x1bbf   :  { %v6488_v57 = vpop.f32.mrb[190].mxu0  ;;  %13124 = vmatpush3.bf16.msra.mxu1 %v14518_v52 }
0x1bc0   :  { %v6532_v60 = vpack.c.bf16 %v6488_v57, %v6485_v53  ;;  %v13026_v62 = vpop.f32.mrb[191].mxu0  ;;  %13125 = vmatprep.subr.bf16.mxu1 %v14703_v54 }
0x1bc2   :  { %13060 = vmatmul.mubr.msk.bf16.gmra.mrb[252].mxu1 %vm750_vm3, %v6532_v60 }
0x1bc3   :  { %13063 = vmatprep.mubr.msk.bf16.mxu1 %vm14704_vm0, %v14703_v54  ;;  %13126 = vmatpush3.bf16.msra.mxu1 %v14519_v58 }
0x1bc4   :  { %13127 = vmatprep.subr.bf16.mxu1 %v14703_v54 }
0x1bc5   :  { %v6493_v1 = vpop.f32.mrb[192].mxu0 }
0x1bc6   :  { %v13029_v2 = vpop.f32.mrb[193].mxu0 }
0x1bc7   :  { %v6496_v3 = vpop.f32.mrb[194].mxu0  ;;  %13128 = vmatpush3.bf16.msra.mxu1 %v14520_v0 }
0x1bc8   :  { %v6533_v4 = vpack.c.bf16 %v6496_v3, %v6493_v1  ;;  %v13030_v5 = vpop.f32.mrb[195].mxu0  ;;  %13201 = vmatprep.subr.bf16.mxu1 %v14703_v54 }
0x1bca   :  { %13064 = vmatmul.mubr.msk.bf16.gmra.mrb[0].mxu1 %vm750_vm3, %v6533_v4 }
0x1bcb   :  { %13067 = vmatprep.mubr.msk.bf16.mxu1 %vm14704_vm0, %v14703_v54 }
0x1bcd   :  { %v6501_v19 = vpop.f32.mrb[196].mxu0 }
0x1bce   :  { %v13033_v38 = vpop.f32.mrb[197].mxu0 }
0x1bcf   :  { %v6504_v59 = vpop.f32.mrb[198].mxu0 }
0x1bd0   :  { %v6534_v14 = vpack.c.bf16 %v6504_v59, %v6501_v19  ;;  %v13034_v6 = vpop.f32.mrb[199].mxu0 }
0x1bd2   :  { %13068 = vmatmul.mubr.msk.bf16.gmra.mrb[4].mxu1 %vm750_vm3, %v6534_v14 }
0x1bd3   :  { %13071 = vmatprep.mubr.msk.bf16.mxu1 %vm14704_vm0, %v14703_v54 }
0x1bd5   :  { %v6509_v7 = vpop.f32.mrb[200].mxu0 }
0x1bd6   :  { %v13037_v9 = vpop.f32.mrb[201].mxu0 }
0x1bd7   :  { %v6512_v10 = vpop.f32.mrb[202].mxu0  ;;  %v14522_v9 = vld [vmem:[%s18125_s22 + $0x40] sm:$0xff]  }
0x1bd8   :  { %v6535_v12 = vpack.c.bf16 %v6512_v10, %v6509_v7  ;;  %v13038_v15 = vpop.f32.mrb[203].mxu0  ;;  %v14521_v7 = vld [vmem:[%s18125_s22] sm:$0xff]   ;;  %v14523_v10 = vld [vmem:[%s18125_s22 + $0x8] sm:$0xff]  }
0x1bd9   :  { %13158 = vmatpush3.bf16.msra.mxu0 %v14521_v7  ;;  %v14525_v15 = vld [vmem:[%s18125_s22 + $0x10] sm:$0xff]  }
0x1bda   :  { %13072 = vmatmul.mubr.msk.bf16.gmra.mrb[8].mxu1 %vm750_vm3, %v6535_v12  ;;  %13159 = vmatprep.subr.bf16.mxu0 %v14703_v54  ;;  %v14524_v12 = vld [vmem:[%s18125_s22 + $0x48] sm:$0xff]  }
0x1bdb   :  { %13075 = vmatprep.mubr.msk.bf16.mxu1 %vm14704_vm0, %v14703_v54 }
0x1bdd   :  { %v6517_v51 = vpop.f32.mrb[204].mxu0  ;;  %13160 = vmatpush3.bf16.msra.mxu0 %v14523_v10 }
0x1bde   :  { %v13041_v63 = vpop.f32.mrb[205].mxu0  ;;  %13161 = vmatprep.subr.bf16.mxu0 %v14703_v54 }
0x1bdf   :  { %v6520_v17 = vpop.f32.mrb[206].mxu0  ;;  %v14527_v63 = vld [vmem:[%s18125_s22 + $0x18] sm:$0xff]  }
0x1be0   :  { %v6536_v18 = vpack.c.bf16 %v6520_v17, %v6517_v51  ;;  %v13042_v21 = vpop.f32.mrb[207].mxu0  ;;  %v14526_v51 = vld [vmem:[%s18125_s22 + $0x50] sm:$0xff]   ;;  %v14528_v17 = vld [vmem:[%s18125_s22 + $0x58] sm:$0xff]  }
0x1be1   :  { %13162 = vmatpush3.bf16.msra.mxu0 %v14525_v15  ;;  %v14530_v21 = vld [vmem:[%s18125_s22 + $0x60] sm:$0xff]  }
0x1be2   :  { %13076 = vmatmul.mubr.msk.bf16.gmra.mrb[12].mxu1 %vm750_vm3, %v6536_v18  ;;  %13163 = vmatprep.subr.bf16.mxu0 %v14703_v54  ;;  %v14529_v18 = vld [vmem:[%s18125_s22 + $0x20] sm:$0xff]  }
0x1be3   :  { %13079 = vmatprep.mubr.msk.bf16.mxu1 %vm14704_vm0, %v14703_v54 }
0x1be5   :  { %v6525_v55 = vpop.f32.mrb[208].mxu0  ;;  %13164 = vmatpush3.bf16.msra.mxu0 %v14527_v63 }
0x1be6   :  { %v13045_v30 = vpop.f32.mrb[209].mxu0  ;;  %v6537_v48 = vpack.c.bf16 %v6525_v55, %v6525_v55  ;;  %13165 = vmatprep.subr.bf16.mxu0 %v14703_v54  ;;  %v14531_v55 = vld [vmem:[%s18125_s22 + $0x28] sm:$0xff]  }
0x1be7   :  { %v6528_v35 = vpop.f32.mrb[210].mxu0  ;;  %v14532_v30 = vld [vmem:[%s18125_s22 + $0x68] sm:$0xff]  }
0x1be8   :  { %v13046_v13 = vpop.f32.mrb[211].mxu0  ;;  %v14533_v35 = vld [vmem:[%s18125_s22 + $0x30] sm:$0xff]  }
0x1be9   :  { %13166 = vmatpush3.bf16.msra.mxu0 %v14529_v18  ;;  %v14535_v13 = vld [vmem:[%s18125_s22 + $0x38] sm:$0xff]  }
0x1bea   :  { %13080 = vmatmul.mubr.msk.bf16.gmra.mrb[16].mxu1 %vm750_vm3, %v6537_v48  ;;  %13167 = vmatprep.subr.bf16.mxu0 %v14703_v54  ;;  %v14534_v48 = vld [vmem:[%s18125_s22 + $0x70] sm:$0xff]  }
0x1beb   :  { %13129 = vmatprep.mubr.msk.bf16.mxu1 %vm14704_vm0, %v14703_v54 }
0x1bed   :  { %v6795_v24 = vpop.f32.mrb[212].mxu0  ;;  %13168 = vmatpush3.bf16.msra.mxu0 %v14531_v55 }
0x1bee   :  { %v13095_v25 = vpop.f32.mrb[213].mxu0  ;;  %13169 = vmatprep.subr.bf16.mxu0 %v14703_v54 }
0x1bef   :  { %v6798_v28 = vpop.f32.mrb[214].mxu0 }
0x1bf0   :  { %v6849_v29 = vpack.c.bf16 %v6798_v28, %v6795_v24  ;;  %v13096_v31 = vpop.f32.mrb[215].mxu0  ;;  %v14536_v24 = vld [vmem:[%s18125_s22 + $0x78] sm:$0xff]  }
0x1bf1   :  { %13170 = vmatpush3.bf16.msra.mxu0 %v14533_v35 }
0x1bf2   :  { %13130 = vmatmul.mubr.msk.bf16.vlgmr.msra.gmra.mrb[20].mxu1 %vm750_vm3, %v6849_v29  ;;  %13171 = vmatprep.subr.bf16.mxu0 %v14703_v54 }
0x1bf3   :  { %13133 = vmatprep.mubr.msk.bf16.mxu1 %vm14704_vm0, %v14703_v54  ;;  %13202 = vmatpush3.bf16.msra.mxu1 %v14522_v9 }
0x1bf4   :  { %13203 = vmatprep.subr.bf16.mxu1 %v14703_v54 }
0x1bf5   :  { %v6803_v32 = vpop.f32.mrb[216].mxu0  ;;  %13172 = vmatpush3.bf16.msra.mxu0 %v14535_v13 }
0x1bf6   :  { %v13099_v34 = vpop.f32.mrb[217].mxu0  ;;  %13359 = vmatprep.subr.bf16.mxu0 %v14703_v54 }
0x1bf7   :  { %v6806_v36 = vpop.f32.mrb[218].mxu0  ;;  %13204 = vmatpush3.bf16.msra.mxu1 %v14524_v12 }
0x1bf8   :  { %v6850_v39 = vpack.c.bf16 %v6806_v36, %v6803_v32  ;;  %v13100_v40 = vpop.f32.mrb[219].mxu0  ;;  %13205 = vmatprep.subr.bf16.mxu1 %v14703_v54 }
0x1bfa   :  { %13134 = vmatmul.mubr.msk.bf16.gmra.mrb[24].mxu1 %vm750_vm3, %v6850_v39 }
0x1bfb   :  { %13137 = vmatprep.mubr.msk.bf16.mxu1 %vm14704_vm0, %v14703_v54  ;;  %13206 = vmatpush3.bf16.msra.mxu1 %v14526_v51 }
0x1bfc   :  { %13207 = vmatprep.subr.bf16.mxu1 %v14703_v54 }
0x1bfd   :  { %v6811_v42 = vpop.f32.mrb[220].mxu0 }
0x1bfe   :  { %v13103_v43 = vpop.f32.mrb[221].mxu0 }
0x1bff   :  { %v6814_v44 = vpop.f32.mrb[222].mxu0  ;;  %13208 = vmatpush3.bf16.msra.mxu1 %v14528_v17 }
0x1c00   :  { %v6851_v46 = vpack.c.bf16 %v6814_v44, %v6811_v42  ;;  %v13104_v47 = vpop.f32.mrb[223].mxu0  ;;  %13209 = vmatprep.subr.bf16.mxu1 %v14703_v54 }
0x1c02   :  { %13138 = vmatmul.mubr.msk.bf16.gmra.mrb[28].mxu1 %vm750_vm3, %v6851_v46 }
0x1c03   :  { %13141 = vmatprep.mubr.msk.bf16.mxu1 %vm14704_vm0, %v14703_v54  ;;  %13210 = vmatpush3.bf16.msra.mxu1 %v14530_v21 }
0x1c04   :  { %13211 = vmatprep.subr.bf16.mxu1 %v14703_v54 }
0x1c05   :  { %v6819_v49 = vpop.f32.mrb[224].mxu0 }
0x1c06   :  { %v13107_v50 = vpop.f32.mrb[225].mxu0 }
0x1c07   :  { %v6822_v52 = vpop.f32.mrb[226].mxu0  ;;  %13212 = vmatpush3.bf16.msra.mxu1 %v14532_v30 }
0x1c08   :  { %v6852_v53 = vpack.c.bf16 %v6822_v52, %v6819_v49  ;;  %v13108_v56 = vpop.f32.mrb[227].mxu0  ;;  %13213 = vmatprep.subr.bf16.mxu1 %v14703_v54 }
0x1c0a   :  { %13142 = vmatmul.mubr.msk.bf16.gmra.mrb[32].mxu1 %vm750_vm3, %v6852_v53 }
0x1c0b   :  { %13145 = vmatprep.mubr.msk.bf16.mxu1 %vm14704_vm0, %v14703_v54  ;;  %13214 = vmatpush3.bf16.msra.mxu1 %v14534_v48 }
0x1c0c   :  { %13215 = vmatprep.subr.bf16.mxu1 %v14703_v54 }
0x1c0d   :  { %v6827_v57 = vpop.f32.mrb[228].mxu0 }
0x1c0e   :  { %v13111_v58 = vpop.f32.mrb[229].mxu0 }
0x1c0f   :  { %v6830_v60 = vpop.f32.mrb[230].mxu0  ;;  %13216 = vmatpush3.bf16.msra.mxu1 %v14536_v24 }
0x1c10   :  { %v6853_v62 = vpack.c.bf16 %v6830_v60, %v6827_v57  ;;  %v13112_v0 = vpop.f32.mrb[231].mxu0  ;;  %13245 = vmatprep.subr.bf16.mxu1 %v14703_v54 }
0x1c12   :  { %13146 = vmatmul.mubr.msk.bf16.gmra.mrb[36].mxu1 %vm750_vm3, %v6853_v62 }
0x1c13   :  { %13149 = vmatprep.mubr.msk.bf16.mxu1 %vm14704_vm0, %v14703_v54 }
0x1c15   :  { %v6835_v1 = vpop.f32.mrb[232].mxu0 }
0x1c16   :  { %v13115_v2 = vpop.f32.mrb[233].mxu0 }
0x1c17   :  { %v6838_v3 = vpop.f32.mrb[234].mxu0 }
0x1c18   :  { %v6854_v4 = vpack.c.bf16 %v6838_v3, %v6835_v1  ;;  %v13116_v5 = vpop.f32.mrb[235].mxu0 }
0x1c1a   :  { %13150 = vmatmul.mubr.msk.bf16.gmra.mrb[40].mxu1 %vm750_vm3, %v6854_v4 }
0x1c1b   :  { %13153 = vmatprep.mubr.msk.bf16.mxu1 %vm14704_vm0, %v14703_v54 }
0x1c1d   :  { %v6843_v19 = vpop.f32.mrb[236].mxu0 }
0x1c1e   :  { %v6855_v38 = vpack.c.bf16 %v6843_v19, %v6843_v19  ;;  %v13119_v59 = vpop.f32.mrb[237].mxu0 }
0x1c1f   :  { %v6846_v14 = vpop.f32.mrb[238].mxu0 }
0x1c20   :  { %v13120_v6 = vpop.f32.mrb[239].mxu0  ;;  %v16903_v14 = vld [vmem:[%s18123_s20] ss:$0 sm:$0xff] }
0x1c22   :  { %13154 = vmatmul.mubr.msk.bf16.gmra.mrb[44].mxu1 %vm750_vm3, %v6855_v38 }
0x1c23   :  { %13217 = vmatprep.mubr.msk.bf16.mxu1 %vm14704_vm0, %v14703_v54 }
0x1c8d   :  { %v6626_v25 = vpop.f32.mrb[248].mxu1 }
0x1c8e   :  { %v6680_v28 = vadd.f32 %v6626_v25, %v16725_v23  ;;  %v13057_v29 = vpop.f32.mrb[249].mxu1 }
0x1c8f   :  { %v6629_v31 = vpop.f32.mrb[250].mxu1 }
0x1c90   :  { %v6681_v32 = vadd.f32 %v6629_v31, %v16727_v8  ;;  %v13058_v34 = vpop.f32.mrb[251].mxu1 }
0x1c95   :  { %v6634_v36 = vpop.f32.mrb[252].mxu1 }
0x1c96   :  { %v6682_v39 = vadd.f32 %v6634_v36, %v16729_v11  ;;  %v13061_v40 = vpop.f32.mrb[253].mxu1 }
0x1c97   :  { %v6637_v42 = vpop.f32.mrb[254].mxu1 }
0x1c98   :  { %v6683_v43 = vadd.f32 %v6637_v42, %v16731_v61  ;;  %v13062_v44 = vpop.f32.mrb[255].mxu1 }
0x1c9d   :  { %v6642_v46 = vpop.f32.mrb[0].mxu1 }
0x1c9e   :  { %v6684_v47 = vadd.f32 %v6642_v46, %v16733_v16  ;;  %v13065_v49 = vpop.f32.mrb[1].mxu1 }
0x1c9f   :  { %v6645_v50 = vpop.f32.mrb[2].mxu1 }
0x1ca0   :  { %v6685_v23 = vadd.f32 %v6645_v50, %v16735_v20  ;;  %v13066_v52 = vpop.f32.mrb[3].mxu1 }
0x1ca5   :  { %v6650_v53 = vpop.f32.mrb[4].mxu1 }
0x1ca6   :  { %v16880_v8 = vadd.f32 %v6650_v53, %v16737_v26  ;;  %v13069_v56 = vpop.f32.mrb[5].mxu1 }
0x1ca7   :  { %v6653_v57 = vpop.f32.mrb[6].mxu1 }
0x1ca8   :  { %v16883_v11 = vadd.f32 %v6653_v57, %v16739_v41  ;;  %v13070_v58 = vpop.f32.mrb[7].mxu1 }
0x1cad   :  { %v6658_v61 = vpop.f32.mrb[8].mxu1 }
0x1cae   :  { %v16886_v60 = vadd.f32 %v6658_v61, %v16741_v22  ;;  %v13073_v16 = vpop.f32.mrb[9].mxu1 }
0x1caf   :  { %v6661_v62 = vpop.f32.mrb[10].mxu1 }
0x1cb0   :  { %v16889_v0 = vadd.f32 %v6661_v62, %v16743_v27  ;;  %v13074_v20 = vpop.f32.mrb[11].mxu1 }
0x1cb5   :  { %v6666_v1 = vpop.f32.mrb[12].mxu1 }
0x1cb6   :  { %v16892_v26 = vadd.f32 %v6666_v1, %v16745_v45  ;;  %v13077_v2 = vpop.f32.mrb[13].mxu1 }
0x1cb7   :  { %v6669_v3 = vpop.f32.mrb[14].mxu1 }
0x1cb8   :  { %v16895_v41 = vadd.f32 %v6669_v3, %v16747_v33  ;;  %v13078_v4 = vpop.f32.mrb[15].mxu1 }
0x1cbd   :  { %v6674_v5 = vpop.f32.mrb[16].mxu1 }
0x1cbe   :  { %v16898_v22 = vadd.f32 %v6674_v5, %v16749_v37  ;;  %v13081_v19 = vpop.f32.mrb[17].mxu1 }
0x1cbf   :  { %v6677_v38 = vpop.f32.mrb[18].mxu1 }
0x1cc0   :  { %v13082_v59 = vpop.f32.mrb[19].mxu1 }
0x1cc5   :  { %v6944_v27 = vpop.f32.mrb[20].mxu1 }
0x1cc6   :  { %v6998_v45 = vadd.f32 %v6944_v27, %v6680_v28  ;;  %v13131_v6 = vpop.f32.mrb[21].mxu1 }
0x1cc7   :  { %v6947_v7 = vpop.f32.mrb[22].mxu1 }
0x1cc8   :  { %v7018_v33 = vadd.f32 %v16903_v14, %v6998_v45  ;;  %v6999_v9 = vadd.f32 %v6947_v7, %v6681_v32  ;;  %v13132_v10 = vpop.f32.mrb[23].mxu1 }
0x1cca   :  { %v7019_v12 = vadd.f32 %v16903_v14, %v6999_v9  ;;  %v7031_v37 = vmax.f32 %v7018_v33, 0.0 }
0x1ccc   :  { %v7032_v15 = vmax.f32 %v7019_v12, 0.0 }
0x1ccd   :  { %v6952_v51 = vpop.f32.mrb[24].mxu1 }
0x1cce   :  { %v16907_v63 = vpack.c.bf16 %v7032_v15, %v7031_v37  ;;  %v7000_v17 = vadd.f32 %v6952_v51, %v6682_v39  ;;  %v13135_v18 = vpop.f32.mrb[25].mxu1 }
0x1ccf   :  { %v6955_v21 = vpop.f32.mrb[26].mxu1 }
0x1cd0   :  { %v7020_v55 = vadd.f32 %v16903_v14, %v7000_v17  ;;  %v7001_v30 = vadd.f32 %v6955_v21, %v6683_v43  ;;  %v13136_v35 = vpop.f32.mrb[27].mxu1  ;;  %13174 = vmatmul.mubr.bf16.vlgmr.msra.gmra.mrb[240].mxu0 %v16907_v63  ;;  %13218 = vmatmul.mubr.bf16.vlgmr.msra.gmra.mrb[48].mxu1 %v16907_v63 }
0x1cd1   :  { %13177 = vmatprep.mubr.msk.bf16.mxu0 %vm14704_vm0, %v14703_v54  ;;  %13221 = vmatprep.mubr.msk.bf16.mxu1 %vm14704_vm0, %v14703_v54 }
0x1cd2   :  { %v7021_v48 = vadd.f32 %v16903_v14, %v7001_v30  ;;  %v7033_v13 = vmax.f32 %v7020_v55, 0.0 }
0x1cd4   :  { %v7034_v24 = vmax.f32 %v7021_v48, 0.0 }
0x1cd5   :  { %v6960_v25 = vpop.f32.mrb[28].mxu1 }
0x1cd6   :  { %v16917_v28 = vpack.c.bf16 %v7034_v24, %v7033_v13  ;;  %v7002_v29 = vadd.f32 %v6960_v25, %v6684_v47  ;;  %v13139_v31 = vpop.f32.mrb[29].mxu1 }
0x1cd7   :  { %v6963_v32 = vpop.f32.mrb[30].mxu1 }
0x1cd8   :  { %v7022_v34 = vadd.f32 %v16903_v14, %v7002_v29  ;;  %v7003_v36 = vadd.f32 %v6963_v32, %v6685_v23  ;;  %v13140_v39 = vpop.f32.mrb[31].mxu1  ;;  %13178 = vmatmul.mubr.bf16.gmra.mrb[244].mxu0 %v16917_v28  ;;  %13222 = vmatmul.mubr.bf16.gmra.mrb[52].mxu1 %v16917_v28 }
0x1cd9   :  { %13181 = vmatprep.mubr.msk.bf16.mxu0 %vm14704_vm0, %v14703_v54  ;;  %13225 = vmatprep.mubr.msk.bf16.mxu1 %vm14704_vm0, %v14703_v54 }
0x1cda   :  { %v7023_v40 = vadd.f32 %v16903_v14, %v7003_v36  ;;  %v7035_v42 = vmax.f32 %v7022_v34, 0.0 }
0x1cdc   :  { %v7036_v43 = vmax.f32 %v7023_v40, 0.0 }
0x1cdd   :  { %v6968_v44 = vpop.f32.mrb[32].mxu1 }
0x1cde   :  { %v16927_v46 = vpack.c.bf16 %v7036_v43, %v7035_v42  ;;  %v7004_v47 = vadd.f32 %v6968_v44, %v16880_v8  ;;  %v13143_v49 = vpop.f32.mrb[33].mxu1 }
0x1cdf   :  { %v6971_v50 = vpop.f32.mrb[34].mxu1 }
0x1ce0   :  { %v7024_v23 = vadd.f32 %v16903_v14, %v7004_v47  ;;  %v7005_v52 = vadd.f32 %v6971_v50, %v16883_v11  ;;  %v13144_v53 = vpop.f32.mrb[35].mxu1  ;;  %13182 = vmatmul.mubr.bf16.gmra.mrb[248].mxu0 %v16927_v46  ;;  %13226 = vmatmul.mubr.bf16.gmra.mrb[56].mxu1 %v16927_v46 }
0x1ce1   :  { %13185 = vmatprep.mubr.msk.bf16.mxu0 %vm14704_vm0, %v14703_v54  ;;  %13229 = vmatprep.mubr.msk.bf16.mxu1 %vm14704_vm0, %v14703_v54 }
0x1ce2   :  { %v7025_v56 = vadd.f32 %v16903_v14, %v7005_v52  ;;  %v7037_v8 = vmax.f32 %v7024_v23, 0.0 }
0x1ce4   :  { %v7038_v57 = vmax.f32 %v7025_v56, 0.0 }
0x1ce5   :  { %v6976_v58 = vpop.f32.mrb[36].mxu1 }
0x1ce6   :  { %v16939_v61 = vpack.c.bf16 %v7038_v57, %v7037_v8  ;;  %v7006_v11 = vadd.f32 %v6976_v58, %v16886_v60  ;;  %v13147_v16 = vpop.f32.mrb[37].mxu1 }
0x1ce7   :  { %v6979_v62 = vpop.f32.mrb[38].mxu1 }
0x1ce8   :  { %v7026_v20 = vadd.f32 %v16903_v14, %v7006_v11  ;;  %v7007_v1 = vadd.f32 %v6979_v62, %v16889_v0  ;;  %v13148_v2 = vpop.f32.mrb[39].mxu1  ;;  %13186 = vmatmul.mubr.bf16.gmra.mrb[252].mxu0 %v16939_v61  ;;  %13230 = vmatmul.mubr.bf16.gmra.mrb[60].mxu1 %v16939_v61 }
0x1ce9   :  { %13189 = vmatprep.mubr.msk.bf16.mxu0 %vm14704_vm0, %v14703_v54  ;;  %13233 = vmatprep.mubr.msk.bf16.mxu1 %vm14704_vm0, %v14703_v54 }
0x1cea   :  { %v7027_v3 = vadd.f32 %v16903_v14, %v7007_v1  ;;  %v7039_v60 = vmax.f32 %v7026_v20, 0.0 }
0x1cec   :  { %v7040_v4 = vmax.f32 %v7027_v3, 0.0 }
0x1ced   :  { %v6984_v5 = vpop.f32.mrb[40].mxu1 }
0x1cee   :  { %v16951_v19 = vpack.c.bf16 %v7040_v4, %v7039_v60  ;;  %v7008_v0 = vadd.f32 %v6984_v5, %v16892_v26  ;;  %v13151_v38 = vpop.f32.mrb[41].mxu1 }
0x1cef   :  { %v6987_v59 = vpop.f32.mrb[42].mxu1 }
0x1cf0   :  { %v7028_v27 = vadd.f32 %v16903_v14, %v7008_v0  ;;  %v7009_v45 = vadd.f32 %v6987_v59, %v16895_v41  ;;  %v13152_v6 = vpop.f32.mrb[43].mxu1  ;;  %13190 = vmatmul.mubr.bf16.gmra.mrb[0].mxu0 %v16951_v19  ;;  %13234 = vmatmul.mubr.bf16.gmra.mrb[64].mxu1 %v16951_v19 }
0x1cf1   :  { %13193 = vmatprep.mubr.msk.bf16.mxu0 %vm14704_vm0, %v14703_v54  ;;  %13237 = vmatprep.mubr.msk.bf16.mxu1 %vm14704_vm0, %v14703_v54 }
0x1cf2   :  { %v7029_v7 = vadd.f32 %v16903_v14, %v7009_v45  ;;  %v7041_v26 = vmax.f32 %v7028_v27, 0.0 }
0x1cf4   :  { %v7042_v33 = vmax.f32 %v7029_v7, 0.0 }
0x1cf5   :  { %v6992_v9 = vpop.f32.mrb[44].mxu1 }
0x1cf6   :  { %v16963_v10 = vpack.c.bf16 %v7042_v33, %v7041_v26  ;;  %v7010_v41 = vadd.f32 %v6992_v9, %v16898_v22  ;;  %v13155_v12 = vpop.f32.mrb[45].mxu1 }
0x1cf7   :  { %v6995_v37 = vpop.f32.mrb[46].mxu1 }
0x1cf8   :  { %v7030_v15 = vadd.f32 %v16903_v14, %v7010_v41  ;;  %v13156_v51 = vpop.f32.mrb[47].mxu1  ;;  %13194 = vmatmul.mubr.bf16.gmra.mrb[4].mxu0 %v16963_v10  ;;  %13238 = vmatmul.mubr.bf16.gmra.mrb[68].mxu1 %v16963_v10 }
0x1cf9   :  { %13197 = vmatprep.mubr.msk.bf16.mxu0 %vm14704_vm0, %v14703_v54  ;;  %13241 = vmatprep.mubr.msk.bf16.mxu1 %vm14704_vm0, %v14703_v54 }
0x1cfa   :  { %v7043_v17 = vmax.f32 %v7030_v15, 0.0 }
0x1cfc   :  { %v16973_v18 = vpack.c.bf16 %v7043_v17, %v7043_v17 }
0x1d00   :  { %13198 = vmatmul.mubr.bf16.gmra.mrb[8].mxu0 %v16973_v18  ;;  %13242 = vmatmul.mubr.bf16.gmra.mrb[72].mxu1 %v16973_v18 }
0x1d01   :  { %13259 = vmatprep.mubr.msk.bf16.mxu1 %vm14704_vm0, %v14703_v54  ;;  %13373 = vmatprep.mubr.msk.bf16.mxu0 %vm14704_vm0, %v14703_v54 }
0x1da3   :  { %v7149_v22 = vpop.f32.mrb[240].mxu0  ;;  %v7358_v14 = vpop.f32.mrb[48].mxu1 }
0x1da4   :  { %v13175_v21 = vpop.f32.mrb[241].mxu0  ;;  %v13219_v55 = vpop.f32.mrb[49].mxu1 }
0x1da5   :  { %v7152_v30 = vpop.f32.mrb[242].mxu0  ;;  %v7361_v35 = vpop.f32.mrb[50].mxu1 }
0x1da6   :  { %v16981_v48 = vpack.c.bf16 %v7152_v30, %v7149_v22  ;;  %v7412_v13 = vpack.c.bf16 %v7361_v35, %v7358_v14  ;;  %v13176_v24 = vpop.f32.mrb[243].mxu0  ;;  %v13220_v25 = vpop.f32.mrb[51].mxu1 }
0x1da8   :  { %13246 = vmatpush3.bf16.msra.mxu1 %v7412_v13  ;;  %13360 = vmatpush3.bf16.msra.mxu0 %v16981_v48 }
0x1da9   :  { %13247 = vmatprep.subr.bf16.mxu1 %v14703_v54  ;;  %13361 = vmatprep.subr.bf16.mxu0 %v14703_v54 }
0x1dab   :  { %v7157_v29 = vpop.f32.mrb[244].mxu0  ;;  %v7366_v31 = vpop.f32.mrb[52].mxu1 }
0x1dac   :  { %v13179_v32 = vpop.f32.mrb[245].mxu0  ;;  %v13223_v34 = vpop.f32.mrb[53].mxu1 }
0x1dad   :  { %v7160_v36 = vpop.f32.mrb[246].mxu0  ;;  %v7369_v39 = vpop.f32.mrb[54].mxu1 }
0x1dae   :  { %v16986_v40 = vpack.c.bf16 %v7160_v36, %v7157_v29  ;;  %v7413_v42 = vpack.c.bf16 %v7369_v39, %v7366_v31  ;;  %v13180_v43 = vpop.f32.mrb[247].mxu0  ;;  %v13224_v44 = vpop.f32.mrb[55].mxu1 }
0x1daf   :  { %v14537_v43 = vld [vmem:[%s18124_s21 + $0xc4] sm:$0xff]   ;;  %v14538_v44 = vld [vmem:[%s18124_s21 + $0xcc] sm:$0xff]  }
0x1db0   :  { %13248 = vmatpush3.bf16.msra.mxu1 %v7413_v42  ;;  %13362 = vmatpush3.bf16.msra.mxu0 %v16986_v40 }
0x1db1   :  { %13249 = vmatprep.subr.bf16.mxu1 %v14703_v54  ;;  %13363 = vmatprep.subr.bf16.mxu0 %v14703_v54 }
0x1db3   :  { %v7165_v47 = vpop.f32.mrb[248].mxu0  ;;  %v7374_v49 = vpop.f32.mrb[56].mxu1 }
0x1db4   :  { %v13183_v50 = vpop.f32.mrb[249].mxu0  ;;  %v13227_v23 = vpop.f32.mrb[57].mxu1 }
0x1db5   :  { %v7168_v52 = vpop.f32.mrb[250].mxu0  ;;  %v7377_v53 = vpop.f32.mrb[58].mxu1  ;;  %v14543_v50 = vld [vmem:[%s18124_s21 + $0xf4] sm:$0xff]   ;;  %v14544_v23 = vld [vmem:[%s18124_s21 + $0xfc] sm:$0xff]  }
0x1db6   :  { %v16991_v56 = vpack.c.bf16 %v7168_v52, %v7165_v47  ;;  %v7414_v8 = vpack.c.bf16 %v7377_v53, %v7374_v49  ;;  %v13184_v57 = vpop.f32.mrb[251].mxu0  ;;  %v13228_v58 = vpop.f32.mrb[59].mxu1  ;;  %v14541_v47 = vld [vmem:[%s18124_s21 + $0xe4] sm:$0xff]   ;;  %v14542_v49 = vld [vmem:[%s18124_s21 + $0xec] sm:$0xff]  }
0x1db7   :  { %v14545_v52 = vld [vmem:[%s18124_s21 + $0x104] sm:$0xff]   ;;  %v14546_v53 = vld [vmem:[%s18124_s21 + $0x10c] sm:$0xff]  }
0x1db8   :  { %13250 = vmatpush3.bf16.msra.mxu1 %v7414_v8  ;;  %13364 = vmatpush3.bf16.msra.mxu0 %v16991_v56  ;;  %v14548_v8 = vld [vmem:[%s18124_s21 + $0x11c] sm:$0xff]   ;;  %v14549_v57 = vld [vmem:[%s18124_s21 + $0x124] sm:$0xff]   ;;  %v14550_v58 = vld [vmem:[%s18124_s21 + $0x12c] sm:$0xff]  }
0x1db9   :  { %13251 = vmatprep.subr.bf16.mxu1 %v14703_v54  ;;  %13365 = vmatprep.subr.bf16.mxu0 %v14703_v54 }
0x1dbb   :  { %v7173_v11 = vpop.f32.mrb[252].mxu0  ;;  %v7382_v16 = vpop.f32.mrb[60].mxu1 }
0x1dbc   :  { %v13187_v62 = vpop.f32.mrb[253].mxu0  ;;  %v13231_v20 = vpop.f32.mrb[61].mxu1 }
0x1dbd   :  { %v7176_v1 = vpop.f32.mrb[254].mxu0  ;;  %v7385_v2 = vpop.f32.mrb[62].mxu1  ;;  %v14553_v62 = vld [vmem:[%s18124_s21 + $0x144] sm:$0xff]   ;;  %v14554_v20 = vld [vmem:[%s18124_s21 + $0x14c] sm:$0xff]  }
0x1dbe   :  { %v16996_v3 = vpack.c.bf16 %v7176_v1, %v7173_v11  ;;  %v7415_v60 = vpack.c.bf16 %v7385_v2, %v7382_v16  ;;  %v13188_v4 = vpop.f32.mrb[255].mxu0  ;;  %v13232_v5 = vpop.f32.mrb[63].mxu1  ;;  %v14551_v11 = vld [vmem:[%s18124_s21 + $0x134] sm:$0xff]   ;;  %v14552_v16 = vld [vmem:[%s18124_s21 + $0x13c] sm:$0xff]  }
0x1dbf   :  { %v14555_v1 = vld [vmem:[%s18124_s21 + $0x154] sm:$0xff]   ;;  %v14556_v2 = vld [vmem:[%s18124_s21 + $0x15c] sm:$0xff]  }
0x1dc0   :  { %13252 = vmatpush3.bf16.msra.mxu1 %v7415_v60  ;;  %13366 = vmatpush3.bf16.msra.mxu0 %v16996_v3  ;;  %v14558_v60 = vld [vmem:[%s18124_s21 + $0x16c] sm:$0xff]   ;;  %v14559_v4 = vld [vmem:[%s18124_s21 + $0x174] sm:$0xff]   ;;  %v14560_v5 = vld [vmem:[%s18124_s21 + $0x17c] sm:$0xff]  }
0x1dc1   :  { %13253 = vmatprep.subr.bf16.mxu1 %v14703_v54  ;;  %13367 = vmatprep.subr.bf16.mxu0 %v14703_v54 }
0x1dc3   :  { %v7181_v0 = vpop.f32.mrb[0].mxu0  ;;  %v7390_v38 = vpop.f32.mrb[64].mxu1 }
0x1dc4   :  { %v13191_v59 = vpop.f32.mrb[1].mxu0  ;;  %v13235_v27 = vpop.f32.mrb[65].mxu1 }
0x1dc5   :  { %v7184_v45 = vpop.f32.mrb[2].mxu0  ;;  %v7393_v6 = vpop.f32.mrb[66].mxu1  ;;  %v14566_v59 = vld [vmem:[%s18125_s22 + $0x80] sm:$0xff]   ;;  %v14569_v27 = vld [vmem:[%s18125_s22 + $0x88] sm:$0xff]  }
0x1dc6   :  { %v7207_v7 = vpack.c.bf16 %v7184_v45, %v7181_v0  ;;  %v7416_v26 = vpack.c.bf16 %v7393_v6, %v7390_v38  ;;  %v13192_v33 = vpop.f32.mrb[3].mxu0  ;;  %v13236_v9 = vpop.f32.mrb[67].mxu1  ;;  %v14561_v0 = vld [vmem:[%s18124_s21 + $0x184] ss:$0 sps:$4 sm:$0xff]   ;;  %v14562_v38 = vld [vmem:[%s18124_s21 + $0x50] sm:$0xff]   ;;  %v14563_v45 = vld [vmem:[%s18124_s21 + $0x58] sm:$0xff]  }
0x1dc7   :  { %v14572_v6 = vld [vmem:[%s18125_s22 + $0x90] sm:$0xff]   ;;  %v14564_v9 = vld [vmem:[%s18124_s21 + $0x60] sm:$0xff]  }
0x1dc8   :  { %13254 = vmatpush3.bf16.msra.mxu1 %v7416_v26  ;;  %13368 = vmatpush3.bf16.msra.mxu0 %v7207_v7 }
0x1dc9   :  { %13255 = vmatprep.subr.bf16.mxu1 %v14703_v54  ;;  %13369 = vmatprep.subr.bf16.mxu0 %v14703_v54 }
0x1dcb   :  { %v7189_v41 = vpop.f32.mrb[4].mxu0  ;;  %v7398_v12 = vpop.f32.mrb[68].mxu1 }
0x1dcc   :  { %v13195_v37 = vpop.f32.mrb[5].mxu0  ;;  %v13239_v15 = vpop.f32.mrb[69].mxu1 }
0x1dcd   :  { %v7192_v51 = vpop.f32.mrb[6].mxu0  ;;  %v7401_v17 = vpop.f32.mrb[70].mxu1  ;;  %v14581_v15 = vld [vmem:[%s18125_s22 + $0xa8] sm:$0xff]  }
0x1dce   :  { %v7208_v22 = vpack.c.bf16 %v7192_v51, %v7189_v41  ;;  %v7417_v14 = vpack.c.bf16 %v7401_v17, %v7398_v12  ;;  %v13196_v21 = vpop.f32.mrb[7].mxu0  ;;  %v13240_v55 = vpop.f32.mrb[71].mxu1  ;;  %v14578_v12 = vld [vmem:[%s18125_s22 + $0xa0] sm:$0xff]  }
0x1dcf   :  { %v14583_v21 = vld [vmem:[%s18125_s22 + $0xb0] sm:$0xff]  }
0x1dd0   :  { %13256 = vmatpush3.bf16.msra.mxu1 %v7417_v14  ;;  %13370 = vmatpush3.bf16.msra.mxu0 %v7208_v22 }
0x1dd1   :  { %13257 = vmatprep.subr.bf16.mxu1 %v14703_v54  ;;  %13371 = vmatprep.subr.bf16.mxu0 %v14703_v54 }
0x1dd3   :  { %v7197_v30 = vpop.f32.mrb[8].mxu0  ;;  %v7406_v35 = vpop.f32.mrb[72].mxu1 }
0x1dd4   :  { %v7209_v13 = vpack.c.bf16 %v7197_v30, %v7197_v30  ;;  %v7418_v24 = vpack.c.bf16 %v7406_v35, %v7406_v35  ;;  %v13199_v25 = vpop.f32.mrb[9].mxu0  ;;  %v13243_v29 = vpop.f32.mrb[73].mxu1  ;;  %v14584_v30 = vld [vmem:[%s18125_s22 + $0xb8] sm:$0xff]  }
0x1dd5   :  { %v7200_v31 = vpop.f32.mrb[10].mxu0  ;;  %v7409_v32 = vpop.f32.mrb[74].mxu1 }
0x1dd6   :  { %v8102_v34 = vsel %vm3394_vm5, %v7209_v13, 0  ;;  %v7669_v36 = vsel %vm3394_vm5, %v7418_v24, 0  ;;  %v13200_v39 = vpop.f32.mrb[11].mxu0  ;;  %v13244_v42 = vpop.f32.mrb[75].mxu1  ;;  %v14567_v24 = vld [vmem:[%s18124_s21 + $0x70] sm:$0xff]  }
0x1dd7   :  { %13258 = vmatpush3.bf16.msra.mxu1 %v7669_v36  ;;  %13372 = vmatpush3.bf16.msra.mxu0 %v8102_v34 }
0x1dd8   :  { %13789 = vmatprep.subr.bf16.mxu1 %v14703_v54  ;;  %13517 = vmatprep.subr.bf16.mxu0 %v14703_v54 }
0x1dda   :  { %13260 = vmatmul.mubr.msk.bf16.vlgmr.msra.gmra.mrb[76].mxu1 %vm7592_vm8, %v14537_v43 }
0x1ddb   :  { %13796 = vmatpush3.bf16.msra.mxu1 %v16981_v48  ;;  %13263 = vmatprep.mubr.msk.bf16.mxu1 %vm14704_vm0, %v14703_v54  ;;  %v14539_v48 = vld [vmem:[%s18124_s21 + $0xd4] sm:$0xff]  }
0x1ddc   :  { %13790 = vmatprep.subr.bf16.mxu1 %v14703_v54 }
0x1ddf   :  { %13797 = vmatpush3.bf16.msra.mxu1 %v16986_v40  ;;  %v14540_v40 = vld [vmem:[%s18124_s21 + $0xdc] sm:$0xff]  }
0x1de0   :  { %13791 = vmatprep.subr.bf16.mxu1 %v14703_v54 }
0x1de2   :  { %13264 = vmatmul.mubr.msk.bf16.gmra.mrb[80].mxu1 %vm7592_vm8, %v14538_v44  ;;  %v14570_v44 = vld [vmem:[%s18124_s21 + $0x80] sm:$0xff]  }
0x1de3   :  { %13798 = vmatpush3.bf16.msra.mxu1 %v16991_v56  ;;  %13267 = vmatprep.mubr.msk.bf16.mxu1 %vm14704_vm0, %v14703_v54  ;;  %v14547_v56 = vld [vmem:[%s18124_s21 + $0x114] sm:$0xff]  }
0x1de4   :  { %13792 = vmatprep.subr.bf16.mxu1 %v14703_v54 }
0x1de7   :  { %13799 = vmatpush3.bf16.msra.mxu1 %v16996_v3  ;;  %v14557_v3 = vld [vmem:[%s18124_s21 + $0x164] sm:$0xff]  }
0x1de8   :  { %13793 = vmatprep.subr.bf16.mxu1 %v14703_v54 }
0x1dea   :  { %13268 = vmatmul.mubr.msk.bf16.gmra.mrb[84].mxu1 %vm7592_vm8, %v14539_v48 }
0x1deb   :  { %13800 = vmatpush3.bf16.msra.mxu1 %v7207_v7  ;;  %13271 = vmatprep.mubr.msk.bf16.mxu1 %vm14704_vm0, %v14703_v54  ;;  %v14575_v7 = vld [vmem:[%s18125_s22 + $0x98] sm:$0xff]  }
0x1dec   :  { %13794 = vmatprep.subr.bf16.mxu1 %v14703_v54 }
0x1def   :  { %13801 = vmatpush3.bf16.msra.mxu1 %v7208_v22  ;;  %v14565_v22 = vld [vmem:[%s18124_s21 + $0x68] sm:$0xff]  }
0x1df0   :  { %13795 = vmatprep.subr.bf16.mxu1 %v14703_v54 }
0x1df2   :  { %13272 = vmatmul.mubr.msk.bf16.gmra.mrb[88].mxu1 %vm7592_vm8, %v14540_v40 }
0x1df3   :  { %13802 = vmatpush3.bf16.msra.mxu1 %v8102_v34  ;;  %13275 = vmatprep.mubr.msk.bf16.mxu1 %vm14704_vm0, %v14703_v54  ;;  %v14568_v34 = vld [vmem:[%s18124_s21 + $0x78] sm:$0xff]  }
0x1df4   :  { %13473 = vmatprep.subr.bf16.mxu1 %v14703_v54 }
0x1dfa   :  { %13276 = vmatmul.mubr.msk.bf16.gmra.mrb[92].mxu1 %vm7592_vm8, %v14541_v47 }
0x1dfb   :  { %13279 = vmatprep.mubr.msk.bf16.mxu1 %vm14704_vm0, %v14703_v54 }
0x1e02   :  { %13280 = vmatmul.mubr.msk.bf16.gmra.mrb[96].mxu1 %vm7592_vm8, %v14542_v49 }
0x1e03   :  { %13283 = vmatprep.mubr.msk.bf16.mxu1 %vm14704_vm0, %v14703_v54 }
0x1e0a   :  { %13284 = vmatmul.mubr.msk.bf16.gmra.mrb[100].mxu1 %vm7592_vm8, %v14543_v50  ;;  %v14571_v50 = vld [vmem:[%s18124_s21 + $0x88] sm:$0xff]  }
0x1e0b   :  { %13287 = vmatprep.mubr.msk.bf16.mxu1 %vm14704_vm0, %v14703_v54 }
0x1e12   :  { %13288 = vmatmul.mubr.msk.bf16.gmra.mrb[104].mxu1 %vm7592_vm8, %v14544_v23 }
0x1e13   :  { %13291 = vmatprep.mubr.msk.bf16.mxu1 %vm14704_vm0, %v14703_v54 }
0x1e1a   :  { %13292 = vmatmul.mubr.msk.bf16.gmra.mrb[108].mxu1 %vm7592_vm8, %v14545_v52 }
0x1e1b   :  { %13295 = vmatprep.mubr.msk.bf16.mxu1 %vm14704_vm0, %v14703_v54 }
0x1e22   :  { %13296 = vmatmul.mubr.msk.bf16.gmra.mrb[112].mxu1 %vm7592_vm8, %v14546_v53 }
0x1e23   :  { %13299 = vmatprep.mubr.msk.bf16.mxu1 %vm14704_vm0, %v14703_v54 }
0x1e2a   :  { %13300 = vmatmul.mubr.msk.bf16.gmra.mrb[116].mxu1 %vm7592_vm8, %v14547_v56 }
0x1e2b   :  { %13303 = vmatprep.mubr.msk.bf16.mxu1 %vm14704_vm0, %v14703_v54 }
0x1e32   :  { %13304 = vmatmul.mubr.msk.bf16.gmra.mrb[120].mxu1 %vm7592_vm8, %v14548_v8  ;;  %v14573_v8 = vld [vmem:[%s18124_s21 + $0x90] sm:$0xff]  }
0x1e33   :  { %13307 = vmatprep.mubr.msk.bf16.mxu1 %vm14704_vm0, %v14703_v54 }
0x1e3a   :  { %13308 = vmatmul.mubr.msk.bf16.gmra.mrb[124].mxu1 %vm7592_vm8, %v14549_v57 }
0x1e3b   :  { %13311 = vmatprep.mubr.msk.bf16.mxu1 %vm14704_vm0, %v14703_v54 }
0x1e42   :  { %13312 = vmatmul.mubr.msk.bf16.gmra.mrb[128].mxu1 %vm7592_vm8, %v14550_v58 }
0x1e43   :  { %13315 = vmatprep.mubr.msk.bf16.mxu1 %vm14704_vm0, %v14703_v54 }
0x1e4a   :  { %13316 = vmatmul.mubr.msk.bf16.gmra.mrb[132].mxu1 %vm7592_vm8, %v14551_v11 }
0x1e4b   :  { %13319 = vmatprep.mubr.msk.bf16.mxu1 %vm14704_vm0, %v14703_v54 }
0x1e52   :  { %13320 = vmatmul.mubr.msk.bf16.gmra.mrb[136].mxu1 %vm7592_vm8, %v14552_v16 }
0x1e53   :  { %13323 = vmatprep.mubr.msk.bf16.mxu1 %vm14704_vm0, %v14703_v54 }
0x1e5a   :  { %13324 = vmatmul.mubr.msk.bf16.gmra.mrb[140].mxu1 %vm7592_vm8, %v14553_v62  ;;  %v14574_v62 = vld [vmem:[%s18124_s21 + $0x98] sm:$0xff]  }
0x1e5b   :  { %13327 = vmatprep.mubr.msk.bf16.mxu1 %vm14704_vm0, %v14703_v54 }
0x1e62   :  { %13328 = vmatmul.mubr.msk.bf16.gmra.mrb[144].mxu1 %vm7592_vm8, %v14554_v20 }
0x1e63   :  { %13331 = vmatprep.mubr.msk.bf16.mxu1 %vm14704_vm0, %v14703_v54 }
0x1e6a   :  { %13332 = vmatmul.mubr.msk.bf16.gmra.mrb[148].mxu1 %vm7592_vm8, %v14555_v1 }
0x1e6b   :  { %13335 = vmatprep.mubr.msk.bf16.mxu1 %vm14704_vm0, %v14703_v54 }
0x1e72   :  { %13336 = vmatmul.mubr.msk.bf16.gmra.mrb[152].mxu1 %vm7592_vm8, %v14556_v2 }
0x1e73   :  { %13339 = vmatprep.mubr.msk.bf16.mxu1 %vm14704_vm0, %v14703_v54 }
0x1e7a   :  { %13340 = vmatmul.mubr.msk.bf16.gmra.mrb[156].mxu1 %vm7592_vm8, %v14557_v3 }
0x1e7b   :  { %13343 = vmatprep.mubr.msk.bf16.mxu1 %vm14704_vm0, %v14703_v54 }
0x1e82   :  { %13344 = vmatmul.mubr.msk.bf16.gmra.mrb[160].mxu1 %vm7592_vm8, %v14558_v60  ;;  %v14576_v60 = vld [vmem:[%s18124_s21 + $0xa0] sm:$0xff]  }
0x1e83   :  { %13347 = vmatprep.mubr.msk.bf16.mxu1 %vm14704_vm0, %v14703_v54 }
0x1e8a   :  { %13348 = vmatmul.mubr.msk.bf16.gmra.mrb[164].mxu1 %vm7592_vm8, %v14559_v4 }
0x1e8b   :  { %13351 = vmatprep.mubr.msk.bf16.mxu1 %vm14704_vm0, %v14703_v54 }
0x1e92   :  { %13352 = vmatmul.mubr.msk.bf16.gmra.mrb[168].mxu1 %vm7592_vm8, %v14560_v5 }
0x1e93   :  { %13355 = vmatprep.mubr.msk.bf16.mxu1 %vm14704_vm0, %v14703_v54 }
0x1e9a   :  { %13356 = vmatmul.mubr.msk.bf16.gmra.mrb[172].mxu1 %vm7592_vm8, %v14561_v0 }
0x1e9b   :  { %13413 = vmatprep.mubr.msk.bf16.mxu1 %vm14704_vm0, %v14703_v54 }
0x1ea2   :  { %13414 = vmatmul.mubr.msk.bf16.vlgmr.msra.gmra.mrb[116].mxu1 %vm7592_vm8, %v14562_v38 }
0x1ea3   :  { %13417 = vmatprep.mubr.msk.bf16.mxu1 %vm14704_vm0, %v14703_v54  ;;  %13474 = vmatpush3.bf16.msra.mxu1 %v14566_v59  ;;  %v14577_v59 = vld [vmem:[%s18124_s21 + $0xa8] sm:$0xff]  }
0x1ea4   :  { %13475 = vmatprep.subr.bf16.mxu1 %v14703_v54 }
0x1ea7   :  { %13476 = vmatpush3.bf16.msra.mxu1 %v14569_v27 }
0x1ea8   :  { %13477 = vmatprep.subr.bf16.mxu1 %v14703_v54 }
0x1eaa   :  { %13418 = vmatmul.mubr.msk.bf16.gmra.mrb[120].mxu1 %vm7592_vm8, %v14563_v45 }
0x1eab   :  { %13421 = vmatprep.mubr.msk.bf16.mxu1 %vm14704_vm0, %v14703_v54  ;;  %13478 = vmatpush3.bf16.msra.mxu1 %v14572_v6  ;;  %v14579_v6 = vld [vmem:[%s18124_s21 + $0xb0] sm:$0xff]  }
0x1eac   :  { %13479 = vmatprep.subr.bf16.mxu1 %v14703_v54 }
0x1ead   :  { %v17197_v26 = vpop.f32.mrb[76].mxu1 }
0x1eae   :  { %v13261_v33 = vpop.f32.mrb[77].mxu1 }
0x1eaf   :  { %v17202_v41 = vpop.f32.mrb[78].mxu1  ;;  %13480 = vmatpush3.bf16.msra.mxu1 %v14575_v7  ;;  %v14580_v7 = vld [vmem:[%s18124_s21 + $0xb8] sm:$0xff]   ;;  %v14582_v33 = vld [vmem:[%s18124_s21 + $0xc0] ss:$0 sps:$4 sm:$0xff]  }
0x1eb0   :  { %v13262_v37 = vpop.f32.mrb[79].mxu1  ;;  %13481 = vmatprep.subr.bf16.mxu1 %v14703_v54 }
0x1eb1   :  { %v14587_v37 = vld [vmem:[%s18125_s22 + $0xd0] sm:$0xff]  }
0x1eb2   :  { %13422 = vmatmul.mubr.msk.bf16.gmra.mrb[124].mxu1 %vm7592_vm8, %v14564_v9  ;;  %v14585_v9 = vld [vmem:[%s18125_s22 + $0xc0] sm:$0xff]  }
0x1eb3   :  { %13425 = vmatprep.mubr.msk.bf16.mxu1 %vm14704_vm0, %v14703_v54  ;;  %13482 = vmatpush3.bf16.msra.mxu1 %v14578_v12  ;;  %v14586_v12 = vld [vmem:[%s18125_s22 + $0xc8] sm:$0xff]  }
0x1eb4   :  { %13483 = vmatprep.subr.bf16.mxu1 %v14703_v54 }
0x1eb5   :  { %v17215_v51 = vpop.f32.mrb[80].mxu1 }
0x1eb6   :  { %v13265_v17 = vpop.f32.mrb[81].mxu1 }
0x1eb7   :  { %v17220_v14 = vpop.f32.mrb[82].mxu1  ;;  %13484 = vmatpush3.bf16.msra.mxu1 %v14581_v15  ;;  %v14588_v15 = vld [vmem:[%s18125_s22 + $0xd8] sm:$0xff]   ;;  %v14589_v17 = vld [vmem:[%s18125_s22 + $0xe0] sm:$0xff]  }
0x1eb8   :  { %v13266_v55 = vpop.f32.mrb[83].mxu1  ;;  %13485 = vmatprep.subr.bf16.mxu1 %v14703_v54 }
0x1eb9   :  { %v14592_v55 = vld [vmem:[%s18125_s22 + $0xf8] sm:$0xff]  }
0x1eba   :  { %13426 = vmatmul.mubr.msk.bf16.gmra.mrb[128].mxu1 %vm7592_vm8, %v14565_v22  ;;  %v14590_v22 = vld [vmem:[%s18125_s22 + $0xe8] sm:$0xff]  }
0x1ebb   :  { %13429 = vmatprep.mubr.msk.bf16.mxu1 %vm14704_vm0, %v14703_v54  ;;  %13486 = vmatpush3.bf16.msra.mxu1 %v14583_v21  ;;  %v14591_v21 = vld [vmem:[%s18125_s22 + $0xf0] sm:$0xff]  }
0x1ebc   :  { %13487 = vmatprep.subr.bf16.mxu1 %v14703_v54 }
0x1ebd   :  { %v17233_v35 = vpop.f32.mrb[84].mxu1 }
0x1ebe   :  { %v13269_v13 = vpop.f32.mrb[85].mxu1 }
0x1ebf   :  { %v17238_v25 = vpop.f32.mrb[86].mxu1  ;;  %13488 = vmatpush3.bf16.msra.mxu1 %v14584_v30  ;;  %v14593_v30 = vld [vmem:[%s18124_s21] sm:$0xff]   ;;  %v14594_v13 = vld [vmem:[%s18124_s21 + $0x8] sm:$0xff]  }
0x1ec0   :  { %v13270_v29 = vpop.f32.mrb[87].mxu1  ;;  %13631 = vmatprep.subr.bf16.mxu1 %v14703_v54  ;;  %13374 = vmatmul.mubr.msk.bf16.vlgmr.msra.gmra.mrb[12].mxu0 %vm7592_vm8, %v14593_v30 }
0x1ec1   :  { %13377 = vmatprep.mubr.msk.bf16.mxu0 %vm14704_vm0, %v14703_v54 }
0x1ec2   :  { %13430 = vmatmul.mubr.msk.bf16.gmra.mrb[132].mxu1 %vm7592_vm8, %v14567_v24 }
0x1ec3   :  { %13433 = vmatprep.mubr.msk.bf16.mxu1 %vm14704_vm0, %v14703_v54 }
0x1ec5   :  { %v17244_v31 = vpop.f32.mrb[88].mxu1 }
0x1ec6   :  { %v13273_v32 = vpop.f32.mrb[89].mxu1 }
0x1ec7   :  { %v17249_v36 = vpop.f32.mrb[90].mxu1 }
0x1ec8   :  { %v13274_v39 = vpop.f32.mrb[91].mxu1  ;;  %13378 = vmatmul.mubr.msk.bf16.gmra.mrb[16].mxu0 %vm7592_vm8, %v14594_v13 }
0x1ec9   :  { %13381 = vmatprep.mubr.msk.bf16.mxu0 %vm14704_vm0, %v14703_v54 }
0x1eca   :  { %13434 = vmatmul.mubr.msk.bf16.gmra.mrb[136].mxu1 %vm7592_vm8, %v14568_v34 }
0x1ecb   :  { %13437 = vmatprep.mubr.msk.bf16.mxu1 %vm14704_vm0, %v14703_v54 }
0x1ecd   :  { %v17254_v42 = vpop.f32.mrb[92].mxu1 }
0x1ece   :  { %v13277_v43 = vpop.f32.mrb[93].mxu1 }
0x1ecf   :  { %v17259_v48 = vpop.f32.mrb[94].mxu1 }
0x1ed0   :  { %v13278_v40 = vpop.f32.mrb[95].mxu1 }
0x1ed2   :  { %13438 = vmatmul.mubr.msk.bf16.gmra.mrb[140].mxu1 %vm7592_vm8, %v14570_v44 }
0x1ed3   :  { %13441 = vmatprep.mubr.msk.bf16.mxu1 %vm14704_vm0, %v14703_v54 }
0x1ed5   :  { %v17264_v47 = vpop.f32.mrb[96].mxu1 }
0x1ed6   :  { %v13281_v49 = vpop.f32.mrb[97].mxu1 }
0x1ed7   :  { %v17269_v23 = vpop.f32.mrb[98].mxu1 }
0x1ed8   :  { %v13282_v52 = vpop.f32.mrb[99].mxu1 }
0x1eda   :  { %13442 = vmatmul.mubr.msk.bf16.gmra.mrb[144].mxu1 %vm7592_vm8, %v14571_v50 }
0x1edb   :  { %13445 = vmatprep.mubr.msk.bf16.mxu1 %vm14704_vm0, %v14703_v54 }
0x1edd   :  { %v17274_v53 = vpop.f32.mrb[100].mxu1 }
0x1ede   :  { %v13285_v56 = vpop.f32.mrb[101].mxu1 }
0x1edf   :  { %v17279_v57 = vpop.f32.mrb[102].mxu1  ;;  %v14600_v56 = vld [vmem:[%s18124_s21 + $0x38] sm:$0xff]  }
0x1ee0   :  { %v13286_v58 = vpop.f32.mrb[103].mxu1 }
0x1ee2   :  { %13446 = vmatmul.mubr.msk.bf16.gmra.mrb[148].mxu1 %vm7592_vm8, %v14573_v8 }
0x1ee3   :  { %13449 = vmatprep.mubr.msk.bf16.mxu1 %vm14704_vm0, %v14703_v54 }
0x1ee5   :  { %v17284_v11 = vpop.f32.mrb[104].mxu1 }
0x1ee6   :  { %v13289_v16 = vpop.f32.mrb[105].mxu1 }
0x1ee7   :  { %v17289_v20 = vpop.f32.mrb[106].mxu1 }
0x1ee8   :  { %v13290_v1 = vpop.f32.mrb[107].mxu1 }
0x1eea   :  { %13450 = vmatmul.mubr.msk.bf16.gmra.mrb[152].mxu1 %vm7592_vm8, %v14574_v62  ;;  %v14601_v62 = vld [vmem:[%s18124_s21 + $0x40] sm:$0xff]  }
0x1eeb   :  { %13453 = vmatprep.mubr.msk.bf16.mxu1 %vm14704_vm0, %v14703_v54 }
0x1eed   :  { %v17294_v2 = vpop.f32.mrb[108].mxu1 }
0x1eee   :  { %v13293_v3 = vpop.f32.mrb[109].mxu1 }
0x1eef   :  { %v17299_v4 = vpop.f32.mrb[110].mxu1 }
0x1ef0   :  { %v13294_v5 = vpop.f32.mrb[111].mxu1 }
0x1ef2   :  { %13454 = vmatmul.mubr.msk.bf16.gmra.mrb[156].mxu1 %vm7592_vm8, %v14576_v60 }
0x1ef3   :  { %13457 = vmatprep.mubr.msk.bf16.mxu1 %vm14704_vm0, %v14703_v54 }
0x1ef5   :  { %v17304_v0 = vpop.f32.mrb[112].mxu1 }
0x1ef6   :  { %v13297_v38 = vpop.f32.mrb[113].mxu1 }
0x1ef7   :  { %v17309_v27 = vpop.f32.mrb[114].mxu1  ;;  %v14602_v38 = vld [vmem:[%s18124_s21 + $0x48] sm:$0xff]  }
0x1ef8   :  { %v13298_v45 = vpop.f32.mrb[115].mxu1 }
0x1efa   :  { %13458 = vmatmul.mubr.msk.bf16.gmra.mrb[160].mxu1 %vm7592_vm8, %v14577_v59 }
0x1efb   :  { %13461 = vmatprep.mubr.msk.bf16.mxu1 %vm14704_vm0, %v14703_v54 }
0x1f02   :  { %13462 = vmatmul.mubr.msk.bf16.gmra.mrb[164].mxu1 %vm7592_vm8, %v14579_v6 }
0x1f03   :  { %13465 = vmatprep.mubr.msk.bf16.mxu1 %vm14704_vm0, %v14703_v54 }
0x1f0a   :  { %13466 = vmatmul.mubr.msk.bf16.gmra.mrb[168].mxu1 %vm7592_vm8, %v14580_v7 }
0x1f0b   :  { %13469 = vmatprep.mubr.msk.bf16.mxu1 %vm14704_vm0, %v14703_v54 }
0x1f12   :  { %13470 = vmatmul.mubr.msk.bf16.gmra.mrb[172].mxu1 %vm7592_vm8, %v14582_v33 }
0x1f13   :  { %13489 = vmatprep.mubr.msk.bf16.mxu1 %vm14704_vm0, %v14703_v54 }
0x1f1a   :  { %13490 = vmatmul.mubr.bf16.vlgmr.msra.gmra.mrb[176].mxu1 %v16907_v63 }
0x1f1b   :  { %13493 = vmatprep.mubr.msk.bf16.mxu1 %vm14704_vm0, %v14703_v54  ;;  %13632 = vmatpush3.bf16.msra.mxu1 %v14585_v9 }
0x1f1c   :  { %13633 = vmatprep.subr.bf16.mxu1 %v14703_v54 }
0x1f1f   :  { %13634 = vmatpush3.bf16.msra.mxu1 %v14586_v12 }
0x1f20   :  { %13635 = vmatprep.subr.bf16.mxu1 %v14703_v54 }
0x1f22   :  { %13494 = vmatmul.mubr.bf16.gmra.mrb[180].mxu1 %v16917_v28 }
0x1f23   :  { %13497 = vmatprep.mubr.msk.bf16.mxu1 %vm14704_vm0, %v14703_v54  ;;  %13636 = vmatpush3.bf16.msra.mxu1 %v14587_v37 }
0x1f24   :  { %13637 = vmatprep.subr.bf16.mxu1 %v14703_v54 }
0x1f27   :  { %13638 = vmatpush3.bf16.msra.mxu1 %v14588_v15 }
0x1f28   :  { %13639 = vmatprep.subr.bf16.mxu1 %v14703_v54 }
0x1f2a   :  { %13498 = vmatmul.mubr.bf16.gmra.mrb[184].mxu1 %v16927_v46 }
0x1f2b   :  { %13501 = vmatprep.mubr.msk.bf16.mxu1 %vm14704_vm0, %v14703_v54  ;;  %13640 = vmatpush3.bf16.msra.mxu1 %v14589_v17 }
0x1f2c   :  { %13641 = vmatprep.subr.bf16.mxu1 %v14703_v54 }
0x1f2f   :  { %13642 = vmatpush3.bf16.msra.mxu1 %v14590_v22 }
0x1f30   :  { %13643 = vmatprep.subr.bf16.mxu1 %v14703_v54 }
0x1f32   :  { %13502 = vmatmul.mubr.bf16.gmra.mrb[188].mxu1 %v16939_v61 }
0x1f33   :  { %13505 = vmatprep.mubr.msk.bf16.mxu1 %vm14704_vm0, %v14703_v54  ;;  %13644 = vmatpush3.bf16.msra.mxu1 %v14591_v21 }
0x1f34   :  { %13645 = vmatprep.subr.bf16.mxu1 %v14703_v54 }
0x1f37   :  { %13646 = vmatpush3.bf16.msra.mxu1 %v14592_v55 }
0x1f3a   :  { %13506 = vmatmul.mubr.bf16.gmra.mrb[192].mxu1 %v16951_v19 }
0x1f3b   :  { %13509 = vmatprep.mubr.msk.bf16.mxu1 %vm14704_vm0, %v14703_v54 }
0x1f42   :  { %13510 = vmatmul.mubr.bf16.gmra.mrb[196].mxu1 %v16963_v10 }
0x1f43   :  { %13513 = vmatprep.mubr.msk.bf16.mxu1 %vm14704_vm0, %v14703_v54 }
0x1f4a   :  { %13514 = vmatmul.mubr.bf16.gmra.mrb[200].mxu1 %v16973_v18 }
0x1f4b   :  { %13647 = vmatprep.mubr.msk.bf16.mxu1 %vm14704_vm0, %v14703_v54 }
0x1f52   :  { %13648 = vmatmul.mubr.bf16.vlgmr.msra.gmra.mrb[204].mxu1 %v16907_v63  ;;  %v14595_v63 = vld [vmem:[%s18124_s21 + $0x10] sm:$0xff]  }
0x1f53   :  { %13651 = vmatprep.mubr.msk.bf16.mxu1 %vm14704_vm0, %v14703_v54  ;;  %13382 = vmatmul.mubr.msk.bf16.gmra.mrb[20].mxu0 %vm7592_vm8, %v14595_v63 }
0x1f54   :  { %13385 = vmatprep.mubr.msk.bf16.mxu0 %vm14704_vm0, %v14703_v54 }
0x1f5a   :  { %13652 = vmatmul.mubr.bf16.gmra.mrb[208].mxu1 %v16917_v28  ;;  %v14596_v28 = vld [vmem:[%s18124_s21 + $0x18] sm:$0xff]  }
0x1f5b   :  { %13655 = vmatprep.mubr.msk.bf16.mxu1 %vm14704_vm0, %v14703_v54  ;;  %13386 = vmatmul.mubr.msk.bf16.gmra.mrb[24].mxu0 %vm7592_vm8, %v14596_v28 }
0x1f5c   :  { %13389 = vmatprep.mubr.msk.bf16.mxu0 %vm14704_vm0, %v14703_v54 }
0x1f62   :  { %13656 = vmatmul.mubr.bf16.gmra.mrb[212].mxu1 %v16927_v46  ;;  %v14597_v46 = vld [vmem:[%s18124_s21 + $0x20] sm:$0xff]  }
0x1f63   :  { %13659 = vmatprep.mubr.msk.bf16.mxu1 %vm14704_vm0, %v14703_v54  ;;  %13390 = vmatmul.mubr.msk.bf16.gmra.mrb[28].mxu0 %vm7592_vm8, %v14597_v46 }
0x1f64   :  { %13393 = vmatprep.mubr.msk.bf16.mxu0 %vm14704_vm0, %v14703_v54 }
0x1f6a   :  { %13660 = vmatmul.mubr.bf16.gmra.mrb[216].mxu1 %v16939_v61 }
0x1f6b   :  { %13663 = vmatprep.mubr.msk.bf16.mxu1 %vm14704_vm0, %v14703_v54 }
0x1f72   :  { %13664 = vmatmul.mubr.bf16.gmra.mrb[220].mxu1 %v16951_v19  ;;  %v14598_v19 = vld [vmem:[%s18124_s21 + $0x28] sm:$0xff]  }
0x1f73   :  { %13667 = vmatprep.mubr.msk.bf16.mxu1 %vm14704_vm0, %v14703_v54  ;;  %13394 = vmatmul.mubr.msk.bf16.gmra.mrb[32].mxu0 %vm7592_vm8, %v14598_v19 }
0x1f74   :  { %13397 = vmatprep.mubr.msk.bf16.mxu0 %vm14704_vm0, %v14703_v54 }
0x1f75   :  { %v17427_v61 = vpop.f32.mrb[116].mxu1 }
0x1f76   :  { %v13415_v24 = vpop.f32.mrb[117].mxu1 }
0x1f77   :  { %v17431_v29 = vpop.f32.mrb[118].mxu1 }
0x1f78   :  { %v13416_v32 = vpop.f32.mrb[119].mxu1 }
0x1f7a   :  { %13668 = vmatmul.mubr.bf16.gmra.mrb[224].mxu1 %v16963_v10  ;;  %v14599_v10 = vld [vmem:[%s18124_s21 + $0x30] sm:$0xff]  }
0x1f7b   :  { %13671 = vmatprep.mubr.msk.bf16.mxu1 %vm14704_vm0, %v14703_v54  ;;  %13398 = vmatmul.mubr.msk.bf16.gmra.mrb[36].mxu0 %vm7592_vm8, %v14599_v10 }
0x1f7c   :  { %13401 = vmatprep.mubr.msk.bf16.mxu0 %vm14704_vm0, %v14703_v54 }
0x1f7d   :  { %v17440_v34 = vpop.f32.mrb[120].mxu1 }
0x1f7e   :  { %v13419_v39 = vpop.f32.mrb[121].mxu1 }
0x1f7f   :  { %v17444_v43 = vpop.f32.mrb[122].mxu1 }
0x1f80   :  { %v13420_v44 = vpop.f32.mrb[123].mxu1 }
0x1f82   :  { %13672 = vmatmul.mubr.bf16.gmra.mrb[228].mxu1 %v16973_v18 }
0x1f83   :  { %13402 = vmatmul.mubr.msk.bf16.gmra.mrb[40].mxu0 %vm7592_vm8, %v14600_v56 }
0x1f84   :  { %13405 = vmatprep.mubr.msk.bf16.mxu0 %vm14704_vm0, %v14703_v54 }
0x1f85   :  { %v17451_v40 = vpop.f32.mrb[124].mxu1 }
0x1f86   :  { %v13423_v49 = vpop.f32.mrb[125].mxu1 }
0x1f87   :  { %v17455_v50 = vpop.f32.mrb[126].mxu1 }
0x1f88   :  { %v13424_v52 = vpop.f32.mrb[127].mxu1 }
0x1f8b   :  { %13406 = vmatmul.mubr.msk.bf16.gmra.mrb[44].mxu0 %vm7592_vm8, %v14601_v62 }
0x1f8c   :  { %13409 = vmatprep.mubr.msk.bf16.mxu0 %vm14704_vm0, %v14703_v54 }
0x1f8d   :  { %v17461_v18 = vpop.f32.mrb[128].mxu1 }
0x1f8e   :  { %v13427_v8 = vpop.f32.mrb[129].mxu1 }
0x1f8f   :  { %v17465_v58 = vpop.f32.mrb[130].mxu1 }
0x1f90   :  { %v13428_v16 = vpop.f32.mrb[131].mxu1 }
0x1f93   :  { %13410 = vmatmul.mubr.msk.bf16.gmra.mrb[48].mxu0 %vm7592_vm8, %v14602_v38 }
0x1f94   :  { %13531 = vmatprep.mubr.msk.bf16.mxu0 %vm14704_vm0, %v14703_v54 }
0x1f95   :  { %v17471_v1 = vpop.f32.mrb[132].mxu1 }
0x1f96   :  { %v13431_v3 = vpop.f32.mrb[133].mxu1 }
0x1f97   :  { %v17475_v60 = vpop.f32.mrb[134].mxu1 }
0x1f98   :  { %v13432_v5 = vpop.f32.mrb[135].mxu1 }
0x1f9d   :  { %v17481_v59 = vpop.f32.mrb[136].mxu1 }
0x1f9e   :  { %v13435_v45 = vpop.f32.mrb[137].mxu1 }
0x1f9f   :  { %v17485_v6 = vpop.f32.mrb[138].mxu1 }
0x1fa0   :  { %v13436_v7 = vpop.f32.mrb[139].mxu1 }
0x1fa5   :  { %v17487_v33 = vpop.f32.mrb[140].mxu1 }
0x1fa6   :  { %v13439_v9 = vpop.f32.mrb[141].mxu1 }
0x1fa7   :  { %v17489_v12 = vpop.f32.mrb[142].mxu1 }
0x1fa8   :  { %v13440_v37 = vpop.f32.mrb[143].mxu1 }
0x1fad   :  { %v17491_v15 = vpop.f32.mrb[144].mxu1 }
0x1fae   :  { %v13443_v17 = vpop.f32.mrb[145].mxu1 }
0x1faf   :  { %v17493_v22 = vpop.f32.mrb[146].mxu1 }
0x1fb0   :  { %v13444_v21 = vpop.f32.mrb[147].mxu1 }
0x1fb5   :  { %v17495_v55 = vpop.f32.mrb[148].mxu1 }
0x1fb6   :  { %v13447_v30 = vpop.f32.mrb[149].mxu1 }
0x1fb7   :  { %v17497_v13 = vpop.f32.mrb[150].mxu1 }
0x1fb8   :  { %v13448_v63 = vpop.f32.mrb[151].mxu1 }
0x1fbd   :  { %v17499_v28 = vpop.f32.mrb[152].mxu1 }
0x1fbe   :  { %v13451_v46 = vpop.f32.mrb[153].mxu1 }
0x1fbf   :  { %v17501_v24 = vpop.f32.mrb[154].mxu1 }
0x1fc0   :  { %v13452_v32 = vpop.f32.mrb[155].mxu1 }
0x1fc5   :  { %v17503_v19 = vpop.f32.mrb[156].mxu1 }
0x1fc6   :  { %v13455_v39 = vpop.f32.mrb[157].mxu1 }
0x1fc7   :  { %v17505_v44 = vpop.f32.mrb[158].mxu1 }
0x1fc8   :  { %v13456_v10 = vpop.f32.mrb[159].mxu1 }
0x1fcd   :  { %v17507_v49 = vpop.f32.mrb[160].mxu1 }
0x1fce   :  { %v13459_v52 = vpop.f32.mrb[161].mxu1 }
0x1fcf   :  { %v17509_v56 = vpop.f32.mrb[162].mxu1 }
0x1fd0   :  { %v13460_v8 = vpop.f32.mrb[163].mxu1 }
0x1fd5   :  { %v17511_v16 = vpop.f32.mrb[164].mxu1 }
0x1fd6   :  { %v13463_v62 = vpop.f32.mrb[165].mxu1 }
0x1fd7   :  { %v17513_v3 = vpop.f32.mrb[166].mxu1 }
0x1fd8   :  { %v13464_v5 = vpop.f32.mrb[167].mxu1 }
0x1fdd   :  { %v17515_v38 = vpop.f32.mrb[168].mxu1 }
0x1fde   :  { %v13467_v45 = vpop.f32.mrb[169].mxu1 }
0x1fdf   :  { %v17517_v7 = vpop.f32.mrb[170].mxu1 }
0x1fe0   :  { %v13468_v9 = vpop.f32.mrb[171].mxu1 }
0x1fe5   :  { %v17519_v37 = vpop.f32.mrb[172].mxu1 }
0x1fe6   :  { %18155 = vst [vmem:[#allocation8_spill] sm:$0xff] %v17519_v37  ;;  %v13471_v17 = vpop.f32.mrb[173].mxu1 }
0x1fe7   :  { %v8333_v21 = vpop.f32.mrb[174].mxu1 }
0x1fe8   :  { %v13472_v30 = vpop.f32.mrb[175].mxu1 }
0x1fed   :  { %v8435_v63 = vpop.f32.mrb[176].mxu1 }
0x1fee   :  { %v13491_v46 = vpop.f32.mrb[177].mxu1 }
0x1fef   :  { %v8438_v32 = vpop.f32.mrb[178].mxu1 }
0x1ff0   :  { %v8489_v39 = vpack.c.bf16 %v8438_v32, %v8435_v63  ;;  %v13492_v10 = vpop.f32.mrb[179].mxu1 }
0x1ff2   :  { %13518 = vmatpush3.bf16.msra.mxu0 %v8489_v39 }
0x1ff3   :  { %13519 = vmatprep.subr.bf16.mxu0 %v14703_v54 }
0x1ff5   :  { %v8443_v52 = vpop.f32.mrb[180].mxu1 }
0x1ff6   :  { %v13495_v8 = vpop.f32.mrb[181].mxu1 }
0x1ff7   :  { %v8446_v62 = vpop.f32.mrb[182].mxu1 }
0x1ff8   :  { %v8490_v5 = vpack.c.bf16 %v8446_v62, %v8443_v52  ;;  %v13496_v45 = vpop.f32.mrb[183].mxu1 }
0x1ffa   :  { %13520 = vmatpush3.bf16.msra.mxu0 %v8490_v5 }
0x1ffb   :  { %13521 = vmatprep.subr.bf16.mxu0 %v14703_v54 }
0x1ffd   :  { %v8451_v9 = vpop.f32.mrb[184].mxu1 }
0x1ffe   :  { %v13499_v17 = vpop.f32.mrb[185].mxu1 }
0x1fff   :  { %v8454_v21 = vpop.f32.mrb[186].mxu1 }
0x2000   :  { %v8491_v30 = vpack.c.bf16 %v8454_v21, %v8451_v9  ;;  %v13500_v37 = vpop.f32.mrb[187].mxu1 }
0x2002   :  { %13522 = vmatpush3.bf16.msra.mxu0 %v8491_v30 }
0x2003   :  { %13523 = vmatprep.subr.bf16.mxu0 %v14703_v54 }
0x2005   :  { %v8459_v63 = vpop.f32.mrb[188].mxu1 }
0x2006   :  { %v13503_v46 = vpop.f32.mrb[189].mxu1 }
0x2007   :  { %v8462_v32 = vpop.f32.mrb[190].mxu1 }
0x2008   :  { %v8492_v39 = vpack.c.bf16 %v8462_v32, %v8459_v63  ;;  %v13504_v10 = vpop.f32.mrb[191].mxu1 }
0x200a   :  { %13524 = vmatpush3.bf16.msra.mxu0 %v8492_v39 }
0x200b   :  { %13525 = vmatprep.subr.bf16.mxu0 %v14703_v54 }
0x200d   :  { %v8467_v52 = vpop.f32.mrb[192].mxu1 }
0x200e   :  { %v13507_v8 = vpop.f32.mrb[193].mxu1 }
0x200f   :  { %v8470_v62 = vpop.f32.mrb[194].mxu1 }
0x2010   :  { %v8493_v5 = vpack.c.bf16 %v8470_v62, %v8467_v52  ;;  %v13508_v45 = vpop.f32.mrb[195].mxu1  ;;  %v14603_v52 = vld [vmem:[%s18124_s21 + $0x188] sm:$0xff]  }
0x2012   :  { %13526 = vmatpush3.bf16.msra.mxu0 %v8493_v5 }
0x2013   :  { %13527 = vmatprep.subr.bf16.mxu0 %v14703_v54 }
0x2015   :  { %v8475_v37 = vpop.f32.mrb[196].mxu1 }
0x2016   :  { %v13511_v9 = vpop.f32.mrb[197].mxu1 }
0x2017   :  { %v8478_v17 = vpop.f32.mrb[198].mxu1 }
0x2018   :  { %v8494_v21 = vpack.c.bf16 %v8478_v17, %v8475_v37  ;;  %v13512_v30 = vpop.f32.mrb[199].mxu1  ;;  %v14604_v17 = vld [vmem:[%s18124_s21 + $0x190] sm:$0xff]  }
0x201a   :  { %13528 = vmatpush3.bf16.msra.mxu0 %v8494_v21 }
0x201b   :  { %13529 = vmatprep.subr.bf16.mxu0 %v14703_v54 }
0x201d   :  { %v8483_v63 = vpop.f32.mrb[200].mxu1 }
0x201e   :  { %v8495_v46 = vpack.c.bf16 %v8483_v63, %v8483_v63  ;;  %v13515_v32 = vpop.f32.mrb[201].mxu1 }
0x201f   :  { %v8486_v39 = vpop.f32.mrb[202].mxu1 }
0x2020   :  { %v8745_v10 = vsel %vm3394_vm5, %v8495_v46, 0  ;;  %v13516_v8 = vpop.f32.mrb[203].mxu1  ;;  %v14605_v39 = vld [vmem:[%s18124_s21 + $0x198] sm:$0xff]  }
0x2021   :  { %13530 = vmatpush3.bf16.msra.mxu0 %v8745_v10 }
0x2022   :  { %13675 = vmatprep.subr.bf16.mxu0 %v14703_v54 }
0x2024   :  { %13532 = vmatmul.mubr.msk.bf16.vlgmr.msra.gmra.mrb[12].mxu0 %vm7592_vm8, %v14603_v52 }
0x2025   :  { %v9127_v62 = vpop.f32.mrb[204].mxu1  ;;  %13535 = vmatprep.mubr.msk.bf16.mxu0 %vm14704_vm0, %v14703_v54 }
0x2026   :  { %v13649_v5 = vpop.f32.mrb[205].mxu1 }
0x2027   :  { %v9130_v45 = vpop.f32.mrb[206].mxu1 }
0x2028   :  { %v9181_v37 = vpack.c.bf16 %v9130_v45, %v9127_v62  ;;  %v13650_v9 = vpop.f32.mrb[207].mxu1  ;;  %v14606_v45 = vld [vmem:[%s18124_s21 + $0x1a0] sm:$0xff]  }
0x202a   :  { %13676 = vmatpush3.bf16.msra.mxu0 %v9181_v37 }
0x202b   :  { %13677 = vmatprep.subr.bf16.mxu0 %v14703_v54 }
0x202c   :  { %13536 = vmatmul.mubr.msk.bf16.gmra.mrb[16].mxu0 %vm7592_vm8, %v14604_v17 }
0x202d   :  { %v9135_v21 = vpop.f32.mrb[208].mxu1  ;;  %13539 = vmatprep.mubr.msk.bf16.mxu0 %vm14704_vm0, %v14703_v54 }
0x202e   :  { %v13653_v30 = vpop.f32.mrb[209].mxu1 }
0x202f   :  { %v9138_v63 = vpop.f32.mrb[210].mxu1 }
0x2030   :  { %v9182_v46 = vpack.c.bf16 %v9138_v63, %v9135_v21  ;;  %v13654_v32 = vpop.f32.mrb[211].mxu1  ;;  %v14607_v63 = vld [vmem:[%s18124_s21 + $0x1a8] sm:$0xff]  }
0x2032   :  { %13678 = vmatpush3.bf16.msra.mxu0 %v9182_v46 }
0x2033   :  { %13679 = vmatprep.subr.bf16.mxu0 %v14703_v54 }
0x2034   :  { %13540 = vmatmul.mubr.msk.bf16.gmra.mrb[20].mxu0 %vm7592_vm8, %v14605_v39 }
0x2035   :  { %v9143_v10 = vpop.f32.mrb[212].mxu1  ;;  %13543 = vmatprep.mubr.msk.bf16.mxu0 %vm14704_vm0, %v14703_v54 }
0x2036   :  { %v13657_v8 = vpop.f32.mrb[213].mxu1 }
0x2037   :  { %v9146_v52 = vpop.f32.mrb[214].mxu1 }
0x2038   :  { %v9183_v62 = vpack.c.bf16 %v9146_v52, %v9143_v10  ;;  %v13658_v5 = vpop.f32.mrb[215].mxu1  ;;  %v14608_v52 = vld [vmem:[%s18124_s21 + $0x1b0] sm:$0xff]  }
0x203a   :  { %13680 = vmatpush3.bf16.msra.mxu0 %v9183_v62 }
0x203b   :  { %13681 = vmatprep.subr.bf16.mxu0 %v14703_v54 }
0x203c   :  { %13544 = vmatmul.mubr.msk.bf16.gmra.mrb[24].mxu0 %vm7592_vm8, %v14606_v45 }
0x203d   :  { %v9151_v37 = vpop.f32.mrb[216].mxu1  ;;  %13547 = vmatprep.mubr.msk.bf16.mxu0 %vm14704_vm0, %v14703_v54 }
0x203e   :  { %v13661_v9 = vpop.f32.mrb[217].mxu1 }
0x203f   :  { %v9154_v17 = vpop.f32.mrb[218].mxu1 }
0x2040   :  { %v9184_v21 = vpack.c.bf16 %v9154_v17, %v9151_v37  ;;  %v13662_v30 = vpop.f32.mrb[219].mxu1  ;;  %v14609_v17 = vld [vmem:[%s18124_s21 + $0x1b8] sm:$0xff]  }
0x2042   :  { %13682 = vmatpush3.bf16.msra.mxu0 %v9184_v21 }
0x2043   :  { %13683 = vmatprep.subr.bf16.mxu0 %v14703_v54 }
0x2044   :  { %13548 = vmatmul.mubr.msk.bf16.gmra.mrb[28].mxu0 %vm7592_vm8, %v14607_v63 }
0x2045   :  { %v9159_v46 = vpop.f32.mrb[220].mxu1  ;;  %13551 = vmatprep.mubr.msk.bf16.mxu0 %vm14704_vm0, %v14703_v54 }
0x2046   :  { %v13665_v32 = vpop.f32.mrb[221].mxu1 }
0x2047   :  { %v9162_v39 = vpop.f32.mrb[222].mxu1 }
0x2048   :  { %v9185_v10 = vpack.c.bf16 %v9162_v39, %v9159_v46  ;;  %v13666_v8 = vpop.f32.mrb[223].mxu1 }
0x2049   :  { %v14611_v8 = vld [vmem:[%s18124_s21 + $0x1c8] sm:$0xff]  }
0x204a   :  { %13684 = vmatpush3.bf16.msra.mxu0 %v9185_v10  ;;  %v14610_v10 = vld [vmem:[%s18124_s21 + $0x1c0] sm:$0xff]  }
0x204b   :  { %13685 = vmatprep.subr.bf16.mxu0 %v14703_v54 }
0x204c   :  { %13552 = vmatmul.mubr.msk.bf16.gmra.mrb[32].mxu0 %vm7592_vm8, %v14608_v52  ;;  %v14612_v52 = vld [vmem:[%s18124_s21 + $0x1d0] sm:$0xff]  }
0x204d   :  { %v9167_v62 = vpop.f32.mrb[224].mxu1  ;;  %13555 = vmatprep.mubr.msk.bf16.mxu0 %vm14704_vm0, %v14703_v54 }
0x204e   :  { %v13669_v5 = vpop.f32.mrb[225].mxu1 }
0x204f   :  { %v9170_v45 = vpop.f32.mrb[226].mxu1  ;;  %v14614_v5 = vld [vmem:[%s18124_s21 + $0x1e0] sm:$0xff]  }
0x2050   :  { %v9186_v37 = vpack.c.bf16 %v9170_v45, %v9167_v62  ;;  %v13670_v9 = vpop.f32.mrb[227].mxu1  ;;  %v14613_v62 = vld [vmem:[%s18124_s21 + $0x1d8] sm:$0xff]   ;;  %v14615_v45 = vld [vmem:[%s18124_s21 + $0x1e8] sm:$0xff]  }
0x2051   :  { %v14617_v9 = vld [vmem:[%s18124_s21 + $0x1f8] sm:$0xff]  }
0x2052   :  { %13686 = vmatpush3.bf16.msra.mxu0 %v9186_v37  ;;  %v14616_v37 = vld [vmem:[%s18124_s21 + $0x1f0] sm:$0xff]  }
0x2053   :  { %13687 = vmatprep.subr.bf16.mxu0 %v14703_v54 }
0x2054   :  { %13556 = vmatmul.mubr.msk.bf16.gmra.mrb[36].mxu0 %vm7592_vm8, %v14609_v17  ;;  %v14618_v17 = vld [vmem:[%s18124_s21 + $0x200] sm:$0xff]  }
0x2055   :  { %v9175_v21 = vpop.f32.mrb[228].mxu1  ;;  %13559 = vmatprep.mubr.msk.bf16.mxu0 %vm14704_vm0, %v14703_v54 }
0x2056   :  { %v9187_v30 = vpack.c.bf16 %v9175_v21, %v9175_v21  ;;  %v13673_v63 = vpop.f32.mrb[229].mxu1  ;;  %v14619_v21 = vld [vmem:[%s18124_s21 + $0x208] sm:$0xff]  }
0x2057   :  { %v9178_v46 = vpop.f32.mrb[230].mxu1  ;;  %v14621_v63 = vld [vmem:[%s18124_s21 + $0x218] sm:$0xff]  }
0x2058   :  { %v9437_v32 = vsel %vm3394_vm5, %v9187_v30, 0  ;;  %v13674_v39 = vpop.f32.mrb[231].mxu1  ;;  %v14620_v30 = vld [vmem:[%s18124_s21 + $0x210] sm:$0xff]   ;;  %v14622_v46 = vld [vmem:[%s18124_s21 + $0x220] sm:$0xff]  }
0x2059   :  { %13688 = vmatpush3.bf16.msra.mxu0 %v9437_v32  ;;  %v14623_v32 = vld [vmem:[%s18124_s21 + $0x228] sm:$0xff]   ;;  %v14624_v39 = vld [vmem:[%s18124_s21 + $0x230] sm:$0xff]  }
0x205c   :  { %13560 = vmatmul.mubr.msk.bf16.gmra.mrb[40].mxu0 %vm7592_vm8, %v14610_v10  ;;  %v14625_v10 = vld [vmem:[%s18124_s21 + $0x238] sm:$0xff]  }
0x205d   :  { %13563 = vmatprep.mubr.msk.bf16.mxu0 %vm14704_vm0, %v14703_v54 }
0x2064   :  { %13564 = vmatmul.mubr.msk.bf16.gmra.mrb[44].mxu0 %vm7592_vm8, %v14611_v8  ;;  %v14626_v8 = vld [vmem:[%s18124_s21 + $0x240] sm:$0xff]  }
0x2065   :  { %13567 = vmatprep.mubr.msk.bf16.mxu0 %vm14704_vm0, %v14703_v54 }
0x206c   :  { %13568 = vmatmul.mubr.msk.bf16.gmra.mrb[48].mxu0 %vm7592_vm8, %v14612_v52  ;;  %v14627_v52 = vld [vmem:[%s18124_s21 + $0x248] ss:$0 sps:$4 sm:$0xff]  }
0x206d   :  { %13571 = vmatprep.mubr.msk.bf16.mxu0 %vm14704_vm0, %v14703_v54 }
0x2074   :  { %13572 = vmatmul.mubr.msk.bf16.gmra.mrb[52].mxu0 %vm7592_vm8, %v14613_v62  ;;  %v14628_v62 = vld [vmem:[%s18124_s21 + $0x24c] sm:$0xff]  }
0x2075   :  { %13575 = vmatprep.mubr.msk.bf16.mxu0 %vm14704_vm0, %v14703_v54 }
0x207c   :  { %13576 = vmatmul.mubr.msk.bf16.gmra.mrb[56].mxu0 %vm7592_vm8, %v14614_v5  ;;  %v14629_v5 = vld [vmem:[%s18124_s21 + $0x254] sm:$0xff]  }
0x207d   :  { %13579 = vmatprep.mubr.msk.bf16.mxu0 %vm14704_vm0, %v14703_v54 }
0x2084   :  { %13580 = vmatmul.mubr.msk.bf16.gmra.mrb[60].mxu0 %vm7592_vm8, %v14615_v45  ;;  %v14630_v45 = vld [vmem:[%s18124_s21 + $0x25c] sm:$0xff]  }
0x2085   :  { %13583 = vmatprep.mubr.msk.bf16.mxu0 %vm14704_vm0, %v14703_v54 }
0x208c   :  { %13584 = vmatmul.mubr.msk.bf16.gmra.mrb[64].mxu0 %vm7592_vm8, %v14616_v37  ;;  %v14631_v37 = vld [vmem:[%s18124_s21 + $0x264] sm:$0xff]  }
0x208d   :  { %13587 = vmatprep.mubr.msk.bf16.mxu0 %vm14704_vm0, %v14703_v54 }
0x2094   :  { %13588 = vmatmul.mubr.msk.bf16.gmra.mrb[68].mxu0 %vm7592_vm8, %v14617_v9  ;;  %v14632_v9 = vld [vmem:[%s18124_s21 + $0x26c] sm:$0xff]  }
0x2095   :  { %13591 = vmatprep.mubr.msk.bf16.mxu0 %vm14704_vm0, %v14703_v54 }
0x209c   :  { %13592 = vmatmul.mubr.msk.bf16.gmra.mrb[72].mxu0 %vm7592_vm8, %v14618_v17  ;;  %v14633_v17 = vld [vmem:[%s18124_s21 + $0x274] sm:$0xff]  }
0x209d   :  { %13595 = vmatprep.mubr.msk.bf16.mxu0 %vm14704_vm0, %v14703_v54 }
0x20a4   :  { %13596 = vmatmul.mubr.msk.bf16.gmra.mrb[76].mxu0 %vm7592_vm8, %v14619_v21  ;;  %v14634_v21 = vld [vmem:[%s18124_s21 + $0x27c] sm:$0xff]  }
0x20a5   :  { %13599 = vmatprep.mubr.msk.bf16.mxu0 %vm14704_vm0, %v14703_v54 }
0x20ac   :  { %13600 = vmatmul.mubr.msk.bf16.gmra.mrb[80].mxu0 %vm7592_vm8, %v14620_v30  ;;  %v14635_v30 = vld [vmem:[%s18124_s21 + $0x284] sm:$0xff]  }
0x20ad   :  { %13603 = vmatprep.mubr.msk.bf16.mxu0 %vm14704_vm0, %v14703_v54 }
0x20b4   :  { %13604 = vmatmul.mubr.msk.bf16.gmra.mrb[84].mxu0 %vm7592_vm8, %v14621_v63  ;;  %v14636_v63 = vld [vmem:[%s18124_s21 + $0x28c] sm:$0xff]  }
0x20b5   :  { %13607 = vmatprep.mubr.msk.bf16.mxu0 %vm14704_vm0, %v14703_v54 }
0x20bc   :  { %13608 = vmatmul.mubr.msk.bf16.gmra.mrb[88].mxu0 %vm7592_vm8, %v14622_v46  ;;  %v14637_v46 = vld [vmem:[%s18124_s21 + $0x294] sm:$0xff]  }
0x20bd   :  { %13611 = vmatprep.mubr.msk.bf16.mxu0 %vm14704_vm0, %v14703_v54 }
0x20c4   :  { %13612 = vmatmul.mubr.msk.bf16.gmra.mrb[92].mxu0 %vm7592_vm8, %v14623_v32  ;;  %v14638_v32 = vld [vmem:[%s18124_s21 + $0x29c] sm:$0xff]  }
0x20c5   :  { %13615 = vmatprep.mubr.msk.bf16.mxu0 %vm14704_vm0, %v14703_v54 }
0x20cc   :  { %13616 = vmatmul.mubr.msk.bf16.gmra.mrb[96].mxu0 %vm7592_vm8, %v14624_v39  ;;  %v14639_v39 = vld [vmem:[%s18124_s21 + $0x2a4] sm:$0xff]  }
0x20cd   :  { %13619 = vmatprep.mubr.msk.bf16.mxu0 %vm14704_vm0, %v14703_v54 }
0x20d4   :  { %13620 = vmatmul.mubr.msk.bf16.gmra.mrb[100].mxu0 %vm7592_vm8, %v14625_v10  ;;  %v14640_v10 = vld [vmem:[%s18124_s21 + $0x2ac] sm:$0xff]  }
0x20d5   :  { %13623 = vmatprep.mubr.msk.bf16.mxu0 %vm14704_vm0, %v14703_v54 }
0x20dc   :  { %13624 = vmatmul.mubr.msk.bf16.gmra.mrb[104].mxu0 %vm7592_vm8, %v14626_v8  ;;  %v14641_v8 = vld [vmem:[%s18124_s21 + $0x2b4] sm:$0xff]  }
0x20dd   :  { %13627 = vmatprep.mubr.msk.bf16.mxu0 %vm14704_vm0, %v14703_v54 }
0x20e4   :  { %13628 = vmatmul.mubr.msk.bf16.gmra.mrb[108].mxu0 %vm7592_vm8, %v14627_v52  ;;  %v14642_v52 = vld [vmem:[%s18124_s21 + $0x2bc] sm:$0xff]  }
0x20e5   :  { %13689 = vmatprep.mubr.msk.bf16.mxu0 %vm14704_vm0, %v14703_v54 }
0x20ec   :  { %13690 = vmatmul.mubr.msk.bf16.vlgmr.msra.gmra.mrb[12].mxu0 %vm7592_vm8, %v14628_v62  ;;  %v14643_v62 = vld [vmem:[%s18124_s21 + $0x2c4] sm:$0xff]  }
0x20ed   :  { %13693 = vmatprep.mubr.msk.bf16.mxu0 %vm14704_vm0, %v14703_v54 }
0x20f4   :  { %13694 = vmatmul.mubr.msk.bf16.gmra.mrb[16].mxu0 %vm7592_vm8, %v14629_v5  ;;  %v14644_v5 = vld [vmem:[%s18124_s21 + $0x2cc] sm:$0xff]  }
0x20f5   :  { %13697 = vmatprep.mubr.msk.bf16.mxu0 %vm14704_vm0, %v14703_v54 }
0x20fc   :  { %13698 = vmatmul.mubr.msk.bf16.gmra.mrb[20].mxu0 %vm7592_vm8, %v14630_v45  ;;  %v14645_v45 = vld [vmem:[%s18124_s21 + $0x2d4] sm:$0xff]  }
0x20fd   :  { %13701 = vmatprep.mubr.msk.bf16.mxu0 %vm14704_vm0, %v14703_v54 }
0x2104   :  { %13702 = vmatmul.mubr.msk.bf16.gmra.mrb[24].mxu0 %vm7592_vm8, %v14631_v37  ;;  %v14646_v37 = vld [vmem:[%s18124_s21 + $0x2dc] sm:$0xff]  }
0x2105   :  { %13705 = vmatprep.mubr.msk.bf16.mxu0 %vm14704_vm0, %v14703_v54 }
0x210c   :  { %13706 = vmatmul.mubr.msk.bf16.gmra.mrb[28].mxu0 %vm7592_vm8, %v14632_v9  ;;  %v14647_v9 = vld [vmem:[%s18124_s21 + $0x2e4] sm:$0xff]  }
0x210d   :  { %13709 = vmatprep.mubr.msk.bf16.mxu0 %vm14704_vm0, %v14703_v54 }
0x2114   :  { %13710 = vmatmul.mubr.msk.bf16.gmra.mrb[32].mxu0 %vm7592_vm8, %v14633_v17  ;;  %v14648_v17 = vld [vmem:[%s18124_s21 + $0x2ec] sm:$0xff]  }
0x2115   :  { %13713 = vmatprep.mubr.msk.bf16.mxu0 %vm14704_vm0, %v14703_v54 }
0x211c   :  { %13714 = vmatmul.mubr.msk.bf16.gmra.mrb[36].mxu0 %vm7592_vm8, %v14634_v21  ;;  %v14649_v21 = vld [vmem:[%s18124_s21 + $0x2f4] sm:$0xff]  }
0x211d   :  { %13717 = vmatprep.mubr.msk.bf16.mxu0 %vm14704_vm0, %v14703_v54 }
0x2124   :  { %13718 = vmatmul.mubr.msk.bf16.gmra.mrb[40].mxu0 %vm7592_vm8, %v14635_v30  ;;  %v14650_v30 = vld [vmem:[%s18124_s21 + $0x2fc] sm:$0xff]  }
0x2125   :  { %13721 = vmatprep.mubr.msk.bf16.mxu0 %vm14704_vm0, %v14703_v54 }
0x212c   :  { %13722 = vmatmul.mubr.msk.bf16.gmra.mrb[44].mxu0 %vm7592_vm8, %v14636_v63  ;;  %v14651_v63 = vld [vmem:[%s18124_s21 + $0x304] sm:$0xff]  }
0x212d   :  { %13725 = vmatprep.mubr.msk.bf16.mxu0 %vm14704_vm0, %v14703_v54 }
0x2134   :  { %13726 = vmatmul.mubr.msk.bf16.gmra.mrb[48].mxu0 %vm7592_vm8, %v14637_v46  ;;  %v14652_v46 = vld [vmem:[%s18124_s21 + $0x30c] ss:$0 sps:$4 sm:$0xff]  }
0x2135   :  { %13729 = vmatprep.mubr.msk.bf16.mxu0 %vm14704_vm0, %v14703_v54 }
0x213c   :  { %13730 = vmatmul.mubr.msk.bf16.gmra.mrb[52].mxu0 %vm7592_vm8, %v14638_v32 }
0x213d   :  { %13733 = vmatprep.mubr.msk.bf16.mxu0 %vm14704_vm0, %v14703_v54 }
0x2144   :  { %13734 = vmatmul.mubr.msk.bf16.gmra.mrb[56].mxu0 %vm7592_vm8, %v14639_v39 }
0x2145   :  { %13737 = vmatprep.mubr.msk.bf16.mxu0 %vm14704_vm0, %v14703_v54 }
0x214c   :  { %13738 = vmatmul.mubr.msk.bf16.gmra.mrb[60].mxu0 %vm7592_vm8, %v14640_v10 }
0x214d   :  { %13741 = vmatprep.mubr.msk.bf16.mxu0 %vm14704_vm0, %v14703_v54 }
0x2154   :  { %13742 = vmatmul.mubr.msk.bf16.gmra.mrb[64].mxu0 %vm7592_vm8, %v14641_v8 }
0x2155   :  { %13745 = vmatprep.mubr.msk.bf16.mxu0 %vm14704_vm0, %v14703_v54 }
0x215c   :  { %13746 = vmatmul.mubr.msk.bf16.gmra.mrb[68].mxu0 %vm7592_vm8, %v14642_v52 }
0x215d   :  { %13749 = vmatprep.mubr.msk.bf16.mxu0 %vm14704_vm0, %v14703_v54 }
0x2164   :  { %13750 = vmatmul.mubr.msk.bf16.gmra.mrb[72].mxu0 %vm7592_vm8, %v14643_v62 }
0x2165   :  { %13753 = vmatprep.mubr.msk.bf16.mxu0 %vm14704_vm0, %v14703_v54 }
0x216c   :  { %13754 = vmatmul.mubr.msk.bf16.gmra.mrb[76].mxu0 %vm7592_vm8, %v14644_v5 }
0x216d   :  { %13757 = vmatprep.mubr.msk.bf16.mxu0 %vm14704_vm0, %v14703_v54 }
0x2174   :  { %13758 = vmatmul.mubr.msk.bf16.gmra.mrb[80].mxu0 %vm7592_vm8, %v14645_v45 }
0x2175   :  { %13761 = vmatprep.mubr.msk.bf16.mxu0 %vm14704_vm0, %v14703_v54 }
0x217c   :  { %13762 = vmatmul.mubr.msk.bf16.gmra.mrb[84].mxu0 %vm7592_vm8, %v14646_v37 }
0x217d   :  { %13765 = vmatprep.mubr.msk.bf16.mxu0 %vm14704_vm0, %v14703_v54 }
0x2184   :  { %13766 = vmatmul.mubr.msk.bf16.gmra.mrb[88].mxu0 %vm7592_vm8, %v14647_v9 }
0x2185   :  { %13769 = vmatprep.mubr.msk.bf16.mxu0 %vm14704_vm0, %v14703_v54 }
0x218c   :  { %13770 = vmatmul.mubr.msk.bf16.gmra.mrb[92].mxu0 %vm7592_vm8, %v14648_v17 }
0x218d   :  { %13773 = vmatprep.mubr.msk.bf16.mxu0 %vm14704_vm0, %v14703_v54 }
0x2194   :  { %13774 = vmatmul.mubr.msk.bf16.gmra.mrb[96].mxu0 %vm7592_vm8, %v14649_v21 }
0x2195   :  { %13777 = vmatprep.mubr.msk.bf16.mxu0 %vm14704_vm0, %v14703_v54 }
0x219c   :  { %13778 = vmatmul.mubr.msk.bf16.gmra.mrb[100].mxu0 %vm7592_vm8, %v14650_v30 }
0x219d   :  { %13781 = vmatprep.mubr.msk.bf16.mxu0 %vm14704_vm0, %v14703_v54 }
0x21a4   :  { %13782 = vmatmul.mubr.msk.bf16.gmra.mrb[104].mxu0 %vm7592_vm8, %v14651_v63 }
0x21a5   :  { %13785 = vmatprep.mubr.msk.bf16.mxu0 %vm14704_vm0, %v14703_v54 }
0x21ac   :  { %13786 = vmatmul.mubr.msk.bf16.gmra.mrb[108].mxu0 %vm7592_vm8, %v14652_v46 }
0x21bf   :  { %v9473_v32 = vpop.f32.mrb[12].mxu0 }
0x21c0   :  { %v13803_v39 = vadd.f32 %v9473_v32, %v17197_v26  ;;  %v13691_v10 = vpop.f32.mrb[13].mxu0 }
0x21c1   :  { %v9476_v8 = vpop.f32.mrb[14].mxu0 }
0x21c2   :  { %v11396_v52 = vpack.c.bf16 %v13803_v39, %v13803_v39  ;;  %v13804_v62 = vadd.f32 %v9476_v8, %v17202_v41  ;;  %v13692_v5 = vpop.f32.mrb[15].mxu0 }
0x21c4   :  { %9920 = vst.msk [vmem:[%s18128_s25] sm:$0xf] %vm9919_vm9, %v11396_v52  ;;  %v11397_v54 = vpack.c.bf16 %v13804_v62, %v13804_v62 }
0x21c6   :  { %9921 = vst.msk [vmem:[%s18128_s25 + $0x4] sm:$0xf] %vm9919_vm9, %v11397_v54 }
0x21c7   :  { %v9481_v45 = vpop.f32.mrb[16].mxu0 }
0x21c8   :  { %v13805_v26 = vadd.f32 %v9481_v45, %v17215_v51  ;;  %v13695_v37 = vpop.f32.mrb[17].mxu0 }
0x21c9   :  { %v9484_v9 = vpop.f32.mrb[18].mxu0 }
0x21ca   :  { %v11398_v17 = vpack.c.bf16 %v13805_v26, %v13805_v26  ;;  %v13806_v41 = vadd.f32 %v9484_v9, %v17220_v14  ;;  %v13696_v21 = vpop.f32.mrb[19].mxu0 }
0x21cc   :  { %9922 = vst.msk [vmem:[%s18128_s25 + $0x8] sm:$0xf] %vm9919_vm9, %v11398_v17  ;;  %v11399_v30 = vpack.c.bf16 %v13806_v41, %v13806_v41 }
0x21ce   :  { %9923 = vst.msk [vmem:[%s18128_s25 + $0xc] sm:$0xf] %vm9919_vm9, %v11399_v30 }
0x21cf   :  { %v9489_v63 = vpop.f32.mrb[20].mxu0 }
0x21d0   :  { %v13807_v51 = vadd.f32 %v9489_v63, %v17233_v35  ;;  %v13699_v46 = vpop.f32.mrb[21].mxu0 }
0x21d1   :  { %v9492_v32 = vpop.f32.mrb[22].mxu0 }
0x21d2   :  { %v11400_v39 = vpack.c.bf16 %v13807_v51, %v13807_v51  ;;  %v13808_v14 = vadd.f32 %v9492_v32, %v17238_v25  ;;  %v13700_v10 = vpop.f32.mrb[23].mxu0 }
0x21d4   :  { %9924 = vst.msk [vmem:[%s18128_s25 + $0x10] sm:$0xf] %vm9919_vm9, %v11400_v39  ;;  %v11401_v8 = vpack.c.bf16 %v13808_v14, %v13808_v14 }
0x21d6   :  { %9925 = vst.msk [vmem:[%s18128_s25 + $0x14] sm:$0xf] %vm9919_vm9, %v11401_v8 }
0x21d7   :  { %v9497_v52 = vpop.f32.mrb[24].mxu0 }
0x21d8   :  { %v13809_v35 = vadd.f32 %v9497_v52, %v17244_v31  ;;  %v13703_v62 = vpop.f32.mrb[25].mxu0 }
0x21d9   :  { %v9500_v5 = vpop.f32.mrb[26].mxu0 }
0x21da   :  { %v11402_v54 = vpack.c.bf16 %v13809_v35, %v13809_v35  ;;  %v13810_v25 = vadd.f32 %v9500_v5, %v17249_v36  ;;  %v13704_v45 = vpop.f32.mrb[27].mxu0 }
0x21dc   :  { %9926 = vst.msk [vmem:[%s18128_s25 + $0x18] sm:$0xf] %vm9919_vm9, %v11402_v54  ;;  %v11403_v26 = vpack.c.bf16 %v13810_v25, %v13810_v25 }
0x21de   :  { %9927 = vst.msk [vmem:[%s18128_s25 + $0x1c] sm:$0xf] %vm9919_vm9, %v11403_v26 }
0x21df   :  { %v9505_v37 = vpop.f32.mrb[28].mxu0 }
0x21e0   :  { %v13811_v31 = vadd.f32 %v9505_v37, %v17254_v42  ;;  %v13707_v9 = vpop.f32.mrb[29].mxu0 }
0x21e1   :  { %v9508_v17 = vpop.f32.mrb[30].mxu0 }
0x21e2   :  { %v11404_v41 = vpack.c.bf16 %v13811_v31, %v13811_v31  ;;  %v13812_v36 = vadd.f32 %v9508_v17, %v17259_v48  ;;  %v13708_v21 = vpop.f32.mrb[31].mxu0 }
0x21e4   :  { %9928 = vst.msk [vmem:[%s18128_s25 + $0x20] sm:$0xf] %vm9919_vm9, %v11404_v41  ;;  %v11405_v30 = vpack.c.bf16 %v13812_v36, %v13812_v36 }
0x21e6   :  { %9929 = vst.msk [vmem:[%s18128_s25 + $0x24] sm:$0xf] %vm9919_vm9, %v11405_v30 }
0x21e7   :  { %v9513_v63 = vpop.f32.mrb[32].mxu0 }
0x21e8   :  { %v13813_v42 = vadd.f32 %v9513_v63, %v17264_v47  ;;  %v13711_v51 = vpop.f32.mrb[33].mxu0 }
0x21e9   :  { %v9516_v46 = vpop.f32.mrb[34].mxu0 }
0x21ea   :  { %v11406_v32 = vpack.c.bf16 %v13813_v42, %v13813_v42  ;;  %v13814_v48 = vadd.f32 %v9516_v46, %v17269_v23  ;;  %v13712_v39 = vpop.f32.mrb[35].mxu0 }
0x21ec   :  { %9930 = vst.msk [vmem:[%s18128_s25 + $0x28] sm:$0xf] %vm9919_vm9, %v11406_v32  ;;  %v11407_v14 = vpack.c.bf16 %v13814_v48, %v13814_v48 }
0x21ee   :  { %9931 = vst.msk [vmem:[%s18128_s25 + $0x2c] sm:$0xf] %vm9919_vm9, %v11407_v14 }
0x21ef   :  { %v9521_v10 = vpop.f32.mrb[36].mxu0 }
0x21f0   :  { %v13815_v47 = vadd.f32 %v9521_v10, %v17274_v53  ;;  %v13715_v8 = vpop.f32.mrb[37].mxu0 }
0x21f1   :  { %v9524_v52 = vpop.f32.mrb[38].mxu0 }
0x21f2   :  { %v11408_v35 = vpack.c.bf16 %v13815_v47, %v13815_v47  ;;  %v13816_v23 = vadd.f32 %v9524_v52, %v17279_v57  ;;  %v13716_v62 = vpop.f32.mrb[39].mxu0 }
0x21f4   :  { %9932 = vst.msk [vmem:[%s18128_s25 + $0x30] sm:$0xf] %vm9919_vm9, %v11408_v35  ;;  %v11409_v5 = vpack.c.bf16 %v13816_v23, %v13816_v23 }
0x21f6   :  { %9933 = vst.msk [vmem:[%s18128_s25 + $0x34] sm:$0xf] %vm9919_vm9, %v11409_v5 }
0x21f7   :  { %v9529_v54 = vpop.f32.mrb[40].mxu0 }
0x21f8   :  { %v13817_v53 = vadd.f32 %v9529_v54, %v17284_v11  ;;  %v13719_v25 = vpop.f32.mrb[41].mxu0 }
0x21f9   :  { %v9532_v45 = vpop.f32.mrb[42].mxu0 }
0x21fa   :  { %v11410_v26 = vpack.c.bf16 %v13817_v53, %v13817_v53  ;;  %v13818_v57 = vadd.f32 %v9532_v45, %v17289_v20  ;;  %v13720_v37 = vpop.f32.mrb[43].mxu0 }
0x21fc   :  { %9934 = vst.msk [vmem:[%s18128_s25 + $0x38] sm:$0xf] %vm9919_vm9, %v11410_v26  ;;  %v11411_v31 = vpack.c.bf16 %v13818_v57, %v13818_v57 }
0x21fe   :  { %9935 = vst.msk [vmem:[%s18128_s25 + $0x3c] sm:$0xf] %vm9919_vm9, %v11411_v31 }
0x21ff   :  { %v9537_v9 = vpop.f32.mrb[44].mxu0 }
0x2200   :  { %v13819_v11 = vadd.f32 %v9537_v9, %v17294_v2  ;;  %v13723_v17 = vpop.f32.mrb[45].mxu0 }
0x2201   :  { %v9540_v41 = vpop.f32.mrb[46].mxu0 }
0x2202   :  { %v11412_v36 = vpack.c.bf16 %v13819_v11, %v13819_v11  ;;  %v13820_v20 = vadd.f32 %v9540_v41, %v17299_v4  ;;  %v13724_v21 = vpop.f32.mrb[47].mxu0 }
0x2204   :  { %9936 = vst.msk [vmem:[%s18128_s25 + $0x40] sm:$0xf] %vm9919_vm9, %v11412_v36  ;;  %v11413_v30 = vpack.c.bf16 %v13820_v20, %v13820_v20 }
0x2205   :  { %14666 = shalt.err (!%p14663_p4)
}
0x2206   :  { %s14667_s2 = scalar_lea.hbm %s18126_s23, 32 }
0x2207   :  { %p14668_p5 = scmp.ne.s32.totalorder %s18126_s23, %s14667_s2  ;;  %p14671_p6 = scmp.lt.u32.totalorder %s14667_s2, %s18126_s23 }
0x2209   :  { %p14673_p7 = pnand %p14671_p6, %p14668_p5 }
0x220b   :  { %14676 = shalt.err (!%p14673_p7)
}
0x220c   :  { %9978 = dma.vmem_to_hbm [thread:$0]  %s9976_s16, 32, %s18126_s23, [#allocation3]   ;;  %9937 = vst.msk [vmem:[%s18128_s25 + $0x44] sm:$0xf] %vm9919_vm9, %v11413_v30 }
0x220d   :  { %s14677_s7 = scalar_lea.vmem %s9986_s14, 32  ;;  %p14682_p9 = scmp.lt.s32.totalorder %s9986_s14, %s9986_s14 }
0x220e   :  { %p14678_p8 = scmp.ne.s32.totalorder %s9986_s14, %s14677_s7  ;;  %p14683_p10 = scmp.lt.s32.totalorder %s14677_s7, %s14677_s7 }
0x2210   :  { %p14684_p11 = por %p14683_p10, %p14682_p9 }
0x2212   :  { %p14685_p12 = pnand %p14684_p11, %p14678_p8 }
0x2214   :  { %14688 = shalt.err (!%p14685_p12)
}
0x2215   :  { %s14689_s15 = scalar_lea.hbm %s18127_s24, 32 }
0x2216   :  { %p14690_p13 = scmp.ne.s32.totalorder %s18127_s24, %s14689_s15  ;;  %p14693_p0 = scmp.lt.u32.totalorder %s14689_s15, %s18127_s24 }
0x2218   :  { %p14695_p1 = pnand %p14693_p0, %p14690_p13 }
0x221a   :  { %14698 = shalt.err (!%p14695_p1)
}
0x221b   :  { %9988 = dma.vmem_to_hbm [thread:$0]  %s9986_s14, 32, %s18127_s24, [#allocation5]   ;;  %v9545_v2 = vpop.f32.mrb[48].mxu0 }
0x221c   :  { %v13821_v4 = vadd.f32 %v9545_v2, %v17304_v0  ;;  %v13727_v63 = vpop.f32.mrb[49].mxu0 }
0x221d   :  { %v9548_v42 = vpop.f32.mrb[50].mxu0 }
0x221e   :  { %v11414_v51 = vpack.c.bf16 %v13821_v4, %v13821_v4  ;;  %v13822_v46 = vadd.f32 %v9548_v42, %v17309_v27  ;;  %v13728_v32 = vpop.f32.mrb[51].mxu0 }
0x221f   :  { %v9553_v39 = vpop.f32.mrb[52].mxu0 }
0x2220   :  { %9938 = vst.msk [vmem:[%s18128_s25 + $0x48] sm:$0xf] %vm9919_vm9, %v11414_v51  ;;  %v11415_v48 = vpack.c.bf16 %v13822_v46, %v13822_v46  ;;  %v13823_v0 = vadd.f32 %v9553_v39, %v17427_v61  ;;  %v13731_v14 = vpop.f32.mrb[53].mxu0 }
0x2221   :  { %v9556_v10 = vpop.f32.mrb[54].mxu0 }
0x2222   :  { %9939 = vst.msk [vmem:[%s18128_s25 + $0x4c] sm:$0xf] %vm9919_vm9, %v11415_v48  ;;  %v11416_v47 = vpack.c.bf16 %v13823_v0, %v13823_v0  ;;  %v13824_v27 = vadd.f32 %v9556_v10, %v17431_v29  ;;  %v13732_v8 = vpop.f32.mrb[55].mxu0 }
0x2223   :  { %v9561_v35 = vpop.f32.mrb[56].mxu0 }
0x2224   :  { %9940 = vst.msk [vmem:[%s18128_s25 + $0x50] sm:$0xf] %vm9919_vm9, %v11416_v47  ;;  %v11417_v52 = vpack.c.bf16 %v13824_v27, %v13824_v27  ;;  %v13825_v61 = vadd.f32 %v9561_v35, %v17440_v34  ;;  %v13735_v23 = vpop.f32.mrb[57].mxu0 }
0x2225   :  { %v9564_v62 = vpop.f32.mrb[58].mxu0 }
0x2226   :  { %9941 = vst.msk [vmem:[%s18128_s25 + $0x54] sm:$0xf] %vm9919_vm9, %v11417_v52  ;;  %v11418_v5 = vpack.c.bf16 %v13825_v61, %v13825_v61  ;;  %v13826_v29 = vadd.f32 %v9564_v62, %v17444_v43  ;;  %v13736_v54 = vpop.f32.mrb[59].mxu0 }
0x2227   :  { %v9569_v25 = vpop.f32.mrb[60].mxu0 }
0x2228   :  { %9942 = vst.msk [vmem:[%s18128_s25 + $0x58] sm:$0xf] %vm9919_vm9, %v11418_v5  ;;  %v11419_v53 = vpack.c.bf16 %v13826_v29, %v13826_v29  ;;  %v13827_v34 = vadd.f32 %v9569_v25, %v17451_v40  ;;  %v13739_v45 = vpop.f32.mrb[61].mxu0 }
0x2229   :  { %v9572_v26 = vpop.f32.mrb[62].mxu0 }
0x222a   :  { %9943 = vst.msk [vmem:[%s18128_s25 + $0x5c] sm:$0xf] %vm9919_vm9, %v11419_v53  ;;  %v11420_v57 = vpack.c.bf16 %v13827_v34, %v13827_v34  ;;  %v13828_v43 = vadd.f32 %v9572_v26, %v17455_v50  ;;  %v13740_v37 = vpop.f32.mrb[63].mxu0 }
0x222b   :  { %v9577_v9 = vpop.f32.mrb[64].mxu0 }
0x222c   :  { %9944 = vst.msk [vmem:[%s18128_s25 + $0x60] sm:$0xf] %vm9919_vm9, %v11420_v57  ;;  %v11421_v31 = vpack.c.bf16 %v13828_v43, %v13828_v43  ;;  %v13829_v40 = vadd.f32 %v9577_v9, %v17461_v18  ;;  %v13743_v11 = vpop.f32.mrb[65].mxu0 }
0x222d   :  { %v9580_v17 = vpop.f32.mrb[66].mxu0 }
0x222e   :  { %9945 = vst.msk [vmem:[%s18128_s25 + $0x64] sm:$0xf] %vm9919_vm9, %v11421_v31  ;;  %v11422_v41 = vpack.c.bf16 %v13829_v40, %v13829_v40  ;;  %v13830_v50 = vadd.f32 %v9580_v17, %v17465_v58  ;;  %v13744_v36 = vpop.f32.mrb[67].mxu0 }
0x222f   :  { %v9585_v21 = vpop.f32.mrb[68].mxu0 }
0x2230   :  { %9946 = vst.msk [vmem:[%s18128_s25 + $0x68] sm:$0xf] %vm9919_vm9, %v11422_v41  ;;  %v11423_v20 = vpack.c.bf16 %v13830_v50, %v13830_v50  ;;  %v13831_v18 = vadd.f32 %v9585_v21, %v17471_v1  ;;  %v13747_v30 = vpop.f32.mrb[69].mxu0 }
0x2231   :  { %v9588_v2 = vpop.f32.mrb[70].mxu0 }
0x2232   :  { %9947 = vst.msk [vmem:[%s18128_s25 + $0x6c] sm:$0xf] %vm9919_vm9, %v11423_v20  ;;  %v11424_v4 = vpack.c.bf16 %v13831_v18, %v13831_v18  ;;  %v13832_v58 = vadd.f32 %v9588_v2, %v17475_v60  ;;  %v13748_v63 = vpop.f32.mrb[71].mxu0 }
0x2234   :  { %9948 = vst.msk [vmem:[%s18128_s25 + $0x70] sm:$0xf] %vm9919_vm9, %v11424_v4  ;;  %v11425_v42 = vpack.c.bf16 %v13832_v58, %v13832_v58 }
0x2236   :  { %9949 = vst.msk [vmem:[%s18128_s25 + $0x74] sm:$0xf] %vm9919_vm9, %v11425_v42 }
0x2237   :  { %v9593_v51 = vpop.f32.mrb[72].mxu0 }
0x2238   :  { %v13833_v1 = vadd.f32 %v9593_v51, %v17481_v59  ;;  %v13751_v46 = vpop.f32.mrb[73].mxu0 }
0x2239   :  { %v9596_v32 = vpop.f32.mrb[74].mxu0 }
0x223a   :  { %v11426_v48 = vpack.c.bf16 %v13833_v1, %v13833_v1  ;;  %v13834_v60 = vadd.f32 %v9596_v32, %v17485_v6  ;;  %v13752_v39 = vpop.f32.mrb[75].mxu0 }
0x223c   :  { %9950 = vst.msk [vmem:[%s18128_s25 + $0x78] sm:$0xf] %vm9919_vm9, %v11426_v48  ;;  %v11427_v0 = vpack.c.bf16 %v13834_v60, %v13834_v60 }
0x223e   :  { %9951 = vst.msk [vmem:[%s18128_s25 + $0x7c] sm:$0xf] %vm9919_vm9, %v11427_v0 }
0x223f   :  { %v9601_v14 = vpop.f32.mrb[76].mxu0 }
0x2240   :  { %v13835_v59 = vadd.f32 %v9601_v14, %v17487_v33  ;;  %v13755_v10 = vpop.f32.mrb[77].mxu0 }
0x2241   :  { %v9604_v47 = vpop.f32.mrb[78].mxu0 }
0x2242   :  { %v11428_v27 = vpack.c.bf16 %v13835_v59, %v13835_v59  ;;  %v13836_v6 = vadd.f32 %v9604_v47, %v17489_v12  ;;  %v13756_v8 = vpop.f32.mrb[79].mxu0  ;;  %v18156_v47 = vld [vmem:[#allocation8_spill] sm:$0xff] }
0x2244   :  { %9952 = vst.msk [vmem:[%s18128_s25 + $0x80] sm:$0xf] %vm9919_vm9, %v11428_v27  ;;  %v11429_v52 = vpack.c.bf16 %v13836_v6, %v13836_v6 }
0x2246   :  { %9953 = vst.msk [vmem:[%s18128_s25 + $0x84] sm:$0xf] %vm9919_vm9, %v11429_v52 }
0x2247   :  { %v9609_v35 = vpop.f32.mrb[80].mxu0 }
0x2248   :  { %v13837_v33 = vadd.f32 %v9609_v35, %v17491_v15  ;;  %v13759_v61 = vpop.f32.mrb[81].mxu0 }
0x2249   :  { %v9612_v23 = vpop.f32.mrb[82].mxu0 }
0x224a   :  { %v11430_v62 = vpack.c.bf16 %v13837_v33, %v13837_v33  ;;  %v13838_v12 = vadd.f32 %v9612_v23, %v17493_v22  ;;  %v13760_v5 = vpop.f32.mrb[83].mxu0 }
0x224c   :  { %9954 = vst.msk [vmem:[%s18128_s25 + $0x88] sm:$0xf] %vm9919_vm9, %v11430_v62  ;;  %v11431_v29 = vpack.c.bf16 %v13838_v12, %v13838_v12 }
0x224e   :  { %9955 = vst.msk [vmem:[%s18128_s25 + $0x8c] sm:$0xf] %vm9919_vm9, %v11431_v29 }
0x224f   :  { %v9617_v54 = vpop.f32.mrb[84].mxu0 }
0x2250   :  { %v13839_v15 = vadd.f32 %v9617_v54, %v17495_v55  ;;  %v13763_v53 = vpop.f32.mrb[85].mxu0 }
0x2251   :  { %v9620_v25 = vpop.f32.mrb[86].mxu0 }
0x2252   :  { %v11432_v34 = vpack.c.bf16 %v13839_v15, %v13839_v15  ;;  %v13840_v22 = vadd.f32 %v9620_v25, %v17497_v13  ;;  %v13764_v45 = vpop.f32.mrb[87].mxu0 }
0x2254   :  { %9956 = vst.msk [vmem:[%s18128_s25 + $0x90] sm:$0xf] %vm9919_vm9, %v11432_v34  ;;  %v11433_v26 = vpack.c.bf16 %v13840_v22, %v13840_v22 }
0x2256   :  { %9957 = vst.msk [vmem:[%s18128_s25 + $0x94] sm:$0xf] %vm9919_vm9, %v11433_v26 }
0x2257   :  { %v9625_v57 = vpop.f32.mrb[88].mxu0 }
0x2258   :  { %v13841_v55 = vadd.f32 %v9625_v57, %v17499_v28  ;;  %v13767_v43 = vpop.f32.mrb[89].mxu0 }
0x2259   :  { %v9628_v37 = vpop.f32.mrb[90].mxu0 }
0x225a   :  { %v11434_v31 = vpack.c.bf16 %v13841_v55, %v13841_v55  ;;  %v13842_v13 = vadd.f32 %v9628_v37, %v17501_v24  ;;  %v13768_v9 = vpop.f32.mrb[91].mxu0 }
0x225c   :  { %9958 = vst.msk [vmem:[%s18128_s25 + $0x98] sm:$0xf] %vm9919_vm9, %v11434_v31  ;;  %v11435_v40 = vpack.c.bf16 %v13842_v13, %v13842_v13 }
0x225e   :  { %9959 = vst.msk [vmem:[%s18128_s25 + $0x9c] sm:$0xf] %vm9919_vm9, %v11435_v40 }
0x225f   :  { %v9633_v11 = vpop.f32.mrb[92].mxu0 }
0x2260   :  { %v13843_v28 = vadd.f32 %v9633_v11, %v17503_v19  ;;  %v13771_v17 = vpop.f32.mrb[93].mxu0 }
0x2261   :  { %v9636_v41 = vpop.f32.mrb[94].mxu0 }
0x2262   :  { %v11436_v50 = vpack.c.bf16 %v13843_v28, %v13843_v28  ;;  %v13844_v24 = vadd.f32 %v9636_v41, %v17505_v44  ;;  %v13772_v36 = vpop.f32.mrb[95].mxu0 }
0x2264   :  { %9960 = vst.msk [vmem:[%s18128_s25 + $0xa0] sm:$0xf] %vm9919_vm9, %v11436_v50  ;;  %v11437_v20 = vpack.c.bf16 %v13844_v24, %v13844_v24 }
0x2266   :  { %9961 = vst.msk [vmem:[%s18128_s25 + $0xa4] sm:$0xf] %vm9919_vm9, %v11437_v20 }
0x2267   :  { %v9641_v21 = vpop.f32.mrb[96].mxu0 }
0x2268   :  { %v13845_v19 = vadd.f32 %v9641_v21, %v17507_v49  ;;  %v13775_v18 = vpop.f32.mrb[97].mxu0 }
0x2269   :  { %v9644_v30 = vpop.f32.mrb[98].mxu0 }
0x226a   :  { %v11438_v2 = vpack.c.bf16 %v13845_v19, %v13845_v19  ;;  %v13846_v44 = vadd.f32 %v9644_v30, %v17509_v56  ;;  %v13776_v4 = vpop.f32.mrb[99].mxu0 }
0x226c   :  { %9962 = vst.msk [vmem:[%s18128_s25 + $0xa8] sm:$0xf] %vm9919_vm9, %v11438_v2  ;;  %v11439_v58 = vpack.c.bf16 %v13846_v44, %v13846_v44 }
0x226e   :  { %9963 = vst.msk [vmem:[%s18128_s25 + $0xac] sm:$0xf] %vm9919_vm9, %v11439_v58 }
0x226f   :  { %v9649_v63 = vpop.f32.mrb[100].mxu0 }
0x2270   :  { %v13847_v49 = vadd.f32 %v9649_v63, %v17511_v16  ;;  %v13779_v42 = vpop.f32.mrb[101].mxu0 }
0x2271   :  { %v9652_v51 = vpop.f32.mrb[102].mxu0 }
0x2272   :  { %v11440_v1 = vpack.c.bf16 %v13847_v49, %v13847_v49  ;;  %v13848_v56 = vadd.f32 %v9652_v51, %v17513_v3  ;;  %v13780_v46 = vpop.f32.mrb[103].mxu0 }
0x2274   :  { %9964 = vst.msk [vmem:[%s18128_s25 + $0xb0] sm:$0xf] %vm9919_vm9, %v11440_v1  ;;  %v11441_v32 = vpack.c.bf16 %v13848_v56, %v13848_v56 }
0x2276   :  { %9965 = vst.msk [vmem:[%s18128_s25 + $0xb4] sm:$0xf] %vm9919_vm9, %v11441_v32 }
0x2277   :  { %v9657_v48 = vpop.f32.mrb[104].mxu0 }
0x2278   :  { %v13849_v16 = vadd.f32 %v9657_v48, %v17515_v38  ;;  %v13783_v60 = vpop.f32.mrb[105].mxu0 }
0x2279   :  { %v9660_v39 = vpop.f32.mrb[106].mxu0 }
0x227a   :  { %v11442_v0 = vpack.c.bf16 %v13849_v16, %v13849_v16  ;;  %v13850_v3 = vadd.f32 %v9660_v39, %v17517_v7  ;;  %v13784_v14 = vpop.f32.mrb[107].mxu0 }
0x227c   :  { %9966 = vst.msk [vmem:[%s18128_s25 + $0xb8] sm:$0xf] %vm9919_vm9, %v11442_v0  ;;  %v11443_v59 = vpack.c.bf16 %v13850_v3, %v13850_v3 }
0x227e   :  { %9967 = vst.msk [vmem:[%s18128_s25 + $0xbc] sm:$0xf] %vm9919_vm9, %v11443_v59 }
0x227f   :  { %v9665_v10 = vpop.f32.mrb[108].mxu0 }
0x2280   :  { %v13851_v38 = vadd.f32 %v9665_v10, %v18156_v47  ;;  %v13787_v27 = vpop.f32.mrb[109].mxu0 }
0x2281   :  { %v9668_v6 = vpop.f32.mrb[110].mxu0 }
0x2282   :  { %v11444_v8 = vpack.c.bf16 %v13851_v38, %v13851_v38  ;;  %v13788_v52 = vpop.f32.mrb[111].mxu0 }
0x2284   :  { %9968 = vst.msk [vmem:[%s18128_s25 + $0xc0] sm:$0xf] %vm9919_vm9, %v11444_v8 }
0x2285   :  { %14699 = dma.done.wait [#allocation3], 32  }
0x2286   :  { %14700 = vsyncadd [#allocation3], 4294967264 }
0x2287   :  { %14701 = dma.done.wait [#allocation5], 32  }
0x2288   :  { %14702 = vsyncadd [#allocation5], 4294967264 }
0x2289   :  { %9999 = vsyncpa [#allocation3], 1 }
0x228a   :  { %10000 = vsyncpa [#allocation5], 1 }

// kernel: static_vae64_forward.9
= control target key start
LH: loop header
LB: loop body
LE: loop exit
PB: predicated region body
PF: predicated region fallthrough
CT: control target
= control target key end

     0   :  { %s1240_s12 = smov 0   ;;  %s1518_s0 = inlined_call_operand.vmem [shape: bf16[2048,128], index: 0, kind: input, shape index: {}]   ;;  %s1519_s1 = inlined_call_operand.vmem [shape: bf16[128,4], index: 1, kind: input, shape index: {}]   ;;  %s1520_s2 = inlined_call_operand.vmem [shape: f32[1,4], index: 2, kind: input, shape index: {}]   ;;  %s1521_s3 = inlined_call_operand.vmem [shape: f32[2048,4], index: 3, kind: output, shape index: {}]  }
   0x1 LB: > { %s976_s13 = sadd.s32 4294967295, %s1218_s12   ;;  %p980_p0 = scmp.ge.s32.totalorder %s1218_s12, 1  ;;  %s1218_s12 = sphi %s1240_s12, %s13_s12  }
   0x2   : > { %p138_p1 = scmp.lt.s32.totalorder %s1218_s12, 5 }
   0x4   : > { %p139_p2 = pnand %p980_p0, %p138_p1 }
   0x5   : > { %v1172_v0 = vld [vmem:[%s1519_s1] sm:$0xff] (!%p139_p2)   ;;  %s981_s16 = sshll.u32 (!%p139_p2), %s976_s13, 6  ;;  %v1173_v1 = vld [vmem:[%s1519_s1 + $0x8] sm:$0xff] (!%p139_p2)   ;;  %v1174_v2 = vld [vmem:[%s1519_s1 + $0x10] sm:$0xff] (!%p139_p2)   ;;  %vm855_vm0 = vcmask (!%p139_p2), 31744  }
   0x6   : > { %142 = sbr.rel (%p139_p2) target bundleno = 314 (0x13a), region = 32  ;;  %p163_p3 = scmp.lt.s32.totalorder (!%p139_p2), %s981_s16, 255  ;;  %1068 = vmatprep.subr.bf16.mxu0 (!%p139_p2), %v1172_v0  ;;  %1148 = vmatprep.subr.bf16.mxu1 (!%p139_p2), %v1172_v0  ;;  %v1175_v3 = vld [vmem:[%s1519_s1 + $0x18] sm:$0xff] (!%p139_p2)   ;;  %v1176_v6 = vld [vmem:[%s1519_s1 + $0x20] sm:$0xff] (!%p139_p2)   ;;  %v1177_v7 = vld [vmem:[%s1519_s1 + $0x28] sm:$0xff] (!%p139_p2)  }
   0x7   : > { %1069 = vmatpush3.bf16.msra.mxu0 (!%p139_p2), %v1172_v0  ;;  %1156 = vmatpush3.bf16.msra.mxu1 (!%p139_p2), %v1172_v0  ;;  %v1178_v8 = vld [vmem:[%s1519_s1 + $0x30] sm:$0xff] (!%p139_p2)   ;;  %v1179_v9 = vld [vmem:[%s1519_s1 + $0x38] sm:$0xff] (!%p139_p2)   ;;  %v1315_v40 = vld [vmem:[%s1520_s2] ss:$0 sm:$0xff] (!%p139_p2) }
   0x8   : > { %1070 = vmatprep.subr.bf16.mxu0 (!%p139_p2), %v1173_v1  ;;  %1149 = vmatprep.subr.bf16.mxu1 (!%p139_p2), %v1173_v1 }
   0xb   : > { %1071 = vmatpush3.bf16.msra.mxu0 (!%p139_p2), %v1173_v1  ;;  %1157 = vmatpush3.bf16.msra.mxu1 (!%p139_p2), %v1173_v1 }
   0xc   : > { %1072 = vmatprep.subr.bf16.mxu0 (!%p139_p2), %v1174_v2  ;;  %1150 = vmatprep.subr.bf16.mxu1 (!%p139_p2), %v1174_v2 }
   0xd   : > { %s1523_s16 = smov (!%p163_p3, %s981_s16), 255 }
   0xe   : > { %s982_s21 = sshll.u32 %s1523_s16, 2  ;;  %s984_s10 = sshll.u32 %s1523_s16, 3 }
   0xf   : > { %s1263_s24 = scalar_lea.vmem %s1518_s0, %s982_s21  ;;  %1073 = vmatpush3.bf16.msra.mxu0 %v1174_v2  ;;  %1158 = vmatpush3.bf16.msra.mxu1 %v1174_v2  ;;  %s1323_s14 = scalar_lea.vmem %s1521_s3, %s984_s10 }
  0x10   : > { %v1180_v4 = vld [vmem:[%s1263_s24] sm:$0xff]   ;;  %1074 = vmatprep.subr.bf16.mxu0 %v1175_v3  ;;  %1151 = vmatprep.subr.bf16.mxu1 %v1175_v3  ;;  %v1182_v10 = vld [vmem:[%s1263_s24 + $0x8] sm:$0xff]   ;;  %v1184_v12 = vld [vmem:[%s1263_s24 + $0x10] sm:$0xff]  }
  0x11   : > { %v1181_v5 = vld [vmem:[%s1263_s24 + $0x80] sm:$0xff]   ;;  %1084 = vmatprep.mubr.bf16.mxu0 %v1180_v4  ;;  %v1183_v11 = vld [vmem:[%s1263_s24 + $0x88] sm:$0xff]   ;;  %v1185_v13 = vld [vmem:[%s1263_s24 + $0x90] sm:$0xff]  }
  0x12   : > { %1116 = vmatprep.mubr.bf16.mxu1 %v1181_v5  ;;  %v1186_v14 = vld [vmem:[%s1263_s24 + $0x18] sm:$0xff]   ;;  %v1188_v16 = vld [vmem:[%s1263_s24 + $0x20] sm:$0xff]   ;;  %v1190_v18 = vld [vmem:[%s1263_s24 + $0x28] sm:$0xff]  }
  0x13   : > { %1075 = vmatpush3.bf16.msra.mxu0 %v1175_v3  ;;  %1159 = vmatpush3.bf16.msra.mxu1 %v1175_v3  ;;  %v1187_v15 = vld [vmem:[%s1263_s24 + $0x98] sm:$0xff]   ;;  %v1189_v17 = vld [vmem:[%s1263_s24 + $0xa0] sm:$0xff]   ;;  %v1191_v19 = vld [vmem:[%s1263_s24 + $0xa8] sm:$0xff]  }
  0x14   : > { %1076 = vmatprep.subr.bf16.mxu0 %v1176_v6  ;;  %1152 = vmatprep.subr.bf16.mxu1 %v1176_v6  ;;  %v1192_v20 = vld [vmem:[%s1263_s24 + $0x30] sm:$0xff]   ;;  %v1194_v22 = vld [vmem:[%s1263_s24 + $0x38] sm:$0xff]   ;;  %v1196_v24 = vld [vmem:[%s1263_s24 + $0x40] sm:$0xff]  }
  0x15   : > { %v1193_v21 = vld [vmem:[%s1263_s24 + $0xb0] sm:$0xff]   ;;  %v1195_v23 = vld [vmem:[%s1263_s24 + $0xb8] sm:$0xff]   ;;  %v1197_v25 = vld [vmem:[%s1263_s24 + $0xc0] sm:$0xff]  }
  0x16   : > { %v1198_v26 = vld [vmem:[%s1263_s24 + $0x48] sm:$0xff]   ;;  %v1200_v28 = vld [vmem:[%s1263_s24 + $0x50] sm:$0xff]   ;;  %v1202_v30 = vld [vmem:[%s1263_s24 + $0x58] sm:$0xff]  }
  0x17   : > { %1077 = vmatpush3.bf16.msra.mxu0 %v1176_v6  ;;  %1160 = vmatpush3.bf16.msra.mxu1 %v1176_v6  ;;  %v1199_v27 = vld [vmem:[%s1263_s24 + $0xc8] sm:$0xff]   ;;  %v1201_v29 = vld [vmem:[%s1263_s24 + $0xd0] sm:$0xff]   ;;  %v1203_v31 = vld [vmem:[%s1263_s24 + $0xd8] sm:$0xff]  }
  0x18   : > { %1078 = vmatprep.subr.bf16.mxu0 %v1177_v7  ;;  %1153 = vmatprep.subr.bf16.mxu1 %v1177_v7  ;;  %v1204_v32 = vld [vmem:[%s1263_s24 + $0x60] sm:$0xff]   ;;  %v1206_v34 = vld [vmem:[%s1263_s24 + $0x68] sm:$0xff]   ;;  %v1208_v36 = vld [vmem:[%s1263_s24 + $0x70] sm:$0xff]  }
  0x19   : > { %v1205_v33 = vld [vmem:[%s1263_s24 + $0xe0] sm:$0xff]   ;;  %v1207_v35 = vld [vmem:[%s1263_s24 + $0xe8] sm:$0xff]   ;;  %v1209_v37 = vld [vmem:[%s1263_s24 + $0xf0] sm:$0xff]  }
  0x1a   : > { %v1210_v38 = vld [vmem:[%s1263_s24 + $0x78] sm:$0xff]  }
  0x1b   : > { %1079 = vmatpush3.bf16.msra.mxu0 %v1177_v7  ;;  %1161 = vmatpush3.bf16.msra.mxu1 %v1177_v7  ;;  %v1211_v39 = vld [vmem:[%s1263_s24 + $0xf8] sm:$0xff]  }
  0x1c   : > { %1080 = vmatprep.subr.bf16.mxu0 %v1178_v8  ;;  %1154 = vmatprep.subr.bf16.mxu1 %v1178_v8 }
  0x1f   : > { %1081 = vmatpush3.bf16.msra.mxu0 %v1178_v8  ;;  %1162 = vmatpush3.bf16.msra.mxu1 %v1178_v8 }
  0x20   : > { %1082 = vmatprep.subr.bf16.mxu0 %v1179_v9  ;;  %1155 = vmatprep.subr.bf16.mxu1 %v1179_v9 }
  0x23   : > { %1083 = vmatpush3.bf16.msra.mxu0 %v1179_v9  ;;  %1163 = vmatpush3.bf16.msra.mxu1 %v1179_v9 }
  0x26   : > { %1085 = vmatmul.mubr.bf16.vlgmr.msra.gmra.mrb[0].mxu0 %v1182_v10  ;;  %1117 = vmatmul.mubr.bf16.vlgmr.msra.gmra.mrb[0].mxu1 %v1183_v11 }
  0x27   : > { %1088 = vmatprep.mubr.bf16.mxu0 %v1184_v12  ;;  %1120 = vmatprep.mubr.bf16.mxu1 %v1185_v13 }
  0x2e   : > { %1089 = vmatmul.mubr.bf16.gmra.mrb[4].mxu0 %v1186_v14  ;;  %1121 = vmatmul.mubr.bf16.gmra.mrb[4].mxu1 %v1187_v15 }
  0x2f   : > { %1092 = vmatprep.mubr.bf16.mxu0 %v1188_v16  ;;  %1124 = vmatprep.mubr.bf16.mxu1 %v1189_v17 }
  0x36   : > { %1093 = vmatmul.mubr.bf16.gmra.mrb[8].mxu0 %v1190_v18  ;;  %1125 = vmatmul.mubr.bf16.gmra.mrb[8].mxu1 %v1191_v19 }
  0x37   : > { %1096 = vmatprep.mubr.bf16.mxu0 %v1192_v20  ;;  %1128 = vmatprep.mubr.bf16.mxu1 %v1193_v21 }
  0x3e   : > { %1097 = vmatmul.mubr.bf16.gmra.mrb[12].mxu0 %v1194_v22  ;;  %1129 = vmatmul.mubr.bf16.gmra.mrb[12].mxu1 %v1195_v23 }
  0x3f   : > { %1100 = vmatprep.mubr.bf16.mxu0 %v1196_v24  ;;  %1132 = vmatprep.mubr.bf16.mxu1 %v1197_v25 }
  0x46   : > { %1101 = vmatmul.mubr.bf16.gmra.mrb[16].mxu0 %v1198_v26  ;;  %1133 = vmatmul.mubr.bf16.gmra.mrb[16].mxu1 %v1199_v27 }
  0x47   : > { %1104 = vmatprep.mubr.bf16.mxu0 %v1200_v28  ;;  %1136 = vmatprep.mubr.bf16.mxu1 %v1201_v29 }
  0x4e   : > { %1105 = vmatmul.mubr.bf16.gmra.mrb[20].mxu0 %v1202_v30  ;;  %1137 = vmatmul.mubr.bf16.gmra.mrb[20].mxu1 %v1203_v31 }
  0x4f   : > { %1108 = vmatprep.mubr.bf16.mxu0 %v1204_v32  ;;  %1140 = vmatprep.mubr.bf16.mxu1 %v1205_v33 }
  0x56   : > { %1109 = vmatmul.mubr.bf16.gmra.mrb[24].mxu0 %v1206_v34  ;;  %1141 = vmatmul.mubr.bf16.gmra.mrb[24].mxu1 %v1207_v35 }
  0x57   : > { %1112 = vmatprep.mubr.bf16.mxu0 %v1208_v36  ;;  %1144 = vmatprep.mubr.bf16.mxu1 %v1209_v37 }
  0x5e   : > { %1113 = vmatmul.mubr.bf16.gmra.mrb[28].mxu0 %v1210_v38  ;;  %1145 = vmatmul.mubr.bf16.gmra.mrb[28].mxu1 %v1211_v39 }
  0xf9   : > { %v1086_v41 = vpop.f32.mrb[0].mxu0  ;;  %v1118_v42 = vpop.f32.mrb[0].mxu1 }
  0xfa   : > { %v545_v43 = vadd.f32 %v1086_v41, %v1315_v40  ;;  %v673_v44 = vadd.f32 %v1118_v42, %v1315_v40  ;;  %v536_v45 = vpop.f32.mrb[1].mxu0  ;;  %v664_v46 = vpop.f32.mrb[1].mxu1 }
  0xfb   : > { %v537_v47 = vadd.f32 %v1315_v40, %v536_v45  ;;  %v665_v48 = vadd.f32 %v1315_v40, %v664_v46  ;;  %v1087_v49 = vpop.f32.mrb[2].mxu0  ;;  %v1119_v50 = vpop.f32.mrb[2].mxu1 }
  0xfc   : > { %v793_v51 = vmax.f32 %v545_v43, 0.0  ;;  %v825_v52 = vmax.f32 %v673_v44, 0.0  ;;  %v548_v53 = vadd.f32 %v1087_v49, %v1315_v40  ;;  %v676_v54 = vadd.f32 %v1119_v50, %v1315_v40  ;;  %v539_v55 = vpop.f32.mrb[3].mxu0  ;;  %v667_v56 = vpop.f32.mrb[3].mxu1 }
  0xfd   : > { %v791_v57 = vmax.f32 %v537_v47, 0.0  ;;  %v823_v58 = vmax.f32 %v665_v48, 0.0  ;;  %v540_v59 = vadd.f32 %v1315_v40, %v539_v55  ;;  %v668_v60 = vadd.f32 %v1315_v40, %v667_v56 }
  0xfe   : > { %858 = vst.msk [vmem:[%s1323_s14 + $0x10] sm:$0xff] %vm855_vm0, %v793_v51  ;;  %890 = vst.msk [vmem:[%s1323_s14 + $0x110] sm:$0xff] %vm855_vm0, %v825_v52  ;;  %v794_v61 = vmax.f32 %v548_v53, 0.0  ;;  %v826_v62 = vmax.f32 %v676_v54, 0.0 }
  0xff   : > { %856 = vst.msk [vmem:[%s1323_s14] sm:$0xff] %vm855_vm0, %v791_v57  ;;  %888 = vst.msk [vmem:[%s1323_s14 + $0x100] sm:$0xff] %vm855_vm0, %v823_v58  ;;  %v792_v63 = vmax.f32 %v540_v59, 0.0  ;;  %v824_v0 = vmax.f32 %v668_v60, 0.0 }
 0x100   : > { %859 = vst.msk [vmem:[%s1323_s14 + $0x18] sm:$0xff] %vm855_vm0, %v794_v61  ;;  %891 = vst.msk [vmem:[%s1323_s14 + $0x118] sm:$0xff] %vm855_vm0, %v826_v62 }
 0x101   : > { %857 = vst.msk [vmem:[%s1323_s14 + $0x8] sm:$0xff] %vm855_vm0, %v792_v63  ;;  %889 = vst.msk [vmem:[%s1323_s14 + $0x108] sm:$0xff] %vm855_vm0, %v824_v0  ;;  %v1090_v1 = vpop.f32.mrb[4].mxu0  ;;  %v1122_v2 = vpop.f32.mrb[4].mxu1 }
 0x102   : > { %v561_v3 = vadd.f32 %v1090_v1, %v1315_v40  ;;  %v689_v4 = vadd.f32 %v1122_v2, %v1315_v40  ;;  %v552_v5 = vpop.f32.mrb[5].mxu0  ;;  %v680_v6 = vpop.f32.mrb[5].mxu1 }
 0x103   : > { %v553_v7 = vadd.f32 %v1315_v40, %v552_v5  ;;  %v681_v8 = vadd.f32 %v1315_v40, %v680_v6  ;;  %v1091_v9 = vpop.f32.mrb[6].mxu0  ;;  %v1123_v10 = vpop.f32.mrb[6].mxu1 }
 0x104   : > { %v797_v11 = vmax.f32 %v561_v3, 0.0  ;;  %v829_v12 = vmax.f32 %v689_v4, 0.0  ;;  %v564_v13 = vadd.f32 %v1091_v9, %v1315_v40  ;;  %v692_v14 = vadd.f32 %v1123_v10, %v1315_v40  ;;  %v555_v15 = vpop.f32.mrb[7].mxu0  ;;  %v683_v16 = vpop.f32.mrb[7].mxu1 }
 0x105   : > { %v795_v17 = vmax.f32 %v553_v7, 0.0  ;;  %v827_v18 = vmax.f32 %v681_v8, 0.0  ;;  %v556_v19 = vadd.f32 %v1315_v40, %v555_v15  ;;  %v684_v20 = vadd.f32 %v1315_v40, %v683_v16 }
 0x106   : > { %862 = vst.msk [vmem:[%s1323_s14 + $0x30] sm:$0xff] %vm855_vm0, %v797_v11  ;;  %894 = vst.msk [vmem:[%s1323_s14 + $0x130] sm:$0xff] %vm855_vm0, %v829_v12  ;;  %v798_v21 = vmax.f32 %v564_v13, 0.0  ;;  %v830_v22 = vmax.f32 %v692_v14, 0.0 }
 0x107   : > { %860 = vst.msk [vmem:[%s1323_s14 + $0x20] sm:$0xff] %vm855_vm0, %v795_v17  ;;  %892 = vst.msk [vmem:[%s1323_s14 + $0x120] sm:$0xff] %vm855_vm0, %v827_v18  ;;  %v796_v23 = vmax.f32 %v556_v19, 0.0  ;;  %v828_v24 = vmax.f32 %v684_v20, 0.0 }
 0x108   : > { %863 = vst.msk [vmem:[%s1323_s14 + $0x38] sm:$0xff] %vm855_vm0, %v798_v21  ;;  %895 = vst.msk [vmem:[%s1323_s14 + $0x138] sm:$0xff] %vm855_vm0, %v830_v22 }
 0x109   : > { %861 = vst.msk [vmem:[%s1323_s14 + $0x28] sm:$0xff] %vm855_vm0, %v796_v23  ;;  %893 = vst.msk [vmem:[%s1323_s14 + $0x128] sm:$0xff] %vm855_vm0, %v828_v24  ;;  %v1094_v25 = vpop.f32.mrb[8].mxu0  ;;  %v1126_v26 = vpop.f32.mrb[8].mxu1 }
 0x10a   : > { %v577_v27 = vadd.f32 %v1094_v25, %v1315_v40  ;;  %v705_v28 = vadd.f32 %v1126_v26, %v1315_v40  ;;  %v568_v29 = vpop.f32.mrb[9].mxu0  ;;  %v696_v30 = vpop.f32.mrb[9].mxu1 }
 0x10b   : > { %v569_v31 = vadd.f32 %v1315_v40, %v568_v29  ;;  %v697_v32 = vadd.f32 %v1315_v40, %v696_v30  ;;  %v1095_v33 = vpop.f32.mrb[10].mxu0  ;;  %v1127_v34 = vpop.f32.mrb[10].mxu1 }
 0x10c   : > { %v801_v35 = vmax.f32 %v577_v27, 0.0  ;;  %v833_v36 = vmax.f32 %v705_v28, 0.0  ;;  %v580_v37 = vadd.f32 %v1095_v33, %v1315_v40  ;;  %v708_v38 = vadd.f32 %v1127_v34, %v1315_v40  ;;  %v571_v39 = vpop.f32.mrb[11].mxu0  ;;  %v699_v41 = vpop.f32.mrb[11].mxu1 }
 0x10d   : > { %v799_v42 = vmax.f32 %v569_v31, 0.0  ;;  %v831_v43 = vmax.f32 %v697_v32, 0.0  ;;  %v572_v44 = vadd.f32 %v1315_v40, %v571_v39  ;;  %v700_v45 = vadd.f32 %v1315_v40, %v699_v41 }
 0x10e   : > { %866 = vst.msk [vmem:[%s1323_s14 + $0x50] sm:$0xff] %vm855_vm0, %v801_v35  ;;  %898 = vst.msk [vmem:[%s1323_s14 + $0x150] sm:$0xff] %vm855_vm0, %v833_v36  ;;  %v802_v46 = vmax.f32 %v580_v37, 0.0  ;;  %v834_v47 = vmax.f32 %v708_v38, 0.0 }
 0x10f   : > { %864 = vst.msk [vmem:[%s1323_s14 + $0x40] sm:$0xff] %vm855_vm0, %v799_v42  ;;  %896 = vst.msk [vmem:[%s1323_s14 + $0x140] sm:$0xff] %vm855_vm0, %v831_v43  ;;  %v800_v48 = vmax.f32 %v572_v44, 0.0  ;;  %v832_v49 = vmax.f32 %v700_v45, 0.0 }
 0x110   : > { %867 = vst.msk [vmem:[%s1323_s14 + $0x58] sm:$0xff] %vm855_vm0, %v802_v46  ;;  %899 = vst.msk [vmem:[%s1323_s14 + $0x158] sm:$0xff] %vm855_vm0, %v834_v47 }
 0x111   : > { %865 = vst.msk [vmem:[%s1323_s14 + $0x48] sm:$0xff] %vm855_vm0, %v800_v48  ;;  %897 = vst.msk [vmem:[%s1323_s14 + $0x148] sm:$0xff] %vm855_vm0, %v832_v49  ;;  %v1098_v50 = vpop.f32.mrb[12].mxu0  ;;  %v1130_v51 = vpop.f32.mrb[12].mxu1 }
 0x112   : > { %v593_v52 = vadd.f32 %v1098_v50, %v1315_v40  ;;  %v721_v53 = vadd.f32 %v1130_v51, %v1315_v40  ;;  %v584_v54 = vpop.f32.mrb[13].mxu0  ;;  %v712_v55 = vpop.f32.mrb[13].mxu1 }
 0x113   : > { %v585_v56 = vadd.f32 %v1315_v40, %v584_v54  ;;  %v713_v57 = vadd.f32 %v1315_v40, %v712_v55  ;;  %v1099_v58 = vpop.f32.mrb[14].mxu0  ;;  %v1131_v59 = vpop.f32.mrb[14].mxu1 }
 0x114   : > { %v805_v60 = vmax.f32 %v593_v52, 0.0  ;;  %v837_v61 = vmax.f32 %v721_v53, 0.0  ;;  %v596_v62 = vadd.f32 %v1099_v58, %v1315_v40  ;;  %v724_v63 = vadd.f32 %v1131_v59, %v1315_v40  ;;  %v587_v0 = vpop.f32.mrb[15].mxu0  ;;  %v715_v1 = vpop.f32.mrb[15].mxu1 }
 0x115   : > { %v803_v2 = vmax.f32 %v585_v56, 0.0  ;;  %v835_v3 = vmax.f32 %v713_v57, 0.0  ;;  %v588_v4 = vadd.f32 %v1315_v40, %v587_v0  ;;  %v716_v5 = vadd.f32 %v1315_v40, %v715_v1 }
 0x116   : > { %870 = vst.msk [vmem:[%s1323_s14 + $0x70] sm:$0xff] %vm855_vm0, %v805_v60  ;;  %902 = vst.msk [vmem:[%s1323_s14 + $0x170] sm:$0xff] %vm855_vm0, %v837_v61  ;;  %v806_v6 = vmax.f32 %v596_v62, 0.0  ;;  %v838_v7 = vmax.f32 %v724_v63, 0.0 }
 0x117   : > { %868 = vst.msk [vmem:[%s1323_s14 + $0x60] sm:$0xff] %vm855_vm0, %v803_v2  ;;  %900 = vst.msk [vmem:[%s1323_s14 + $0x160] sm:$0xff] %vm855_vm0, %v835_v3  ;;  %v804_v8 = vmax.f32 %v588_v4, 0.0  ;;  %v836_v9 = vmax.f32 %v716_v5, 0.0 }
 0x118   : > { %871 = vst.msk [vmem:[%s1323_s14 + $0x78] sm:$0xff] %vm855_vm0, %v806_v6  ;;  %903 = vst.msk [vmem:[%s1323_s14 + $0x178] sm:$0xff] %vm855_vm0, %v838_v7 }
 0x119   : > { %869 = vst.msk [vmem:[%s1323_s14 + $0x68] sm:$0xff] %vm855_vm0, %v804_v8  ;;  %901 = vst.msk [vmem:[%s1323_s14 + $0x168] sm:$0xff] %vm855_vm0, %v836_v9  ;;  %v1102_v10 = vpop.f32.mrb[16].mxu0  ;;  %v1134_v11 = vpop.f32.mrb[16].mxu1 }
 0x11a   : > { %v609_v12 = vadd.f32 %v1102_v10, %v1315_v40  ;;  %v737_v13 = vadd.f32 %v1134_v11, %v1315_v40  ;;  %v600_v14 = vpop.f32.mrb[17].mxu0  ;;  %v728_v15 = vpop.f32.mrb[17].mxu1 }
 0x11b   : > { %v601_v16 = vadd.f32 %v1315_v40, %v600_v14  ;;  %v729_v17 = vadd.f32 %v1315_v40, %v728_v15  ;;  %v1103_v18 = vpop.f32.mrb[18].mxu0  ;;  %v1135_v19 = vpop.f32.mrb[18].mxu1 }
 0x11c   : > { %v809_v20 = vmax.f32 %v609_v12, 0.0  ;;  %v841_v21 = vmax.f32 %v737_v13, 0.0  ;;  %v612_v22 = vadd.f32 %v1103_v18, %v1315_v40  ;;  %v740_v23 = vadd.f32 %v1135_v19, %v1315_v40  ;;  %v603_v24 = vpop.f32.mrb[19].mxu0  ;;  %v731_v25 = vpop.f32.mrb[19].mxu1 }
 0x11d   : > { %v807_v26 = vmax.f32 %v601_v16, 0.0  ;;  %v839_v27 = vmax.f32 %v729_v17, 0.0  ;;  %v604_v28 = vadd.f32 %v1315_v40, %v603_v24  ;;  %v732_v29 = vadd.f32 %v1315_v40, %v731_v25 }
 0x11e   : > { %874 = vst.msk [vmem:[%s1323_s14 + $0x90] sm:$0xff] %vm855_vm0, %v809_v20  ;;  %906 = vst.msk [vmem:[%s1323_s14 + $0x190] sm:$0xff] %vm855_vm0, %v841_v21  ;;  %v810_v30 = vmax.f32 %v612_v22, 0.0  ;;  %v842_v31 = vmax.f32 %v740_v23, 0.0 }
 0x11f   : > { %872 = vst.msk [vmem:[%s1323_s14 + $0x80] sm:$0xff] %vm855_vm0, %v807_v26  ;;  %904 = vst.msk [vmem:[%s1323_s14 + $0x180] sm:$0xff] %vm855_vm0, %v839_v27  ;;  %v808_v32 = vmax.f32 %v604_v28, 0.0  ;;  %v840_v33 = vmax.f32 %v732_v29, 0.0 }
 0x120   : > { %875 = vst.msk [vmem:[%s1323_s14 + $0x98] sm:$0xff] %vm855_vm0, %v810_v30  ;;  %907 = vst.msk [vmem:[%s1323_s14 + $0x198] sm:$0xff] %vm855_vm0, %v842_v31 }
 0x121   : > { %873 = vst.msk [vmem:[%s1323_s14 + $0x88] sm:$0xff] %vm855_vm0, %v808_v32  ;;  %905 = vst.msk [vmem:[%s1323_s14 + $0x188] sm:$0xff] %vm855_vm0, %v840_v33  ;;  %v1106_v34 = vpop.f32.mrb[20].mxu0  ;;  %v1138_v35 = vpop.f32.mrb[20].mxu1 }
 0x122   : > { %v625_v36 = vadd.f32 %v1106_v34, %v1315_v40  ;;  %v753_v37 = vadd.f32 %v1138_v35, %v1315_v40  ;;  %v616_v38 = vpop.f32.mrb[21].mxu0  ;;  %v744_v39 = vpop.f32.mrb[21].mxu1 }
 0x123   : > { %v617_v41 = vadd.f32 %v1315_v40, %v616_v38  ;;  %v745_v42 = vadd.f32 %v1315_v40, %v744_v39  ;;  %v1107_v43 = vpop.f32.mrb[22].mxu0  ;;  %v1139_v44 = vpop.f32.mrb[22].mxu1 }
 0x124   : > { %v813_v45 = vmax.f32 %v625_v36, 0.0  ;;  %v845_v46 = vmax.f32 %v753_v37, 0.0  ;;  %v628_v47 = vadd.f32 %v1107_v43, %v1315_v40  ;;  %v756_v48 = vadd.f32 %v1139_v44, %v1315_v40  ;;  %v619_v49 = vpop.f32.mrb[23].mxu0  ;;  %v747_v50 = vpop.f32.mrb[23].mxu1 }
 0x125   : > { %v811_v51 = vmax.f32 %v617_v41, 0.0  ;;  %v843_v52 = vmax.f32 %v745_v42, 0.0  ;;  %v620_v53 = vadd.f32 %v1315_v40, %v619_v49  ;;  %v748_v54 = vadd.f32 %v1315_v40, %v747_v50 }
 0x126   : > { %878 = vst.msk [vmem:[%s1323_s14 + $0xb0] sm:$0xff] %vm855_vm0, %v813_v45  ;;  %910 = vst.msk [vmem:[%s1323_s14 + $0x1b0] sm:$0xff] %vm855_vm0, %v845_v46  ;;  %v814_v55 = vmax.f32 %v628_v47, 0.0  ;;  %v846_v56 = vmax.f32 %v756_v48, 0.0 }
 0x127   : > { %876 = vst.msk [vmem:[%s1323_s14 + $0xa0] sm:$0xff] %vm855_vm0, %v811_v51  ;;  %908 = vst.msk [vmem:[%s1323_s14 + $0x1a0] sm:$0xff] %vm855_vm0, %v843_v52  ;;  %v812_v57 = vmax.f32 %v620_v53, 0.0  ;;  %v844_v58 = vmax.f32 %v748_v54, 0.0 }
 0x128   : > { %879 = vst.msk [vmem:[%s1323_s14 + $0xb8] sm:$0xff] %vm855_vm0, %v814_v55  ;;  %911 = vst.msk [vmem:[%s1323_s14 + $0x1b8] sm:$0xff] %vm855_vm0, %v846_v56 }
 0x129   : > { %877 = vst.msk [vmem:[%s1323_s14 + $0xa8] sm:$0xff] %vm855_vm0, %v812_v57  ;;  %909 = vst.msk [vmem:[%s1323_s14 + $0x1a8] sm:$0xff] %vm855_vm0, %v844_v58  ;;  %v1110_v59 = vpop.f32.mrb[24].mxu0  ;;  %v1142_v60 = vpop.f32.mrb[24].mxu1 }
 0x12a   : > { %v641_v61 = vadd.f32 %v1110_v59, %v1315_v40  ;;  %v769_v62 = vadd.f32 %v1142_v60, %v1315_v40  ;;  %v632_v63 = vpop.f32.mrb[25].mxu0  ;;  %v760_v0 = vpop.f32.mrb[25].mxu1 }
 0x12b   : > { %v633_v1 = vadd.f32 %v1315_v40, %v632_v63  ;;  %v761_v2 = vadd.f32 %v1315_v40, %v760_v0  ;;  %v1111_v3 = vpop.f32.mrb[26].mxu0  ;;  %v1143_v4 = vpop.f32.mrb[26].mxu1 }
 0x12c   : > { %v817_v5 = vmax.f32 %v641_v61, 0.0  ;;  %v849_v6 = vmax.f32 %v769_v62, 0.0  ;;  %v644_v7 = vadd.f32 %v1111_v3, %v1315_v40  ;;  %v772_v8 = vadd.f32 %v1143_v4, %v1315_v40  ;;  %v635_v9 = vpop.f32.mrb[27].mxu0  ;;  %v763_v10 = vpop.f32.mrb[27].mxu1 }
 0x12d   : > { %v815_v11 = vmax.f32 %v633_v1, 0.0  ;;  %v847_v12 = vmax.f32 %v761_v2, 0.0  ;;  %v636_v13 = vadd.f32 %v1315_v40, %v635_v9  ;;  %v764_v14 = vadd.f32 %v1315_v40, %v763_v10 }
 0x12e   : > { %882 = vst.msk [vmem:[%s1323_s14 + $0xd0] sm:$0xff] %vm855_vm0, %v817_v5  ;;  %914 = vst.msk [vmem:[%s1323_s14 + $0x1d0] sm:$0xff] %vm855_vm0, %v849_v6  ;;  %v818_v15 = vmax.f32 %v644_v7, 0.0  ;;  %v850_v16 = vmax.f32 %v772_v8, 0.0 }
 0x12f   : > { %880 = vst.msk [vmem:[%s1323_s14 + $0xc0] sm:$0xff] %vm855_vm0, %v815_v11  ;;  %912 = vst.msk [vmem:[%s1323_s14 + $0x1c0] sm:$0xff] %vm855_vm0, %v847_v12  ;;  %v816_v17 = vmax.f32 %v636_v13, 0.0  ;;  %v848_v18 = vmax.f32 %v764_v14, 0.0 }
 0x130   : > { %883 = vst.msk [vmem:[%s1323_s14 + $0xd8] sm:$0xff] %vm855_vm0, %v818_v15  ;;  %915 = vst.msk [vmem:[%s1323_s14 + $0x1d8] sm:$0xff] %vm855_vm0, %v850_v16 }
 0x131   : > { %881 = vst.msk [vmem:[%s1323_s14 + $0xc8] sm:$0xff] %vm855_vm0, %v816_v17  ;;  %913 = vst.msk [vmem:[%s1323_s14 + $0x1c8] sm:$0xff] %vm855_vm0, %v848_v18  ;;  %v1114_v19 = vpop.f32.mrb[28].mxu0  ;;  %v1146_v20 = vpop.f32.mrb[28].mxu1 }
 0x132   : > { %v657_v21 = vadd.f32 %v1114_v19, %v1315_v40  ;;  %v785_v22 = vadd.f32 %v1146_v20, %v1315_v40  ;;  %v648_v23 = vpop.f32.mrb[29].mxu0  ;;  %v776_v24 = vpop.f32.mrb[29].mxu1 }
 0x133   : > { %v649_v25 = vadd.f32 %v1315_v40, %v648_v23  ;;  %v777_v26 = vadd.f32 %v1315_v40, %v776_v24  ;;  %v1115_v27 = vpop.f32.mrb[30].mxu0  ;;  %v1147_v28 = vpop.f32.mrb[30].mxu1 }
 0x134   : > { %v821_v29 = vmax.f32 %v657_v21, 0.0  ;;  %v853_v30 = vmax.f32 %v785_v22, 0.0  ;;  %v660_v31 = vadd.f32 %v1115_v27, %v1315_v40  ;;  %v788_v32 = vadd.f32 %v1147_v28, %v1315_v40  ;;  %v651_v33 = vpop.f32.mrb[31].mxu0  ;;  %v779_v34 = vpop.f32.mrb[31].mxu1 }
 0x135   : > { %v819_v35 = vmax.f32 %v649_v25, 0.0  ;;  %v851_v36 = vmax.f32 %v777_v26, 0.0  ;;  %v652_v37 = vadd.f32 %v1315_v40, %v651_v33  ;;  %v780_v38 = vadd.f32 %v1315_v40, %v779_v34 }
 0x136   : > { %886 = vst.msk [vmem:[%s1323_s14 + $0xf0] sm:$0xff] %vm855_vm0, %v821_v29  ;;  %918 = vst.msk [vmem:[%s1323_s14 + $0x1f0] sm:$0xff] %vm855_vm0, %v853_v30  ;;  %v822_v39 = vmax.f32 %v660_v31, 0.0  ;;  %v854_v41 = vmax.f32 %v788_v32, 0.0 }
 0x137   : > { %884 = vst.msk [vmem:[%s1323_s14 + $0xe0] sm:$0xff] %vm855_vm0, %v819_v35  ;;  %916 = vst.msk [vmem:[%s1323_s14 + $0x1e0] sm:$0xff] %vm855_vm0, %v851_v36  ;;  %v820_v42 = vmax.f32 %v652_v37, 0.0  ;;  %v852_v43 = vmax.f32 %v780_v38, 0.0 }
 0x138   : > { %887 = vst.msk [vmem:[%s1323_s14 + $0xf8] sm:$0xff] %vm855_vm0, %v822_v39  ;;  %919 = vst.msk [vmem:[%s1323_s14 + $0x1f8] sm:$0xff] %vm855_vm0, %v854_v41 }
 0x139   : > { %885 = vst.msk [vmem:[%s1323_s14 + $0xe8] sm:$0xff] %vm855_vm0, %v820_v42  ;;  %917 = vst.msk [vmem:[%s1323_s14 + $0x1e8] sm:$0xff] %vm855_vm0, %v852_v43 }
 0x13a PF: > { %s13_s12 = sadd.s32 1, %s1218_s12  }
 0x13b   : > { %p10_p4 = scmp.ge.s32.totalorder %s13_s12, 6  }
 0x13d   :  { %12 = sbr.rel (!%p10_p4) target bundleno = 1 (0x1), region = 62 }

</bundles_post_ra>
